<compile_context>
chip_gen: v7x
topology: tpu7x:2x2x1
jax: 0.10.0
libtpu: 0.0.40
codegen_flags: <defaults>
</compile_context>

<pallas_src>
import functools

import jax
import jax.numpy as jnp
import numpy as np
from jax import lax
from jax.experimental import pallas as pl
from jax.experimental.pallas import tpu as pltpu

EPS = 1e-5


def _round_up(v, m):
    return ((v + m - 1) // m) * m


@functools.lru_cache(maxsize=None)
def _vmem_cap():
    # v4/v5/v6 have 128 MiB physical VMEM, v7x only 64 MiB -> per-chip caps.
    try:
        kind = jax.devices()[0].device_kind.lower()
    except Exception:  # pragma: no cover
        kind = ""
    if any(v in kind for v in ("v4", "v5", "v6")):
        return 96 * 1024 * 1024
    return 40 * 1024 * 1024


def _clamp_vmem(est):
    return int(min(max(est, 16 * 1024 * 1024), _vmem_cap()))


# ----------------------------------------------------------------------------
# Pallas kernels
# ----------------------------------------------------------------------------
@functools.lru_cache(maxsize=None)
def _get_matmul_call(Mpad, K, Npad, TM, relu, out_dtype_name):
    """(Mpad, K) bf16 @ (K, Npad) bf16 + bias, f32 accumulate, M-tiled grid."""
    out_dtype = jnp.dtype(out_dtype_name)

    def kernel(x_ref, w_ref, b_ref, o_ref):
        acc = jnp.dot(x_ref[...], w_ref[...], preferred_element_type=jnp.float32)
        acc = acc + b_ref[...]
        if relu:
            acc = jnp.maximum(acc, 0.0)
        o_ref[...] = acc.astype(o_ref.dtype)

    vmem = _clamp_vmem(2 * (TM * K * 2) + 2 * (K * Npad * 2) + 2 * (Npad * 4)
                       + 2 * (TM * Npad * out_dtype.itemsize)
                       + TM * Npad * 4 + (8 << 20))
    fn = pl.pallas_call(
        kernel,
        out_shape=jax.ShapeDtypeStruct((Mpad, Npad), out_dtype),
        grid=(Mpad // TM,),
        in_specs=[
            pl.BlockSpec((TM, K), lambda i: (i, 0)),
            pl.BlockSpec((K, Npad), lambda i: (0, 0)),   # weights stay resident
            pl.BlockSpec((1, Npad), lambda i: (0, 0)),
        ],
        out_specs=pl.BlockSpec((TM, Npad), lambda i: (i, 0)),
        compiler_params=pltpu.CompilerParams(
            dimension_semantics=("parallel",), vmem_limit_bytes=vmem),
    )
    return jax.jit(fn)


def matmul_bias(x2d, w, b, relu=False, out_dtype=jnp.bfloat16):
    """x2d: (M, K), w: (K, N), b: (N,) -> (M, N). bf16 in, f32 MXU accumulate."""
    M, K = x2d.shape
    N = w.shape[1]
    # Largest M tile that fits the VMEM budget (not the MXU width).
    TM = min(512, _round_up(M, 8))
    Mpad = _round_up(M, TM)
    Npad = _round_up(max(N, 128), 128)  # lane-dense stores

    x = x2d.astype(jnp.bfloat16)
    if Mpad != M:
        x = jnp.pad(x, ((0, Mpad - M), (0, 0)))
    wb = w.astype(jnp.bfloat16)
    bb = b.astype(jnp.float32).reshape(1, N)
    if Npad != N:
        wb = jnp.pad(wb, ((0, 0), (0, Npad - N)))
        bb = jnp.pad(bb, ((0, 0), (0, Npad - N)))

    out = _get_matmul_call(Mpad, K, Npad, TM, bool(relu),
                           jnp.dtype(out_dtype).name)(x, wb, bb)
    if Mpad != M or Npad != N:
        out = out[:M, :N]
    return out


# --- direct 3x3 conv (no im2col HBM materialization) -------------------------
def _conv3x3_vmem(H, Wpk, Cin, Coutp):
    M = H * Wpk
    rows = (H + 2) * Wpk + 8
    cin_l = max(Cin, 128)
    return (2 * rows * cin_l * 2          # flattened padded input (double buffered)
            + 2 * 9 * Cin * Coutp * 2     # weights (double buffered)
            + 2 * M * Coutp * 2           # bf16 output block
            + M * Coutp * 4               # f32 accumulator value
            + M * cin_l * 2               # tap window value
            + (8 << 20))


@functools.lru_cache(maxsize=None)
def _get_conv3x3_call(B, H, Wpk, Cin, Coutp, relu):
    """Direct 3x3 conv on a reflect-padded plane flattened to (Hp*Wp, Cin) rows.

    Output rows are over the padded width Wpk; the two junk columns per row are
    sliced away in the wrapper.  9 tap matmuls over statically offset row
    windows -> no im2col expansion in HBM.
    """
    M = H * Wpk
    rows = (H + 2) * Wpk + 8  # slack rows so the (dy=2, dx=2) window stays in bounds

    def kernel(x_ref, w_ref, b_ref, o_ref):
        acc = jnp.zeros((M, Coutp), jnp.float32)
        for dy in range(3):
            for dx in range(3):
                off = dy * Wpk + dx
                win = x_ref[0, off:off + M, :]                 # (M, Cin) bf16
                acc = acc + jnp.dot(win, w_ref[dy, dx],
                                    preferred_element_type=jnp.float32)
        acc = acc + b_ref[...]
        if relu:
            acc = jnp.maximum(acc, 0.0)
        o_ref[0] = acc.astype(o_ref.dtype)

    vmem = _clamp_vmem(_conv3x3_vmem(H, Wpk, Cin, Coutp))
    fn = pl.pallas_call(
        kernel,
        out_shape=jax.ShapeDtypeStruct((B, M, Coutp), jnp.bfloat16),
        grid=(B,),
        in_specs=[
            pl.BlockSpec((1, rows, Cin), lambda b: (b, 0, 0)),
            pl.BlockSpec((3, 3, Cin, Coutp), lambda b: (0, 0, 0, 0)),  # resident
            pl.BlockSpec((1, Coutp), lambda b: (0, 0)),
        ],
        out_specs=pl.BlockSpec((1, M, Coutp), lambda b: (b, 0, 0)),
        compiler_params=pltpu.CompilerParams(
            dimension_semantics=("parallel",), vmem_limit_bytes=vmem),
    )
    return jax.jit(fn)


def conv3x3(x, w, b, relu=False):
    """3x3 stride-1 reflect-padded conv, NHWC, bf16 output."""
    B, H, W, Cin = x.shape
    Cout = w.shape[3]
    Coutp = _round_up(max(Cout, 128), 128)
    Hp, Wpk = H + 2, W + 2

    xb = x.astype(jnp.bfloat16)
    xp = jnp.pad(xb, ((0, 0), (1, 1), (1, 1), (0, 0)), mode="reflect")

    if _conv3x3_vmem(H, Wpk, Cin, Coutp) <= _vmem_cap():
        xflat = xp.reshape(B, Hp * Wpk, Cin)
        xflat = jnp.pad(xflat, ((0, 0), (0, 8), (0, 0)))   # slack rows for last tap
        wb = w.astype(jnp.bfloat16)
        bb = b.astype(jnp.float32).reshape(1, Cout)
        if Coutp != Cout:
            wb = jnp.pad(wb, ((0, 0), (0, 0), (0, 0), (0, Coutp - Cout)))
            bb = jnp.pad(bb, ((0, 0), (0, Coutp - Cout)))
        out = _get_conv3x3_call(B, H, Wpk, Cin, Coutp, bool(relu))(xflat, wb, bb)
        return out.reshape(B, H, Wpk, Coutp)[:, :, :W, :Cout]

    # TODO(synk): halo-tiled direct conv for very large spatial planes; until
    # then fall back to a bf16 im2col (no f32 expansion, but 9x activation reads).
    cols = jnp.concatenate(
        [xp[:, dy:dy + H, dx:dx + W, :] for dy in range(3) for dx in range(3)],
        axis=-1).reshape(B * H * W, 9 * Cin)
    out = matmul_bias(cols, w.reshape(9 * Cin, Cout), b, relu=relu)
    return out.reshape(B, H, W, Cout)


def conv2d(x, w, b, relu=False):
    """NHWC conv; 1x1 -> batched-M matmul, 3x3 -> direct Pallas conv."""
    kh, kw, Cin, Cout = w.shape
    if kh == 1 and kw == 1:
        B, H, W, _ = x.shape
        out = matmul_bias(x.reshape(B * H * W, Cin), w.reshape(Cin, Cout), b,
                          relu=relu, out_dtype=jnp.bfloat16)
        return out.reshape(B, H, W, Cout)
    return conv3x3(x, w, b, relu=relu)


# --- per-image mean / std ----------------------------------------------------
def _meanstd_kernel(x_ref, m_ref, s_ref):
    x = x_ref[0].astype(jnp.float32)                          # (HW, C)
    hw = x.shape[0]
    mean = jnp.sum(x, axis=0, keepdims=True) * (1.0 / hw)
    # torch.var(unbiased=True); guard only the degenerate 1x1-spatial case.
    var = jnp.sum((x - mean) ** 2, axis=0, keepdims=True) * (1.0 / max(hw - 1, 1))
    m_ref[0] = mean
    s_ref[0] = jnp.sqrt(var + EPS)


@functools.lru_cache(maxsize=None)
def _get_meanstd_call(B, HW, C, in_dtype_name):
    in_dt = jnp.dtype(in_dtype_name)
    # TODO(synk): tile HW (running sum / sum-of-squares) for very large planes.
    vmem = _clamp_vmem(2 * HW * C * in_dt.itemsize + HW * C * 4
                       + 8 * C * 4 + (8 << 20))
    fn = pl.pallas_call(
        _meanstd_kernel,
        out_shape=(jax.ShapeDtypeStruct((B, 1, C), jnp.float32),
                   jax.ShapeDtypeStruct((B, 1, C), jnp.float32)),
        grid=(B,),
        in_specs=[pl.BlockSpec((1, HW, C), lambda b: (b, 0, 0))],
        out_specs=(pl.BlockSpec((1, 1, C), lambda b: (b, 0, 0)),
                   pl.BlockSpec((1, 1, C), lambda b: (b, 0, 0))),
        compiler_params=pltpu.CompilerParams(
            dimension_semantics=("parallel",), vmem_limit_bytes=vmem),
    )
    return jax.jit(fn)


def _mvn_kernel(x_ref, o_ref):
    x = x_ref[0].astype(jnp.float32)                          # (HW, C)
    hw = x.shape[0]
    mean = jnp.sum(x, axis=0, keepdims=True) * (1.0 / hw)
    var = jnp.sum((x - mean) ** 2, axis=0, keepdims=True) * (1.0 / max(hw - 1, 1))
    o_ref[0] = (x - mean) * lax.rsqrt(var + EPS)              # fused normalize


@functools.lru_cache(maxsize=None)
def _get_mvn_call(B, HW, C, in_dtype_name):
    in_dt = jnp.dtype(in_dtype_name)
    vmem = _clamp_vmem(2 * HW * C * in_dt.itemsize + 2 * HW * C * 4
                       + HW * C * 4 + (8 << 20))
    fn = pl.pallas_call(
        _mvn_kernel,
        out_shape=jax.ShapeDtypeStruct((B, HW, C), jnp.float32),
        grid=(B,),
        in_specs=[pl.BlockSpec((1, HW, C), lambda b: (b, 0, 0))],
        out_specs=pl.BlockSpec((1, HW, C), lambda b: (b, 0, 0)),
        compiler_params=pltpu.CompilerParams(
            dimension_semantics=("parallel",), vmem_limit_bytes=vmem),
    )
    return jax.jit(fn)


# --- fused mean_variance_norm + 1x1 conv (SANet f/g path) --------------------
def _mvn_matmul_kernel(x_ref, m_ref, s_ref, w_ref, b_ref, o_ref):
    x = (x_ref[0].astype(jnp.float32) - m_ref[0]) * s_ref[0]  # (TL, C) normalized
    acc = jnp.dot(x.astype(jnp.bfloat16), w_ref[...],
                  preferred_element_type=jnp.float32)
    o_ref[0] = (acc + b_ref[...]).astype(o_ref.dtype)


@functools.lru_cache(maxsize=None)
def _get_mvn_matmul_call(B, Lp, C, Npad, TL):
    vmem = _clamp_vmem(2 * (TL * C * 2) + 2 * (C * Npad * 2) + 2 * (TL * Npad * 2)
                       + 8 * C * 4 + TL * Npad * 4 + TL * C * 4 + (8 << 20))
    fn = pl.pallas_call(
        _mvn_matmul_kernel,
        out_shape=jax.ShapeDtypeStruct((B, Lp, Npad), jnp.bfloat16),
        grid=(B, Lp // TL),
        in_specs=[
            pl.BlockSpec((1, TL, C), lambda b, l: (b, l, 0)),
            pl.BlockSpec((1, 1, C), lambda b, l: (b, 0, 0)),
            pl.BlockSpec((1, 1, C), lambda b, l: (b, 0, 0)),
            pl.BlockSpec((C, Npad), lambda b, l: (0, 0)),
            pl.BlockSpec((1, Npad), lambda b, l: (0, 0)),
        ],
        out_specs=pl.BlockSpec((1, TL, Npad), lambda b, l: (b, l, 0)),
        compiler_params=pltpu.CompilerParams(
            dimension_semantics=("parallel", "parallel"), vmem_limit_bytes=vmem),
    )
    return jax.jit(fn)


def mvn_conv1x1(x, w, b):
    """Fused mean_variance_norm + 1x1 conv: removes the standalone MVN HBM pass."""
    B, H, W, C = x.shape
    Cout = w.shape[3]
    L = H * W
    mean, std = calc_mean_std(x)                      # (B,1,1,C) f32
    inv_std = (1.0 / std).reshape(B, 1, C)
    mean = mean.reshape(B, 1, C)

    TL = min(512, _round_up(L, 8))
    Lp = _round_up(L, TL)
    Npad = _round_up(max(Cout, 128), 128)
    xr = x.reshape(B, L, C).astype(jnp.bfloat16)
    if Lp != L:
        xr = jnp.pad(xr, ((0, 0), (0, Lp - L), (0, 0)))
    wb = w.reshape(C, Cout).astype(jnp.bfloat16)
    bb = b.astype(jnp.float32).reshape(1, Cout)
    if Npad != Cout:
        wb = jnp.pad(wb, ((0, 0), (0, Npad - Cout)))
        bb = jnp.pad(bb, ((0, 0), (0, Npad - Cout)))
    out = _get_mvn_matmul_call(B, Lp, C, Npad, TL)(xr, mean, inv_std, wb, bb)
    return out[:, :L, :Cout].reshape(B, H, W, Cout)


# --- SANet attention ----------------------------------------------------------
def _attn_kernel(f_ref, g_ref, h_ref, o_ref):
    f = f_ref[0]                                              # (TQ, C) bf16
    g = g_ref[0]                                              # (Ls, C) bf16
    h = h_ref[0]                                              # (Ls, C) bf16
    # Contract last dims (F @ G^T) -- no HBM transpose of G needed.
    s = lax.dot_general(f, g, (((1,), (1,)), ((), ())),
                        preferred_element_type=jnp.float32)   # (TQ, Ls)
    s = s - jnp.max(s, axis=-1, keepdims=True)
    e = jnp.exp(s)
    p = e / jnp.sum(e, axis=-1, keepdims=True)                # exact softmax
    o = jnp.dot(p.astype(h.dtype), h, preferred_element_type=jnp.float32)
    o_ref[0] = o.astype(o_ref.dtype)


@functools.lru_cache(maxsize=None)
def _get_attn_call(B, Lcp, Ls, C, TQ):
    # TODO(synk): tile Ls (flash-style online softmax) for very long style maps.
    vmem = _clamp_vmem(2 * (TQ * C * 2) + 4 * (Ls * C * 2) + 2 * (TQ * C * 2)
                       + 2 * TQ * Ls * 4 + (8 << 20))
    fn = pl.pallas_call(
        _attn_kernel,
        out_shape=jax.ShapeDtypeStruct((B, Lcp, C), jnp.bfloat16),
        grid=(B, Lcp // TQ),
        in_specs=[
            pl.BlockSpec((1, TQ, C), lambda b, q: (b, q, 0)),
            pl.BlockSpec((1, Ls, C), lambda b, q: (b, 0, 0)),
            pl.BlockSpec((1, Ls, C), lambda b, q: (b, 0, 0)),
        ],
        out_specs=pl.BlockSpec((1, TQ, C), lambda b, q: (b, q, 0)),
        compiler_params=pltpu.CompilerParams(
            dimension_semantics=("parallel", "parallel"), vmem_limit_bytes=vmem),
    )
    return jax.jit(fn)


def sanet_attention(F, G, Hs):
    """F: (B, hc, wc, C); G, Hs: (B, hs, ws, C) -> (B, hc, wc, C) bf16."""
    B, hc, wc, C = F.shape
    _, hs, ws, _ = G.shape
    Lc, Ls = hc * wc, hs * ws
    TQ = min(512, _round_up(Lc, 8))
    Lcp = _round_up(Lc, TQ)
    f = F.reshape(B, Lc, C).astype(jnp.bfloat16)
    if Lcp != Lc:
        f = jnp.pad(f, ((0, 0), (0, Lcp - Lc), (0, 0)))
    g = G.reshape(B, Ls, C).astype(jnp.bfloat16)
    h = Hs.reshape(B, Ls, C).astype(jnp.bfloat16)
    out = _get_attn_call(B, Lcp, Ls, C, TQ)(f, g, h)
    if Lcp != Lc:
        out = out[:, :Lc, :]
    return out.reshape(B, hc, wc, C)


# ----------------------------------------------------------------------------
# NN helpers
# ----------------------------------------------------------------------------
def maxpool2(x):
    N, H, W, C = x.shape
    return x.reshape(N, H // 2, 2, W // 2, 2, C).max(axis=(2, 4))


def upsample_nearest(x, out_h, out_w):
    N, H, W, C = x.shape
    if out_h % H == 0 and out_w % W == 0:
        fh, fw = out_h // H, out_w // W
        y = jnp.broadcast_to(x[:, :, None, :, None, :], (N, H, fh, W, fw, C))
        return y.reshape(N, out_h, out_w, C)
    hi = (jnp.arange(out_h) * H) // out_h
    wi = (jnp.arange(out_w) * W) // out_w
    return x[:, hi][:, :, wi]


def calc_mean_std(feat):
    """feat: (N, H, W, C) -> mean, std of shape (N, 1, 1, C), f32."""
    N, H, W, C = feat.shape
    m, s = _get_meanstd_call(N, H * W, C, feat.dtype.name)(feat.reshape(N, H * W, C))
    return m.reshape(N, 1, 1, C), s.reshape(N, 1, 1, C)


def mean_variance_norm(feat):
    N, H, W, C = feat.shape
    out = _get_mvn_call(N, H * W, C, feat.dtype.name)(feat.reshape(N, H * W, C))
    return out.reshape(N, H, W, C)


def mse(a, b):
    return jnp.mean((a.astype(jnp.float32) - b.astype(jnp.float32)) ** 2)


# ----------------------------------------------------------------------------
# Parameters (deterministic synthetic init — no checkpoint load)
# ----------------------------------------------------------------------------
def init_params(key):
    params = {}

    def conv_p(name, kh, kw, cin, cout):
        nonlocal key
        key, k1, k2 = jax.random.split(key, 3)
        fan = kh * kw * cin
        params[name + "_w"] = (
            jax.random.normal(k1, (kh, kw, cin, cout), jnp.float32) / np.sqrt(fan))
        params[name + "_b"] = jax.random.normal(k2, (cout,), jnp.float32) * 0.01

    def lin_p(name, cin, cout):
        nonlocal key
        key, k1, k2 = jax.random.split(key, 3)
        params[name + "_w"] = (
            jax.random.normal(k1, (cin, cout), jnp.float32) / np.sqrt(cin))
        params[name + "_b"] = jax.random.normal(k2, (cout,), jnp.float32) * 0.01

    # VGG-19 (normalised) encoder, up to relu5_1
    conv_p("enc_conv0", 1, 1, 3, 3)
    conv_p("enc_1_1", 3, 3, 3, 64)
    conv_p("enc_1_2", 3, 3, 64, 64)
    conv_p("enc_2_1", 3, 3, 64, 128)
    conv_p("enc_2_2", 3, 3, 128, 128)
    conv_p("enc_3_1", 3, 3, 128, 256)
    conv_p("enc_3_2", 3, 3, 256, 256)
    conv_p("enc_3_3", 3, 3, 256, 256)
    conv_p("enc_3_4", 3, 3, 256, 256)
    conv_p("enc_4_1", 3, 3, 256, 512)
    conv_p("enc_4_2", 3, 3, 512, 512)
    conv_p("enc_4_3", 3, 3, 512, 512)
    conv_p("enc_4_4", 3, 3, 512, 512)
    conv_p("enc_5_1", 3, 3, 512, 512)
    # decoder
    conv_p("dec_1", 3, 3, 512, 256)
    conv_p("dec_2", 3, 3, 256, 256)
    conv_p("dec_3", 3, 3, 256, 256)
    conv_p("dec_4", 3, 3, 256, 256)
    conv_p("dec_5", 3, 3, 256, 128)
    conv_p("dec_6", 3, 3, 128, 128)
    conv_p("dec_7", 3, 3, 128, 64)
    conv_p("dec_8", 3, 3, 64, 64)
    conv_p("dec_9", 3, 3, 64, 3)
    # Transform: two SANets (512 planes) + merge conv
    for pre in ("san4", "san5"):
        for nm in ("f", "g", "h", "out"):
            conv_p(pre + "_" + nm, 1, 1, 512, 512)
    conv_p("merge", 3, 3, 512, 512)
    # projection heads
    lin_p("pc1", 512, 256)
    lin_p("pc2", 256, 128)
    lin_p("ps1", 256, 128)
    lin_p("ps2", 128, 128)
    return params


# ----------------------------------------------------------------------------
# Model pieces (each jitted once and reused across calls)
# ----------------------------------------------------------------------------
def _enc_conv0(p, x):
    # Tiny 1x1 3->3 pre-conv: plain XLA (3-lane Pallas output would be wasteful).
    return jnp.einsum("bhwc,cd->bhwd", x, p["enc_conv0_w"][0, 0]) + p["enc_conv0_b"]


@jax.jit
def encode_with_intermediate(p, x):
    feats = []
    h = _enc_conv0(p, x)
    h = conv2d(h, p["enc_1_1_w"], p["enc_1_1_b"], relu=True)
    feats.append(h)                                    # relu1_1
    h = conv2d(h, p["enc_1_2_w"], p["enc_1_2_b"], relu=True)
    h = maxpool2(h)
    h = conv2d(h, p["enc_2_1_w"], p["enc_2_1_b"], relu=True)
    feats.append(h)                                    # relu2_1
    h = conv2d(h, p["enc_2_2_w"], p["enc_2_2_b"], relu=True)
    h = maxpool2(h)
    h = conv2d(h, p["enc_3_1_w"], p["enc_3_1_b"], relu=True)
    feats.append(h)                                    # relu3_1
    h = conv2d(h, p["enc_3_2_w"], p["enc_3_2_b"], relu=True)
    h = conv2d(h, p["enc_3_3_w"], p["enc_3_3_b"], relu=True)
    h = conv2d(h, p["enc_3_4_w"], p["enc_3_4_b"], relu=True)
    h = maxpool2(h)
    h = conv2d(h, p["enc_4_1_w"], p["enc_4_1_b"], relu=True)
    feats.append(h)                                    # relu4_1
    h = conv2d(h, p["enc_4_2_w"], p["enc_4_2_b"], relu=True)
    h = conv2d(h, p["enc_4_3_w"], p["enc_4_3_b"], relu=True)
    h = conv2d(h, p["enc_4_4_w"], p["enc_4_4_b"], relu=True)
    h = maxpool2(h)
    h = conv2d(h, p["enc_5_1_w"], p["enc_5_1_b"], relu=True)
    feats.append(h)                                    # relu5_1
    return tuple(feats)


def sanet_forward(p, prefix, content, style):
    # mean_variance_norm fused into the f/g 1x1 convs (perf review item 6).
    F = mvn_conv1x1(content, p[prefix + "_f_w"], p[prefix + "_f_b"])
    G = mvn_conv1x1(style, p[prefix + "_g_w"], p[prefix + "_g_b"])
    Hs = conv2d(style, p[prefix + "_h_w"], p[prefix + "_h_b"])
    # TODO(synk): concatenate g/h (and f) 1x1 weights into one fatter matmul launch.
    O = sanet_attention(F, G, Hs)
    O = conv2d(O, p[prefix + "_out_w"], p[prefix + "_out_b"])
    return O + content.astype(O.dtype)


@jax.jit
def transform_forward(p, content4_1, style4_1, content5_1, style5_1):
    o4 = sanet_forward(p, "san4", content4_1, style4_1)
    o5 = sanet_forward(p, "san5", content5_1, style5_1)
    o5 = upsample_nearest(o5, content4_1.shape[1], content4_1.shape[2])
    return conv2d(o4 + o5, p["merge_w"], p["merge_b"], relu=False)


@jax.jit
def decoder_forward(p, x):
    x = conv2d(x, p["dec_1_w"], p["dec_1_b"], relu=True)
    x = upsample_nearest(x, x.shape[1] * 2, x.shape[2] * 2)
    x = conv2d(x, p["dec_2_w"], p["dec_2_b"], relu=True)
    x = conv2d(x, p["dec_3_w"], p["dec_3_b"], relu=True)
    x = conv2d(x, p["dec_4_w"], p["dec_4_b"], relu=True)
    x = conv2d(x, p["dec_5_w"], p["dec_5_b"], relu=True)
    x = upsample_nearest(x, x.shape[1] * 2, x.shape[2] * 2)
    x = conv2d(x, p["dec_6_w"], p["dec_6_b"], relu=True)
    x = conv2d(x, p["dec_7_w"], p["dec_7_b"], relu=True)
    x = upsample_nearest(x, x.shape[1] * 2, x.shape[2] * 2)
    x = conv2d(x, p["dec_8_w"], p["dec_8_b"], relu=True)
    x = conv2d(x, p["dec_9_w"], p["dec_9_b"], relu=False)
    return x


# ----------------------------------------------------------------------------
# Losses / projection heads
# ----------------------------------------------------------------------------
def calc_content_loss(a, b, norm=False):
    if not norm:
        return mse(a, b)
    return mse(mean_variance_norm(a), mean_variance_norm(b))


def calc_style_loss(a, b):
    am, asd = calc_mean_std(a)
    bm, bsd = calc_mean_std(b)
    return mse(am, bm) + mse(asd, bsd)


def style_feature_contrastive(p, x):
    out = jnp.sum(x.astype(jnp.float32), axis=(1, 2))
    out = matmul_bias(out, p["ps1_w"], p["ps1_b"], relu=True, out_dtype=jnp.float32)
    out = matmul_bias(out, p["ps2_w"], p["ps2_b"], relu=False, out_dtype=jnp.float32)
    return out / jnp.linalg.norm(out, axis=1, keepdims=True)


def content_feature_contrastive(p, x):
    out = jnp.sum(x.astype(jnp.float32), axis=(1, 2))
    out = matmul_bias(out, p["pc1_w"], p["pc1_b"], relu=True, out_dtype=jnp.float32)
    out = matmul_bias(out, p["pc2_w"], p["pc2_b"], relu=False, out_dtype=jnp.float32)
    return out / jnp.linalg.norm(out, axis=1, keepdims=True)


def _batched_contrastive(refs, comps, tau):
    # CrossEntropy with target index 0 == logsumexp(logits) - logits[:, 0];
    # all comparison sets have identical length, so one gather + one matmul.
    q = jnp.concatenate(refs, axis=0).astype(jnp.float32)      # (n, D)
    k = jnp.stack(comps, axis=0).astype(jnp.float32)           # (n, K, D)
    logits = jnp.einsum("nd,nkd->nk", q, k) / tau
    return jnp.sum(jax.nn.logsumexp(logits, axis=1) - logits[:, 0])


@functools.partial(jax.jit, static_argnames=("batch_size",))
def _compute_losses(p, content, style, content_feats, style_feats,
                    g_t_feats, Icc, Iss, Fcc, Fss, batch_size):
    loss_c = calc_content_loss(g_t_feats[3], content_feats[3], norm=True) + \
             calc_content_loss(g_t_feats[4], content_feats[4], norm=True)
    loss_s = calc_style_loss(g_t_feats[0], style_feats[0])
    for i in range(1, 5):
        loss_s = loss_s + calc_style_loss(g_t_feats[i], style_feats[i])

    l_identity1 = calc_content_loss(Icc, content) + calc_content_loss(Iss, style)
    l_identity2 = calc_content_loss(Fcc[0], content_feats[0]) + \
                  calc_content_loss(Fss[0], style_feats[0])
    for i in range(1, 5):
        l_identity2 = l_identity2 + calc_content_loss(Fcc[i], content_feats[i]) + \
                      calc_content_loss(Fss[i], style_feats[i])

    half = int(batch_size / 2)
    style_up = style_feature_contrastive(p, g_t_feats[2][0:half])
    style_down = style_feature_contrastive(p, g_t_feats[2][half:])
    content_up = content_feature_contrastive(p, g_t_feats[3][0:half])
    content_down = content_feature_contrastive(p, g_t_feats[3][half:])

    cat = lambda xs: jnp.concatenate(xs, 0)

    # --- style contrastive (same branch logic as PyTorch reference, batched) ---
    s_refs, s_cmps = [], []
    for i in range(half):
        s_refs.append(style_up[i:i + 1])
        if i == 0:
            s_cmps.append(cat([style_down[0:half - 1], style_up[1:]]))
        elif i == 1:
            s_cmps.append(cat([style_down[1:], style_up[0:1], style_up[2:]]))
        elif i == half - 1:
            s_cmps.append(cat([style_down[half - 1:], style_down[0:half - 2],
                               style_up[0:half - 1]]))
        else:
            s_cmps.append(cat([style_down[i:], style_down[0:i - 1],
                               style_up[0:i], style_up[i + 1:]]))
    for i in range(half):
        s_refs.append(style_down[i:i + 1])
        if i == 0:
            s_cmps.append(cat([style_up[0:1], style_up[2:], style_down[1:]]))
        elif i == half - 2:
            s_cmps.append(cat([style_up[half - 2:half - 1], style_up[0:half - 2],
                               style_down[0:half - 2], style_down[half - 1:]]))
        elif i == half - 1:
            s_cmps.append(cat([style_up[half - 1:], style_up[1:half - 1],
                               style_down[0:half - 1]]))
        else:
            s_cmps.append(cat([style_up[i:i + 1], style_up[0:i], style_up[i + 2:],
                               style_down[0:i], style_down[i + 1:]]))
    style_contrastive_loss = _batched_contrastive(s_refs, s_cmps, 0.2)

    # --- content contrastive -------------------------------------------------
    c_refs, c_cmps = [], []
    for i in range(half):
        c_refs.append(content_up[i:i + 1])
        if i == 0:
            c_cmps.append(cat([content_down[half - 1:], content_down[1:half - 1],
                               content_up[1:]]))
        elif i == 1:
            c_cmps.append(cat([content_down[0:1], content_down[2:],
                               content_up[0:1], content_up[2:]]))
        elif i == half - 1:
            c_cmps.append(cat([content_down[half - 2:half - 1],
                               content_down[0:half - 2], content_up[0:half - 1]]))
        else:
            c_cmps.append(cat([content_down[i - 1:i], content_down[0:i - 1],
                               content_down[i + 1:], content_up[0:i],
                               content_up[i + 1:]]))
    for i in range(half):
        c_refs.append(content_down[i:i + 1])
        if i == 0:
            c_cmps.append(cat([content_up[1:], content_down[1:]]))
        elif i == half - 2:
            c_cmps.append(cat([content_up[half - 1:], content_up[0:half - 2],
                               content_down[0:half - 2], content_down[half - 1:]]))
        elif i == half - 1:
            c_cmps.append(cat([content_up[0:half - 1], content_down[0:half - 1]]))
        else:
            c_cmps.append(cat([content_up[i + 1:i + 2], content_up[0:i],
                               content_up[i + 2:], content_down[0:i],
                               content_down[i + 1:]]))
    content_contrastive_loss = _batched_contrastive(c_refs, c_cmps, 0.2)

    return (loss_c, loss_s, l_identity1, l_identity2,
            content_contrastive_loss, style_contrastive_loss)


# ----------------------------------------------------------------------------
# Full Net.forward
# ----------------------------------------------------------------------------
def net_forward(p, content, style, batch_size):
    style_feats = encode_with_intermediate(p, style)
    content_feats = encode_with_intermediate(p, content)

    stylized = transform_forward(
        p, content_feats[3], style_feats[3], content_feats[4], style_feats[4])
    g_t = decoder_forward(p, stylized).astype(jnp.float32)
    g_t_feats = encode_with_intermediate(p, g_t)

    # identity branches
    Icc = decoder_forward(
        p, transform_forward(p, content_feats[3], content_feats[3],
                             content_feats[4], content_feats[4])).astype(jnp.float32)
    Iss = decoder_forward(
        p, transform_forward(p, style_feats[3], style_feats[3],
                             style_feats[4], style_feats[4])).astype(jnp.float32)
    Fcc = encode_with_intermediate(p, Icc)
    Fss = encode_with_intermediate(p, Iss)

    losses = _compute_losses(p, content, style, content_feats, style_feats,
                             g_t_feats, Icc, Iss, Fcc, Fss,
                             batch_size=batch_size)
    (loss_c, loss_s, l_identity1, l_identity2,
     content_contrastive_loss, style_contrastive_loss) = losses

    # TODO(synk): checkpoint restore (start_iter > 0 torch.load) intentionally omitted.
    return (g_t, loss_c, loss_s, l_identity1, l_identity2,
            content_contrastive_loss, style_contrastive_loss)


# ----------------------------------------------------------------------------
if __name__ == "__main__":
    key = jax.random.PRNGKey(0)
    kp, kc, ks = jax.random.split(key, 3)
    params = init_params(kp)

    B = 4  # batch_size (half = 2 for the contrastive loops)
    content_nchw = jax.random.normal(kc, (B, 3, 32, 32), jnp.float32)
    style_nchw = jax.random.normal(ks, (B, 3, 32, 32), jnp.float32)
    # NCHW (PyTorch convention) -> NHWC (kernel layout)
    content = jnp.transpose(content_nchw, (0, 2, 3, 1))
    style = jnp.transpose(style_nchw, (0, 2, 3, 1))

    outs = net_forward(params, content, style, B)
    outs = jax.block_until_ready(outs)
    print("KERNEL_OK")
</pallas_src>

<mosaic_0001>
module attributes {stable_mosaic.version = 11 : i64} {
  func.func @kernel(%arg0: i32, %arg1: memref<1x1164x3xbf16, #tpu.memory_space<vmem>>, %arg2: memref<3x3x3x128xbf16, #tpu.memory_space<vmem>>, %arg3: memref<1x128xf32, #tpu.memory_space<vmem>>, %arg4: memref<1x1088x128xbf16, #tpu.memory_space<vmem>>) attributes {dimension_semantics = [#tpu.dimension_semantics<parallel>], iteration_bounds = array<i64: 4>, scalar_prefetch = 0 : i64, scratch_operands = 0 : i64, tpu.core_type = #tpu.core_type<tc>, window_params = [{transform_indices = @transform_0, window_bounds = array<i64: 1, 1164, 3>}, {pipeline_mode = #tpu.pipeline_mode<synchronous>, transform_indices = @transform_1, window_bounds = array<i64: 3, 3, 3, 128>}, {pipeline_mode = #tpu.pipeline_mode<synchronous>, transform_indices = @transform_2, window_bounds = array<i64: 1, 128>}, {transform_indices = @transform_3, window_bounds = array<i64: 1, 1088, 128>}]} {
    %cst = arith.constant 0.000000e+00 : f32
    %0 = vector.broadcast %cst : f32 to vector<1088x128xf32>
    %c0 = arith.constant 0 : index
    %c0_0 = arith.constant 0 : index
    %c0_1 = arith.constant 0 : index
    %1 = vector.load %arg1[%c0, %c0_0, %c0_1] : memref<1x1164x3xbf16, #tpu.memory_space<vmem>>, vector<1x1088x3xbf16>
    %2 = vector.shape_cast %1 : vector<1x1088x3xbf16> to vector<1088x3xbf16>
    %c0_2 = arith.constant 0 : index
    %c0_3 = arith.constant 0 : index
    %c0_4 = arith.constant 0 : index
    %c0_5 = arith.constant 0 : index
    %3 = vector.load %arg2[%c0_2, %c0_3, %c0_4, %c0_5] : memref<3x3x3x128xbf16, #tpu.memory_space<vmem>>, vector<1x1x3x128xbf16>
    %4 = vector.shape_cast %3 : vector<1x1x3x128xbf16> to vector<3x128xbf16>
    %cst_6 = arith.constant dense<0.000000e+00> : vector<1088x128xf32>
    %5 = tpu.matmul %2, %4, %cst_6 {dimension_numbers = #tpu.dot_dimension_numbers<[1], [0], [0], [1], [0, 0, 1, 1], [], []>} : vector<1088x3xbf16>, vector<3x128xbf16>, vector<1088x128xf32> -> vector<1088x128xf32>
    %6 = arith.addf %0, %5 : vector<1088x128xf32>
    %c0_7 = arith.constant 0 : index
    %c1 = arith.constant 1 : index
    %c0_8 = arith.constant 0 : index
    %7 = vector.load %arg1[%c0_7, %c1, %c0_8] : memref<1x1164x3xbf16, #tpu.memory_space<vmem>>, vector<1x1088x3xbf16>
    %8 = vector.shape_cast %7 : vector<1x1088x3xbf16> to vector<1088x3xbf16>
    %c0_9 = arith.constant 0 : index
    %c1_10 = arith.constant 1 : index
    %c0_11 = arith.constant 0 : index
    %c0_12 = arith.constant 0 : index
    %9 = vector.load %arg2[%c0_9, %c1_10, %c0_11, %c0_12] : memref<3x3x3x128xbf16, #tpu.memory_space<vmem>>, vector<1x1x3x128xbf16>
    %10 = vector.shape_cast %9 : vector<1x1x3x128xbf16> to vector<3x128xbf16>
    %cst_13 = arith.constant dense<0.000000e+00> : vector<1088x128xf32>
    %11 = tpu.matmul %8, %10, %cst_13 {dimension_numbers = #tpu.dot_dimension_numbers<[1], [0], [0], [1], [0, 0, 1, 1], [], []>} : vector<1088x3xbf16>, vector<3x128xbf16>, vector<1088x128xf32> -> vector<1088x128xf32>
    %12 = arith.addf %6, %11 : vector<1088x128xf32>
    %c0_14 = arith.constant 0 : index
    %c2 = arith.constant 2 : index
    %c0_15 = arith.constant 0 : index
    %13 = vector.load %arg1[%c0_14, %c2, %c0_15] : memref<1x1164x3xbf16, #tpu.memory_space<vmem>>, vector<1x1088x3xbf16>
    %14 = vector.shape_cast %13 : vector<1x1088x3xbf16> to vector<1088x3xbf16>
    %c0_16 = arith.constant 0 : index
    %c2_17 = arith.constant 2 : index
    %c0_18 = arith.constant 0 : index
    %c0_19 = arith.constant 0 : index
    %15 = vector.load %arg2[%c0_16, %c2_17, %c0_18, %c0_19] : memref<3x3x3x128xbf16, #tpu.memory_space<vmem>>, vector<1x1x3x128xbf16>
    %16 = vector.shape_cast %15 : vector<1x1x3x128xbf16> to vector<3x128xbf16>
    %cst_20 = arith.constant dense<0.000000e+00> : vector<1088x128xf32>
    %17 = tpu.matmul %14, %16, %cst_20 {dimension_numbers = #tpu.dot_dimension_numbers<[1], [0], [0], [1], [0, 0, 1, 1], [], []>} : vector<1088x3xbf16>, vector<3x128xbf16>, vector<1088x128xf32> -> vector<1088x128xf32>
    %18 = arith.addf %12, %17 : vector<1088x128xf32>
    %c0_21 = arith.constant 0 : index
    %c34 = arith.constant 34 : index
    %c0_22 = arith.constant 0 : index
    %19 = vector.load %arg1[%c0_21, %c34, %c0_22] : memref<1x1164x3xbf16, #tpu.memory_space<vmem>>, vector<1x1088x3xbf16>
    %20 = vector.shape_cast %19 : vector<1x1088x3xbf16> to vector<1088x3xbf16>
    %c1_23 = arith.constant 1 : index
    %c0_24 = arith.constant 0 : index
    %c0_25 = arith.constant 0 : index
    %c0_26 = arith.constant 0 : index
    %21 = vector.load %arg2[%c1_23, %c0_24, %c0_25, %c0_26] : memref<3x3x3x128xbf16, #tpu.memory_space<vmem>>, vector<1x1x3x128xbf16>
    %22 = vector.shape_cast %21 : vector<1x1x3x128xbf16> to vector<3x128xbf16>
    %cst_27 = arith.constant dense<0.000000e+00> : vector<1088x128xf32>
    %23 = tpu.matmul %20, %22, %cst_27 {dimension_numbers = #tpu.dot_dimension_numbers<[1], [0], [0], [1], [0, 0, 1, 1], [], []>} : vector<1088x3xbf16>, vector<3x128xbf16>, vector<1088x128xf32> -> vector<1088x128xf32>
    %24 = arith.addf %18, %23 : vector<1088x128xf32>
    %c0_28 = arith.constant 0 : index
    %c35 = arith.constant 35 : index
    %c0_29 = arith.constant 0 : index
    %25 = vector.load %arg1[%c0_28, %c35, %c0_29] : memref<1x1164x3xbf16, #tpu.memory_space<vmem>>, vector<1x1088x3xbf16>
    %26 = vector.shape_cast %25 : vector<1x1088x3xbf16> to vector<1088x3xbf16>
    %c1_30 = arith.constant 1 : index
    %c1_31 = arith.constant 1 : index
    %c0_32 = arith.constant 0 : index
    %c0_33 = arith.constant 0 : index
    %27 = vector.load %arg2[%c1_30, %c1_31, %c0_32, %c0_33] : memref<3x3x3x128xbf16, #tpu.memory_space<vmem>>, vector<1x1x3x128xbf16>
    %28 = vector.shape_cast %27 : vector<1x1x3x128xbf16> to vector<3x128xbf16>
    %cst_34 = arith.constant dense<0.000000e+00> : vector<1088x128xf32>
    %29 = tpu.matmul %26, %28, %cst_34 {dimension_numbers = #tpu.dot_dimension_numbers<[1], [0], [0], [1], [0, 0, 1, 1], [], []>} : vector<1088x3xbf16>, vector<3x128xbf16>, vector<1088x128xf32> -> vector<1088x128xf32>
    %30 = arith.addf %24, %29 : vector<1088x128xf32>
    %c0_35 = arith.constant 0 : index
    %c36 = arith.constant 36 : index
    %c0_36 = arith.constant 0 : index
    %31 = vector.load %arg1[%c0_35, %c36, %c0_36] : memref<1x1164x3xbf16, #tpu.memory_space<vmem>>, vector<1x1088x3xbf16>
    %32 = vector.shape_cast %31 : vector<1x1088x3xbf16> to vector<1088x3xbf16>
    %c1_37 = arith.constant 1 : index
    %c2_38 = arith.constant 2 : index
    %c0_39 = arith.constant 0 : index
    %c0_40 = arith.constant 0 : index
    %33 = vector.load %arg2[%c1_37, %c2_38, %c0_39, %c0_40] : memref<3x3x3x128xbf16, #tpu.memory_space<vmem>>, vector<1x1x3x128xbf16>
    %34 = vector.shape_cast %33 : vector<1x1x3x128xbf16> to vector<3x128xbf16>
    %cst_41 = arith.constant dense<0.000000e+00> : vector<1088x128xf32>
    %35 = tpu.matmul %32, %34, %cst_41 {dimension_numbers = #tpu.dot_dimension_numbers<[1], [0], [0], [1], [0, 0, 1, 1], [], []>} : vector<1088x3xbf16>, vector<3x128xbf16>, vector<1088x128xf32> -> vector<1088x128xf32>
    %36 = arith.addf %30, %35 : vector<1088x128xf32>
    %c0_42 = arith.constant 0 : index
    %c68 = arith.constant 68 : index
    %c0_43 = arith.constant 0 : index
    %37 = vector.load %arg1[%c0_42, %c68, %c0_43] : memref<1x1164x3xbf16, #tpu.memory_space<vmem>>, vector<1x1088x3xbf16>
    %38 = vector.shape_cast %37 : vector<1x1088x3xbf16> to vector<1088x3xbf16>
    %c2_44 = arith.constant 2 : index
    %c0_45 = arith.constant 0 : index
    %c0_46 = arith.constant 0 : index
    %c0_47 = arith.constant 0 : index
    %39 = vector.load %arg2[%c2_44, %c0_45, %c0_46, %c0_47] : memref<3x3x3x128xbf16, #tpu.memory_space<vmem>>, vector<1x1x3x128xbf16>
    %40 = vector.shape_cast %39 : vector<1x1x3x128xbf16> to vector<3x128xbf16>
    %cst_48 = arith.constant dense<0.000000e+00> : vector<1088x128xf32>
    %41 = tpu.matmul %38, %40, %cst_48 {dimension_numbers = #tpu.dot_dimension_numbers<[1], [0], [0], [1], [0, 0, 1, 1], [], []>} : vector<1088x3xbf16>, vector<3x128xbf16>, vector<1088x128xf32> -> vector<1088x128xf32>
    %42 = arith.addf %36, %41 : vector<1088x128xf32>
    %c0_49 = arith.constant 0 : index
    %c69 = arith.constant 69 : index
    %c0_50 = arith.constant 0 : index
    %43 = vector.load %arg1[%c0_49, %c69, %c0_50] : memref<1x1164x3xbf16, #tpu.memory_space<vmem>>, vector<1x1088x3xbf16>
    %44 = vector.shape_cast %43 : vector<1x1088x3xbf16> to vector<1088x3xbf16>
    %c2_51 = arith.constant 2 : index
    %c1_52 = arith.constant 1 : index
    %c0_53 = arith.constant 0 : index
    %c0_54 = arith.constant 0 : index
    %45 = vector.load %arg2[%c2_51, %c1_52, %c0_53, %c0_54] : memref<3x3x3x128xbf16, #tpu.memory_space<vmem>>, vector<1x1x3x128xbf16>
    %46 = vector.shape_cast %45 : vector<1x1x3x128xbf16> to vector<3x128xbf16>
    %cst_55 = arith.constant dense<0.000000e+00> : vector<1088x128xf32>
    %47 = tpu.matmul %44, %46, %cst_55 {dimension_numbers = #tpu.dot_dimension_numbers<[1], [0], [0], [1], [0, 0, 1, 1], [], []>} : vector<1088x3xbf16>, vector<3x128xbf16>, vector<1088x128xf32> -> vector<1088x128xf32>
    %48 = arith.addf %42, %47 : vector<1088x128xf32>
    %c0_56 = arith.constant 0 : index
    %c70 = arith.constant 70 : index
    %c0_57 = arith.constant 0 : index
    %49 = vector.load %arg1[%c0_56, %c70, %c0_57] : memref<1x1164x3xbf16, #tpu.memory_space<vmem>>, vector<1x1088x3xbf16>
    %50 = vector.shape_cast %49 : vector<1x1088x3xbf16> to vector<1088x3xbf16>
    %c2_58 = arith.constant 2 : index
    %c2_59 = arith.constant 2 : index
    %c0_60 = arith.constant 0 : index
    %c0_61 = arith.constant 0 : index
    %51 = vector.load %arg2[%c2_58, %c2_59, %c0_60, %c0_61] : memref<3x3x3x128xbf16, #tpu.memory_space<vmem>>, vector<1x1x3x128xbf16>
    %52 = vector.shape_cast %51 : vector<1x1x3x128xbf16> to vector<3x128xbf16>
    %cst_62 = arith.constant dense<0.000000e+00> : vector<1088x128xf32>
    %53 = tpu.matmul %50, %52, %cst_62 {dimension_numbers = #tpu.dot_dimension_numbers<[1], [0], [0], [1], [0, 0, 1, 1], [], []>} : vector<1088x3xbf16>, vector<3x128xbf16>, vector<1088x128xf32> -> vector<1088x128xf32>
    %54 = arith.addf %48, %53 : vector<1088x128xf32>
    %c0_63 = arith.constant 0 : index
    %c0_64 = arith.constant 0 : index
    %55 = vector.load %arg3[%c0_63, %c0_64] : memref<1x128xf32, #tpu.memory_space<vmem>>, vector<1x128xf32>
    %56 = vector.broadcast %55 : vector<1x128xf32> to vector<1088x128xf32>
    %57 = arith.addf %54, %56 : vector<1088x128xf32>
    %cst_65 = arith.constant 0.000000e+00 : f32
    %58 = vector.broadcast %cst_65 : f32 to vector<1088x128xf32>
    %59 = arith.maximumf %57, %58 : vector<1088x128xf32>
    %60 = arith.truncf %59 : vector<1088x128xf32> to vector<1088x128xbf16>
    %c0_66 = arith.constant 0 : index
    %c0_67 = arith.constant 0 : index
    %c0_68 = arith.constant 0 : index
    %61 = vector.load %arg4[%c0_66, %c0_67, %c0_68] : memref<1x1088x128xbf16, #tpu.memory_space<vmem>>, vector<1x1088x128xbf16>
    %62 = vector.shape_cast %61 : vector<1x1088x128xbf16> to vector<1088x128xbf16>
    %63 = vector.shape_cast %60 : vector<1088x128xbf16> to vector<1x1088x128xbf16>
    tpu.vector_store %arg4[%c0_66, %c0_67, %c0_68], %63 {strides = array<i32>} : memref<1x1088x128xbf16, #tpu.memory_space<vmem>>, vector<1x1088x128xbf16>,
    return
  }
  func.func @transform_0(%arg0: i32) -> (i32, i32, i32) {
    %c0_i32 = arith.constant 0 : i32
    %c0_i32_0 = arith.constant 0 : i32
    %c0_i32_1 = arith.constant 0 : i32
    return %arg0, %c0_i32, %c0_i32_0 : i32, i32, i32
  }
  func.func @transform_1(%arg0: i32) -> (i32, i32, i32, i32) {
    %c0_i32 = arith.constant 0 : i32
    %c0_i32_0 = arith.constant 0 : i32
    %c0_i32_1 = arith.constant 0 : i32
    %c0_i32_2 = arith.constant 0 : i32
    %c0_i32_3 = arith.constant 0 : i32
    return %c0_i32, %c0_i32_0, %c0_i32_1, %c0_i32_2 : i32, i32, i32, i32
  }
  func.func @transform_2(%arg0: i32) -> (i32, i32) {
    %c0_i32 = arith.constant 0 : i32
    %c0_i32_0 = arith.constant 0 : i32
    %c0_i32_1 = arith.constant 0 : i32
    return %c0_i32, %c0_i32_0 : i32, i32
  }
  func.func @transform_3(%arg0: i32) -> (i32, i32, i32) {
    %c0_i32 = arith.constant 0 : i32
    %c0_i32_0 = arith.constant 0 : i32
    %c0_i32_1 = arith.constant 0 : i32
    return %arg0, %c0_i32, %c0_i32_0 : i32, i32, i32
  }
}

</mosaic_0001>

<bundles_post_ra>
// kernel: tpu_custom_call.1
= control target key start
LH: loop header
LB: loop body
LE: loop exit
PB: predicated region body
PF: predicated region fallthrough
CT: control target
= control target key end

     0   :  { %8 = vsyncpa [#allocation3], 0  ;;  %s21037_s0 = inlined_call_operand.vmem [shape: bf16[4,1164,3], index: 0, kind: input, shape index: {}]   ;;  %s21038_s1 = inlined_call_operand.vmem [shape: bf16[3,3,3,128], index: 1, kind: input, shape index: {}]   ;;  %s21039_s2 = inlined_call_operand.vmem [shape: f32[1,128], index: 2, kind: input, shape index: {}]   ;;  %s21040_s3 = inlined_call_operand.hbm [shape: bf16[4,1088,128], index: 3, kind: output, shape index: {}]  }
   0x1   :  { %10 = vsyncpa [#allocation3 + $0x1], 0  ;;  %s18217_s12 = smov 0   ;;  %s18219_s13 = smov 0  }
   0x2   :  { %s18221_s14 = smov 0   ;;  %s18223_s15 = smov 0  }
   0x3 LB: > { %s18238_s16 = sadd.s32 4294967295, %s18191_s15   ;;  %s13106_s17 = sadd.s32 4294967294, %s18191_s15   ;;  %s18191_s15 = sphi %s18223_s15, %s21245_s15   ;;  %s18187_s14 = sphi %s18221_s14, %s21244_s14   ;;  %s18183_s13 = sphi %s18219_s13, %s21243_s13   ;;  %s18179_s12 = sphi %s18217_s12, %s21242_s12  }
   0x4   : > { %s18242_s18 = sadd.s32 1, %s18191_s15   ;;  %s91_s19 = sadd.s32 1, %s18187_s14 }
   0x5   : > { %s88_s20 = ssub.s32 %s18191_s15, %s18242_s18  ;;  %p101_p0 = scmp.ne.s32.totalorder %s18187_s14, %s18183_s13 }
   0x6   : > { %p89_p1 = scmp.eq.s32.totalorder %s88_s20, 0  ;;  %p102_p2 = scmp.eq.s32.totalorder %s18238_s16, 3 }
   0x7   : > { %p107_p3 = scmp.ne.s32.totalorder %s18183_s13, %s18179_s12  ;;  %p108_p4 = scmp.eq.s32.totalorder %s13106_s17, 3 }
   0x8   : > { %s18253_s21 = scalar_select %p89_p1, %s18187_s14, %s91_s19  }
   0x9   : > { %p18255_p5 = por %p102_p2, %p101_p0  ;;  %p18259_p6 = por %p108_p4, %p107_p3 }
   0xa   : > { %p13109_p7 = scmp.ge.s32.totalorder %s18191_s15, 1  ;;  %p140_p8 = scmp.lt.s32.totalorder %s18191_s15, 5 }
   0xc   : > { %p141_p9 = pnand %p13109_p7, %p140_p8 }
   0xe   : > { %144 = sbr.rel (%p141_p9) target bundleno = 1496 (0x5d8), region = 32 }
  0x15   : > { %v13111_v0 = vld [vmem:[%s21038_s1 + $0x2] sm:$0x3]  ;;  %vm1407_vm0 = vcmask 1040384   ;;  %vm1408_vm1 = vcmask 1041408   ;;  %p164_p10 = scmp.lt.s32.totalorder %s18238_s16, 3  ;;  %v18193_v1 = vmov 65535  }
  0x16   : > { %v1409_v2 = vsel %vm1407_vm0, 4294967295, %v18193_v1  ;;  %v13525_v3 = vld [vmem:[%s21038_s1 + $0x8] sm:$0x3]  ;;  %v306_v5 = vld [vmem:[%s21038_s1] sm:$0x3]  ;;  %vm1202_vm3 = vcmask 23552  }
  0x17   : > { %v18272_v4 = vsel %vm1408_vm1, %v1409_v2, 0  ;;  %s165_s28 = scalar_select %p164_p10, %s18238_s16, 3  ;;  %v13595_v9 = vld [vmem:[%s21038_s1 + $0xa] sm:$0x3]  ;;  %vm653_vm2 = vsmask.f32 7424 }
  0x18   : > { %v1412_v6 = vand.u32 %v13111_v0, %v18272_v4  ;;  %v18280_v7 = vand.u32 %v13525_v3, %v18272_v4  ;;  %v18283_v8 = vand.u32 %v18272_v4, %v306_v5  ;;  %v18289_v10 = vand.u32 %v13595_v9, %v18272_v4  ;;  %s161_s4 = sand.u32 1, %s18183_s13   ;;  %s18194_s24 = smov [#allocation2]  }
  0x19   : > { %s17580_s6 = smul.u32 584, %s165_s28  ;;  %vm5316_vm4 = vsmask.f32 6400  ;;  %vm6863_vm5 = vcmask 1045504   ;;  %vm2713_vm6 = vcmask 1046528   ;;  %vm11013_vm8 = vcmask 1044480  }
  0x1a   : > { %15247 = vmatprep.subr.bf16.mxu1 %v1412_v6  ;;  %15799 = vmatprep.subr.bf16.mxu0 %v18280_v7  ;;  %vm9466_vm7 = vsmask.f32 5376  ;;  %s20633_s5 = smul.u32 544, %s161_s4  ;;  %s18133_s25 = sshll.u32 %s18194_s24, 4  ;;  %s18134_s25 = int_to_ptr.vmem [resolvable:$false] %s18133_s25 }
  0x1b   : > { %15248 = vmatpush3.bf16.msra.mxu1 %v1412_v6  ;;  %15800 = vmatpush3.bf16.msra.mxu0 %v18280_v7  ;;  %s18296_s9 = scalar_lea.vmem %s21037_s0, %s17580_s6  ;;  %s18135_s26 = scalar_lea.vmem %s18134_s25, 17408 }
  0x1c   : > { %v170_v11 = vld [vmem:[%s18296_s9] sm:$0xf]  ;;  %v171_v12 = vld [vmem:[%s18296_s9 + $0x4] sm:$0xf]  ;;  %15385 = vmatprep.subr.bf16.mxu1 %v18283_v8  ;;  %15937 = vmatprep.subr.bf16.mxu0 %v18289_v10  ;;  %v17625_v14 = vld [vmem:[%s18296_s9 + $0x8] sm:$0xff]   ;;  %s20658_s6 = scalar_lea.vmem [#allocation2], %s20633_s5 }
  0x1d   : > { %v18302_v13 = vcombine.low %v170_v11, %v171_v12  ;;  %v3771_v15 = vld [vmem:[%s18296_s9 + $0x10] sm:$0xe]  ;;  %v3772_v16 = vld [vmem:[%s18296_s9 + $0x14] sm:$0xf]  ;;  %v662_v19 = vshll.u32 %v17625_v14, 16  ;;  %v666_v20 = vshrl.u32 %v17625_v14, 16 }
  0x1e   : > { %v17627_v21 = vld [vmem:[%s18296_s9 + $0x18] sm:$0xff]   ;;  %v17628_v22 = vld [vmem:[%s18296_s9 + $0x10] sm:$0xff]   ;;  %v18311_v23 = vcombine.low %v3771_v15, %v3772_v16  ;;  %v17629_v31 = vld [vmem:[%s18296_s9 + $0x20] sm:$0xff]   ;;  %s13044_s10 = sshll.u32 %s20658_s6, 4  ;;  %s20990_s10 = int_to_ptr.vmem [resolvable:$true] %s13044_s10 }
  0x1f   : > { %v655_v17 = vshrl.u32 %v18302_v13, 16  ;;  %v657_v18 = vshll.u32 %v18302_v13, 16  ;;  %v664_v25 = vrot.slane %v662_v19, 1  ;;  %v5326_v26 = vshrl.u32 %v17627_v21, 16  ;;  %v17630_v36 = vld [vmem:[%s18296_s9 + $0x18] sm:$0xff]   ;;  %v17631_v37 = vld [vmem:[%s18296_s9 + $0x28] sm:$0xff]   ;;  %p18136_p0 = scmp.lt.s32.totalorder %s20990_s10, %s18134_s25 }
  0x20   : > { %21098 = vst [vmem:[#allocation5_spill] sm:$0xff] %v18311_v23  ;;  %v5329_v27 = vshll.u32 %v17627_v21, 16  ;;  %v5318_v28 = vshrl.u32 %v18311_v23, 16  ;;  %v5321_v29 = vshll.u32 %v18311_v23, 16  ;;  %v670_v30 = vshll.u32 %v17628_v22, 16  ;;  %v17632_v50 = vld [vmem:[%s18296_s9 + $0x20] sm:$0xff]  }
  0x21   : > { %v659_v24 = vrot.slane %v657_v18, 1  ;;  %v668_v33 = vor.u32 %v666_v20, %v664_v25  ;;  %v5328_v34 = vrot.slane %v5326_v26, 1  ;;  %v5335_v41 = vshrl.u32 %v17629_v31, 16  ;;  %v17633_v51 = vld [vmem:[%s18296_s9 + $0x30] sm:$0xff]   ;;  %v17634_v56 = vld [vmem:[%s18296_s9 + $0x28] sm:$0xff]   ;;  %v17635_v61 = vld [vmem:[%s18296_s9 + $0x38] sm:$0xff]  }
  0x22   : > { %v5331_v35 = vrot.slane %v5329_v27, 2  ;;  %v5320_v38 = vrot.slane %v5318_v28, 1  ;;  %v5323_v39 = vrot.slane %v5321_v29, 2  ;;  %v672_v40 = vrot.slane %v670_v30, 1  ;;  %v17636_v2 = vld [vmem:[%s18296_s9 + $0x30] sm:$0xff]   ;;  %v17637_v19 = vld [vmem:[%s18296_s9 + $0x40] sm:$0xff]  }
  0x23   : > { %v660_v32 = vor.u32 %v659_v24, %v655_v17  ;;  %v5338_v44 = vshll.u32 %v17629_v31, 16  ;;  %v674_v45 = vshrl.u32 %v17628_v22, 16  ;;  %v5337_v48 = vrot.slane %v5335_v41, 1  ;;  %v17638_v29 = vld [vmem:[%s18296_s9 + $0x38] sm:$0xff]   ;;  %s18129_s20 = scalar_lea.vmem %s20990_s10, 8704 }
  0x24   : > { %v5332_v43 = vor.u32 %v5331_v35, %v5328_v34  ;;  %v5324_v46 = vor.u32 %v5323_v39, %v5320_v38  ;;  %v673_v47 = vsel %vm653_vm2, %v668_v33, %v672_v40  ;;  %v678_v49 = vshll.u32 %v17630_v36, 16  ;;  %v19129_v23 = vld [vmem:[%s18296_s9 + $0x58] sm:$0xff]   ;;  %p18130_p11 = scmp.ne.s32.totalorder %s20990_s10, %s18129_s20  ;;  %p18137_p1 = scmp.lt.s32.totalorder %s18135_s26, %s18129_s20 }
  0x25   : > { %v665_v42 = vsel %vm653_vm2, %v660_v32, %v664_v25  ;;  %v5340_v52 = vrot.slane %v5338_v44, 2  ;;  %v676_v53 = vor.u32 %v674_v45, %v672_v40  ;;  %v5344_v54 = vshrl.u32 %v17631_v37, 16  ;;  %21106 = vst [vmem:[#allocation13_spill] sm:$0xff] %v19129_v23 }
  0x26   : > { %15249 = vmatprep.mubr.msk.bf16.mxu1 %vm1202_vm3, %v665_v42  ;;  %v5347_v55 = vshll.u32 %v17631_v37, 16  ;;  %v5333_v57 = vsel %vm5316_vm4, %v5324_v46, %v5332_v43  ;;  %v680_v58 = vrot.slane %v678_v49, 1  ;;  %v682_v59 = vshrl.u32 %v17630_v36, 16  ;;  %v17639_v37 = vld [vmem:[%s18296_s9 + $0x48] sm:$0xff]   ;;  %v17640_v42 = vld [vmem:[%s18296_s9 + $0x40] sm:$0xff]   ;;  %p18131_p12 = pnand %p18130_p11, %p18255_p5  ;;  %p18138_p2 = por %p18137_p1, %p18136_p0 }
  0x27   : > { %15250 = vmatmul.mubr.msk.bf16.vlgmr.msra.gmra.mrb[0].mxu1 %vm1202_vm3, %v673_v47  ;;  %v686_v60 = vshll.u32 %v17632_v50, 16  ;;  %15801 = vmatprep.mubr.msk.bf16.mxu0 %vm1202_vm3, %v5333_v57  ;;  %v5341_v62 = vor.u32 %v5340_v52, %v5337_v48  ;;  %v5346_v63 = vrot.slane %v5344_v54, 1  ;;  %v5353_v1 = vshrl.u32 %v17633_v51, 16 }
  0x28   : > { %15386 = vmatpush3.bf16.msra.mxu1 %v18283_v8  ;;  %v5349_v0 = vrot.slane %v5347_v55, 2  ;;  %v681_v3 = vsel %vm653_vm2, %v676_v53, %v680_v58  ;;  %v684_v5 = vor.u32 %v682_v59, %v680_v58  ;;  %v5356_v9 = vshll.u32 %v17633_v51, 16  ;;  %v17642_v51 = vld [vmem:[%s18296_s9 + $0x48] sm:$0xff]   ;;  %v17643_v59 = vld [vmem:[%s18296_s9 + $0x58] sm:$0xff]   ;;  %p18132_p13 = pneg %p18131_p12 }
  0x29   : > { %v688_v6 = vrot.slane %v686_v60, 1  ;;  %v5342_v11 = vsel %vm5316_vm4, %v5332_v43, %v5341_v62  ;;  %15253 = vmatprep.mubr.msk.bf16.mxu1 %vm1202_vm3, %v681_v3  ;;  %v5355_v12 = vrot.slane %v5353_v1, 1  ;;  %v690_v14 = vshrl.u32 %v17632_v50, 16  ;;  %v17641_v50 = vld [vmem:[%s18296_s9 + $0x50] sm:$0xff]  }
  0x2a   : > { %v5350_v8 = vor.u32 %v5349_v0, %v5346_v63  ;;  %15802 = vmatmul.mubr.msk.bf16.vlgmr.msra.gmra.mrb[0].mxu0 %vm1202_vm3, %v5342_v11  ;;  %v5358_v16 = vrot.slane %v5356_v9, 2  ;;  %v694_v17 = vshll.u32 %v17634_v56, 16  ;;  %v5362_v18 = vshrl.u32 %v17635_v61, 16  ;;  %v17644_v3 = vld [vmem:[%s18296_s9 + $0x50] sm:$0xff]   ;;  %v17645_v9 = vld [vmem:[%s18296_s9 + $0x60] sm:$0xff]   ;;  %p18139_p3 = pnand %p18138_p2, %p18132_p13 }
  0x2b   : > { %v689_v15 = vsel %vm653_vm2, %v684_v5, %v688_v6  ;;  %15938 = vmatpush3.bf16.msra.mxu0 %v18289_v10  ;;  %v692_v21 = vor.u32 %v690_v14, %v688_v6  ;;  %v5365_v22 = vshll.u32 %v17635_v61, 16  ;;  %v698_v24 = vshrl.u32 %v17634_v56, 16 }
  0x2c   : > { %v5351_v20 = vsel %vm5316_vm4, %v5341_v62, %v5350_v8  ;;  %v5359_v25 = vor.u32 %v5358_v16, %v5355_v12  ;;  %v696_v26 = vrot.slane %v694_v17, 1  ;;  %v5364_v27 = vrot.slane %v5362_v18, 1  ;;  %v17646_v18 = vld [vmem:[%s18296_s9 + $0x58] sm:$0xff]  }
  0x2d   : > { %15805 = vmatprep.mubr.msk.bf16.mxu0 %vm1202_vm3, %v5351_v20  ;;  %v702_v28 = vshll.u32 %v17636_v2, 16  ;;  %v5367_v30 = vrot.slane %v5365_v22, 2  ;;  %v5371_v31 = vshrl.u32 %v17637_v19, 16  ;;  %v5374_v32 = vshll.u32 %v17637_v19, 16 }
  0x2e   : > { %v706_v10 = vshrl.u32 %v17636_v2, 16  ;;  %v5360_v33 = vsel %vm5316_vm4, %v5350_v8, %v5359_v25  ;;  %v697_v34 = vsel %vm653_vm2, %v692_v21, %v696_v26  ;;  %v700_v35 = vor.u32 %v698_v24, %v696_v26  ;;  %v17647_v24 = vld [vmem:[%s18296_s9 + $0x68] sm:$0xff]  }
  0x2f   : > { %15254 = vmatmul.mubr.msk.bf16.gmra.mrb[4].mxu1 %vm1202_vm3, %v689_v15  ;;  %v704_v36 = vrot.slane %v702_v28, 1  ;;  %v5368_v38 = vor.u32 %v5367_v30, %v5364_v27  ;;  %v5373_v39 = vrot.slane %v5371_v31, 1  ;;  %v5376_v40 = vrot.slane %v5374_v32, 2 }
  0x30   : > { %15257 = vmatprep.mubr.msk.bf16.mxu1 %vm1202_vm3, %v697_v34  ;;  %v710_v41 = vshll.u32 %v17638_v29, 16  ;;  %v5380_v44 = vshrl.u32 %v17639_v37, 16  ;;  %v5383_v45 = vshll.u32 %v17639_v37, 16  ;;  %v714_v49 = vshrl.u32 %v17638_v29, 16 }
  0x31   : > { %v708_v43 = vor.u32 %v706_v10, %v704_v36  ;;  %v5369_v46 = vsel %vm5316_vm4, %v5359_v25, %v5368_v38  ;;  %v705_v47 = vsel %vm653_vm2, %v700_v35, %v704_v36  ;;  %v718_v54 = vshll.u32 %v17640_v42, 16  ;;  %v17648_v10 = vld [vmem:[%s18296_s9 + $0x60] sm:$0xff]   ;;  %v17650_v36 = vld [vmem:[%s18296_s9 + $0x68] sm:$0xff]  }
  0x32   : > { %v712_v48 = vrot.slane %v710_v41, 1  ;;  %15806 = vmatmul.mubr.msk.bf16.gmra.mrb[4].mxu0 %vm1202_vm3, %v5360_v33  ;;  %v5382_v52 = vrot.slane %v5380_v44, 1  ;;  %v5385_v53 = vrot.slane %v5383_v45, 2  ;;  %v722_v55 = vshrl.u32 %v17640_v42, 16  ;;  %v17649_v33 = vld [vmem:[%s18296_s9 + $0x70] sm:$0xff]   ;;  %v17651_v45 = vld [vmem:[%s18296_s9 + $0x78] sm:$0xff]  }
  0x33   : > { %15809 = vmatprep.mubr.msk.bf16.mxu0 %vm1202_vm3, %v5369_v46  ;;  %v5377_v56 = vor.u32 %v5376_v40, %v5373_v39  ;;  %v5389_v58 = vshrl.u32 %v17641_v50, 16  ;;  %v720_v61 = vrot.slane %v718_v54, 1  ;;  %v5392_v62 = vshll.u32 %v17641_v50, 16  ;;  %v17652_v54 = vld [vmem:[%s18296_s9 + $0x70] sm:$0xff]  }
  0x34   : > { %v713_v57 = vsel %vm653_vm2, %v708_v43, %v712_v48  ;;  %v5386_v60 = vor.u32 %v5385_v53, %v5382_v52  ;;  %v726_v63 = vshll.u32 %v17642_v51, 16  ;;  %v5398_v1 = vshrl.u32 %v17643_v59, 16 }
  0x35   : > { %v5391_v0 = vrot.slane %v5389_v58, 1  ;;  %v5401_v2 = vshll.u32 %v17643_v59, 16  ;;  %v716_v5 = vor.u32 %v714_v49, %v712_v48  ;;  %v5394_v6 = vrot.slane %v5392_v62, 2 }
  0x36   : > { %v5378_v11 = vsel %vm5316_vm4, %v5368_v38, %v5377_v56  ;;  %v724_v8 = vor.u32 %v722_v55, %v720_v61  ;;  %v728_v12 = vrot.slane %v726_v63, 1  ;;  %v5387_v14 = vsel %vm5316_vm4, %v5377_v56, %v5386_v60  ;;  %v17653_v55 = vld [vmem:[%s18296_s9 + $0x80] sm:$0xff]  }
  0x37   : > { %15258 = vmatmul.mubr.msk.bf16.gmra.mrb[8].mxu1 %vm1202_vm3, %v705_v47  ;;  %v5400_v15 = vrot.slane %v5398_v1, 1  ;;  %v5403_v16 = vrot.slane %v5401_v2, 2  ;;  %v734_v17 = vshll.u32 %v17644_v3, 16  ;;  %v721_v19 = vsel %vm653_vm2, %v716_v5, %v720_v61 }
  0x38   : > { %15261 = vmatprep.mubr.msk.bf16.mxu1 %vm1202_vm3, %v713_v57  ;;  %v5395_v20 = vor.u32 %v5394_v6, %v5391_v0  ;;  %v730_v21 = vshrl.u32 %v17642_v51, 16  ;;  %v5407_v22 = vshrl.u32 %v17645_v9, 16  ;;  %v729_v25 = vsel %vm653_vm2, %v724_v8, %v728_v12  ;;  %v17655_v8 = vld [vmem:[%s18296_s9 + $0x88] sm:$0xff]  }
  0x39   : > { %v5410_v26 = vshll.u32 %v17645_v9, 16  ;;  %v738_v27 = vshrl.u32 %v17644_v3, 16  ;;  %v742_v28 = vshll.u32 %v17646_v18, 16  ;;  %v5404_v29 = vor.u32 %v5403_v16, %v5400_v15  ;;  %v17654_v3 = vld [vmem:[%s18296_s9 + $0x78] sm:$0xff]  }
  0x3a   : > { %15810 = vmatmul.mubr.msk.bf16.gmra.mrb[8].mxu0 %vm1202_vm3, %v5378_v11  ;;  %v5416_v30 = vshrl.u32 %v17647_v24, 16  ;;  %v5419_v31 = vshll.u32 %v17647_v24, 16  ;;  %v736_v32 = vrot.slane %v734_v17, 1  ;;  %v732_v34 = vor.u32 %v730_v21, %v728_v12 }
  0x3b   : > { %15813 = vmatprep.mubr.msk.bf16.mxu0 %vm1202_vm3, %v5387_v14  ;;  %v5409_v35 = vrot.slane %v5407_v22, 1  ;;  %v5396_v37 = vsel %vm5316_vm4, %v5386_v60, %v5395_v20  ;;  %v5412_v38 = vrot.slane %v5410_v26, 2  ;;  %v744_v40 = vrot.slane %v742_v28, 1  ;;  %v17656_v28 = vld [vmem:[%s18296_s9 + $0x80] sm:$0xff]  }
  0x3c   : > { %v740_v39 = vor.u32 %v738_v27, %v736_v32  ;;  %v5405_v41 = vsel %vm5316_vm4, %v5395_v20, %v5404_v29  ;;  %v5418_v42 = vrot.slane %v5416_v30, 1  ;;  %v5421_v43 = vrot.slane %v5419_v31, 2  ;;  %v17658_v30 = vld [vmem:[%s18296_s9 + $0x88] sm:$0xff]  }
  0x3d   : > { %v746_v44 = vshrl.u32 %v17646_v18, 16  ;;  %v750_v46 = vshll.u32 %v17648_v10, 16  ;;  %v5425_v47 = vshrl.u32 %v17649_v33, 16  ;;  %v737_v48 = vsel %vm653_vm2, %v732_v34, %v736_v32 }
  0x3e   : > { %v5428_v49 = vshll.u32 %v17649_v33, 16  ;;  %v758_v50 = vshll.u32 %v17650_v36, 16  ;;  %v5413_v51 = vor.u32 %v5412_v38, %v5409_v35  ;;  %v745_v52 = vsel %vm653_vm2, %v740_v39, %v744_v40  ;;  %v17659_v33 = vld [vmem:[%s18296_s9 + $0x98] sm:$0xff]  }
  0x3f   : > { %15262 = vmatmul.mubr.msk.bf16.gmra.mrb[12].mxu1 %vm1202_vm3, %v721_v19  ;;  %v754_v53 = vshrl.u32 %v17648_v10, 16  ;;  %v5422_v56 = vor.u32 %v5421_v43, %v5418_v42  ;;  %v5434_v57 = vshrl.u32 %v17651_v45, 16  ;;  %v5437_v58 = vshll.u32 %v17651_v45, 16 }
  0x40   : > { %15265 = vmatprep.mubr.msk.bf16.mxu1 %vm1202_vm3, %v729_v25  ;;  %v752_v59 = vrot.slane %v750_v46, 1  ;;  %v5427_v60 = vrot.slane %v5425_v47, 1  ;;  %v748_v61 = vor.u32 %v746_v44, %v744_v40  ;;  %v5430_v62 = vrot.slane %v5428_v49, 2  ;;  %v17660_v49 = vld [vmem:[%s18296_s9 + $0x90] sm:$0xff]  }
  0x41   : > { %v760_v63 = vrot.slane %v758_v50, 1  ;;  %v5414_v0 = vsel %vm5316_vm4, %v5404_v29, %v5413_v51  ;;  %v766_v2 = vshll.u32 %v17652_v54, 16  ;;  %v5423_v5 = vsel %vm5316_vm4, %v5413_v51, %v5422_v56  ;;  %v17657_v29 = vld [vmem:[%s18296_s9 + $0x90] sm:$0xff]   ;;  %v17661_v51 = vld [vmem:[%s18296_s9 + $0xa0] sm:$0xff]  }
  0x42   : > { %15814 = vmatmul.mubr.msk.bf16.gmra.mrb[12].mxu0 %vm1202_vm3, %v5396_v37  ;;  %v756_v1 = vor.u32 %v754_v53, %v752_v59  ;;  %v5436_v6 = vrot.slane %v5434_v57, 1  ;;  %v5439_v9 = vrot.slane %v5437_v58, 2  ;;  %v5443_v11 = vshrl.u32 %v17653_v55, 16 }
  0x43   : > { %15817 = vmatprep.mubr.msk.bf16.mxu0 %vm1202_vm3, %v5405_v41  ;;  %v762_v12 = vshrl.u32 %v17650_v36, 16  ;;  %v5446_v14 = vshll.u32 %v17653_v55, 16  ;;  %v753_v15 = vsel %vm653_vm2, %v748_v61, %v752_v59  ;;  %v5431_v16 = vor.u32 %v5430_v62, %v5427_v60  ;;  %v17662_v59 = vld [vmem:[%s18296_s9 + $0x98] sm:$0xff]   ;;  %v17663_v62 = vld [vmem:[%s18296_s9 + $0xa8] sm:$0xff]  }
  0x44   : > { %v761_v17 = vsel %vm653_vm2, %v756_v1, %v760_v63  ;;  %v768_v18 = vrot.slane %v766_v2, 1  ;;  %v770_v19 = vshrl.u32 %v17652_v54, 16  ;;  %v774_v20 = vshll.u32 %v17654_v3, 16 }
  0x45   : > { %v5440_v21 = vor.u32 %v5439_v9, %v5436_v6  ;;  %v5445_v22 = vrot.slane %v5443_v11, 1  ;;  %v5452_v24 = vshrl.u32 %v17655_v8, 16  ;;  %v5455_v25 = vshll.u32 %v17655_v8, 16 }
  0x46   : > { %v764_v26 = vor.u32 %v762_v12, %v760_v63  ;;  %v5448_v27 = vrot.slane %v5446_v14, 2  ;;  %v5432_v31 = vsel %vm5316_vm4, %v5422_v56, %v5431_v16  ;;  %v772_v32 = vor.u32 %v770_v19, %v768_v18 }
  0x47   : > { %15266 = vmatmul.mubr.msk.bf16.gmra.mrb[16].mxu1 %vm1202_vm3, %v737_v48  ;;  %v776_v10 = vrot.slane %v774_v20, 1  ;;  %v5441_v34 = vsel %vm5316_vm4, %v5431_v16, %v5440_v21  ;;  %v5454_v35 = vrot.slane %v5452_v24, 1  ;;  %v5457_v36 = vrot.slane %v5455_v25, 2  ;;  %v17665_v20 = vld [vmem:[%s18296_s9 + $0xb0] sm:$0xff]   ;;  %v17666_v25 = vld [vmem:[%s18296_s9 + $0xa8] sm:$0xff]  }
  0x48   : > { %15269 = vmatprep.mubr.msk.bf16.mxu1 %vm1202_vm3, %v745_v52  ;;  %v769_v37 = vsel %vm653_vm2, %v764_v26, %v768_v18  ;;  %v5449_v38 = vor.u32 %v5448_v27, %v5445_v22  ;;  %v782_v39 = vshll.u32 %v17656_v28, 16  ;;  %v778_v40 = vshrl.u32 %v17654_v3, 16  ;;  %v17664_v18 = vld [vmem:[%s18296_s9 + $0xa0] sm:$0xff]  }
  0x49   : > { %v5461_v41 = vshrl.u32 %v17657_v29, 16  ;;  %v5464_v42 = vshll.u32 %v17657_v29, 16  ;;  %v786_v43 = vshrl.u32 %v17656_v28, 16  ;;  %v777_v44 = vsel %vm653_vm2, %v772_v32, %v776_v10  ;;  %v17667_v29 = vld [vmem:[%s18296_s9 + $0xb8] sm:$0xff]  }
  0x4a   : > { %15818 = vmatmul.mubr.msk.bf16.gmra.mrb[16].mxu0 %vm1202_vm3, %v5414_v0  ;;  %v790_v45 = vshll.u32 %v17658_v30, 16  ;;  %v5470_v46 = vshrl.u32 %v17659_v33, 16  ;;  %v5458_v47 = vor.u32 %v5457_v36, %v5454_v35  ;;  %v5473_v48 = vshll.u32 %v17659_v33, 16 }
  0x4b   : > { %15821 = vmatprep.mubr.msk.bf16.mxu0 %vm1202_vm3, %v5423_v5  ;;  %v784_v50 = vrot.slane %v782_v39, 1  ;;  %v5450_v52 = vsel %vm5316_vm4, %v5440_v21, %v5449_v38  ;;  %v780_v53 = vor.u32 %v778_v40, %v776_v10  ;;  %v5463_v54 = vrot.slane %v5461_v41, 1 }
  0x4c   : > { %v5466_v55 = vrot.slane %v5464_v42, 2  ;;  %v792_v57 = vrot.slane %v790_v45, 1  ;;  %v5472_v58 = vrot.slane %v5470_v46, 1  ;;  %v5459_v60 = vsel %vm5316_vm4, %v5449_v38, %v5458_v47  ;;  %v17668_v42 = vld [vmem:[%s18296_s9 + $0xb0] sm:$0xff]   ;;  %v17669_v45 = vld [vmem:[%s18296_s9 + $0xc0] sm:$0xff]  }
  0x4d   : > { %v788_v56 = vor.u32 %v786_v43, %v784_v50  ;;  %v5475_v61 = vrot.slane %v5473_v48, 2  ;;  %v794_v63 = vshrl.u32 %v17658_v30, 16  ;;  %v798_v0 = vshll.u32 %v17660_v49, 16 }
  0x4e   : > { %v5479_v1 = vshrl.u32 %v17661_v51, 16  ;;  %v785_v2 = vsel %vm653_vm2, %v780_v53, %v784_v50  ;;  %v5482_v3 = vshll.u32 %v17661_v51, 16  ;;  %v5467_v5 = vor.u32 %v5466_v55, %v5463_v54  ;;  %v17670_v50 = vld [vmem:[%s18296_s9 + $0xb8] sm:$0xff]   ;;  %v17671_v54 = vld [vmem:[%s18296_s9 + $0xc8] sm:$0xff]  }
  0x4f   : > { %15270 = vmatmul.mubr.msk.bf16.gmra.mrb[20].mxu1 %vm1202_vm3, %v753_v15  ;;  %v793_v6 = vsel %vm653_vm2, %v788_v56, %v792_v57  ;;  %v802_v9 = vshrl.u32 %v17660_v49, 16  ;;  %v806_v11 = vshll.u32 %v17662_v59, 16  ;;  %v5476_v8 = vor.u32 %v5475_v61, %v5472_v58 }
  0x50   : > { %15273 = vmatprep.mubr.msk.bf16.mxu1 %vm1202_vm3, %v761_v17  ;;  %v5488_v12 = vshrl.u32 %v17663_v62, 16  ;;  %v5491_v14 = vshll.u32 %v17663_v62, 16  ;;  %v796_v15 = vor.u32 %v794_v63, %v792_v57  ;;  %v800_v16 = vrot.slane %v798_v0, 1 }
  0x51   : > { %v5481_v17 = vrot.slane %v5479_v1, 1  ;;  %v5484_v19 = vrot.slane %v5482_v3, 2  ;;  %v5468_v21 = vsel %vm5316_vm4, %v5458_v47, %v5467_v5  ;;  %v808_v24 = vrot.slane %v806_v11, 1 }
  0x52   : > { %15822 = vmatmul.mubr.msk.bf16.gmra.mrb[20].mxu0 %vm1202_vm3, %v5432_v31  ;;  %v804_v22 = vor.u32 %v802_v9, %v800_v16  ;;  %v5477_v26 = vsel %vm5316_vm4, %v5467_v5, %v5476_v8  ;;  %v5490_v27 = vrot.slane %v5488_v12, 1  ;;  %v5493_v28 = vrot.slane %v5491_v14, 2  ;;  %v17672_v5 = vld [vmem:[%s18296_s9 + $0xc0] sm:$0xff]  }
  0x53   : > { %15825 = vmatprep.mubr.msk.bf16.mxu0 %vm1202_vm3, %v5441_v34  ;;  %v801_v30 = vsel %vm653_vm2, %v796_v15, %v800_v16  ;;  %v814_v31 = vshll.u32 %v17664_v18, 16  ;;  %v5485_v32 = vor.u32 %v5484_v19, %v5481_v17  ;;  %v810_v10 = vshrl.u32 %v17662_v59, 16  ;;  %v17674_v16 = vld [vmem:[%s18296_s9 + $0xc8] sm:$0xff]  }
  0x54   : > { %v5497_v33 = vshrl.u32 %v17665_v20, 16  ;;  %v5500_v34 = vshll.u32 %v17665_v20, 16  ;;  %v809_v35 = vsel %vm653_vm2, %v804_v22, %v808_v24  ;;  %v818_v36 = vshrl.u32 %v17664_v18, 16  ;;  %v17675_v20 = vld [vmem:[%s18296_s9 + $0xd8] sm:$0xff]  }
  0x55   : > { %v5494_v38 = vor.u32 %v5493_v28, %v5490_v27  ;;  %v5506_v39 = vshrl.u32 %v17667_v29, 16  ;;  %v5509_v40 = vshll.u32 %v17667_v29, 16  ;;  %v816_v41 = vrot.slane %v814_v31, 1 }
  0x56   : > { %v5486_v43 = vsel %vm5316_vm4, %v5476_v8, %v5485_v32  ;;  %v5499_v46 = vrot.slane %v5497_v33, 1  ;;  %v5502_v47 = vrot.slane %v5500_v34, 2  ;;  %v830_v55 = vshll.u32 %v17668_v42, 16 }
  0x57   : > { %15274 = vmatmul.mubr.msk.bf16.gmra.mrb[24].mxu1 %vm1202_vm3, %v769_v37  ;;  %v822_v37 = vshll.u32 %v17666_v25, 16  ;;  %v820_v48 = vor.u32 %v818_v36, %v816_v41  ;;  %v5495_v51 = vsel %vm5316_vm4, %v5485_v32, %v5494_v38  ;;  %v5511_v53 = vrot.slane %v5509_v40, 2  ;;  %v17677_v36 = vld [vmem:[%s18296_s9 + $0xe0] sm:$0xff]  }
  0x58   : > { %15277 = vmatprep.mubr.msk.bf16.mxu1 %vm1202_vm3, %v777_v44  ;;  %v812_v44 = vor.u32 %v810_v10, %v808_v24  ;;  %v826_v57 = vshrl.u32 %v17666_v25, 16  ;;  %v5515_v58 = vshrl.u32 %v17669_v45, 16  ;;  %v5518_v59 = vshll.u32 %v17669_v45, 16 }
  0x59   : > { %v824_v49 = vrot.slane %v822_v37, 1  ;;  %v834_v62 = vshrl.u32 %v17668_v42, 16  ;;  %v838_v63 = vshll.u32 %v17670_v50, 16  ;;  %v5524_v1 = vshrl.u32 %v17671_v54, 16 }
  0x5a   : > { %15826 = vmatmul.mubr.msk.bf16.gmra.mrb[24].mxu0 %vm1202_vm3, %v5450_v52  ;;  %v5508_v52 = vrot.slane %v5506_v39, 1  ;;  %v817_v56 = vsel %vm653_vm2, %v812_v44, %v816_v41  ;;  %v832_v3 = vrot.slane %v830_v55, 1  ;;  %v5517_v11 = vrot.slane %v5515_v58, 1  ;;  %v17678_v39 = vld [vmem:[%s18296_s9 + $0xd8] sm:$0xff]  }
  0x5b   : > { %15829 = vmatprep.mubr.msk.bf16.mxu0 %vm1202_vm3, %v5459_v60  ;;  %v5503_v60 = vor.u32 %v5502_v47, %v5499_v46  ;;  %v825_v61 = vsel %vm653_vm2, %v820_v48, %v824_v49  ;;  %v828_v9 = vor.u32 %v826_v57, %v824_v49  ;;  %v5520_v8 = vrot.slane %v5518_v59, 2 }
  0x5c   : > { %v5512_v0 = vor.u32 %v5511_v53, %v5508_v52  ;;  %v836_v14 = vor.u32 %v834_v62, %v832_v3  ;;  %v840_v15 = vrot.slane %v838_v63, 1  ;;  %v5526_v18 = vrot.slane %v5524_v1, 1  ;;  %v17681_v62 = vld [vmem:[%s18296_s9 + $0xf0] sm:$0xff]  }
  0x5d   : > { %v5504_v12 = vsel %vm5316_vm4, %v5494_v38, %v5503_v60  ;;  %v833_v24 = vsel %vm653_vm2, %v828_v9, %v832_v3  ;;  %v842_v25 = vshrl.u32 %v17670_v50, 16  ;;  %v5521_v27 = vor.u32 %v5520_v8, %v5517_v11  ;;  %v17682_v9 = vld [vmem:[%s18296_s9 + $0xe8] sm:$0xff]  }
  0x5e   : > { %v5513_v17 = vsel %vm5316_vm4, %v5503_v60, %v5512_v0  ;;  %v841_v28 = vsel %vm653_vm2, %v836_v14, %v840_v15  ;;  %v850_v29 = vshrl.u32 %v17672_v5, 16  ;;  %v5542_v32 = vshrl.u32 %v17675_v20, 16 }
  0x5f   : > { %15278 = vmatmul.mubr.msk.bf16.gmra.mrb[28].mxu1 %vm1202_vm3, %v785_v2  ;;  %v5527_v2 = vshll.u32 %v17671_v54, 16  ;;  %v5545_v10 = vshll.u32 %v17675_v20, 16  ;;  %v844_v37 = vor.u32 %v842_v25, %v840_v15  ;;  %v5522_v40 = vsel %vm5316_vm4, %v5512_v0, %v5521_v27 }
  0x60   : > { %15281 = vmatprep.mubr.msk.bf16.mxu1 %vm1202_vm3, %v793_v6  ;;  %v17673_v6 = vld [vmem:[%s18296_s9 + $0xd0] sm:$0xff]   ;;  %v5544_v45 = vrot.slane %v5542_v32, 1  ;;  %v858_v47 = vshrl.u32 %v17674_v16, 16  ;;  %v5551_v49 = vshrl.u32 %v17677_v36, 16  ;;  %v870_v52 = vshll.u32 %v17678_v39, 16 }
  0x61   : > { %v5529_v19 = vrot.slane %v5527_v2, 2  ;;  %v5533_v22 = vshrl.u32 %v17673_v6, 16  ;;  %v5547_v46 = vrot.slane %v5545_v10, 2  ;;  %v13665_v2 = vld [vmem:[%s21038_s1 + $0xc] sm:$0x3]  ;;  %v874_v14 = vshrl.u32 %v17678_v39, 16 }
  0x62   : > { %15830 = vmatmul.mubr.msk.bf16.gmra.mrb[28].mxu0 %vm1202_vm3, %v5468_v21  ;;  %v846_v21 = vshll.u32 %v17672_v5, 16  ;;  %v5553_v60 = vrot.slane %v5551_v49, 1  ;;  %v872_v1 = vrot.slane %v870_v52, 1  ;;  %v17685_v10 = vld [vmem:[%s18296_s9 + $0x100] sm:$0xff]  }
  0x63   : > { %15833 = vmatprep.mubr.msk.bf16.mxu0 %vm1202_vm3, %v5477_v26  ;;  %v5536_v26 = vshll.u32 %v17673_v6, 16  ;;  %v5530_v31 = vor.u32 %v5529_v19, %v5526_v18  ;;  %v5535_v34 = vrot.slane %v5533_v22, 1  ;;  %v5548_v57 = vor.u32 %v5547_v46, %v5544_v45 }
  0x64   : > { %v848_v33 = vrot.slane %v846_v21, 1  ;;  %v5572_v19 = vshll.u32 %v17681_v62, 16  ;;  %v5587_v45 = vshrl.u32 %v17685_v10, 16  ;;  %v5590_v46 = vshll.u32 %v17685_v10, 16 }
  0x65   : > { %v5538_v38 = vrot.slane %v5536_v26, 2  ;;  %v5531_v44 = vsel %vm5316_vm4, %v5521_v27, %v5530_v31 }
  0x66   : > { %v852_v41 = vor.u32 %v850_v29, %v848_v33  ;;  %v849_v50 = vsel %vm653_vm2, %v844_v37, %v848_v33  ;;  %v5574_v32 = vrot.slane %v5572_v19, 2 }
  0x67   : > { %15282 = vmatmul.mubr.msk.bf16.gmra.mrb[32].mxu1 %vm1202_vm3, %v801_v30  ;;  %v854_v30 = vshll.u32 %v17674_v16, 16  ;;  %v5539_v53 = vor.u32 %v5538_v38, %v5535_v34  ;;  %v5569_v16 = vshrl.u32 %v17681_v62, 16  ;;  %v17690_v62 = vld [vmem:[%s18296_s9 + $0x108] sm:$0xff]  }
  0x68   : > { %15285 = vmatprep.mubr.msk.bf16.mxu1 %vm1202_vm3, %v809_v35  ;;  %v17676_v35 = vld [vmem:[%s18296_s9 + $0xd0] sm:$0xff]  }
  0x69   : > { %v856_v42 = vrot.slane %v854_v30, 1  ;;  %v862_v48 = vshll.u32 %v17676_v35, 16  ;;  %v866_v55 = vshrl.u32 %v17676_v35, 16  ;;  %v5540_v3 = vsel %vm5316_vm4, %v5530_v31, %v5539_v53  ;;  %v17684_v31 = vld [vmem:[%s18296_s9 + $0xf0] sm:$0xff]  }
  0x6a   : > { %15834 = vmatmul.mubr.msk.bf16.gmra.mrb[32].mxu0 %vm1202_vm3, %v5486_v43  ;;  %v17679_v43 = vld [vmem:[%s18296_s9 + $0xe8] sm:$0xff]   ;;  %v5549_v11 = vsel %vm5316_vm4, %v5539_v53, %v5548_v57  ;;  %v5571_v30 = vrot.slane %v5569_v16, 1 }
  0x6b   : > { %15837 = vmatprep.mubr.msk.bf16.mxu0 %vm1202_vm3, %v5495_v51  ;;  %v5554_v51 = vshll.u32 %v17677_v36, 16  ;;  %v857_v54 = vsel %vm653_vm2, %v852_v41, %v856_v42  ;;  %v5563_v58 = vshll.u32 %v17679_v43, 16  ;;  %v864_v59 = vrot.slane %v862_v48, 1  ;;  %v17686_v36 = vld [vmem:[%s18296_s9 + $0xf8] sm:$0xff]  }
  0x6c   : > { %v860_v63 = vor.u32 %v858_v47, %v856_v42  ;;  %v894_v42 = vshll.u32 %v17684_v31, 16  ;;  %v898_v48 = vshrl.u32 %v17684_v31, 16  ;;  %v902_v49 = vshll.u32 %v17686_v36, 16 }
  0x6d   : > { %v5556_v0 = vrot.slane %v5554_v51, 2  ;;  %v868_v5 = vor.u32 %v866_v55, %v864_v59  ;;  %v5565_v8 = vrot.slane %v5563_v58, 2  ;;  %v5589_v58 = vrot.slane %v5587_v45, 1  ;;  %v17696_v45 = vld [vmem:[%s18296_s9 + $0x120] sm:$0xff]  }
  0x6e   : > { %v865_v18 = vsel %vm653_vm2, %v860_v63, %v864_v59  ;;  %v896_v53 = vrot.slane %v894_v42, 1  ;;  %v5592_v59 = vrot.slane %v5590_v46, 2 }
  0x6f   : > { %15286 = vmatmul.mubr.msk.bf16.gmra.mrb[36].mxu1 %vm1202_vm3, %v817_v56  ;;  %v5560_v56 = vshrl.u32 %v17679_v43, 16  ;;  %v5557_v20 = vor.u32 %v5556_v0, %v5553_v60  ;;  %v873_v21 = vsel %vm653_vm2, %v868_v5, %v872_v1  ;;  %v5575_v43 = vor.u32 %v5574_v32, %v5571_v30  ;;  %v17694_v30 = vld [vmem:[%s18296_s9 + $0x118] sm:$0xff]  }
  0x70   : > { %15289 = vmatprep.mubr.msk.bf16.mxu1 %vm1202_vm3, %v825_v61  ;;  %v17680_v61 = vld [vmem:[%s18296_s9 + $0xe0] sm:$0xff]   ;;  %v900_v60 = vor.u32 %v898_v48, %v896_v53 }
  0x71   : > { %v5562_v6 = vrot.slane %v5560_v56, 1  ;;  %v878_v15 = vshll.u32 %v17680_v61, 16  ;;  %v882_v22 = vshrl.u32 %v17680_v61, 16  ;;  %v5558_v33 = vsel %vm5316_vm4, %v5548_v57, %v5557_v20  ;;  %v17689_v57 = vld [vmem:[%s18296_s9 + $0x110] sm:$0xff]  }
  0x72   : > { %15838 = vmatmul.mubr.msk.bf16.gmra.mrb[36].mxu0 %vm1202_vm3, %v5504_v12  ;;  %v17683_v12 = vld [vmem:[%s18296_s9 + $0xf8] sm:$0xff]   ;;  %v904_v61 = vrot.slane %v902_v49, 1 }
  0x73   : > { %15841 = vmatprep.mubr.msk.bf16.mxu0 %vm1202_vm3, %v5513_v17  ;;  %v18474_v17 = vand.u32 %v13665_v2, %v18272_v4  ;;  %v5566_v25 = vor.u32 %v5565_v8, %v5562_v6  ;;  %v5578_v26 = vshrl.u32 %v17683_v12, 16  ;;  %v5581_v27 = vshll.u32 %v17683_v12, 16  ;;  %v17691_v2 = vld [vmem:[%s18296_s9 + $0x118] sm:$0xff]  }
  0x74   : > { %v880_v29 = vrot.slane %v878_v15, 1  ;;  %v5593_v8 = vor.u32 %v5592_v59, %v5589_v58  ;;  %v905_v12 = vsel %vm653_vm2, %v900_v60, %v904_v61  ;;  %v918_v15 = vshll.u32 %v17690_v62, 16 }
  0x75   : > { %16075 = vmatprep.subr.bf16.mxu0 %v18474_v17  ;;  %v5567_v37 = vsel %vm5316_vm4, %v5557_v20, %v5566_v25  ;;  %v5580_v38 = vrot.slane %v5578_v26, 1  ;;  %v5583_v39 = vrot.slane %v5581_v27, 2  ;;  %v5576_v55 = vsel %vm5316_vm4, %v5566_v25, %v5575_v43  ;;  %v17693_v26 = vld [vmem:[%s18296_s9 + $0x120] sm:$0xff]  }
  0x76   : > { %v884_v34 = vor.u32 %v882_v22, %v880_v29  ;;  %v5617_v19 = vshll.u32 %v17691_v2, 16  ;;  %v938_v58 = vshrl.u32 %v17694_v30, 16 }
  0x77   : > { %15290 = vmatmul.mubr.msk.bf16.gmra.mrb[40].mxu1 %vm1202_vm3, %v833_v24  ;;  %v886_v24 = vshll.u32 %v17682_v9, 16 }
  0x78   : > { %15293 = vmatprep.mubr.msk.bf16.mxu1 %vm1202_vm3, %v841_v28  ;;  %v876_v28 = vor.u32 %v874_v14, %v872_v1  ;;  %v5619_v10 = vrot.slane %v5617_v19, 2 }
  0x79   : > { %v888_v35 = vrot.slane %v886_v24, 1 }
  0x7a   : > { %15842 = vmatmul.mubr.msk.bf16.gmra.mrb[40].mxu0 %vm1202_vm3, %v5522_v40  ;;  %v17687_v40 = vld [vmem:[%s18296_s9 + $0x108] sm:$0xff]   ;;  %v881_v41 = vsel %vm653_vm2, %v876_v28, %v880_v29  ;;  %v920_v29 = vrot.slane %v918_v15, 1 }
  0x7b   : > { %15845 = vmatprep.mubr.msk.bf16.mxu0 %vm1202_vm3, %v5531_v44  ;;  %v890_v44 = vshrl.u32 %v17682_v9, 16  ;;  %v889_v47 = vsel %vm653_vm2, %v884_v34, %v888_v35  ;;  %v5596_v51 = vshrl.u32 %v17687_v40, 16  ;;  %v5599_v52 = vshll.u32 %v17687_v40, 16 }
  0x7c   : > { %v5605_v9 = vshrl.u32 %v17689_v57, 16 }
  0x7d   : > { %v892_v56 = vor.u32 %v890_v44, %v888_v35  ;;  %v5598_v0 = vrot.slane %v5596_v51, 1  ;;  %v5601_v1 = vrot.slane %v5599_v52, 2  ;;  %v6857_v44 = vld [vmem:[%s18296_s9 + $0x10] sm:$0xc]  ;;  %v17697_v52 = vld [vmem:[%s18296_s9 + $0x128] sm:$0xff]  }
  0x7e   : > { %v5607_v24 = vrot.slane %v5605_v9, 1 }
  0x7f   : > { %15294 = vmatmul.mubr.msk.bf16.gmra.mrb[44].mxu1 %vm1202_vm3, %v849_v50  ;;  %v5584_v50 = vor.u32 %v5583_v39, %v5580_v38  ;;  %v897_v6 = vsel %vm653_vm2, %v892_v56, %v896_v53  ;;  %v5602_v16 = vor.u32 %v5601_v1, %v5598_v0  ;;  %v5626_v38 = vshll.u32 %v17693_v26, 16  ;;  %v17837_v0 = vld [vmem:[%s18296_s9 + $0x18] sm:$0xff]  }
  0x80   : > { %15297 = vmatprep.mubr.msk.bf16.mxu1 %vm1202_vm3, %v857_v54  ;;  %v17688_v54 = vld [vmem:[%s18296_s9 + $0x100] sm:$0xff]   ;;  %v942_v56 = vshll.u32 %v17696_v45, 16  ;;  %v6865_v1 = vrot.slane %v17837_v0, 2 }
  0x81   : > { %v5585_v63 = vsel %vm5316_vm4, %v5575_v43, %v5584_v50  ;;  %v910_v5 = vshll.u32 %v17688_v54, 16  ;;  %v914_v14 = vshrl.u32 %v17688_v54, 16  ;;  %v5594_v27 = vsel %vm5316_vm4, %v5584_v50, %v5593_v8  ;;  %v17836_v54 = vld [vmem:[%s18296_s9 + $0x14] sm:$0xf] }
  0x82   : > { %15846 = vmatmul.mubr.msk.bf16.gmra.mrb[44].mxu0 %vm1202_vm3, %v5540_v3  ;;  %v906_v3 = vshrl.u32 %v17686_v36, 16  ;;  %v5603_v31 = vsel %vm5316_vm4, %v5593_v8, %v5602_v16  ;;  %v5628_v49 = vrot.slane %v5626_v38, 2  ;;  %v17699_v8 = vld [vmem:[%s18296_s9 + $0x138] sm:$0xff]  }
  0x83   : > { %15849 = vmatprep.mubr.msk.bf16.mxu0 %vm1202_vm3, %v5549_v11  ;;  %v5608_v11 = vshll.u32 %v17689_v57, 16  ;;  %v912_v20 = vrot.slane %v910_v5, 1 }
  0x84   : > { %v908_v22 = vor.u32 %v906_v3, %v904_v61  ;;  %v946_v61 = vshrl.u32 %v17696_v45, 16  ;;  %v17698_v3 = vld [vmem:[%s18296_s9 + $0x130] sm:$0xff]  }
  0x85   : > { %v5610_v25 = vrot.slane %v5608_v11, 2  ;;  %v916_v28 = vor.u32 %v914_v14, %v912_v20  ;;  %v958_v14 = vshll.u32 %v17698_v3, 16 }
  0x86   : > { %v913_v35 = vsel %vm653_vm2, %v908_v22, %v912_v20  ;;  %v966_v22 = vshll.u32 %v17699_v8, 16 }
  0x87   : > { %15298 = vmatmul.mubr.msk.bf16.gmra.mrb[48].mxu1 %vm1202_vm3, %v865_v18  ;;  %v5614_v18 = vshrl.u32 %v17691_v2, 16  ;;  %v5611_v36 = vor.u32 %v5610_v25, %v5607_v24  ;;  %v921_v39 = vsel %vm653_vm2, %v916_v28, %v920_v29  ;;  %v944_v2 = vrot.slane %v942_v56, 1  ;;  %v17839_v24 = vld [vmem:[%s18296_s9 + $0x28] sm:$0xff]  }
  0x88   : > { %15301 = vmatprep.mubr.msk.bf16.mxu1 %vm1202_vm3, %v873_v21  ;;  %v17692_v21 = vld [vmem:[%s18296_s9 + $0x110] sm:$0xff]   ;;  %v6869_v25 = vrot.slane %v17839_v24, 2  ;;  %v17846_v24 = vld [vmem:[%s18296_s9 + $0x60] sm:$0xff]  }
  0x89   : > { %v5616_v32 = vrot.slane %v5614_v18, 1  ;;  %v926_v34 = vshll.u32 %v17692_v21, 16  ;;  %v930_v40 = vshrl.u32 %v17692_v21, 16  ;;  %v5612_v46 = vsel %vm5316_vm4, %v5602_v16, %v5611_v36  ;;  %v17838_v18 = vld [vmem:[%s18296_s9 + $0x20] sm:$0xff]  }
  0x8a   : > { %15850 = vmatmul.mubr.msk.bf16.gmra.mrb[48].mxu0 %vm1202_vm3, %v5558_v33  ;;  %v922_v33 = vshrl.u32 %v17690_v62, 16  ;;  %v950_v62 = vshll.u32 %v17697_v52, 16  ;;  %v948_v9 = vor.u32 %v946_v61, %v944_v2  ;;  %v954_v16 = vshrl.u32 %v17697_v52, 16  ;;  %v17704_v52 = vld [vmem:[%s18296_s9 + $0x160] sm:$0xff]  }
  0x8b   : > { %15853 = vmatprep.mubr.msk.bf16.mxu0 %vm1202_vm3, %v5567_v37  ;;  %v5623_v37 = vshrl.u32 %v17693_v26, 16  ;;  %v5620_v42 = vor.u32 %v5619_v10, %v5616_v32  ;;  %v928_v43 = vrot.slane %v926_v34, 1  ;;  %v6867_v19 = vrot.slane %v17838_v18, 2  ;;  %v17701_v32 = vld [vmem:[%s18296_s9 + $0x148] sm:$0xff]  }
  0x8c   : > { %v952_v11 = vrot.slane %v950_v62, 1  ;;  %v962_v21 = vshrl.u32 %v17698_v3, 16  ;;  %v960_v26 = vrot.slane %v958_v14, 1  ;;  %v986_v56 = vshrl.u32 %v17701_v32, 16 }
  0x8d   : > { %v5625_v48 = vrot.slane %v5623_v37, 1  ;;  %v932_v50 = vor.u32 %v930_v40, %v928_v43  ;;  %v5621_v53 = vsel %vm5316_vm4, %v5611_v36, %v5620_v42  ;;  %v6870_v10 = vsel %vm6863_vm5, %v6867_v19, %v6869_v25 }
  0x8e   : > { %v953_v20 = vsel %vm653_vm2, %v948_v9, %v952_v11  ;;  %v956_v28 = vor.u32 %v954_v16, %v952_v11  ;;  %v970_v37 = vshrl.u32 %v17699_v8, 16  ;;  %v982_v40 = vshll.u32 %v17701_v32, 16 }
  0x8f   : > { %15302 = vmatmul.mubr.msk.bf16.gmra.mrb[52].mxu1 %vm1202_vm3, %v881_v41  ;;  %v934_v41 = vshll.u32 %v17694_v30, 16  ;;  %v18527_v59 = vor.u32 %v5628_v49, %v5625_v48  ;;  %v964_v30 = vor.u32 %v962_v21, %v960_v26  ;;  %v17703_v48 = vld [vmem:[%s18296_s9 + $0x158] sm:$0xff]  }
  0x90   : > { %15305 = vmatprep.mubr.msk.bf16.mxu1 %vm1202_vm3, %v889_v47  ;;  %v924_v47 = vor.u32 %v922_v33, %v920_v29  ;;  %v6868_v29 = vsel %vm6863_vm5, %v6865_v1, %v6867_v19  ;;  %v961_v34 = vsel %vm653_vm2, %v956_v28, %v960_v26  ;;  %v998_v61 = vshll.u32 %v17703_v48, 16  ;;  %v17845_v21 = vld [vmem:[%s18296_s9 + $0x58] sm:$0xff]  }
  0x91   : > { %v936_v51 = vrot.slane %v934_v41, 1  ;;  %21099 = vst [vmem:[#allocation6_spill] sm:$0xff] %v18527_v59  ;;  %v17841_v41 = vld [vmem:[%s18296_s9 + $0x38] sm:$0xff]   ;;  %v1002_v18 = vshrl.u32 %v17703_v48, 16  ;;  %v1010_v19 = vshrl.u32 %v17704_v52, 16 }
  0x92   : > { %15854 = vmatmul.mubr.msk.bf16.gmra.mrb[52].mxu0 %vm1202_vm3, %v5576_v55  ;;  %v13596_v55 = vcombine.low %v6857_v44, %v17836_v54  ;;  %v929_v57 = vsel %vm653_vm2, %v924_v47, %v928_v43  ;;  %v17702_v44 = vld [vmem:[%s18296_s9 + $0x150] sm:$0xff]   ;;  %v984_v47 = vrot.slane %v982_v40, 1  ;;  %v17842_v54 = vld [vmem:[%s18296_s9 + $0x40] sm:$0xff]   ;;  %v1000_v8 = vrot.slane %v998_v61, 1  ;;  %v17707_v26 = vld [vmem:[%s18296_s9 + $0x178] sm:$0xff]  }
  0x93   : > { %15857 = vmatprep.mubr.msk.bf16.mxu0 %vm1202_vm3, %v5585_v63  ;;  %v937_v60 = vsel %vm653_vm2, %v932_v50, %v936_v51  ;;  %v940_v5 = vor.u32 %v938_v58, %v936_v51  ;;  %v13317_v50 = vld [vmem:[%s21038_s1 + $0x4] sm:$0x3]  ;;  %v990_v51 = vshll.u32 %v17702_v44, 16  ;;  %v17847_v40 = vld [vmem:[%s18296_s9 + $0x68] sm:$0xff]   ;;  %v17711_v61 = vld [vmem:[%s18296_s9 + $0x198] sm:$0xff]  }
  0x94   : > { %v6864_v63 = vrot.slane %v13596_v55, 2  ;;  %v6875_v55 = vrot.slane %v17842_v54, 2  ;;  %v18574_v62 = vand.u32 %v13317_v50, %v18272_v4 }
  0x95   : > { %v945_v15 = vsel %vm653_vm2, %v940_v5, %v944_v2  ;;  %v992_v3 = vrot.slane %v990_v51, 1  ;;  %v1006_v5 = vshll.u32 %v17704_v52, 16  ;;  %v17710_v51 = vld [vmem:[%s18296_s9 + $0x190] sm:$0xff]  }
  0x96   : > { %15523 = vmatprep.subr.bf16.mxu1 %v18574_v62 }
  0x97   : > { %15306 = vmatmul.mubr.msk.bf16.gmra.mrb[56].mxu1 %vm1202_vm3, %v897_v6  ;;  %v5630_v6 = vsel %vm5316_vm4, %v5620_v42, %v18527_v59  ;;  %v6873_v42 = vrot.slane %v17841_v41, 2  ;;  %v6885_v41 = vrot.slane %v17847_v40, 2  ;;  %v19113_v59 = vld [vmem:[%s18296_s9 + $0x128] sm:$0xff]  }
  0x98   : > { %15309 = vmatprep.mubr.msk.bf16.mxu1 %vm1202_vm3, %v905_v12  ;;  %v6866_v12 = vsel %vm6863_vm5, %v6864_v63, %v6865_v1  ;;  %v17843_v63 = vld [vmem:[%s18296_s9 + $0x48] sm:$0xff]   ;;  %v17844_v1 = vld [vmem:[%s18296_s9 + $0x50] sm:$0xff]   ;;  %21103 = vst [vmem:[#allocation10_spill] sm:$0xff] %v19113_v59 }
  0x99   : > { %v6877_v0 = vrot.slane %v17843_v63, 2  ;;  %v6879_v2 = vrot.slane %v17844_v1, 2  ;;  %v6876_v9 = vsel %vm6863_vm5, %v6873_v42, %v6875_v55 }
  0x9a   : > { %15858 = vmatmul.mubr.msk.bf16.gmra.mrb[56].mxu0 %vm1202_vm3, %v5594_v27  ;;  %v17700_v27 = vld [vmem:[%s18296_s9 + $0x140] sm:$0xff]  }
  0x9b   : > { %15861 = vmatprep.mubr.msk.bf16.mxu0 %vm1202_vm3, %v5603_v31  ;;  %v968_v31 = vrot.slane %v966_v22, 1  ;;  %v974_v33 = vshll.u32 %v17700_v27, 16  ;;  %v6878_v14 = vsel %vm6863_vm5, %v6875_v55, %v6877_v0  ;;  %v6881_v22 = vrot.slane %v17845_v21, 2 }
  0x9d   : > { %v969_v38 = vsel %vm653_vm2, %v964_v30, %v968_v31  ;;  %v976_v43 = vrot.slane %v974_v33, 1  ;;  %v972_v45 = vor.u32 %v970_v37, %v968_v31  ;;  %v6880_v30 = vsel %vm6863_vm5, %v6877_v0, %v6879_v2  ;;  %v17708_v33 = vld [vmem:[%s18296_s9 + $0x180] sm:$0xff]  }
  0x9e   : > { %v1042_v54 = vshrl.u32 %v17708_v33, 16 }
  0x9f   : > { %15310 = vmatmul.mubr.msk.bf16.gmra.mrb[60].mxu1 %vm1202_vm3, %v913_v35  ;;  %v17840_v35 = vld [vmem:[%s18296_s9 + $0x30] sm:$0xff]  }
  0xa0   : > { %15313 = vmatprep.mubr.msk.bf16.mxu1 %vm1202_vm3, %v921_v39  ;;  %v6871_v36 = vrot.slane %v17840_v35, 2  ;;  %v978_v39 = vshrl.u32 %v17700_v27, 16  ;;  %v1008_v27 = vrot.slane %v1006_v5, 1  ;;  %v17709_v35 = vld [vmem:[%s18296_s9 + $0x188] sm:$0xff]  }
  0xa1   : > { %v1050_v5 = vshrl.u32 %v17709_v35, 16 }
  0xa2   : > { %15862 = vmatmul.mubr.msk.bf16.gmra.mrb[60].mxu0 %vm1202_vm3, %v5612_v46  ;;  %v980_v46 = vor.u32 %v978_v39, %v976_v43  ;;  %v6874_v49 = vsel %vm6863_vm5, %v6871_v36, %v6873_v42  ;;  %v1012_v31 = vor.u32 %v1010_v19, %v1008_v27  ;;  %v17848_v42 = vld [vmem:[%s18296_s9 + $0x70] sm:$0xff]  }
  0xa3   : > { %15865 = vmatprep.mubr.msk.bf16.mxu0 %vm1202_vm3, %v5621_v53  ;;  %v977_v53 = vsel %vm653_vm2, %v972_v45, %v976_v43  ;;  %v6887_v43 = vrot.slane %v17848_v42, 2  ;;  %v1038_v45 = vshll.u32 %v17708_v33, 16 }
  0xa4   : > { %v985_v58 = vsel %vm653_vm2, %v980_v46, %v984_v47 }
  0xa5   : > { %v1040_v63 = vrot.slane %v1038_v45, 1 }
  0xa7   : > { %15314 = vmatmul.mubr.msk.bf16.gmra.mrb[64].mxu1 %vm1202_vm3, %v929_v57  ;;  %v17705_v57 = vld [vmem:[%s18296_s9 + $0x168] sm:$0xff]  }
  0xa8   : > { %15317 = vmatprep.mubr.msk.bf16.mxu1 %vm1202_vm3, %v937_v60  ;;  %v994_v60 = vshrl.u32 %v17702_v44, 16  ;;  %v1018_v32 = vshrl.u32 %v17705_v57, 16 }
  0xaa   : > { %15866 = vmatmul.mubr.msk.bf16.gmra.mrb[64].mxu0 %vm1202_vm3, %v5630_v6  ;;  %v988_v6 = vor.u32 %v986_v56, %v984_v47  ;;  %v996_v11 = vor.u32 %v994_v60, %v992_v3  ;;  %v17849_v56 = vld [vmem:[%s18296_s9 + $0x78] sm:$0xff]  }
  0xab   : > { %15939 = vmatprep.mubr.msk.bf16.mxu0 %vm1202_vm3, %v6866_v12  ;;  %v1014_v12 = vshll.u32 %v17705_v57, 16  ;;  %v6889_v57 = vrot.slane %v17849_v56, 2 }
  0xac   : > { %v993_v16 = vsel %vm653_vm2, %v988_v6, %v992_v3  ;;  %v1044_v3 = vor.u32 %v1042_v54, %v1040_v63  ;;  %v1054_v6 = vshll.u32 %v17710_v51, 16 }
  0xad   : > { %v1016_v28 = vrot.slane %v1014_v12, 1 }
  0xaf   : > { %15318 = vmatmul.mubr.msk.bf16.gmra.mrb[68].mxu1 %vm1202_vm3, %v945_v15  ;;  %v17706_v15 = vld [vmem:[%s18296_s9 + $0x170] sm:$0xff]   ;;  %v1017_v39 = vsel %vm653_vm2, %v1012_v31, %v1016_v28 }
  0xb0   : > { %15321 = vmatprep.mubr.msk.bf16.mxu1 %vm1202_vm3, %v953_v20  ;;  %v1001_v20 = vsel %vm653_vm2, %v996_v11, %v1000_v8  ;;  %v1026_v37 = vshrl.u32 %v17706_v15, 16  ;;  %v6890_v11 = vsel %vm6863_vm5, %v6887_v43, %v6889_v57  ;;  %v17714_v31 = vld [vmem:[%s18296_s9 + $0x1b0] sm:$0xff]  }
  0xb2   : > { %15940 = vmatmul.mubr.msk.bf16.vlgmr.msra.gmra.mrb[0].mxu0 %vm1202_vm3, %v6868_v29  ;;  %v1004_v29 = vor.u32 %v1002_v18, %v1000_v8  ;;  %v17713_v8 = vld [vmem:[%s18296_s9 + $0x1a8] sm:$0xff]  }
  0xb3   : > { %16076 = vmatpush3.bf16.msra.mxu0 %v18474_v17  ;;  %15943 = vmatprep.mubr.msk.bf16.mxu0 %vm1202_vm3, %v6870_v10  ;;  %v6872_v17 = vsel %vm6863_vm5, %v6869_v25, %v6871_v36  ;;  %v6883_v25 = vrot.slane %v17846_v24, 2  ;;  %v1022_v10 = vshll.u32 %v17706_v15, 16  ;;  %v1062_v15 = vshll.u32 %v17711_v61, 16  ;;  %v17851_v18 = vld [vmem:[%s18296_s9 + $0x88] sm:$0xff]  }
  0xb4   : > { %v1009_v36 = vsel %vm653_vm2, %v1004_v29, %v1008_v27  ;;  %v6893_v19 = vrot.slane %v17851_v18, 2  ;;  %v1078_v29 = vshll.u32 %v17713_v8, 16  ;;  %v1082_v45 = vshrl.u32 %v17713_v8, 16  ;;  %v17857_v8 = vld [vmem:[%s18296_s9 + $0xb8] sm:$0xff]  }
  0xb5   : > { %v1024_v44 = vrot.slane %v1022_v10, 1  ;;  %v6884_v46 = vsel %vm6863_vm5, %v6881_v22, %v6883_v25  ;;  %v6886_v50 = vsel %vm6863_vm5, %v6883_v25, %v6885_v41  ;;  %v1066_v10 = vshrl.u32 %v17711_v61, 16 }
  0xb7   : > { %15322 = vmatmul.mubr.msk.bf16.gmra.mrb[72].mxu1 %vm1202_vm3, %v961_v34  ;;  %v6882_v34 = vsel %vm6863_vm5, %v6879_v2, %v6881_v22  ;;  %v1028_v47 = vor.u32 %v1026_v37, %v1024_v44  ;;  %v6888_v2 = vsel %vm6863_vm5, %v6885_v41, %v6887_v43  ;;  %v1056_v22 = vrot.slane %v1054_v6, 1  ;;  %v17854_v37 = vld [vmem:[%s18296_s9 + $0xa0] sm:$0xff]  }
  0xb8   : > { %15325 = vmatprep.mubr.msk.bf16.mxu1 %vm1202_vm3, %v969_v38  ;;  %v1030_v38 = vshll.u32 %v17707_v26, 16  ;;  %v1080_v41 = vrot.slane %v1078_v29, 1 }
  0xba   : > { %15944 = vmatmul.mubr.msk.bf16.gmra.mrb[4].mxu0 %vm1202_vm3, %v6872_v17  ;;  %v1020_v17 = vor.u32 %v1018_v32, %v1016_v28  ;;  %v1032_v48 = vrot.slane %v1030_v38, 1  ;;  %v1064_v28 = vrot.slane %v1062_v15, 1  ;;  %v6899_v38 = vrot.slane %v17854_v37, 2 }
  0xbb   : > { %15947 = vmatprep.mubr.msk.bf16.mxu0 %vm1202_vm3, %v6874_v49  ;;  %v1046_v49 = vshll.u32 %v17709_v35, 16  ;;  %v17853_v35 = vld [vmem:[%s18296_s9 + $0x98] sm:$0xff]  }
  0xbc   : > { %v1025_v52 = vsel %vm653_vm2, %v1020_v17, %v1024_v44  ;;  %v1033_v55 = vsel %vm653_vm2, %v1028_v47, %v1032_v48  ;;  %v1068_v42 = vor.u32 %v1066_v10, %v1064_v28  ;;  %v1086_v17 = vshll.u32 %v17714_v31, 16 }
  0xbd   : > { %v1048_v0 = vrot.slane %v1046_v49, 1 }
  0xbf   : > { %15326 = vmatmul.mubr.msk.bf16.gmra.mrb[76].mxu1 %vm1202_vm3, %v977_v53  ;;  %v1034_v53 = vshrl.u32 %v17707_v26, 16  ;;  %v1052_v25 = vor.u32 %v1050_v5, %v1048_v0 }
  0xc0   : > { %15329 = vmatprep.mubr.msk.bf16.mxu1 %vm1202_vm3, %v985_v58  ;;  %v17850_v58 = vld [vmem:[%s18296_s9 + $0x80] sm:$0xff]  }
  0xc1   : > { %v6891_v60 = vrot.slane %v17850_v58, 2  ;;  %v1036_v1 = vor.u32 %v1034_v53, %v1032_v48  ;;  %v1057_v32 = vsel %vm653_vm2, %v1052_v25, %v1056_v22  ;;  %v17717_v48 = vld [vmem:[%s18296_s9 + $0x1c8] sm:$0xff]  }
  0xc2   : > { %15948 = vmatmul.mubr.msk.bf16.gmra.mrb[8].mxu0 %vm1202_vm3, %v6876_v9  ;;  %v17712_v9 = vld [vmem:[%s18296_s9 + $0x1a0] sm:$0xff]   ;;  %v17855_v53 = vld [vmem:[%s18296_s9 + $0xa8] sm:$0xff]  }
  0xc3   : > { %15951 = vmatprep.mubr.msk.bf16.mxu0 %vm1202_vm3, %v6878_v14  ;;  %v1041_v12 = vsel %vm653_vm2, %v1036_v1, %v1040_v63  ;;  %v1058_v14 = vshrl.u32 %v17710_v51, 16  ;;  %v1070_v24 = vshll.u32 %v17712_v9, 16  ;;  %v6892_v26 = vsel %vm6863_vm5, %v6889_v57, %v6891_v60 }
  0xc4   : > { %v1074_v33 = vshrl.u32 %v17712_v9, 16  ;;  %v6901_v54 = vrot.slane %v17855_v53, 2  ;;  %v1088_v57 = vrot.slane %v1086_v17, 1  ;;  %v1110_v1 = vshll.u32 %v17717_v48, 16 }
  0xc5   : > { %v1060_v27 = vor.u32 %v1058_v14, %v1056_v22  ;;  %v1072_v40 = vrot.slane %v1070_v24, 1  ;;  %v17858_v14 = vld [vmem:[%s18296_s9 + $0xc0] sm:$0xff]   ;;  %v1114_v24 = vshrl.u32 %v17717_v48, 16 }
  0xc6   : > { %v6907_v15 = vrot.slane %v17858_v14, 2 }
  0xc7   : > { %15330 = vmatmul.mubr.msk.bf16.gmra.mrb[80].mxu1 %vm1202_vm3, %v993_v16  ;;  %v1049_v16 = vsel %vm653_vm2, %v1044_v3, %v1048_v0  ;;  %v1076_v44 = vor.u32 %v1074_v33, %v1072_v40  ;;  %v1073_v49 = vsel %vm653_vm2, %v1068_v42, %v1072_v40  ;;  %v18656_v3 = vld [vmem:[%s18296_s9 + $0x1d0] sm:$0xff]  }
  0xc8   : > { %15333 = vmatprep.mubr.msk.bf16.mxu1 %vm1202_vm3, %v1001_v20  ;;  %v17852_v20 = vld [vmem:[%s18296_s9 + $0x90] sm:$0xff]   ;;  %v1118_v25 = vshll.u32 %v18656_v3, 16  ;;  %v1122_v29 = vshrl.u32 %v18656_v3, 16 }
  0xc9   : > { %v6895_v21 = vrot.slane %v17852_v20, 2 }
  0xca   : > { %15952 = vmatmul.mubr.msk.bf16.gmra.mrb[12].mxu0 %vm1202_vm3, %v6880_v30  ;;  %v6894_v30 = vsel %vm6863_vm5, %v6891_v60, %v6893_v19  ;;  %v1084_v60 = vor.u32 %v1082_v45, %v1080_v41  ;;  %v1120_v33 = vrot.slane %v1118_v25, 1 }
  0xcb   : > { %15955 = vmatprep.mubr.msk.bf16.mxu0 %vm1202_vm3, %v6882_v34  ;;  %v1065_v34 = vsel %vm653_vm2, %v1060_v27, %v1064_v28  ;;  %v6896_v43 = vsel %vm6863_vm5, %v6893_v19, %v6895_v21  ;;  %v1112_v19 = vrot.slane %v1110_v1, 1  ;;  %v18673_v27 = vld [vmem:[%s18296_s9 + $0x1e0] sm:$0xff]  }
  0xcc   : > { %v1089_v5 = vsel %vm653_vm2, %v1084_v60, %v1088_v57  ;;  %v1124_v37 = vor.u32 %v1122_v29, %v1120_v33  ;;  %v1138_v17 = vshrl.u32 %v18673_v27, 16 }
  0xcf   : > { %15334 = vmatmul.mubr.msk.bf16.gmra.mrb[84].mxu1 %vm1202_vm3, %v1009_v36  ;;  %v6897_v36 = vrot.slane %v17853_v35, 2  ;;  %v1116_v35 = vor.u32 %v1114_v24, %v1112_v19  ;;  %v17864_v24 = vld [vmem:[%s18296_s9 + $0xf0] sm:$0xff]  }
  0xd0   : > { %15337 = vmatprep.mubr.msk.bf16.mxu1 %vm1202_vm3, %v1017_v39  ;;  %v17715_v39 = vld [vmem:[%s18296_s9 + $0x1b8] sm:$0xff]   ;;  %v6919_v25 = vrot.slane %v17864_v24, 2  ;;  %v17730_v24 = vld [vmem:[%s18296_s9 + $0x130] sm:$0xff]  }
  0xd1   : > { %v6898_v47 = vsel %vm6863_vm5, %v6895_v21, %v6897_v36  ;;  %v1094_v51 = vshll.u32 %v17715_v39, 16  ;;  %v6900_v61 = vsel %vm6863_vm5, %v6897_v36, %v6899_v38  ;;  %v1098_v6 = vshrl.u32 %v17715_v39, 16 }
  0xd2   : > { %15956 = vmatmul.mubr.msk.bf16.gmra.mrb[16].mxu0 %vm1202_vm3, %v6884_v46  ;;  %v17716_v46 = vld [vmem:[%s18296_s9 + $0x1c0] sm:$0xff]   ;;  %v1134_v39 = vshll.u32 %v18673_v27, 16 }
  0xd3   : > { %15959 = vmatprep.mubr.msk.bf16.mxu0 %vm1202_vm3, %v6886_v50  ;;  %v1090_v50 = vshrl.u32 %v17714_v31, 16  ;;  %v1102_v58 = vshll.u32 %v17716_v46, 16  ;;  %v1096_v0 = vrot.slane %v1094_v51, 1  ;;  %v1106_v9 = vshrl.u32 %v17716_v46, 16 }
  0xd5   : > { %v1092_v63 = vor.u32 %v1090_v50, %v1088_v57  ;;  %v1104_v18 = vrot.slane %v1102_v58, 1  ;;  %v1100_v20 = vor.u32 %v1098_v6, %v1096_v0  ;;  %v18701_v50 = vld [vmem:[%s18296_s9 + $0x1f0] sm:$0xff]  }
  0xd6   : > { %v1150_v57 = vshll.u32 %v18701_v50, 16  ;;  %v1154_v1 = vshrl.u32 %v18701_v50, 16 }
  0xd7   : > { %15338 = vmatmul.mubr.msk.bf16.gmra.mrb[88].mxu1 %vm1202_vm3, %v1025_v52  ;;  %v1081_v52 = vsel %vm653_vm2, %v1076_v44, %v1080_v41  ;;  %v1108_v22 = vor.u32 %v1106_v9, %v1104_v18  ;;  %v1105_v28 = vsel %vm653_vm2, %v1100_v20, %v1104_v18  ;;  %v1121_v41 = vsel %vm653_vm2, %v1116_v35, %v1120_v33  ;;  %v18726_v18 = vld [vmem:[%s18296_s9 + $0x208] sm:$0xff]  }
  0xd8   : > { %15341 = vmatprep.mubr.msk.bf16.mxu1 %vm1202_vm3, %v1033_v55  ;;  %v17856_v55 = vld [vmem:[%s18296_s9 + $0xb0] sm:$0xff]   ;;  %v1152_v9 = vrot.slane %v1150_v57, 1  ;;  %v1174_v29 = vshll.u32 %v18726_v18, 16 }
  0xd9   : > { %v6903_v56 = vrot.slane %v17856_v55, 2  ;;  %v1113_v31 = vsel %vm653_vm2, %v1108_v22, %v1112_v19  ;;  %v18706_v55 = vld [vmem:[%s18296_s9 + $0x1f8] sm:$0xff]  }
  0xda   : > { %15960 = vmatmul.mubr.msk.bf16.gmra.mrb[20].mxu0 %vm1202_vm3, %v6888_v2  ;;  %v6902_v2 = vsel %vm6863_vm5, %v6899_v38, %v6901_v54  ;;  %v1156_v14 = vor.u32 %v1154_v1, %v1152_v9  ;;  %v1162_v22 = vshrl.u32 %v18706_v55, 16 }
  0xdb   : > { %15963 = vmatprep.mubr.msk.bf16.mxu0 %vm1202_vm3, %v6890_v11  ;;  %v1097_v11 = vsel %vm653_vm2, %v1092_v63, %v1096_v0  ;;  %v6904_v21 = vsel %vm6863_vm5, %v6901_v54, %v6903_v56 }
  0xdf   : > { %15342 = vmatmul.mubr.msk.bf16.gmra.mrb[92].mxu1 %vm1202_vm3, %v1041_v12  ;;  %v6905_v12 = vrot.slane %v17857_v8, 2 }
  0xe0   : > { %15345 = vmatprep.mubr.msk.bf16.mxu1 %vm1202_vm3, %v1049_v16  ;;  %v18665_v16 = vld [vmem:[%s18296_s9 + $0x1d8] sm:$0xff]  }
  0xe1   : > { %v6908_v36 = vsel %vm6863_vm5, %v6905_v12, %v6907_v15  ;;  %v1130_v42 = vshrl.u32 %v18665_v16, 16 }
  0xe2   : > { %15964 = vmatmul.mubr.msk.bf16.gmra.mrb[24].mxu0 %vm1202_vm3, %v6892_v26  ;;  %v6906_v26 = vsel %vm6863_vm5, %v6903_v56, %v6905_v12 }
  0xe3   : > { %15967 = vmatprep.mubr.msk.bf16.mxu0 %vm1202_vm3, %v6894_v30  ;;  %v1126_v30 = vshll.u32 %v18665_v16, 16 }
  0xe5   : > { %v1128_v38 = vrot.slane %v1126_v30, 1  ;;  %v17865_v30 = vld [vmem:[%s18296_s9 + $0xf8] sm:$0xff]  }
  0xe7   : > { %15346 = vmatmul.mubr.msk.bf16.gmra.mrb[96].mxu1 %vm1202_vm3, %v1057_v32  ;;  %v17859_v32 = vld [vmem:[%s18296_s9 + $0xc8] sm:$0xff]   ;;  %v1129_v45 = vsel %vm653_vm2, %v1124_v37, %v1128_v38  ;;  %v1132_v51 = vor.u32 %v1130_v42, %v1128_v38  ;;  %v1176_v37 = vrot.slane %v1174_v29, 1  ;;  %v18746_v38 = vld [vmem:[%s18296_s9 + $0x218] sm:$0xff]   ;;  %v1178_v42 = vshrl.u32 %v18726_v18, 16 }
  0xe8   : > { %15349 = vmatprep.mubr.msk.bf16.mxu1 %vm1202_vm3, %v1065_v34  ;;  %v6909_v10 = vrot.slane %v17859_v32, 2  ;;  %v18684_v34 = vld [vmem:[%s18296_s9 + $0x1e8] sm:$0xff]  }
  0xe9   : > { %v1142_v46 = vshll.u32 %v18684_v34, 16  ;;  %v1146_v60 = vshrl.u32 %v18684_v34, 16 }
  0xea   : > { %15968 = vmatmul.mubr.msk.bf16.gmra.mrb[28].mxu0 %vm1202_vm3, %v6896_v43  ;;  %v6910_v40 = vsel %vm6863_vm5, %v6907_v15, %v6909_v10  ;;  %v17860_v43 = vld [vmem:[%s18296_s9 + $0xd0] sm:$0xff]  }
  0xeb   : > { %15971 = vmatprep.mubr.msk.bf16.mxu0 %vm1202_vm3, %v6898_v47  ;;  %v6911_v44 = vrot.slane %v17860_v43, 2  ;;  %v17861_v47 = vld [vmem:[%s18296_s9 + $0xd8] sm:$0xff]   ;;  %v1144_v54 = vrot.slane %v1142_v46, 1  ;;  %v17866_v43 = vld [vmem:[%s18296_s9 + $0x100] sm:$0xff]   ;;  %v1190_v46 = vshll.u32 %v18746_v38, 16 }
  0xec   : > { %v6913_v48 = vrot.slane %v17861_v47, 2  ;;  %v17867_v47 = vld [vmem:[%s18296_s9 + $0x108] sm:$0xff]  }
  0xed   : > { %v1148_v8 = vor.u32 %v1146_v60, %v1144_v54  ;;  %v1194_v60 = vshrl.u32 %v18746_v38, 16 }
  0xee   : > { %v6914_v56 = vsel %vm6863_vm5, %v6911_v44, %v6913_v48 }
  0xef   : > { %15350 = vmatmul.mubr.msk.bf16.gmra.mrb[100].mxu1 %vm1202_vm3, %v1073_v49  ;;  %v1136_v49 = vrot.slane %v1134_v39, 1 }
  0xf0   : > { %15353 = vmatprep.mubr.msk.bf16.mxu1 %vm1202_vm3, %v1081_v52  ;;  %v6912_v52 = vsel %vm6863_vm5, %v6909_v10, %v6911_v44  ;;  %v18741_v10 = vld [vmem:[%s18296_s9 + $0x210] sm:$0xff]   ;;  %v6923_v44 = vrot.slane %v17866_v43, 2 }
  0xf1   : > { %v1140_v53 = vor.u32 %v1138_v17, %v1136_v49  ;;  %v1137_v58 = vsel %vm653_vm2, %v1132_v51, %v1136_v49  ;;  %v1186_v17 = vshrl.u32 %v18741_v10, 16  ;;  %v1180_v51 = vor.u32 %v1178_v42, %v1176_v37  ;;  %v17734_v43 = vld [vmem:[%s18296_s9 + $0x150] sm:$0xff]  }
  0xf2   : > { %15972 = vmatmul.mubr.msk.bf16.gmra.mrb[32].mxu0 %vm1202_vm3, %v6900_v61  ;;  %v17862_v61 = vld [vmem:[%s18296_s9 + $0xe0] sm:$0xff]  }
  0xf3   : > { %15975 = vmatprep.mubr.msk.bf16.mxu0 %vm1202_vm3, %v6902_v2  ;;  %v6915_v63 = vrot.slane %v17862_v61, 2  ;;  %v1145_v0 = vsel %vm653_vm2, %v1140_v53, %v1144_v54  ;;  %v1158_v2 = vshll.u32 %v18706_v55, 16 }
  0xf5   : > { %v6916_v12 = vsel %vm6863_vm5, %v6913_v48, %v6915_v63  ;;  %v1160_v15 = vrot.slane %v1158_v2, 1  ;;  %v6925_v48 = vrot.slane %v17867_v47, 2  ;;  %v17869_v2 = vld [vmem:[%s18296_s9 + $0x118] sm:$0xff]   ;;  %v18830_v47 = vld [vmem:[%s18296_s9 + $0x28] sm:$0xff]  }
  0xf7   : > { %15354 = vmatmul.mubr.msk.bf16.gmra.mrb[104].mxu1 %vm1202_vm3, %v1089_v5  ;;  %v17863_v5 = vld [vmem:[%s18296_s9 + $0xe8] sm:$0xff]   ;;  %v1164_v33 = vor.u32 %v1162_v22, %v1160_v15  ;;  %v6926_v57 = vsel %vm6863_vm5, %v6923_v44, %v6925_v48 }
  0xf8   : > { %15357 = vmatprep.mubr.msk.bf16.mxu1 %vm1202_vm3, %v1097_v11  ;;  %v6917_v6 = vrot.slane %v17863_v5, 2  ;;  %v18721_v11 = vld [vmem:[%s18296_s9 + $0x200] sm:$0xff]   ;;  %v6929_v5 = vrot.slane %v17869_v2, 2 }
  0xf9   : > { %v1166_v20 = vshll.u32 %v18721_v11, 16 }
  0xfa   : > { %15976 = vmatmul.mubr.msk.bf16.gmra.mrb[36].mxu0 %vm1202_vm3, %v6904_v21  ;;  %v6918_v19 = vsel %vm6863_vm5, %v6915_v63, %v6917_v6  ;;  %v1153_v21 = vsel %vm653_vm2, %v1148_v8, %v1152_v9  ;;  %v6920_v35 = vsel %vm6863_vm5, %v6917_v6, %v6919_v25  ;;  %v17868_v63 = vld [vmem:[%s18296_s9 + $0x110] sm:$0xff]  }
  0xfb   : > { %15979 = vmatprep.mubr.msk.bf16.mxu0 %vm1202_vm3, %v6906_v26  ;;  %v1161_v26 = vsel %vm653_vm2, %v1156_v14, %v1160_v15  ;;  %v1168_v32 = vrot.slane %v1166_v20, 1  ;;  %v17729_v14 = vld [vmem:[%s18296_s9 + $0x128] sm:$0xff]  }
  0xff   : > { %15358 = vmatmul.mubr.msk.bf16.gmra.mrb[108].mxu1 %vm1202_vm3, %v1105_v28  ;;  %v1170_v28 = vshrl.u32 %v18721_v11, 16 }
 0x100   : > { %15361 = vmatprep.mubr.msk.bf16.mxu1 %vm1202_vm3, %v1113_v31  ;;  %v6921_v31 = vrot.slane %v17865_v30, 2  ;;  %v18790_v30 = vld [vmem:[%s18296_s9 + $0x8] sm:$0xff]  }
 0x102   : > { %15980 = vmatmul.mubr.msk.bf16.gmra.mrb[40].mxu0 %vm1202_vm3, %v6908_v36  ;;  %v1172_v36 = vor.u32 %v1170_v28, %v1168_v32  ;;  %v6922_v39 = vsel %vm6863_vm5, %v6919_v25, %v6921_v31  ;;  %v6924_v53 = vsel %vm6863_vm5, %v6921_v31, %v6923_v44  ;;  %v6935_v28 = vrot.slane %v17730_v24, 2  ;;  %v17742_v24 = vld [vmem:[%s18296_s9 + $0x190] sm:$0xff]  }
 0x103   : > { %15983 = vmatprep.mubr.msk.bf16.mxu0 %vm1202_vm3, %v6910_v40  ;;  %v1182_v40 = vshll.u32 %v18741_v10, 16 }
 0x105   : > { %v1184_v49 = vrot.slane %v1182_v40, 1  ;;  %v18813_v40 = vld [vmem:[%s18296_s9 + $0x18] sm:$0xff]  }
 0x107   : > { %15362 = vmatmul.mubr.msk.bf16.gmra.mrb[112].mxu1 %vm1202_vm3, %v1121_v41  ;;  %v1169_v41 = vsel %vm653_vm2, %v1164_v33, %v1168_v32  ;;  %v1188_v54 = vor.u32 %v1186_v17, %v1184_v49  ;;  %v17732_v32 = vld [vmem:[%s18296_s9 + $0x140] sm:$0xff]   ;;  %v6943_v17 = vrot.slane %v17734_v43, 2  ;;  %v18910_v43 = vld [vmem:[%s18296_s9 + $0x78] sm:$0xff]  }
 0x108   : > { %15365 = vmatprep.mubr.msk.bf16.mxu1 %vm1202_vm3, %v1129_v45  ;;  %v1177_v45 = vsel %vm653_vm2, %v1172_v36, %v1176_v37  ;;  %v6939_v36 = vrot.slane %v17732_v32, 2  ;;  %v18899_v32 = vld [vmem:[%s18296_s9 + $0x70] sm:$0xff]  }
 0x10a   : > { %15984 = vmatmul.mubr.msk.bf16.gmra.mrb[44].mxu0 %vm1202_vm3, %v6912_v52  ;;  %v17728_v52 = vld [vmem:[%s18296_s9 + $0x220] ss:$0 sps:$4 sm:$0x11]  }
 0x10b   : > { %15987 = vmatprep.mubr.msk.bf16.mxu0 %vm1202_vm3, %v6914_v56  ;;  %v1192_v56 = vrot.slane %v1190_v46, 1  ;;  %v1198_v61 = vshll.u32 %v17728_v52, 16 }
 0x10d   : > { %v1193_v1 = vsel %vm653_vm2, %v1188_v54, %v1192_v56  ;;  %v1196_v6 = vor.u32 %v1194_v60, %v1192_v56  ;;  %v1200_v9 = vrot.slane %v1198_v61, 1  ;;  %v17738_v61 = vld [vmem:[%s18296_s9 + $0x170] sm:$0xff]  }
 0x10f   : > { %15366 = vmatmul.mubr.msk.bf16.gmra.mrb[116].mxu1 %vm1202_vm3, %v1137_v58  ;;  %v1185_v58 = vsel %vm653_vm2, %v1180_v51, %v1184_v49  ;;  %v1201_v15 = vsel %vm653_vm2, %v1196_v6, %v1200_v9  ;;  %v17736_v51 = vld [vmem:[%s18296_s9 + $0x160] sm:$0xff]   ;;  %v18867_v6 = vld [vmem:[%s18296_s9 + $0x50] sm:$0xff]  }
 0x110   : > { %15369 = vmatprep.mubr.msk.bf16.mxu1 %vm1202_vm3, %v1145_v0  ;;  %v6927_v0 = vrot.slane %v17868_v63, 2  ;;  %v6947_v54 = vrot.slane %v17736_v51, 2 }
 0x112   : > { %15988 = vmatmul.mubr.msk.bf16.gmra.mrb[48].mxu0 %vm1202_vm3, %v6916_v12  ;;  %v6928_v8 = vsel %vm6863_vm5, %v6925_v48, %v6927_v0  ;;  %v6930_v12 = vsel %vm6863_vm5, %v6927_v0, %v6929_v5  ;;  %v18835_v48 = vld [vmem:[%s18296_s9 + $0x30] sm:$0xff]   ;;  %v17739_v0 = vld [vmem:[%s18296_s9 + $0x178] sm:$0xff]  }
 0x113   : > { %15991 = vmatprep.mubr.msk.bf16.mxu0 %vm1202_vm3, %v6918_v19  ;;  %v17870_v19 = vld [vmem:[%s18296_s9 + $0x120] sm:$0xff]   ;;  %v6953_v2 = vrot.slane %v17739_v0, 2 }
 0x114   : > { %v6931_v20 = vrot.slane %v17870_v19, 2 }
 0x116   : > { %v6932_v22 = vsel %vm6863_vm5, %v6929_v5, %v6931_v20  ;;  %v18862_v5 = vld [vmem:[%s18296_s9 + $0x48] sm:$0xff]  }
 0x117   : > { %15370 = vmatmul.mubr.msk.bf16.gmra.mrb[120].mxu1 %vm1202_vm3, %v1153_v21  ;;  %v6933_v21 = vrot.slane %v17729_v14, 2  ;;  %v17741_v14 = vld [vmem:[%s18296_s9 + $0x188] sm:$0xff]  }
 0x118   : > { %15373 = vmatprep.mubr.msk.bf16.mxu1 %vm1202_vm3, %v1161_v26  ;;  %v17731_v26 = vld [vmem:[%s18296_s9 + $0x138] sm:$0xff]   ;;  %v6957_v19 = vrot.slane %v17741_v14, 2 }
 0x119   : > { %v6934_v25 = vsel %vm6863_vm5, %v6931_v20, %v6933_v21  ;;  %v6937_v29 = vrot.slane %v17731_v26, 2  ;;  %v6936_v31 = vsel %vm6863_vm5, %v6933_v21, %v6935_v28  ;;  %v18878_v20 = vld [vmem:[%s18296_s9 + $0x58] sm:$0xff]   ;;  %v18883_v21 = vld [vmem:[%s18296_s9 + $0x60] sm:$0xff]  }
 0x11a   : > { %15992 = vmatmul.mubr.msk.bf16.gmra.mrb[52].mxu0 %vm1202_vm3, %v6920_v35  ;;  %v17733_v35 = vld [vmem:[%s18296_s9 + $0x148] sm:$0xff]   ;;  %v17743_v26 = vld [vmem:[%s18296_s9 + $0x198] sm:$0xff]  }
 0x11b   : > { %15995 = vmatprep.mubr.msk.bf16.mxu0 %vm1202_vm3, %v6922_v39  ;;  %v6938_v33 = vsel %vm6863_vm5, %v6935_v28, %v6937_v29  ;;  %v6941_v37 = vrot.slane %v17733_v35, 2  ;;  %v6940_v42 = vsel %vm6863_vm5, %v6937_v29, %v6939_v36  ;;  %v6959_v28 = vrot.slane %v17742_v24, 2  ;;  %v17744_v35 = vld [vmem:[%s18296_s9 + $0x1a0] sm:$0xff]   ;;  %v18958_v24 = vld [vmem:[%s18296_s9 + $0xa8] sm:$0xff]  }
 0x11c   : > { %v6961_v29 = vrot.slane %v17743_v26, 2 }
 0x11d   : > { %v6942_v44 = vsel %vm6863_vm5, %v6939_v36, %v6941_v37  ;;  %v6944_v49 = vsel %vm6863_vm5, %v6941_v37, %v6943_v17  ;;  %v6963_v37 = vrot.slane %v17744_v35, 2 }
 0x11e   : > { %v6962_v36 = vsel %vm6863_vm5, %v6959_v28, %v6961_v29 }
 0x11f   : > { %15374 = vmatmul.mubr.msk.bf16.gmra.mrb[124].mxu1 %vm1202_vm3, %v1169_v41  ;;  %v18818_v41 = vld [vmem:[%s18296_s9 + $0x20] sm:$0xff]  }
 0x120   : > { %15377 = vmatprep.mubr.msk.bf16.mxu1 %vm1202_vm3, %v1177_v45  ;;  %v17735_v45 = vld [vmem:[%s18296_s9 + $0x158] sm:$0xff]  }
 0x121   : > { %v6945_v46 = vrot.slane %v17735_v45, 2  ;;  %v6964_v45 = vsel %vm6863_vm5, %v6961_v29, %v6963_v37 }
 0x122   : > { %15996 = vmatmul.mubr.msk.bf16.gmra.mrb[56].mxu0 %vm1202_vm3, %v6924_v53  ;;  %v17737_v53 = vld [vmem:[%s18296_s9 + $0x168] sm:$0xff]  }
 0x123   : > { %15999 = vmatprep.mubr.msk.bf16.mxu0 %vm1202_vm3, %v6926_v57  ;;  %v6946_v52 = vsel %vm6863_vm5, %v6943_v17, %v6945_v46  ;;  %v6949_v56 = vrot.slane %v17737_v53, 2  ;;  %v18846_v57 = vld [vmem:[%s18296_s9 + $0x38] sm:$0xff]   ;;  %v6948_v60 = vsel %vm6863_vm5, %v6945_v46, %v6947_v54  ;;  %v17746_v17 = vld [vmem:[%s18296_s9 + $0x1b0] sm:$0xff]   ;;  %v18926_v53 = vld [vmem:[%s18296_s9 + $0x88] sm:$0xff]  }
 0x124   : > { %v6967_v51 = vrot.slane %v17746_v17, 2 }
 0x125   : > { %v6950_v63 = vsel %vm6863_vm5, %v6947_v54, %v6949_v56  ;;  %v18931_v54 = vld [vmem:[%s18296_s9 + $0x90] sm:$0xff]  }
 0x127   : > { %15378 = vmatmul.mubr.msk.bf16.gmra.mrb[128].mxu1 %vm1202_vm3, %v1185_v58  ;;  %v18851_v58 = vld [vmem:[%s18296_s9 + $0x40] sm:$0xff]  }
 0x128   : > { %15381 = vmatprep.mubr.msk.bf16.mxu1 %vm1202_vm3, %v1193_v1  ;;  %v6951_v1 = vrot.slane %v17738_v61, 2 }
 0x12a   : > { %16000 = vmatmul.mubr.msk.bf16.gmra.mrb[60].mxu0 %vm1202_vm3, %v6928_v8  ;;  %v6952_v9 = vsel %vm6863_vm5, %v6949_v56, %v6951_v1  ;;  %v17740_v8 = vld [vmem:[%s18296_s9 + $0x180] sm:$0xff]  }
 0x12b   : > { %16003 = vmatprep.mubr.msk.bf16.mxu0 %vm1202_vm3, %v6930_v12  ;;  %v6954_v12 = vsel %vm6863_vm5, %v6951_v1, %v6953_v2 }
 0x12f   : > { %15382 = vmatmul.mubr.msk.bf16.gmra.mrb[132].mxu1 %vm1202_vm3, %v1201_v15  ;;  %v6955_v15 = vrot.slane %v17740_v8, 2 }
 0x130   : > { %15387 = vmatprep.mubr.msk.bf16.mxu1 %vm1202_vm3, %v18302_v13  ;;  %v18796_v13 = vld [vmem:[%s18296_s9 + $0x10] sm:$0xff]  }
 0x132   : > { %16004 = vmatmul.mubr.msk.bf16.gmra.mrb[64].mxu0 %vm1202_vm3, %v6932_v22  ;;  %v6956_v22 = vsel %vm6863_vm5, %v6953_v2, %v6955_v15  ;;  %v18942_v2 = vld [vmem:[%s18296_s9 + $0x98] sm:$0xff]  }
 0x133   : > { %16007 = vmatprep.mubr.msk.bf16.mxu0 %vm1202_vm3, %v6934_v25  ;;  %v6958_v25 = vsel %vm6863_vm5, %v6955_v15, %v6957_v19  ;;  %v17751_v15 = vld [vmem:[%s18296_s9 + $0x1d8] sm:$0xff]  }
 0x137   : > { %15388 = vmatmul.mubr.msk.bf16.vlgmr.msra.gmra.mrb[0].mxu1 %vm1202_vm3, %v18790_v30 }
 0x138   : > { %15524 = vmatpush3.bf16.msra.mxu1 %v18574_v62  ;;  %15391 = vmatprep.mubr.msk.bf16.mxu1 %vm1202_vm3, %v18796_v13  ;;  %v13803_v62 = vld [vmem:[%s21038_s1 + $0xe] sm:$0x3] }
 0x139   : > { %v18810_v39 = vand.u32 %v13803_v62, %v18272_v4  ;;  %v17745_v62 = vld [vmem:[%s18296_s9 + $0x1a8] sm:$0xff]  }
 0x13a   : > { %16008 = vmatmul.mubr.msk.bf16.gmra.mrb[68].mxu0 %vm1202_vm3, %v6936_v31  ;;  %v18894_v31 = vld [vmem:[%s18296_s9 + $0x68] sm:$0xff]  }
 0x13b   : > { %16011 = vmatprep.mubr.msk.bf16.mxu0 %vm1202_vm3, %v6938_v33  ;;  %16213 = vmatprep.subr.bf16.mxu0 %v18810_v39  ;;  %v6960_v33 = vsel %vm6863_vm5, %v6957_v19, %v6959_v28  ;;  %v17752_v28 = vld [vmem:[%s18296_s9 + $0x1e0] sm:$0xff]  }
 0x13c   : > { %v6979_v35 = vrot.slane %v17752_v28, 2 }
 0x13f   : > { %15392 = vmatmul.mubr.msk.bf16.gmra.mrb[4].mxu1 %vm1202_vm3, %v18813_v40 }
 0x140   : > { %15395 = vmatprep.mubr.msk.bf16.mxu1 %vm1202_vm3, %v18818_v41 }
 0x142   : > { %16012 = vmatmul.mubr.msk.bf16.gmra.mrb[72].mxu0 %vm1202_vm3, %v6940_v42  ;;  %v6965_v42 = vrot.slane %v17745_v62, 2  ;;  %v18974_v62 = vld [vmem:[%s18296_s9 + $0xb8] sm:$0xff]  }
 0x143   : > { %16015 = vmatprep.mubr.msk.bf16.mxu0 %vm1202_vm3, %v6942_v44  ;;  %v18915_v44 = vld [vmem:[%s18296_s9 + $0x80] sm:$0xff]  }
 0x144   : > { %v6966_v46 = vsel %vm6863_vm5, %v6963_v37, %v6965_v42  ;;  %v6968_v56 = vsel %vm6863_vm5, %v6965_v42, %v6967_v51  ;;  %v18979_v37 = vld [vmem:[%s18296_s9 + $0xc0] sm:$0xff]  }
 0x147   : > { %15396 = vmatmul.mubr.msk.bf16.gmra.mrb[8].mxu1 %vm1202_vm3, %v18830_v47 }
 0x148   : > { %15399 = vmatprep.mubr.msk.bf16.mxu1 %vm1202_vm3, %v18835_v48 }
 0x14a   : > { %16016 = vmatmul.mubr.msk.bf16.gmra.mrb[76].mxu0 %vm1202_vm3, %v6944_v49  ;;  %v17747_v49 = vld [vmem:[%s18296_s9 + $0x1b8] sm:$0xff]  }
 0x14b   : > { %16019 = vmatprep.mubr.msk.bf16.mxu0 %vm1202_vm3, %v6946_v52  ;;  %v6969_v52 = vrot.slane %v17747_v49, 2 }
 0x14d   : > { %v6970_v61 = vsel %vm6863_vm5, %v6967_v51, %v6969_v52 }
 0x14f   : > { %15400 = vmatmul.mubr.msk.bf16.gmra.mrb[12].mxu1 %vm1202_vm3, %v18846_v57 }
 0x150   : > { %15403 = vmatprep.mubr.msk.bf16.mxu1 %vm1202_vm3, %v18851_v58 }
 0x152   : > { %16020 = vmatmul.mubr.msk.bf16.gmra.mrb[80].mxu0 %vm1202_vm3, %v6948_v60  ;;  %v17748_v60 = vld [vmem:[%s18296_s9 + $0x1c0] sm:$0xff]  }
 0x153   : > { %16023 = vmatprep.mubr.msk.bf16.mxu0 %vm1202_vm3, %v6950_v63  ;;  %v17749_v63 = vld [vmem:[%s18296_s9 + $0x1c8] sm:$0xff]   ;;  %v6971_v0 = vrot.slane %v17748_v60, 2 }
 0x154   : > { %v6973_v1 = vrot.slane %v17749_v63, 2 }
 0x155   : > { %v6972_v8 = vsel %vm6863_vm5, %v6969_v52, %v6971_v0  ;;  %v18990_v52 = vld [vmem:[%s18296_s9 + $0xc8] sm:$0xff]  }
 0x156   : > { %v6974_v14 = vsel %vm6863_vm5, %v6971_v0, %v6973_v1  ;;  %v17757_v0 = vld [vmem:[%s18296_s9 + $0x208] sm:$0xff]  }
 0x157   : > { %15404 = vmatmul.mubr.msk.bf16.gmra.mrb[16].mxu1 %vm1202_vm3, %v18862_v5 }
 0x158   : > { %15407 = vmatprep.mubr.msk.bf16.mxu1 %vm1202_vm3, %v18867_v6 }
 0x15a   : > { %16024 = vmatmul.mubr.msk.bf16.gmra.mrb[84].mxu0 %vm1202_vm3, %v6952_v9  ;;  %v18947_v9 = vld [vmem:[%s18296_s9 + $0xa0] sm:$0xff]  }
 0x15b   : > { %16027 = vmatprep.mubr.msk.bf16.mxu0 %vm1202_vm3, %v6954_v12  ;;  %v17750_v12 = vld [vmem:[%s18296_s9 + $0x1d0] sm:$0xff]  }
 0x15c   : > { %v6975_v19 = vrot.slane %v17750_v12, 2  ;;  %v19006_v12 = vld [vmem:[%s18296_s9 + $0xd8] sm:$0xff]  }
 0x15e   : > { %v6976_v26 = vsel %vm6863_vm5, %v6973_v1, %v6975_v19 }
 0x15f   : > { %15408 = vmatmul.mubr.msk.bf16.gmra.mrb[20].mxu1 %vm1202_vm3, %v18878_v20 }
 0x160   : > { %15411 = vmatprep.mubr.msk.bf16.mxu1 %vm1202_vm3, %v18883_v21 }
 0x162   : > { %16028 = vmatmul.mubr.msk.bf16.gmra.mrb[88].mxu0 %vm1202_vm3, %v6956_v22  ;;  %v6977_v22 = vrot.slane %v17751_v15, 2 }
 0x163   : > { %16031 = vmatprep.mubr.msk.bf16.mxu0 %vm1202_vm3, %v6958_v25  ;;  %v18963_v25 = vld [vmem:[%s18296_s9 + $0xb0] sm:$0xff]  }
 0x164   : > { %v6978_v29 = vsel %vm6863_vm5, %v6975_v19, %v6977_v22  ;;  %v6980_v42 = vsel %vm6863_vm5, %v6977_v22, %v6979_v35  ;;  %v17758_v19 = vld [vmem:[%s18296_s9 + $0x210] sm:$0xff]  }
 0x165   : > { %v6991_v28 = vrot.slane %v17758_v19, 2  ;;  %v19055_v19 = vld [vmem:[%s18296_s9 + $0x28] sm:$0xff]  }
 0x167   : > { %15412 = vmatmul.mubr.msk.bf16.gmra.mrb[24].mxu1 %vm1202_vm3, %v18894_v31 }
 0x168   : > { %15415 = vmatprep.mubr.msk.bf16.mxu1 %vm1202_vm3, %v18899_v32 }
 0x16a   : > { %16032 = vmatmul.mubr.msk.bf16.gmra.mrb[92].mxu0 %vm1202_vm3, %v6960_v33  ;;  %v17753_v33 = vld [vmem:[%s18296_s9 + $0x1e8] sm:$0xff]  }
 0x16b   : > { %16035 = vmatprep.mubr.msk.bf16.mxu0 %vm1202_vm3, %v6962_v36  ;;  %v6981_v36 = vrot.slane %v17753_v33, 2  ;;  %v19022_v33 = vld [vmem:[%s18296_s9 + $0xe8] sm:$0xff]  }
 0x16d   : > { %v6982_v17 = vsel %vm6863_vm5, %v6979_v35, %v6981_v36  ;;  %v19027_v35 = vld [vmem:[%s18296_s9 + $0xf0] sm:$0xff]  }
 0x16f   : > { %15416 = vmatmul.mubr.msk.bf16.gmra.mrb[28].mxu1 %vm1202_vm3, %v18910_v43 }
 0x170   : > { %15419 = vmatprep.mubr.msk.bf16.mxu1 %vm1202_vm3, %v18915_v44 }
 0x172   : > { %16036 = vmatmul.mubr.msk.bf16.gmra.mrb[96].mxu0 %vm1202_vm3, %v6964_v45  ;;  %v17754_v45 = vld [vmem:[%s18296_s9 + $0x1f0] sm:$0xff]  }
 0x173   : > { %16039 = vmatprep.mubr.msk.bf16.mxu0 %vm1202_vm3, %v6966_v46  ;;  %v17755_v46 = vld [vmem:[%s18296_s9 + $0x1f8] sm:$0xff]   ;;  %v6983_v49 = vrot.slane %v17754_v45, 2 }
 0x174   : > { %v6985_v51 = vrot.slane %v17755_v46, 2 }
 0x175   : > { %v6984_v60 = vsel %vm6863_vm5, %v6981_v36, %v6983_v49 }
 0x176   : > { %v6986_v63 = vsel %vm6863_vm5, %v6983_v49, %v6985_v51 }
 0x177   : > { %15420 = vmatmul.mubr.msk.bf16.gmra.mrb[32].mxu1 %vm1202_vm3, %v18926_v53 }
 0x178   : > { %15423 = vmatprep.mubr.msk.bf16.mxu1 %vm1202_vm3, %v18931_v54 }
 0x17a   : > { %16040 = vmatmul.mubr.msk.bf16.gmra.mrb[100].mxu0 %vm1202_vm3, %v6968_v56  ;;  %v18995_v56 = vld [vmem:[%s18296_s9 + $0xd0] sm:$0xff]  }
 0x17b   : > { %16043 = vmatprep.mubr.msk.bf16.mxu0 %vm1202_vm3, %v6970_v61  ;;  %v17756_v61 = vld [vmem:[%s18296_s9 + $0x200] sm:$0xff]  }
 0x17c   : > { %v6987_v1 = vrot.slane %v17756_v61, 2  ;;  %v7922_v61 = vld [vmem:[%s18296_s9 + $0x24] sm:$0xf] }
 0x17e   : > { %v6988_v15 = vsel %vm6863_vm5, %v6985_v51, %v6987_v1  ;;  %v19038_v51 = vld [vmem:[%s18296_s9 + $0xf8] sm:$0xff]  }
 0x17f   : > { %15424 = vmatmul.mubr.msk.bf16.gmra.mrb[36].mxu1 %vm1202_vm3, %v18942_v2 }
 0x180   : > { %15427 = vmatprep.mubr.msk.bf16.mxu1 %vm1202_vm3, %v18947_v9 }
 0x182   : > { %16044 = vmatmul.mubr.msk.bf16.gmra.mrb[104].mxu0 %vm1202_vm3, %v6972_v8  ;;  %v6989_v8 = vrot.slane %v17757_v0, 2 }
 0x183   : > { %16047 = vmatprep.mubr.msk.bf16.mxu0 %vm1202_vm3, %v6974_v14  ;;  %v19011_v14 = vld [vmem:[%s18296_s9 + $0xe0] sm:$0xff]  }
 0x184   : > { %v6990_v22 = vsel %vm6863_vm5, %v6987_v1, %v6989_v8  ;;  %v6992_v36 = vsel %vm6863_vm5, %v6989_v8, %v6991_v28  ;;  %v17762_v1 = vld [vmem:[%s18296_s9 + $0x230] ss:$0 sps:$4 sm:$0x33]  }
 0x187   : > { %15428 = vmatmul.mubr.msk.bf16.gmra.mrb[40].mxu1 %vm1202_vm3, %v18958_v24 }
 0x188   : > { %15431 = vmatprep.mubr.msk.bf16.mxu1 %vm1202_vm3, %v18963_v25 }
 0x18a   : > { %16048 = vmatmul.mubr.msk.bf16.gmra.mrb[108].mxu0 %vm1202_vm3, %v6976_v26  ;;  %v17759_v26 = vld [vmem:[%s18296_s9 + $0x218] sm:$0xff]  }
 0x18b   : > { %16051 = vmatprep.mubr.msk.bf16.mxu0 %vm1202_vm3, %v6978_v29  ;;  %v6993_v29 = vrot.slane %v17759_v26, 2 }
 0x18d   : > { %v6994_v45 = vsel %vm6863_vm5, %v6991_v28, %v6993_v29  ;;  %v8404_v28 = vrot.slane %v19055_v19, 2 }
 0x18f   : > { %15432 = vmatmul.mubr.msk.bf16.gmra.mrb[44].mxu1 %vm1202_vm3, %v18974_v62 }
 0x190   : > { %15435 = vmatprep.mubr.msk.bf16.mxu1 %vm1202_vm3, %v18979_v37 }
 0x192   : > { %16052 = vmatmul.mubr.msk.bf16.gmra.mrb[112].mxu0 %vm1202_vm3, %v6980_v42  ;;  %v17760_v42 = vld [vmem:[%s18296_s9 + $0x220] sm:$0xff]  }
 0x193   : > { %16055 = vmatprep.mubr.msk.bf16.mxu0 %vm1202_vm3, %v6982_v17  ;;  %v17761_v17 = vld [vmem:[%s18296_s9 + $0x228] sm:$0xff]   ;;  %v6995_v46 = vrot.slane %v17760_v42, 2 }
 0x194   : > { %v6997_v49 = vrot.slane %v17761_v17, 2 }
 0x195   : > { %v6996_v0 = vsel %vm6863_vm5, %v6993_v29, %v6995_v46  ;;  %v19062_v29 = vld [vmem:[%s18296_s9 + $0x108] sm:$0xff]  }
 0x196   : > { %v6998_v8 = vsel %vm6863_vm5, %v6995_v46, %v6997_v49  ;;  %v19077_v46 = vld [vmem:[%s18296_s9 + $0x38] sm:$0xff]  }
 0x197   : > { %15436 = vmatmul.mubr.msk.bf16.gmra.mrb[48].mxu1 %vm1202_vm3, %v18990_v52 }
 0x198   : > { %15439 = vmatprep.mubr.msk.bf16.mxu1 %vm1202_vm3, %v18995_v56 }
 0x19a   : > { %16056 = vmatmul.mubr.msk.bf16.gmra.mrb[116].mxu0 %vm1202_vm3, %v6984_v60  ;;  %v7921_v60 = vld [vmem:[%s18296_s9 + $0x20] sm:$0xc] }
 0x19b   : > { %16059 = vmatprep.mubr.msk.bf16.mxu0 %vm1202_vm3, %v6986_v63  ;;  %v19045_v63 = vld [vmem:[%s18296_s9 + $0x100] sm:$0xff]  }
 0x19f   : > { %15440 = vmatmul.mubr.msk.bf16.gmra.mrb[52].mxu1 %vm1202_vm3, %v19006_v12 }
 0x1a0   : > { %15443 = vmatprep.mubr.msk.bf16.mxu1 %vm1202_vm3, %v19011_v14 }
 0x1a2   : > { %16060 = vmatmul.mubr.msk.bf16.gmra.mrb[120].mxu0 %vm1202_vm3, %v6988_v15  ;;  %v19052_v15 = vcombine.low %v7921_v60, %v7922_v61  ;;  %v8408_v61 = vrot.slane %v19077_v46, 2 }
 0x1a3   : > { %16063 = vmatprep.mubr.msk.bf16.mxu0 %vm1202_vm3, %v6990_v22  ;;  %v6999_v22 = vrot.slane %v17762_v1, 2 }
 0x1a4   : > { %v8403_v26 = vrot.slane %v19052_v15, 2 }
 0x1a5   : > { %v7000_v42 = vsel %vm6863_vm5, %v6997_v49, %v6999_v22  ;;  %v19089_v49 = vld [vmem:[%s18296_s9 + $0x120] sm:$0xff]  }
 0x1a6   : > { %v8405_v17 = vsel %vm6863_vm5, %v8403_v26, %v8404_v28  ;;  %21100 = vst [vmem:[#allocation7_spill] sm:$0xff] %v19089_v49  ;;  %v19099_v26 = vld [vmem:[%s18296_s9 + $0x48] sm:$0xff]  }
 0x1a7   : > { %15444 = vmatmul.mubr.msk.bf16.gmra.mrb[56].mxu1 %vm1202_vm3, %v19022_v33  ;;  %21102 = vst [vmem:[#allocation9_spill] sm:$0xff] %v19099_v26 }
 0x1a8   : > { %15447 = vmatprep.mubr.msk.bf16.mxu1 %vm1202_vm3, %v19027_v35 }
 0x1aa   : > { %16064 = vmatmul.mubr.msk.bf16.gmra.mrb[124].mxu0 %vm1202_vm3, %v6992_v36  ;;  %v19067_v36 = vld [vmem:[%s18296_s9 + $0x110] sm:$0xff]  }
 0x1ab   : > { %16067 = vmatprep.mubr.msk.bf16.mxu0 %vm1202_vm3, %v6994_v45  ;;  %v19073_v45 = vld [vmem:[%s18296_s9 + $0x30] sm:$0xff]  }
 0x1ac   : > { %v8406_v60 = vrot.slane %v19073_v45, 2 }
 0x1ae   : > { %v8407_v1 = vsel %vm6863_vm5, %v8404_v28, %v8406_v60  ;;  %v8409_v22 = vsel %vm6863_vm5, %v8406_v60, %v8408_v61  ;;  %v8412_v60 = vrot.slane %v19099_v26, 2 }
 0x1af   : > { %15448 = vmatmul.mubr.msk.bf16.gmra.mrb[60].mxu1 %vm1202_vm3, %v19038_v51 }
 0x1b0   : > { %15451 = vmatprep.mubr.msk.bf16.mxu1 %vm1202_vm3, %v19045_v63 }
 0x1b2   : > { %16068 = vmatmul.mubr.msk.bf16.gmra.mrb[128].mxu0 %vm1202_vm3, %v6996_v0  ;;  %v19084_v0 = vld [vmem:[%s18296_s9 + $0x118] sm:$0xff]  }
 0x1b3   : > { %16071 = vmatprep.mubr.msk.bf16.mxu0 %vm1202_vm3, %v6998_v8  ;;  %v19095_v8 = vld [vmem:[%s18296_s9 + $0x40] sm:$0xff]  }
 0x1b4   : > { %21101 = vst [vmem:[#allocation8_spill] sm:$0xff] %v19095_v8  ;;  %v8410_v28 = vrot.slane %v19095_v8, 2  ;;  %v8416_v8 = vrot.slane %v19129_v23, 2 }
 0x1b7   : > { %15452 = vmatmul.mubr.msk.bf16.gmra.mrb[64].mxu1 %vm1202_vm3, %v19062_v29 }
 0x1b8   : > { %15455 = vmatprep.mubr.msk.bf16.mxu1 %vm1202_vm3, %v19067_v36 }
 0x1ba   : > { %16072 = vmatmul.mubr.msk.bf16.gmra.mrb[132].mxu0 %vm1202_vm3, %v7000_v42  ;;  %v13387_v42 = vld [vmem:[%s21038_s1 + $0x6] sm:$0x3] }
 0x1bb   : > { %16077 = vmatprep.mubr.msk.bf16.mxu0 %vm1202_vm3, %v8405_v17  ;;  %v19109_v17 = vand.u32 %v13387_v42, %v18272_v4  ;;  %v8413_v42 = vsel %vm6863_vm5, %v8410_v28, %v8412_v60 }
 0x1bd   : > { %15661 = vmatprep.subr.bf16.mxu1 %v19109_v17 }
 0x1bf   : > { %15456 = vmatmul.mubr.msk.bf16.gmra.mrb[68].mxu1 %vm1202_vm3, %v19084_v0 }
 0x1c0   : > { %15459 = vmatprep.mubr.msk.bf16.mxu1 %vm1202_vm3, %v19089_v49  ;;  %v17786_v49 = vld [vmem:[%s18296_s9 + $0xd8] sm:$0xff]  }
 0x1c2   : > { %16078 = vmatmul.mubr.msk.bf16.vlgmr.msra.gmra.mrb[0].mxu0 %vm1202_vm3, %v8407_v1  ;;  %v8411_v1 = vsel %vm6863_vm5, %v8408_v61, %v8410_v28  ;;  %v19141_v61 = vld [vmem:[%s18296_s9 + $0x140] sm:$0xff]  }
 0x1c3   : > { %16214 = vmatpush3.bf16.msra.mxu0 %v18810_v39  ;;  %16081 = vmatprep.mubr.msk.bf16.mxu0 %vm1202_vm3, %v8409_v22  ;;  %v19119_v39 = vld [vmem:[%s18296_s9 + $0x130] sm:$0xff]   ;;  %21108 = vst [vmem:[#allocation15_spill] sm:$0xff] %v19141_v61 }
 0x1c4   : > { %21104 = vst [vmem:[#allocation11_spill] sm:$0xff] %v19119_v39  ;;  %v19125_v22 = vld [vmem:[%s18296_s9 + $0x50] sm:$0xff]  }
 0x1c5   : > { %21105 = vst [vmem:[#allocation12_spill] sm:$0xff] %v19125_v22  ;;  %v8414_v26 = vrot.slane %v19125_v22, 2  ;;  %v19151_v22 = vld [vmem:[%s18296_s9 + $0x68] sm:$0xff]  }
 0x1c6   : > { %21110 = vst [vmem:[#allocation17_spill] sm:$0xff] %v19151_v22 }
 0x1c7   : > { %15460 = vmatmul.mubr.msk.bf16.gmra.mrb[72].mxu1 %vm1202_vm3, %v19113_v59  ;;  %v8415_v28 = vsel %vm6863_vm5, %v8412_v60, %v8414_v26  ;;  %v19163_v60 = vld [vmem:[%s18296_s9 + $0x150] sm:$0xff]   ;;  %v19284_v59 = vld [vmem:[%s18296_s9 + $0x1a8] sm:$0xff]  }
 0x1c8   : > { %15463 = vmatprep.mubr.msk.bf16.mxu1 %vm1202_vm3, %v19119_v39  ;;  %v19136_v39 = vld [vmem:[%s18296_s9 + $0x138] sm:$0xff]   ;;  %21112 = vst [vmem:[#allocation19_spill] sm:$0xff] %v19163_v60  ;;  %21133 = vst [vmem:[#allocation40_spill] sm:$0xff] %v19284_v59 }
 0x1c9   : > { %21107 = vst [vmem:[#allocation14_spill] sm:$0xff] %v19136_v39 }
 0x1ca   : > { %16082 = vmatmul.mubr.msk.bf16.gmra.mrb[4].mxu0 %vm1202_vm3, %v8411_v1  ;;  %v19147_v1 = vld [vmem:[%s18296_s9 + $0x60] sm:$0xff]  }
 0x1cb   : > { %16085 = vmatprep.mubr.msk.bf16.mxu0 %vm1202_vm3, %v8413_v42  ;;  %21109 = vst [vmem:[#allocation16_spill] sm:$0xff] %v19147_v1  ;;  %v8417_v42 = vsel %vm6863_vm5, %v8414_v26, %v8416_v8  ;;  %v8418_v23 = vrot.slane %v19147_v1, 2  ;;  %v19173_v1 = vld [vmem:[%s18296_s9 + $0x78] sm:$0xff]  }
 0x1cc   : > { %21114 = vst [vmem:[#allocation21_spill] sm:$0xff] %v19173_v1 }
 0x1cd   : > { %v8419_v26 = vsel %vm6863_vm5, %v8416_v8, %v8418_v23  ;;  %v19185_v8 = vld [vmem:[%s18296_s9 + $0x160] sm:$0xff]  }
 0x1ce   : > { %21116 = vst [vmem:[#allocation23_spill] sm:$0xff] %v19185_v8 }
 0x1cf   : > { %15464 = vmatmul.mubr.msk.bf16.gmra.mrb[76].mxu1 %vm1202_vm3, %v19136_v39  ;;  %v8420_v39 = vrot.slane %v19151_v22, 2 }
 0x1d0   : > { %15467 = vmatprep.mubr.msk.bf16.mxu1 %vm1202_vm3, %v19141_v61  ;;  %v19158_v61 = vld [vmem:[%s18296_s9 + $0x148] sm:$0xff]  }
 0x1d1   : > { %21111 = vst [vmem:[#allocation18_spill] sm:$0xff] %v19158_v61 }
 0x1d2   : > { %16086 = vmatmul.mubr.msk.bf16.gmra.mrb[8].mxu0 %vm1202_vm3, %v8415_v28  ;;  %v19169_v28 = vld [vmem:[%s18296_s9 + $0x70] sm:$0xff]  }
 0x1d3   : > { %16089 = vmatprep.mubr.msk.bf16.mxu0 %vm1202_vm3, %v8417_v42  ;;  %21113 = vst [vmem:[#allocation20_spill] sm:$0xff] %v19169_v28  ;;  %v8421_v42 = vsel %vm6863_vm5, %v8418_v23, %v8420_v39  ;;  %v8422_v22 = vrot.slane %v19169_v28, 2  ;;  %v19195_v28 = vld [vmem:[%s18296_s9 + $0x88] sm:$0xff]  }
 0x1d4   : > { %21118 = vst [vmem:[#allocation25_spill] sm:$0xff] %v19195_v28 }
 0x1d5   : > { %v8423_v23 = vsel %vm6863_vm5, %v8420_v39, %v8422_v22  ;;  %v19207_v39 = vld [vmem:[%s18296_s9 + $0x170] sm:$0xff]  }
 0x1d6   : > { %21120 = vst [vmem:[#allocation27_spill] sm:$0xff] %v19207_v39 }
 0x1d7   : > { %15468 = vmatmul.mubr.msk.bf16.gmra.mrb[80].mxu1 %vm1202_vm3, %v19158_v61  ;;  %v8424_v61 = vrot.slane %v19173_v1, 2 }
 0x1d8   : > { %15471 = vmatprep.mubr.msk.bf16.mxu1 %vm1202_vm3, %v19163_v60  ;;  %v19180_v60 = vld [vmem:[%s18296_s9 + $0x158] sm:$0xff]  }
 0x1d9   : > { %21115 = vst [vmem:[#allocation22_spill] sm:$0xff] %v19180_v60 }
 0x1da   : > { %16090 = vmatmul.mubr.msk.bf16.gmra.mrb[12].mxu0 %vm1202_vm3, %v8419_v26  ;;  %v19191_v26 = vld [vmem:[%s18296_s9 + $0x80] sm:$0xff]  }
 0x1db   : > { %16093 = vmatprep.mubr.msk.bf16.mxu0 %vm1202_vm3, %v8421_v42  ;;  %21117 = vst [vmem:[#allocation24_spill] sm:$0xff] %v19191_v26  ;;  %v8425_v42 = vsel %vm6863_vm5, %v8422_v22, %v8424_v61  ;;  %v8426_v1 = vrot.slane %v19191_v26, 2  ;;  %v19217_v26 = vld [vmem:[%s18296_s9 + $0x98] sm:$0xff]  }
 0x1dc   : > { %21122 = vst [vmem:[#allocation29_spill] sm:$0xff] %v19217_v26 }
 0x1dd   : > { %v8427_v22 = vsel %vm6863_vm5, %v8424_v61, %v8426_v1  ;;  %v19229_v61 = vld [vmem:[%s18296_s9 + $0x180] sm:$0xff]  }
 0x1de   : > { %21124 = vst [vmem:[#allocation31_spill] sm:$0xff] %v19229_v61 }
 0x1df   : > { %15472 = vmatmul.mubr.msk.bf16.gmra.mrb[84].mxu1 %vm1202_vm3, %v19180_v60  ;;  %v8428_v60 = vrot.slane %v19195_v28, 2 }
 0x1e0   : > { %15475 = vmatprep.mubr.msk.bf16.mxu1 %vm1202_vm3, %v19185_v8  ;;  %v19202_v8 = vld [vmem:[%s18296_s9 + $0x168] sm:$0xff]  }
 0x1e1   : > { %21119 = vst [vmem:[#allocation26_spill] sm:$0xff] %v19202_v8 }
 0x1e2   : > { %16094 = vmatmul.mubr.msk.bf16.gmra.mrb[16].mxu0 %vm1202_vm3, %v8423_v23  ;;  %v19213_v23 = vld [vmem:[%s18296_s9 + $0x90] sm:$0xff]  }
 0x1e3   : > { %16097 = vmatprep.mubr.msk.bf16.mxu0 %vm1202_vm3, %v8425_v42  ;;  %21121 = vst [vmem:[#allocation28_spill] sm:$0xff] %v19213_v23  ;;  %v8429_v42 = vsel %vm6863_vm5, %v8426_v1, %v8428_v60  ;;  %v8430_v28 = vrot.slane %v19213_v23, 2  ;;  %v19239_v23 = vld [vmem:[%s18296_s9 + $0xa8] sm:$0xff]  }
 0x1e4   : > { %21126 = vst [vmem:[#allocation33_spill] sm:$0xff] %v19239_v23 }
 0x1e5   : > { %v8431_v1 = vsel %vm6863_vm5, %v8428_v60, %v8430_v28  ;;  %v19251_v60 = vld [vmem:[%s18296_s9 + $0x190] sm:$0xff]  }
 0x1e6   : > { %21128 = vst [vmem:[#allocation35_spill] sm:$0xff] %v19251_v60 }
 0x1e7   : > { %15476 = vmatmul.mubr.msk.bf16.gmra.mrb[88].mxu1 %vm1202_vm3, %v19202_v8  ;;  %v8432_v8 = vrot.slane %v19217_v26, 2 }
 0x1e8   : > { %15479 = vmatprep.mubr.msk.bf16.mxu1 %vm1202_vm3, %v19207_v39  ;;  %v19224_v39 = vld [vmem:[%s18296_s9 + $0x178] sm:$0xff]  }
 0x1e9   : > { %21123 = vst [vmem:[#allocation30_spill] sm:$0xff] %v19224_v39 }
 0x1ea   : > { %16098 = vmatmul.mubr.msk.bf16.gmra.mrb[20].mxu0 %vm1202_vm3, %v8427_v22  ;;  %v19235_v22 = vld [vmem:[%s18296_s9 + $0xa0] sm:$0xff]  }
 0x1eb   : > { %16101 = vmatprep.mubr.msk.bf16.mxu0 %vm1202_vm3, %v8429_v42  ;;  %21125 = vst [vmem:[#allocation32_spill] sm:$0xff] %v19235_v22  ;;  %v8433_v42 = vsel %vm6863_vm5, %v8430_v28, %v8432_v8  ;;  %v8434_v26 = vrot.slane %v19235_v22, 2  ;;  %v19261_v22 = vld [vmem:[%s18296_s9 + $0xb8] sm:$0xff]  }
 0x1ec   : > { %21130 = vst [vmem:[#allocation37_spill] sm:$0xff] %v19261_v22 }
 0x1ed   : > { %v8435_v28 = vsel %vm6863_vm5, %v8432_v8, %v8434_v26  ;;  %v19273_v8 = vld [vmem:[%s18296_s9 + $0x1a0] sm:$0xff]  }
 0x1ee   : > { %21132 = vst [vmem:[#allocation39_spill] sm:$0xff] %v19273_v8 }
 0x1ef   : > { %15480 = vmatmul.mubr.msk.bf16.gmra.mrb[92].mxu1 %vm1202_vm3, %v19224_v39  ;;  %v8436_v39 = vrot.slane %v19239_v23, 2 }
 0x1f0   : > { %15483 = vmatprep.mubr.msk.bf16.mxu1 %vm1202_vm3, %v19229_v61  ;;  %v19246_v61 = vld [vmem:[%s18296_s9 + $0x188] sm:$0xff]  }
 0x1f1   : > { %21127 = vst [vmem:[#allocation34_spill] sm:$0xff] %v19246_v61 }
 0x1f2   : > { %16102 = vmatmul.mubr.msk.bf16.gmra.mrb[24].mxu0 %vm1202_vm3, %v8431_v1  ;;  %v19257_v1 = vld [vmem:[%s18296_s9 + $0xb0] sm:$0xff]  }
 0x1f3   : > { %16105 = vmatprep.mubr.msk.bf16.mxu0 %vm1202_vm3, %v8433_v42  ;;  %21129 = vst [vmem:[#allocation36_spill] sm:$0xff] %v19257_v1  ;;  %v8437_v42 = vsel %vm6863_vm5, %v8434_v26, %v8436_v39  ;;  %v8438_v23 = vrot.slane %v19257_v1, 2  ;;  %v17784_v1 = vld [vmem:[%s18296_s9 + $0xc8] sm:$0xff]  }
 0x1f5   : > { %v8439_v26 = vsel %vm6863_vm5, %v8436_v39, %v8438_v23 }
 0x1f7   : > { %15484 = vmatmul.mubr.msk.bf16.gmra.mrb[96].mxu1 %vm1202_vm3, %v19246_v61  ;;  %v8440_v61 = vrot.slane %v19261_v22, 2 }
 0x1f8   : > { %15487 = vmatprep.mubr.msk.bf16.mxu1 %vm1202_vm3, %v19251_v60  ;;  %v19268_v60 = vld [vmem:[%s18296_s9 + $0x198] sm:$0xff]  }
 0x1f9   : > { %21131 = vst [vmem:[#allocation38_spill] sm:$0xff] %v19268_v60 }
 0x1fa   : > { %16106 = vmatmul.mubr.msk.bf16.gmra.mrb[28].mxu0 %vm1202_vm3, %v8435_v28  ;;  %v17783_v28 = vld [vmem:[%s18296_s9 + $0xc0] sm:$0xff]  }
 0x1fb   : > { %16109 = vmatprep.mubr.msk.bf16.mxu0 %vm1202_vm3, %v8437_v42  ;;  %v8441_v42 = vsel %vm6863_vm5, %v8438_v23, %v8440_v61  ;;  %v8442_v22 = vrot.slane %v17783_v28, 2  ;;  %v17785_v23 = vld [vmem:[%s18296_s9 + $0xd0] sm:$0xff]   ;;  %v8448_v28 = vrot.slane %v17786_v49, 2 }
 0x1fd   : > { %v8443_v39 = vsel %vm6863_vm5, %v8440_v61, %v8442_v22 }
 0x1ff   : > { %15488 = vmatmul.mubr.msk.bf16.gmra.mrb[100].mxu1 %vm1202_vm3, %v19268_v60  ;;  %v8444_v60 = vrot.slane %v17784_v1, 2  ;;  %v8446_v1 = vrot.slane %v17785_v23, 2 }
 0x200   : > { %15491 = vmatprep.mubr.msk.bf16.mxu1 %vm1202_vm3, %v19273_v8  ;;  %v17924_v8 = vld [vmem:[%s18296_s9 + $0x1b0] sm:$0xff]  }
 0x201   : > { %v8447_v61 = vsel %vm6863_vm5, %v8444_v60, %v8446_v1 }
 0x202   : > { %16110 = vmatmul.mubr.msk.bf16.gmra.mrb[32].mxu0 %vm1202_vm3, %v8439_v26  ;;  %v8445_v26 = vsel %vm6863_vm5, %v8442_v22, %v8444_v60  ;;  %v17787_v22 = vld [vmem:[%s18296_s9 + $0xe0] sm:$0xff]  }
 0x203   : > { %16113 = vmatprep.mubr.msk.bf16.mxu0 %vm1202_vm3, %v8441_v42  ;;  %v19297_v42 = vld [vmem:[%s18296_s9 + $0x1b8] sm:$0xff]   ;;  %v8450_v49 = vrot.slane %v17787_v22, 2 }
 0x204   : > { %21134 = vst [vmem:[#allocation41_spill] sm:$0xff] %v19297_v42 }
 0x205   : > { %v8451_v60 = vsel %vm6863_vm5, %v8448_v28, %v8450_v49 }
 0x207   : > { %15492 = vmatmul.mubr.msk.bf16.gmra.mrb[104].mxu1 %vm1202_vm3, %v19284_v59  ;;  %v17788_v59 = vld [vmem:[%s18296_s9 + $0xe8] sm:$0xff]  }
 0x208   : > { %15495 = vmatprep.mubr.msk.bf16.mxu1 %vm1202_vm3, %v17924_v8  ;;  %v17926_v8 = vld [vmem:[%s18296_s9 + $0x1c0] sm:$0xff]   ;;  %v8452_v23 = vrot.slane %v17788_v59, 2 }
 0x20a   : > { %16114 = vmatmul.mubr.msk.bf16.gmra.mrb[36].mxu0 %vm1202_vm3, %v8443_v39  ;;  %v8449_v39 = vsel %vm6863_vm5, %v8446_v1, %v8448_v28  ;;  %v8453_v1 = vsel %vm6863_vm5, %v8450_v49, %v8452_v23  ;;  %v17791_v28 = vld [vmem:[%s18296_s9 + $0x100] sm:$0xff]  }
 0x20b   : > { %16117 = vmatprep.mubr.msk.bf16.mxu0 %vm1202_vm3, %v8445_v26  ;;  %v17927_v26 = vld [vmem:[%s18296_s9 + $0x1c8] sm:$0xff]   ;;  %v8458_v49 = vrot.slane %v17791_v28, 2  ;;  %v17928_v28 = vld [vmem:[%s18296_s9 + $0x4] sm:$0xf] }
 0x20f   : > { %15496 = vmatmul.mubr.msk.bf16.gmra.mrb[108].mxu1 %vm1202_vm3, %v19297_v42  ;;  %v17790_v42 = vld [vmem:[%s18296_s9 + $0xf8] sm:$0xff]  }
 0x210   : > { %15499 = vmatprep.mubr.msk.bf16.mxu1 %vm1202_vm3, %v17926_v8  ;;  %v17789_v8 = vld [vmem:[%s18296_s9 + $0xf0] sm:$0xff]   ;;  %v8456_v59 = vrot.slane %v17790_v42, 2 }
 0x212   : > { %16118 = vmatmul.mubr.msk.bf16.gmra.mrb[40].mxu0 %vm1202_vm3, %v8447_v61  ;;  %v8454_v61 = vrot.slane %v17789_v8, 2 }
 0x213   : > { %16121 = vmatprep.mubr.msk.bf16.mxu0 %vm1202_vm3, %v8449_v39  ;;  %v17792_v39 = vld [vmem:[%s18296_s9 + $0x108] sm:$0xff]  }
 0x214   : > { %v8457_v22 = vsel %vm6863_vm5, %v8454_v61, %v8456_v59  ;;  %v8460_v42 = vrot.slane %v17792_v39, 2  ;;  %v17797_v39 = vld [vmem:[%s18296_s9 + $0x130] sm:$0xff]  }
 0x217   : > { %15500 = vmatmul.mubr.msk.bf16.gmra.mrb[112].mxu1 %vm1202_vm3, %v17927_v26  ;;  %v17794_v26 = vld [vmem:[%s18296_s9 + $0x118] sm:$0xff]  }
 0x218   : > { %15503 = vmatprep.mubr.msk.bf16.mxu1 %vm1202_vm3, %v18656_v3  ;;  %v8455_v3 = vsel %vm6863_vm5, %v8452_v23, %v8454_v61  ;;  %v8461_v23 = vsel %vm6863_vm5, %v8458_v49, %v8460_v42  ;;  %v8464_v8 = vrot.slane %v17794_v26, 2  ;;  %v17796_v61 = vld [vmem:[%s18296_s9 + $0x128] sm:$0xff]  }
 0x21a   : > { %16122 = vmatmul.mubr.msk.bf16.gmra.mrb[44].mxu0 %vm1202_vm3, %v8451_v60 }
 0x21b   : > { %16125 = vmatprep.mubr.msk.bf16.mxu0 %vm1202_vm3, %v8453_v1 }
 0x21f   : > { %15504 = vmatmul.mubr.msk.bf16.gmra.mrb[116].mxu1 %vm1202_vm3, %v18665_v16  ;;  %v8459_v16 = vsel %vm6863_vm5, %v8456_v59, %v8458_v49  ;;  %v2707_v59 = vld [vmem:[%s18296_s9] sm:$0xe] }
 0x220   : > { %15507 = vmatprep.mubr.msk.bf16.mxu1 %vm1202_vm3, %v18673_v27  ;;  %v17793_v27 = vld [vmem:[%s18296_s9 + $0x110] sm:$0xff]  }
 0x221   : > { %v8462_v60 = vrot.slane %v17793_v27, 2  ;;  %v17799_v27 = vld [vmem:[%s18296_s9 + $0x138] sm:$0xff]  }
 0x222   : > { %16126 = vmatmul.mubr.msk.bf16.gmra.mrb[48].mxu0 %vm1202_vm3, %v8455_v3 }
 0x223   : > { %16129 = vmatprep.mubr.msk.bf16.mxu0 %vm1202_vm3, %v8457_v22  ;;  %v8465_v1 = vsel %vm6863_vm5, %v8462_v60, %v8464_v8  ;;  %v13318_v22 = vcombine.low %v2707_v59, %v17928_v28  ;;  %v2723_v28 = vrot.slane %v18830_v47, 1  ;;  %v13873_v47 = vld [vmem:[%s21038_s1 + $0x10] sm:$0x3] }
 0x225   : > { %v2714_v49 = vrot.slane %v13318_v22, 1 }
 0x227   : > { %15508 = vmatmul.mubr.msk.bf16.gmra.mrb[120].mxu1 %vm1202_vm3, %v18684_v34  ;;  %v8463_v34 = vsel %vm6863_vm5, %v8460_v42, %v8462_v60  ;;  %v2715_v42 = vrot.slane %v18790_v30, 1  ;;  %v2717_v30 = vrot.slane %v18796_v13, 1  ;;  %v17800_v60 = vld [vmem:[%s18296_s9 + $0x140] sm:$0xff]  }
 0x228   : > { %15511 = vmatprep.mubr.msk.bf16.mxu1 %vm1202_vm3, %v18701_v50  ;;  %v17795_v50 = vld [vmem:[%s18296_s9 + $0x120] sm:$0xff]  }
 0x229   : > { %v8466_v3 = vrot.slane %v17795_v50, 2  ;;  %v17801_v50 = vld [vmem:[%s18296_s9 + $0x148] sm:$0xff]  }
 0x22a   : > { %16130 = vmatmul.mubr.msk.bf16.gmra.mrb[52].mxu0 %vm1202_vm3, %v8459_v16  ;;  %v8476_v13 = vrot.slane %v17801_v50, 2 }
 0x22b   : > { %16133 = vmatprep.mubr.msk.bf16.mxu0 %vm1202_vm3, %v8461_v23  ;;  %v2716_v23 = vsel %vm2713_vm6, %v2714_v49, %v2715_v42  ;;  %v19394_v49 = vand.u32 %v13873_v47, %v18272_v4  ;;  %v17810_v47 = vld [vmem:[%s18296_s9 + $0x190] sm:$0xff]  }
 0x22d   : > { %16351 = vmatprep.subr.bf16.mxu0 %v19394_v49 }
 0x22f   : > { %15512 = vmatmul.mubr.msk.bf16.gmra.mrb[124].mxu1 %vm1202_vm3, %v18706_v55  ;;  %v8468_v55 = vrot.slane %v17796_v61, 2 }
 0x230   : > { %15515 = vmatprep.mubr.msk.bf16.mxu1 %vm1202_vm3, %v18721_v11  ;;  %v8467_v11 = vsel %vm6863_vm5, %v8464_v8, %v8466_v3  ;;  %v2719_v8 = vrot.slane %v18813_v40, 1  ;;  %v2721_v40 = vrot.slane %v18818_v41, 1 }
 0x231   : > { %v8469_v16 = vsel %vm6863_vm5, %v8466_v3, %v8468_v55  ;;  %v17802_v3 = vld [vmem:[%s18296_s9 + $0x150] sm:$0xff]  }
 0x232   : > { %16134 = vmatmul.mubr.msk.bf16.gmra.mrb[56].mxu0 %vm1202_vm3, %v8463_v34  ;;  %v2720_v61 = vsel %vm2713_vm6, %v2717_v30, %v2719_v8  ;;  %v2724_v41 = vsel %vm2713_vm6, %v2721_v40, %v2723_v28 }
 0x233   : > { %16137 = vmatprep.mubr.msk.bf16.mxu0 %vm1202_vm3, %v8465_v1  ;;  %v2718_v1 = vsel %vm2713_vm6, %v2715_v42, %v2717_v30  ;;  %v2725_v42 = vrot.slane %v18835_v48, 1 }
 0x235   : > { %v2726_v4 = vsel %vm2713_vm6, %v2723_v28, %v2725_v42 }
 0x237   : > { %15516 = vmatmul.mubr.msk.bf16.gmra.mrb[128].mxu1 %vm1202_vm3, %v18726_v18  ;;  %v8470_v18 = vrot.slane %v17797_v39, 2 }
 0x238   : > { %15519 = vmatprep.mubr.msk.bf16.mxu1 %vm1202_vm3, %v18741_v10  ;;  %v8472_v10 = vrot.slane %v17799_v27, 2  ;;  %v17804_v27 = vld [vmem:[%s18296_s9 + $0x160] sm:$0xff]  }
 0x239   : > { %v8471_v26 = vsel %vm6863_vm5, %v8468_v55, %v8470_v18  ;;  %v17803_v55 = vld [vmem:[%s18296_s9 + $0x158] sm:$0xff]   ;;  %v8482_v30 = vrot.slane %v17804_v27, 2 }
 0x23a   : > { %16138 = vmatmul.mubr.msk.bf16.gmra.mrb[60].mxu0 %vm1202_vm3, %v8467_v11  ;;  %v8473_v34 = vsel %vm6863_vm5, %v8470_v18, %v8472_v10  ;;  %v8478_v11 = vrot.slane %v17802_v3, 2  ;;  %v8480_v39 = vrot.slane %v17803_v55, 2  ;;  %v2727_v18 = vrot.slane %v18846_v57, 1 }
 0x23b   : > { %16141 = vmatprep.mubr.msk.bf16.mxu0 %vm1202_vm3, %v8469_v16  ;;  %v2729_v57 = vrot.slane %v18851_v58, 1  ;;  %v2735_v3 = vrot.slane %v18878_v20, 1  ;;  %v2737_v20 = vrot.slane %v18883_v21, 1 }
 0x23c   : > { %v8479_v16 = vsel %vm6863_vm5, %v8476_v13, %v8478_v11  ;;  %v2728_v48 = vsel %vm2713_vm6, %v2725_v42, %v2727_v18 }
 0x23d   : > { %v2738_v27 = vsel %vm2713_vm6, %v2735_v3, %v2737_v20 }
 0x23f   : > { %15520 = vmatmul.mubr.msk.bf16.gmra.mrb[132].mxu1 %vm1202_vm3, %v18746_v38  ;;  %v8474_v38 = vrot.slane %v17800_v60, 2  ;;  %v8483_v60 = vsel %vm6863_vm5, %v8480_v39, %v8482_v30 }
 0x240   : > { %15525 = vmatprep.mubr.msk.bf16.mxu1 %vm1202_vm3, %v2716_v23  ;;  %v8481_v23 = vsel %vm6863_vm5, %v8478_v11, %v8480_v39  ;;  %v2739_v39 = vrot.slane %v18894_v31, 1  ;;  %v2741_v31 = vrot.slane %v18899_v32, 1 }
 0x241   : > { %v8475_v59 = vsel %vm6863_vm5, %v8472_v10, %v8474_v38  ;;  %v8477_v22 = vsel %vm6863_vm5, %v8474_v38, %v8476_v13  ;;  %v17805_v10 = vld [vmem:[%s18296_s9 + $0x168] sm:$0xff]   ;;  %v2730_v38 = vsel %vm2713_vm6, %v2727_v18, %v2729_v57  ;;  %v8494_v18 = vrot.slane %v17810_v47, 2 }
 0x242   : > { %16142 = vmatmul.mubr.msk.bf16.gmra.mrb[64].mxu0 %vm1202_vm3, %v8471_v26  ;;  %v8484_v26 = vrot.slane %v17805_v10, 2 }
 0x243   : > { %16145 = vmatprep.mubr.msk.bf16.mxu0 %vm1202_vm3, %v8473_v34  ;;  %v2731_v34 = vrot.slane %v18862_v5, 1  ;;  %v2733_v5 = vrot.slane %v18867_v6, 1 }
 0x244   : > { %v8485_v50 = vsel %vm6863_vm5, %v8482_v30, %v8484_v26  ;;  %v2743_v30 = vrot.slane %v18910_v43, 1  ;;  %v2745_v43 = vrot.slane %v18915_v44, 1 }
 0x245   : > { %v2732_v13 = vsel %vm2713_vm6, %v2729_v57, %v2731_v34  ;;  %v2734_v55 = vsel %vm2713_vm6, %v2731_v34, %v2733_v5  ;;  %v2736_v11 = vsel %vm2713_vm6, %v2733_v5, %v2735_v3  ;;  %v2742_v57 = vsel %vm2713_vm6, %v2739_v39, %v2741_v31 }
 0x246   : > { %v2751_v3 = vrot.slane %v18942_v2, 1  ;;  %v2753_v2 = vrot.slane %v18947_v9, 1 }
 0x247   : > { %15526 = vmatmul.mubr.msk.bf16.vlgmr.msra.gmra.mrb[0].mxu1 %vm1202_vm3, %v2718_v1  ;;  %v17807_v1 = vld [vmem:[%s18296_s9 + $0x178] sm:$0xff]  }
 0x248   : > { %15662 = vmatpush3.bf16.msra.mxu1 %v19109_v17  ;;  %15529 = vmatprep.mubr.msk.bf16.mxu1 %vm1202_vm3, %v2720_v61  ;;  %v2722_v17 = vsel %vm2713_vm6, %v2719_v8, %v2721_v40  ;;  %v17806_v8 = vld [vmem:[%s18296_s9 + $0x170] sm:$0xff]   ;;  %v8488_v58 = vrot.slane %v17807_v1, 2  ;;  %v2747_v1 = vrot.slane %v18926_v53, 1  ;;  %v2749_v53 = vrot.slane %v18931_v54, 1 }
 0x249   : > { %16489 = vmatprep.subr.bf16.mxu1 %v18280_v7  ;;  %v8486_v61 = vrot.slane %v17806_v8, 2  ;;  %v2744_v8 = vsel %vm2713_vm6, %v2741_v31, %v2743_v30 }
 0x24a   : > { %16146 = vmatmul.mubr.msk.bf16.gmra.mrb[68].mxu0 %vm1202_vm3, %v8475_v59  ;;  %v17808_v59 = vld [vmem:[%s18296_s9 + $0x180] sm:$0xff]   ;;  %v2748_v5 = vsel %vm2713_vm6, %v2745_v43, %v2747_v1 }
 0x24b   : > { %16149 = vmatprep.mubr.msk.bf16.mxu0 %vm1202_vm3, %v8477_v22  ;;  %v8487_v40 = vsel %vm6863_vm5, %v8484_v26, %v8486_v61  ;;  %v8489_v28 = vsel %vm6863_vm5, %v8486_v61, %v8488_v58  ;;  %v17809_v22 = vld [vmem:[%s18296_s9 + $0x188] sm:$0xff]   ;;  %v17815_v61 = vld [vmem:[%s18296_s9 + $0x1b8] sm:$0xff]  }
 0x24c   : > { %v8492_v6 = vrot.slane %v17809_v22, 2  ;;  %v17813_v26 = vld [vmem:[%s18296_s9 + $0x1a8] sm:$0xff]   ;;  %v8504_v44 = vrot.slane %v17815_v61, 2  ;;  %v2767_v61 = vrot.slane %v19006_v12, 1  ;;  %v2769_v12 = vrot.slane %v19011_v14, 1 }
 0x24d   : > { %v8500_v32 = vrot.slane %v17813_v26, 2  ;;  %v17817_v22 = vld [vmem:[%s18296_s9 + $0x1c8] sm:$0xff]  }
 0x24e   : > { %v8495_v10 = vsel %vm6863_vm5, %v8492_v6, %v8494_v18  ;;  %v8508_v54 = vrot.slane %v17817_v22, 2  ;;  %v17827_v22 = vld [vmem:[%s18296_s9 + $0x218] sm:$0xff]  }
 0x24f   : > { %15530 = vmatmul.mubr.msk.bf16.gmra.mrb[4].mxu1 %vm1202_vm3, %v2722_v17  ;;  %v8490_v17 = vrot.slane %v17808_v59, 2  ;;  %v17816_v59 = vld [vmem:[%s18296_s9 + $0x1c0] sm:$0xff]   ;;  %v8528_v14 = vrot.slane %v17827_v22, 2 }
 0x250   : > { %15533 = vmatprep.mubr.msk.bf16.mxu1 %vm1202_vm3, %v2724_v41 }
 0x251   : > { %v8491_v41 = vsel %vm6863_vm5, %v8488_v58, %v8490_v17  ;;  %v8493_v42 = vsel %vm6863_vm5, %v8490_v17, %v8492_v6  ;;  %v8506_v17 = vrot.slane %v17816_v59, 2  ;;  %v17826_v59 = vld [vmem:[%s18296_s9 + $0x210] sm:$0xff]  }
 0x252   : > { %16150 = vmatmul.mubr.msk.bf16.gmra.mrb[72].mxu0 %vm1202_vm3, %v8479_v16  ;;  %v17811_v16 = vld [vmem:[%s18296_s9 + $0x198] sm:$0xff]  }
 0x253   : > { %16153 = vmatprep.mubr.msk.bf16.mxu0 %vm1202_vm3, %v8481_v23  ;;  %v2740_v23 = vsel %vm2713_vm6, %v2737_v20, %v2739_v39  ;;  %v8496_v21 = vrot.slane %v17811_v16, 2  ;;  %v8507_v6 = vsel %vm6863_vm5, %v8504_v44, %v8506_v17  ;;  %v17818_v20 = vld [vmem:[%s18296_s9 + $0x1d0] sm:$0xff]   ;;  %v8509_v47 = vsel %vm6863_vm5, %v8506_v17, %v8508_v54  ;;  %v17819_v39 = vld [vmem:[%s18296_s9 + $0x1d8] sm:$0xff]  }
 0x254   : > { %v8510_v16 = vrot.slane %v17818_v20, 2  ;;  %v8512_v9 = vrot.slane %v17819_v39, 2  ;;  %v8526_v17 = vrot.slane %v17826_v59, 2 }
 0x256   : > { %v8513_v31 = vsel %vm6863_vm5, %v8510_v16, %v8512_v9  ;;  %v8529_v20 = vsel %vm6863_vm5, %v8526_v17, %v8528_v14 }
 0x257   : > { %15534 = vmatmul.mubr.msk.bf16.gmra.mrb[8].mxu1 %vm1202_vm3, %v2726_v4  ;;  %v17812_v4 = vld [vmem:[%s18296_s9 + $0x1a0] sm:$0xff]  }
 0x258   : > { %15537 = vmatprep.mubr.msk.bf16.mxu1 %vm1202_vm3, %v2728_v48  ;;  %v8497_v48 = vsel %vm6863_vm5, %v8494_v18, %v8496_v21  ;;  %v8511_v18 = vsel %vm6863_vm5, %v8508_v54, %v8510_v16  ;;  %v2777_v16 = vrot.slane %v19045_v63, 1  ;;  %v9468_v63 = vshrl.u32 %v19052_v15, 16 }
 0x25a   : > { %16154 = vmatmul.mubr.msk.bf16.gmra.mrb[76].mxu0 %vm1202_vm3, %v8483_v60  ;;  %v8498_v60 = vrot.slane %v17812_v4, 2 }
 0x25b   : > { %16157 = vmatprep.mubr.msk.bf16.mxu0 %vm1202_vm3, %v8485_v50  ;;  %v17814_v50 = vld [vmem:[%s18296_s9 + $0x1b0] sm:$0xff]  }
 0x25c   : > { %v8499_v34 = vsel %vm6863_vm5, %v8496_v21, %v8498_v60  ;;  %v8502_v58 = vrot.slane %v17814_v50, 2  ;;  %v2759_v21 = vrot.slane %v18974_v62, 1  ;;  %v2761_v62 = vrot.slane %v18979_v37, 1 }
 0x25f   : > { %15538 = vmatmul.mubr.msk.bf16.gmra.mrb[12].mxu1 %vm1202_vm3, %v2730_v38  ;;  %v8501_v38 = vsel %vm6863_vm5, %v8498_v60, %v8500_v32  ;;  %v2763_v60 = vrot.slane %v18990_v52, 1  ;;  %v2765_v52 = vrot.slane %v18995_v56, 1 }
 0x260   : > { %15541 = vmatprep.mubr.msk.bf16.mxu1 %vm1202_vm3, %v2732_v13  ;;  %v2746_v13 = vsel %vm2713_vm6, %v2743_v30, %v2745_v43  ;;  %v2762_v43 = vsel %vm2713_vm6, %v2759_v21, %v2761_v62 }
 0x261   : > { %v2764_v50 = vsel %vm2713_vm6, %v2761_v62, %v2763_v60 }
 0x262   : > { %16158 = vmatmul.mubr.msk.bf16.gmra.mrb[80].mxu0 %vm1202_vm3, %v8487_v40  ;;  %v8503_v40 = vsel %vm6863_vm5, %v8500_v32, %v8502_v58  ;;  %v17823_v32 = vld [vmem:[%s18296_s9 + $0x1f8] sm:$0xff]  }
 0x263   : > { %16161 = vmatprep.mubr.msk.bf16.mxu0 %vm1202_vm3, %v8489_v28  ;;  %v8505_v28 = vsel %vm6863_vm5, %v8502_v58, %v8504_v44  ;;  %v8520_v37 = vrot.slane %v17823_v32, 2  ;;  %v17825_v58 = vld [vmem:[%s18296_s9 + $0x208] sm:$0xff]  }
 0x264   : > { %v8524_v56 = vrot.slane %v17825_v58, 2 }
 0x266   : > { %v8527_v54 = vsel %vm6863_vm5, %v8524_v56, %v8526_v17  ;;  %v21138_v17 = vld [vmem:[#allocation9_spill] sm:$0xff] }
 0x267   : > { %15542 = vmatmul.mubr.msk.bf16.gmra.mrb[16].mxu1 %vm1202_vm3, %v2734_v55  ;;  %v2750_v55 = vsel %vm2713_vm6, %v2747_v1, %v2749_v53 }
 0x268   : > { %15545 = vmatprep.mubr.msk.bf16.mxu1 %vm1202_vm3, %v2736_v11  ;;  %v2752_v11 = vsel %vm2713_vm6, %v2749_v53, %v2751_v3  ;;  %v2768_v53 = vsel %vm2713_vm6, %v2765_v52, %v2767_v61 }
 0x26a   : > { %16162 = vmatmul.mubr.msk.bf16.gmra.mrb[84].mxu0 %vm1202_vm3, %v8491_v41  ;;  %v2755_v41 = vrot.slane %v18958_v24, 1  ;;  %v2757_v24 = vrot.slane %v18963_v25, 1 }
 0x26b   : > { %16165 = vmatprep.mubr.msk.bf16.mxu0 %vm1202_vm3, %v8493_v42  ;;  %v2754_v42 = vsel %vm2713_vm6, %v2751_v3, %v2753_v2  ;;  %v2771_v3 = vrot.slane %v19022_v33, 1  ;;  %v2773_v33 = vrot.slane %v19027_v35, 1 }
 0x26c   : > { %v2758_v4 = vsel %vm2713_vm6, %v2755_v41, %v2757_v24 }
 0x26f   : > { %15546 = vmatmul.mubr.msk.bf16.gmra.mrb[20].mxu1 %vm1202_vm3, %v2738_v27  ;;  %v2756_v27 = vsel %vm2713_vm6, %v2753_v2, %v2755_v41  ;;  %v17828_v2 = vld [vmem:[%s18296_s9 + $0x220] sm:$0xff]   ;;  %v17829_v41 = vld [vmem:[%s18296_s9 + $0x228] sm:$0xff]  }
 0x270   : > { %15549 = vmatprep.mubr.msk.bf16.mxu1 %vm1202_vm3, %v2740_v23  ;;  %v17820_v23 = vld [vmem:[%s18296_s9 + $0x1e0] sm:$0xff]   ;;  %v8530_v39 = vrot.slane %v17828_v2, 2  ;;  %v8532_v35 = vrot.slane %v17829_v41, 2  ;;  %v21140_v41 = vld [vmem:[#allocation14_spill] sm:$0xff] }
 0x271   : > { %v8514_v30 = vrot.slane %v17820_v23, 2 }
 0x272   : > { %16166 = vmatmul.mubr.msk.bf16.gmra.mrb[88].mxu0 %vm1202_vm3, %v8495_v10  ;;  %v17821_v10 = vld [vmem:[%s18296_s9 + $0x1e8] sm:$0xff]  }
 0x273   : > { %16169 = vmatprep.mubr.msk.bf16.mxu0 %vm1202_vm3, %v8497_v48  ;;  %v2760_v48 = vsel %vm2713_vm6, %v2757_v24, %v2759_v21  ;;  %v8516_v25 = vrot.slane %v17821_v10, 2  ;;  %v8515_v26 = vsel %vm6863_vm5, %v8512_v9, %v8514_v30  ;;  %v2779_v9 = vrot.slane %v19062_v29, 1  ;;  %v17831_v24 = vld [vmem:[%s18296_s9 + $0x238] sm:$0xff]  }
 0x274   : > { %v8536_v10 = vrot.slane %v17831_v24, 2  ;;  %v9476_v29 = vshrl.u32 %v19055_v19, 16 }
 0x277   : > { %15550 = vmatmul.mubr.msk.bf16.gmra.mrb[24].mxu1 %vm1202_vm3, %v2742_v57  ;;  %v17822_v57 = vld [vmem:[%s18296_s9 + $0x1f0] sm:$0xff]  }
 0x278   : > { %15553 = vmatprep.mubr.msk.bf16.mxu1 %vm1202_vm3, %v2744_v8  ;;  %v8517_v8 = vsel %vm6863_vm5, %v8514_v30, %v8516_v25  ;;  %v9479_v30 = vshll.u32 %v19055_v19, 16 }
 0x27a   : > { %16170 = vmatmul.mubr.msk.bf16.gmra.mrb[92].mxu0 %vm1202_vm3, %v8499_v34  ;;  %v8518_v34 = vrot.slane %v17822_v57, 2  ;;  %v2783_v57 = vrot.slane %v19084_v0, 1  ;;  %v9481_v32 = vrot.slane %v9479_v30, 3  ;;  %v9494_v0 = vshrl.u32 %v19077_v46, 16 }
 0x27b   : > { %16173 = vmatprep.mubr.msk.bf16.mxu0 %vm1202_vm3, %v8501_v38  ;;  %v17824_v38 = vld [vmem:[%s18296_s9 + $0x200] sm:$0xff]  }
 0x27c   : > { %v8519_v1 = vsel %vm6863_vm5, %v8516_v25, %v8518_v34  ;;  %v8522_v44 = vrot.slane %v17824_v38, 2  ;;  %v21135_v38 = vld [vmem:[#allocation7_spill] sm:$0xff] }
 0x27f   : > { %15554 = vmatmul.mubr.msk.bf16.gmra.mrb[28].mxu1 %vm1202_vm3, %v2746_v13  ;;  %v8521_v13 = vsel %vm6863_vm5, %v8518_v34, %v8520_v37  ;;  %v9485_v34 = vshrl.u32 %v19073_v45, 16 }
 0x280   : > { %15557 = vmatprep.mubr.msk.bf16.mxu1 %vm1202_vm3, %v2748_v5  ;;  %v2766_v5 = vsel %vm2713_vm6, %v2763_v60, %v2765_v52  ;;  %v9470_v60 = vrot.slane %v9468_v63, 2  ;;  %v21143_v63 = vld [vmem:[#allocation15_spill] sm:$0xff] }
 0x281   : > { %v9487_v58 = vrot.slane %v9485_v34, 2  ;;  %v21146_v34 = vld [vmem:[#allocation17_spill] sm:$0xff] }
 0x282   : > { %16174 = vmatmul.mubr.msk.bf16.gmra.mrb[96].mxu0 %vm1202_vm3, %v8503_v40  ;;  %v8523_v40 = vsel %vm6863_vm5, %v8520_v37, %v8522_v44 }
 0x283   : > { %16177 = vmatprep.mubr.msk.bf16.mxu0 %vm1202_vm3, %v8505_v28  ;;  %v8525_v28 = vsel %vm6863_vm5, %v8522_v44, %v8524_v56  ;;  %v21136_v44 = vld [vmem:[#allocation10_spill] sm:$0xff]  ;;  %v9496_v56 = vrot.slane %v9494_v0, 2 }
 0x287   : > { %15558 = vmatmul.mubr.msk.bf16.gmra.mrb[32].mxu1 %vm1202_vm3, %v2750_v55  ;;  %v2770_v55 = vsel %vm2713_vm6, %v2767_v61, %v2769_v12  ;;  %v2785_v61 = vrot.slane %v21135_v38, 1 }
 0x288   : > { %15561 = vmatprep.mubr.msk.bf16.mxu1 %vm1202_vm3, %v2752_v11  ;;  %v2772_v11 = vsel %vm2713_vm6, %v2769_v12, %v2771_v3 }
 0x28a   : > { %16178 = vmatmul.mubr.msk.bf16.gmra.mrb[100].mxu0 %vm1202_vm3, %v8507_v6  ;;  %v2775_v6 = vrot.slane %v19038_v51, 1  ;;  %v8531_v51 = vsel %vm6863_vm5, %v8528_v14, %v8530_v39  ;;  %v9515_v14 = vshll.u32 %v21138_v17, 16 }
 0x28b   : > { %16181 = vmatprep.mubr.msk.bf16.mxu0 %vm1202_vm3, %v8509_v47  ;;  %v2774_v47 = vsel %vm2713_vm6, %v2771_v3, %v2773_v33  ;;  %v21137_v3 = vld [vmem:[#allocation8_spill] sm:$0xff] }
 0x28c   : > { %v2778_v23 = vsel %vm2713_vm6, %v2775_v6, %v2777_v16  ;;  %v9506_v22 = vshll.u32 %v21137_v3, 16 }
 0x28f   : > { %15562 = vmatmul.mubr.msk.bf16.gmra.mrb[36].mxu1 %vm1202_vm3, %v2754_v42  ;;  %v2776_v42 = vsel %vm2713_vm6, %v2773_v33, %v2775_v6  ;;  %v21139_v33 = vld [vmem:[#allocation11_spill] sm:$0xff] }
 0x290   : > { %15565 = vmatprep.mubr.msk.bf16.mxu1 %vm1202_vm3, %v2756_v27  ;;  %v17830_v27 = vld [vmem:[%s18296_s9 + $0x230] sm:$0xff]  }
 0x291   : > { %v8534_v21 = vrot.slane %v17830_v27, 2 }
 0x292   : > { %16182 = vmatmul.mubr.msk.bf16.gmra.mrb[104].mxu0 %vm1202_vm3, %v8511_v18  ;;  %v8533_v18 = vsel %vm6863_vm5, %v8530_v39, %v8532_v35 }
 0x293   : > { %16185 = vmatprep.mubr.msk.bf16.mxu0 %vm1202_vm3, %v8513_v31  ;;  %v2780_v31 = vsel %vm2713_vm6, %v2777_v16, %v2779_v9  ;;  %v8535_v25 = vsel %vm6863_vm5, %v8532_v35, %v8534_v21  ;;  %v8537_v62 = vsel %vm6863_vm5, %v8534_v21, %v8536_v10  ;;  %v9517_v35 = vrot.slane %v9515_v14, 3  ;;  %v21142_v21 = vld [vmem:[#allocation13_spill] sm:$0xff] }
 0x297   : > { %15566 = vmatmul.mubr.msk.bf16.gmra.mrb[40].mxu1 %vm1202_vm3, %v2758_v4  ;;  %v9471_v4 = vshll.u32 %v19052_v15, 16  ;;  %v9478_v15 = vrot.slane %v9476_v29, 2 }
 0x298   : > { %15569 = vmatprep.mubr.msk.bf16.mxu1 %vm1202_vm3, %v2760_v48  ;;  %v2781_v48 = vrot.slane %v19067_v36, 1 }
 0x299   : > { %v9482_v52 = vor.u32 %v9481_v32, %v9478_v15  ;;  %v21145_v32 = vld [vmem:[#allocation16_spill] sm:$0xff] }
 0x29a   : > { %16186 = vmatmul.mubr.msk.bf16.gmra.mrb[108].mxu0 %vm1202_vm3, %v8515_v26  ;;  %v17832_v26 = vld [vmem:[%s18296_s9 + $0x240] ss:$0 sps:$4 sm:$0x33]   ;;  %v2782_v19 = vsel %vm2713_vm6, %v2779_v9, %v2781_v48  ;;  %v2784_v36 = vsel %vm2713_vm6, %v2781_v48, %v2783_v57  ;;  %v21141_v9 = vld [vmem:[#allocation12_spill] sm:$0xff]  ;;  %v21144_v48 = vld [vmem:[#allocation18_spill] sm:$0xff] }
 0x29b   : > { %16189 = vmatprep.mubr.msk.bf16.mxu0 %vm1202_vm3, %v8517_v8  ;;  %v9473_v8 = vrot.slane %v9471_v4, 3  ;;  %v9521_v24 = vshrl.u32 %v21141_v9, 16 }
 0x29d   : > { %v9474_v37 = vor.u32 %v9473_v8, %v9470_v60  ;;  %v9523_v29 = vrot.slane %v9521_v24, 2  ;;  %v21154_v24 = vld [vmem:[#allocation25_spill] sm:$0xff] }
 0x29f   : > { %15570 = vmatmul.mubr.msk.bf16.gmra.mrb[44].mxu1 %vm1202_vm3, %v2762_v43  ;;  %v8538_v43 = vrot.slane %v17832_v26, 2 }
 0x2a0   : > { %15573 = vmatprep.mubr.msk.bf16.mxu1 %vm1202_vm3, %v2764_v50  ;;  %v9488_v50 = vshll.u32 %v19073_v45, 16  ;;  %v9483_v45 = vsel %vm9466_vm7, %v9474_v37, %v9482_v52  ;;  %v9551_v37 = vshll.u32 %v21146_v34, 16 }
 0x2a2   : > { %16190 = vmatmul.mubr.msk.bf16.gmra.mrb[112].mxu0 %vm1202_vm3, %v8519_v1  ;;  %v9497_v1 = vshll.u32 %v19077_v46, 16  ;;  %v2786_v46 = vsel %vm2713_vm6, %v2783_v57, %v2785_v61 }
 0x2a3   : > { %16193 = vmatprep.mubr.msk.bf16.mxu0 %vm1202_vm3, %v8521_v13  ;;  %v8539_v13 = vsel %vm6863_vm5, %v8536_v10, %v8538_v43  ;;  %v9533_v10 = vshll.u32 %v21142_v21, 16  ;;  %v9542_v43 = vshll.u32 %v21145_v32, 16 }
 0x2a4   : > { %v9499_v12 = vrot.slane %v9497_v1, 3 }
 0x2a5   : > { %v9535_v57 = vrot.slane %v9533_v10, 3 }
 0x2a7   : > { %15574 = vmatmul.mubr.msk.bf16.gmra.mrb[48].mxu1 %vm1202_vm3, %v2766_v5  ;;  %v9490_v5 = vrot.slane %v9488_v50, 3  ;;  %v9548_v50 = vshrl.u32 %v21146_v34, 16  ;;  %v21159_v34 = vld [vmem:[#allocation31_spill] sm:$0xff] }
 0x2a8   : > { %15577 = vmatprep.mubr.msk.bf16.mxu1 %vm1202_vm3, %v2768_v53  ;;  %v2787_v53 = vrot.slane %v21136_v44, 1 }
 0x2a9   : > { %v9550_v44 = vrot.slane %v9548_v50, 2  ;;  %v2809_v50 = vrot.slane %v21159_v34, 1 }
 0x2aa   : > { %16194 = vmatmul.mubr.msk.bf16.gmra.mrb[116].mxu0 %vm1202_vm3, %v8523_v40  ;;  %v9491_v40 = vor.u32 %v9490_v5, %v9487_v58  ;;  %v2788_v59 = vsel %vm2713_vm6, %v2785_v61, %v2787_v53  ;;  %v9544_v61 = vrot.slane %v9542_v43, 3 }
 0x2ab   : > { %16197 = vmatprep.mubr.msk.bf16.mxu0 %vm1202_vm3, %v8525_v28  ;;  %v9503_v28 = vshrl.u32 %v21137_v3, 16 }
 0x2ac   : > { %v9492_v2 = vsel %vm9466_vm7, %v9482_v52, %v9491_v40  ;;  %v21147_v52 = vld [vmem:[#allocation19_spill] sm:$0xff] }
 0x2ad   : > { %v9505_v6 = vrot.slane %v9503_v28, 2  ;;  %v2797_v0 = vrot.slane %v21147_v52, 1  ;;  %v21150_v28 = vld [vmem:[#allocation21_spill] sm:$0xff] }
 0x2af   : > { %15578 = vmatmul.mubr.msk.bf16.gmra.mrb[52].mxu1 %vm1202_vm3, %v2770_v55  ;;  %v9500_v55 = vor.u32 %v9499_v12, %v9496_v56 }
 0x2b0   : > { %15581 = vmatprep.mubr.msk.bf16.mxu1 %vm1202_vm3, %v2772_v11  ;;  %v9512_v11 = vshrl.u32 %v21138_v17, 16  ;;  %v21151_v17 = vld [vmem:[#allocation23_spill] sm:$0xff] }
 0x2b1   : > { %v9501_v39 = vsel %vm9466_vm7, %v9491_v40, %v9500_v55 }
 0x2b2   : > { %16198 = vmatmul.mubr.msk.bf16.gmra.mrb[120].mxu0 %vm1202_vm3, %v8527_v54  ;;  %v2789_v54 = vrot.slane %v21139_v33, 1 }
 0x2b3   : > { %16201 = vmatprep.mubr.msk.bf16.mxu0 %vm1202_vm3, %v8529_v20  ;;  %v9508_v20 = vrot.slane %v9506_v22, 3  ;;  %v9566_v22 = vshrl.u32 %v21150_v28, 16 }
 0x2b4   : > { %v2790_v16 = vsel %vm2713_vm6, %v2787_v53, %v2789_v54  ;;  %v9553_v53 = vrot.slane %v9551_v37, 3 }
 0x2b6   : > { %v9554_v3 = vor.u32 %v9553_v53, %v9550_v44 }
 0x2b7   : > { %15582 = vmatmul.mubr.msk.bf16.gmra.mrb[56].mxu1 %vm1202_vm3, %v2774_v47  ;;  %v2791_v47 = vrot.slane %v21140_v41, 1  ;;  %v9568_v41 = vrot.slane %v9566_v22, 2 }
 0x2b8   : > { %15585 = vmatprep.mubr.msk.bf16.mxu1 %vm1202_vm3, %v2776_v42  ;;  %v9514_v42 = vrot.slane %v9512_v11, 2  ;;  %v2801_v11 = vrot.slane %v21151_v17, 1 }
 0x2b9   : > { %v2792_v27 = vsel %vm2713_vm6, %v2789_v54, %v2791_v47 }
 0x2ba   : > { %16202 = vmatmul.mubr.msk.bf16.gmra.mrb[124].mxu0 %vm1202_vm3, %v8531_v51  ;;  %v9509_v51 = vor.u32 %v9508_v20, %v9505_v6 }
 0x2bb   : > { %16205 = vmatprep.mubr.msk.bf16.mxu0 %vm1202_vm3, %v8533_v18  ;;  %v9524_v18 = vshll.u32 %v21141_v9, 16 }
 0x2bc   : > { %v9510_v4 = vsel %vm9466_vm7, %v9500_v55, %v9509_v51  ;;  %v9569_v55 = vshll.u32 %v21150_v28, 16  ;;  %v21163_v28 = vld [vmem:[#allocation35_spill] sm:$0xff] }
 0x2bd   : > { %v9526_v30 = vrot.slane %v9524_v18, 3  ;;  %v9584_v18 = vshrl.u32 %v21154_v24, 16  ;;  %v2813_v22 = vrot.slane %v21163_v28, 1 }
 0x2bf   : > { %15586 = vmatmul.mubr.msk.bf16.gmra.mrb[60].mxu1 %vm1202_vm3, %v2778_v23  ;;  %v9518_v23 = vor.u32 %v9517_v35, %v9514_v42  ;;  %v9527_v8 = vor.u32 %v9526_v30, %v9523_v29 }
 0x2c0   : > { %15589 = vmatprep.mubr.msk.bf16.mxu1 %vm1202_vm3, %v2780_v31  ;;  %v9530_v31 = vshrl.u32 %v21142_v21, 16  ;;  %v21155_v21 = vld [vmem:[#allocation27_spill] sm:$0xff] }
 0x2c1   : > { %v9528_v1 = vsel %vm9466_vm7, %v9518_v23, %v9527_v8 }
 0x2c2   : > { %16206 = vmatmul.mubr.msk.bf16.gmra.mrb[128].mxu0 %vm1202_vm3, %v8535_v25  ;;  %v2795_v25 = vrot.slane %v21144_v48, 1  ;;  %v9532_v26 = vrot.slane %v9530_v31, 2  ;;  %v2805_v31 = vrot.slane %v21155_v21, 1  ;;  %v9586_v48 = vrot.slane %v9584_v18, 2 }
 0x2c3   : > { %16209 = vmatprep.mubr.msk.bf16.mxu0 %vm1202_vm3, %v8537_v62  ;;  %v9519_v62 = vsel %vm9466_vm7, %v9509_v51, %v9518_v23  ;;  %v9587_v23 = vshll.u32 %v21154_v24, 16  ;;  %v21167_v24 = vld [vmem:[#allocation39_spill] sm:$0xff] }
 0x2c4   : > { %v2817_v18 = vrot.slane %v21167_v24, 1 }
 0x2c7   : > { %15590 = vmatmul.mubr.msk.bf16.gmra.mrb[64].mxu1 %vm1202_vm3, %v2782_v19  ;;  %v9539_v19 = vshrl.u32 %v21145_v32, 16 }
 0x2c8   : > { %15593 = vmatprep.mubr.msk.bf16.mxu1 %vm1202_vm3, %v2784_v36  ;;  %v9536_v36 = vor.u32 %v9535_v57, %v9532_v26 }
 0x2c9   : > { %v9541_v38 = vrot.slane %v9539_v19, 2  ;;  %v21158_v19 = vld [vmem:[#allocation29_spill] sm:$0xff] }
 0x2ca   : > { %16210 = vmatmul.mubr.msk.bf16.gmra.mrb[132].mxu0 %vm1202_vm3, %v8539_v13  ;;  %v21148_v13 = vld [vmem:[#allocation22_spill] sm:$0xff]  ;;  %v9537_v5 = vsel %vm9466_vm7, %v9527_v8, %v9536_v36  ;;  %v9602_v43 = vshrl.u32 %v21158_v19, 16 }
 0x2cb   : > { %16215 = vmatprep.mubr.msk.bf16.mxu0 %vm1202_vm3, %v9483_v45  ;;  %v2799_v58 = vrot.slane %v21148_v13, 1  ;;  %v2798_v45 = vsel %vm2713_vm6, %v2795_v25, %v2797_v0  ;;  %v9545_v56 = vor.u32 %v9544_v61, %v9541_v38 }
 0x2cc   : > { %v9604_v13 = vrot.slane %v9602_v43, 2 }
 0x2cd   : > { %v2800_v12 = vsel %vm2713_vm6, %v2797_v0, %v2799_v58  ;;  %v9546_v14 = vsel %vm9466_vm7, %v9536_v36, %v9545_v56  ;;  %v9555_v20 = vsel %vm9466_vm7, %v9545_v56, %v9554_v3  ;;  %v9605_v36 = vshll.u32 %v21158_v19, 16  ;;  %v17931_v19 = vld [vmem:[%s18296_s9 + $0x1b0] sm:$0xff]  }
 0x2ce   : > { %v2821_v43 = vrot.slane %v17931_v19, 1 }
 0x2cf   : > { %15594 = vmatmul.mubr.msk.bf16.gmra.mrb[68].mxu1 %vm1202_vm3, %v2786_v46  ;;  %v21149_v46 = vld [vmem:[#allocation20_spill] sm:$0xff] }
 0x2d0   : > { %15597 = vmatprep.mubr.msk.bf16.mxu1 %vm1202_vm3, %v2788_v59  ;;  %v9557_v40 = vshrl.u32 %v21149_v46, 16  ;;  %v9560_v59 = vshll.u32 %v21149_v46, 16 }
 0x2d2   : > { %16216 = vmatmul.mubr.msk.bf16.vlgmr.msra.gmra.mrb[0].mxu0 %vm1202_vm3, %v9492_v2  ;;  %v9559_v33 = vrot.slane %v9557_v40, 2  ;;  %v9562_v54 = vrot.slane %v9560_v59, 3  ;;  %v21152_v2 = vld [vmem:[#allocation26_spill] sm:$0xff]  ;;  %v21162_v40 = vld [vmem:[#allocation33_spill] sm:$0xff] }
 0x2d3   : > { %16352 = vmatpush3.bf16.msra.mxu0 %v19394_v49  ;;  %16219 = vmatprep.mubr.msk.bf16.mxu0 %vm1202_vm3, %v9501_v39  ;;  %v2793_v49 = vrot.slane %v21143_v63, 1  ;;  %v2803_v6 = vrot.slane %v21152_v2, 1  ;;  %v2802_v39 = vsel %vm2713_vm6, %v2799_v58, %v2801_v11  ;;  %v9607_v58 = vrot.slane %v9605_v36, 3 }
 0x2d4   : > { %v9563_v42 = vor.u32 %v9562_v54, %v9559_v33  ;;  %v9620_v59 = vshrl.u32 %v21162_v40, 16 }
 0x2d5   : > { %v2794_v60 = vsel %vm2713_vm6, %v2791_v47, %v2793_v49  ;;  %v2796_v15 = vsel %vm2713_vm6, %v2793_v49, %v2795_v25  ;;  %v9571_v47 = vrot.slane %v9569_v55, 3  ;;  %v2804_v35 = vsel %vm2713_vm6, %v2801_v11, %v2803_v6 }
 0x2d6   : > { %v9564_v10 = vsel %vm9466_vm7, %v9554_v3, %v9563_v42  ;;  %v9589_v25 = vrot.slane %v9587_v23, 3  ;;  %v9608_v46 = vor.u32 %v9607_v58, %v9604_v13  ;;  %v9623_v3 = vshll.u32 %v21162_v40, 16  ;;  %v17934_v40 = vld [vmem:[%s18296_s9 + $0x1c0] sm:$0xff]  }
 0x2d7   : > { %15598 = vmatmul.mubr.msk.bf16.gmra.mrb[72].mxu1 %vm1202_vm3, %v2790_v16  ;;  %v21153_v16 = vld [vmem:[#allocation24_spill] sm:$0xff]  ;;  %v9572_v9 = vor.u32 %v9571_v47, %v9568_v41  ;;  %v9622_v2 = vrot.slane %v9620_v59, 2  ;;  %v2825_v59 = vrot.slane %v17934_v40, 1 }
 0x2d8   : > { %15601 = vmatprep.mubr.msk.bf16.mxu1 %vm1202_vm3, %v2792_v27  ;;  %v9575_v51 = vshrl.u32 %v21153_v16, 16  ;;  %v9578_v27 = vshll.u32 %v21153_v16, 16  ;;  %v9590_v32 = vor.u32 %v9589_v25, %v9586_v48 }
 0x2d9   : > { %v9573_v30 = vsel %vm9466_vm7, %v9563_v42, %v9572_v9 }
 0x2da   : > { %16220 = vmatmul.mubr.msk.bf16.gmra.mrb[4].mxu0 %vm1202_vm3, %v9510_v4  ;;  %v9577_v63 = vrot.slane %v9575_v51, 2  ;;  %v9580_v49 = vrot.slane %v9578_v27, 3  ;;  %v21156_v4 = vld [vmem:[#allocation30_spill] sm:$0xff]  ;;  %v21166_v51 = vld [vmem:[#allocation37_spill] sm:$0xff] }
 0x2db   : > { %16223 = vmatprep.mubr.msk.bf16.mxu0 %vm1202_vm3, %v9519_v62  ;;  %v2807_v29 = vrot.slane %v21156_v4, 1  ;;  %v2806_v62 = vsel %vm2713_vm6, %v2803_v6, %v2805_v31  ;;  %v9625_v6 = vrot.slane %v9623_v3, 3  ;;  %v9638_v27 = vshrl.u32 %v21166_v51, 16 }
 0x2dc   : > { %v9581_v26 = vor.u32 %v9580_v49, %v9577_v63 }
 0x2dd   : > { %v2808_v57 = vsel %vm2713_vm6, %v2805_v31, %v2807_v29  ;;  %v9626_v16 = vor.u32 %v9625_v6, %v9622_v2  ;;  %v9640_v4 = vrot.slane %v9638_v27, 2 }
 0x2de   : > { %v9582_v37 = vsel %vm9466_vm7, %v9572_v9, %v9581_v26  ;;  %v9591_v61 = vsel %vm9466_vm7, %v9581_v26, %v9590_v32  ;;  %v9641_v9 = vshll.u32 %v21166_v51, 16  ;;  %v17938_v51 = vld [vmem:[%s18296_s9 + $0x1d0] sm:$0xff]  }
 0x2df   : > { %15602 = vmatmul.mubr.msk.bf16.gmra.mrb[76].mxu1 %vm1202_vm3, %v2794_v60  ;;  %v21157_v60 = vld [vmem:[#allocation28_spill] sm:$0xff]  ;;  %v2829_v27 = vrot.slane %v17938_v51, 1 }
 0x2e0   : > { %15605 = vmatprep.mubr.msk.bf16.mxu1 %vm1202_vm3, %v2796_v15  ;;  %v9593_v8 = vshrl.u32 %v21157_v60, 16  ;;  %v9596_v15 = vshll.u32 %v21157_v60, 16 }
 0x2e2   : > { %16224 = vmatmul.mubr.msk.bf16.gmra.mrb[8].mxu0 %vm1202_vm3, %v9528_v1  ;;  %v9595_v52 = vrot.slane %v9593_v8, 2  ;;  %v9598_v0 = vrot.slane %v9596_v15, 3  ;;  %v21160_v1 = vld [vmem:[#allocation34_spill] sm:$0xff] }
 0x2e3   : > { %16227 = vmatprep.mubr.msk.bf16.mxu0 %vm1202_vm3, %v9537_v5  ;;  %v2811_v38 = vrot.slane %v21160_v1, 1  ;;  %v2810_v5 = vsel %vm2713_vm6, %v2807_v29, %v2809_v50  ;;  %v9643_v29 = vrot.slane %v9641_v9, 3  ;;  %v17930_v8 = vld [vmem:[%s18296_s9 + $0xc8] sm:$0xff]  }
 0x2e4   : > { %v9599_v44 = vor.u32 %v9598_v0, %v9595_v52  ;;  %v9656_v15 = vshrl.u32 %v17930_v8, 16 }
 0x2e5   : > { %v2812_v53 = vsel %vm2713_vm6, %v2809_v50, %v2811_v38  ;;  %v9644_v60 = vor.u32 %v9643_v29, %v9640_v4 }
 0x2e6   : > { %v9600_v55 = vsel %vm9466_vm7, %v9590_v32, %v9599_v44  ;;  %v9609_v54 = vsel %vm9466_vm7, %v9599_v44, %v9608_v46  ;;  %v9659_v32 = vshll.u32 %v17930_v8, 16  ;;  %v9658_v1 = vrot.slane %v9656_v15, 2  ;;  %v17942_v8 = vld [vmem:[%s18296_s9 + $0x1e0] sm:$0xff]  }
 0x2e7   : > { %15606 = vmatmul.mubr.msk.bf16.gmra.mrb[80].mxu1 %vm1202_vm3, %v2798_v45  ;;  %v21161_v45 = vld [vmem:[#allocation32_spill] sm:$0xff]  ;;  %v2833_v15 = vrot.slane %v17942_v8, 1 }
 0x2e8   : > { %15609 = vmatprep.mubr.msk.bf16.mxu1 %vm1202_vm3, %v2800_v12  ;;  %v9611_v56 = vshrl.u32 %v21161_v45, 16  ;;  %v9614_v12 = vshll.u32 %v21161_v45, 16 }
 0x2ea   : > { %16228 = vmatmul.mubr.msk.bf16.gmra.mrb[12].mxu0 %vm1202_vm3, %v9546_v14  ;;  %v9613_v17 = vrot.slane %v9611_v56, 2  ;;  %v9616_v11 = vrot.slane %v9614_v12, 3  ;;  %v21164_v14 = vld [vmem:[#allocation38_spill] sm:$0xff]  ;;  %v17933_v56 = vld [vmem:[%s18296_s9 + $0xd8] sm:$0xff]  }
 0x2eb   : > { %16231 = vmatprep.mubr.msk.bf16.mxu0 %vm1202_vm3, %v9555_v20  ;;  %v2815_v33 = vrot.slane %v21164_v14, 1  ;;  %v2814_v20 = vsel %vm2713_vm6, %v2811_v38, %v2813_v22  ;;  %v9661_v38 = vrot.slane %v9659_v32, 3  ;;  %v9674_v12 = vshrl.u32 %v17933_v56, 16 }
 0x2ec   : > { %v9617_v41 = vor.u32 %v9616_v11, %v9613_v17 }
 0x2ed   : > { %v2816_v47 = vsel %vm2713_vm6, %v2813_v22, %v2815_v33  ;;  %v9662_v45 = vor.u32 %v9661_v38, %v9658_v1  ;;  %v9676_v14 = vrot.slane %v9674_v12, 2 }
 0x2ee   : > { %v9618_v23 = vsel %vm9466_vm7, %v9608_v46, %v9617_v41  ;;  %v9627_v49 = vsel %vm9466_vm7, %v9617_v41, %v9626_v16  ;;  %v9677_v46 = vshll.u32 %v17933_v56, 16  ;;  %v17946_v56 = vld [vmem:[%s18296_s9 + $0x1f0] sm:$0xff]  }
 0x2ef   : > { %15610 = vmatmul.mubr.msk.bf16.gmra.mrb[84].mxu1 %vm1202_vm3, %v2802_v39  ;;  %v21165_v39 = vld [vmem:[#allocation36_spill] sm:$0xff]  ;;  %v2837_v12 = vrot.slane %v17946_v56, 1 }
 0x2f0   : > { %15613 = vmatprep.mubr.msk.bf16.mxu1 %vm1202_vm3, %v2804_v35  ;;  %v9629_v42 = vshrl.u32 %v21165_v39, 16  ;;  %v9632_v35 = vshll.u32 %v21165_v39, 16 }
 0x2f2   : > { %16232 = vmatmul.mubr.msk.bf16.gmra.mrb[16].mxu0 %vm1202_vm3, %v9564_v10  ;;  %v9631_v21 = vrot.slane %v9629_v42, 2  ;;  %v9634_v31 = vrot.slane %v9632_v35, 3  ;;  %v21168_v10 = vld [vmem:[#allocation40_spill] sm:$0xff]  ;;  %v17937_v42 = vld [vmem:[%s18296_s9 + $0xe8] sm:$0xff]  }
 0x2f3   : > { %16235 = vmatprep.mubr.msk.bf16.mxu0 %vm1202_vm3, %v9573_v30  ;;  %v2819_v63 = vrot.slane %v21168_v10, 1  ;;  %v2818_v30 = vsel %vm2713_vm6, %v2815_v33, %v2817_v18  ;;  %v9679_v33 = vrot.slane %v9677_v46, 3  ;;  %v9692_v35 = vshrl.u32 %v17937_v42, 16 }
 0x2f4   : > { %v9635_v48 = vor.u32 %v9634_v31, %v9631_v21 }
 0x2f5   : > { %v2820_v25 = vsel %vm2713_vm6, %v2817_v18, %v2819_v63  ;;  %v9680_v39 = vor.u32 %v9679_v33, %v9676_v14  ;;  %v9694_v10 = vrot.slane %v9692_v35, 2 }
 0x2f6   : > { %v9636_v36 = vsel %vm9466_vm7, %v9626_v16, %v9635_v48  ;;  %v9645_v0 = vsel %vm9466_vm7, %v9635_v48, %v9644_v60  ;;  %v9695_v16 = vshll.u32 %v17937_v42, 16  ;;  %v17950_v42 = vld [vmem:[%s18296_s9 + $0x200] sm:$0xff]  }
 0x2f7   : > { %15614 = vmatmul.mubr.msk.bf16.gmra.mrb[88].mxu1 %vm1202_vm3, %v2806_v62  ;;  %v17929_v62 = vld [vmem:[%s18296_s9 + $0xc0] sm:$0xff]   ;;  %v2841_v35 = vrot.slane %v17950_v42, 1 }
 0x2f8   : > { %15617 = vmatprep.mubr.msk.bf16.mxu1 %vm1202_vm3, %v2808_v57  ;;  %v9647_v26 = vshrl.u32 %v17929_v62, 16  ;;  %v9650_v57 = vshll.u32 %v17929_v62, 16 }
 0x2fa   : > { %16236 = vmatmul.mubr.msk.bf16.gmra.mrb[20].mxu0 %vm1202_vm3, %v9582_v37  ;;  %v9649_v34 = vrot.slane %v9647_v26, 2  ;;  %v9652_v50 = vrot.slane %v9650_v57, 3  ;;  %v21169_v37 = vld [vmem:[#allocation41_spill] sm:$0xff]  ;;  %v17941_v26 = vld [vmem:[%s18296_s9 + $0xf8] sm:$0xff]  }
 0x2fb   : > { %16239 = vmatprep.mubr.msk.bf16.mxu0 %vm1202_vm3, %v9591_v61  ;;  %v2823_v52 = vrot.slane %v21169_v37, 1  ;;  %v2822_v61 = vsel %vm2713_vm6, %v2819_v63, %v2821_v43  ;;  %v9697_v63 = vrot.slane %v9695_v16, 3  ;;  %v9710_v57 = vshrl.u32 %v17941_v26, 16 }
 0x2fc   : > { %v9653_v13 = vor.u32 %v9652_v50, %v9649_v34 }
 0x2fd   : > { %v2824_v58 = vsel %vm2713_vm6, %v2821_v43, %v2823_v52  ;;  %v9698_v62 = vor.u32 %v9697_v63, %v9694_v10  ;;  %v9712_v37 = vrot.slane %v9710_v57, 2  ;;  %v17952_v10 = vld [vmem:[%s18296_s9 + $0x120] sm:$0xff]  }
 0x2fe   : > { %v9654_v3 = vsel %vm9466_vm7, %v9644_v60, %v9653_v13  ;;  %v9663_v11 = vsel %vm9466_vm7, %v9653_v13, %v9662_v45  ;;  %v9713_v60 = vshll.u32 %v17941_v26, 16  ;;  %v9755_v63 = vshrl.u32 %v17952_v10, 16  ;;  %v17954_v26 = vld [vmem:[%s18296_s9 + $0x210] sm:$0xff]  }
 0x2ff   : > { %15618 = vmatmul.mubr.msk.bf16.gmra.mrb[92].mxu1 %vm1202_vm3, %v2810_v5  ;;  %v17932_v5 = vld [vmem:[%s18296_s9 + $0xd0] sm:$0xff]   ;;  %v2845_v57 = vrot.slane %v17954_v26, 1 }
 0x300   : > { %15621 = vmatprep.mubr.msk.bf16.mxu1 %vm1202_vm3, %v2812_v53  ;;  %v9665_v44 = vshrl.u32 %v17932_v5, 16  ;;  %v9668_v53 = vshll.u32 %v17932_v5, 16 }
 0x302   : > { %16240 = vmatmul.mubr.msk.bf16.gmra.mrb[24].mxu0 %vm1202_vm3, %v9600_v55  ;;  %v9667_v28 = vrot.slane %v9665_v44, 2  ;;  %v9670_v22 = vrot.slane %v9668_v53, 3  ;;  %v17935_v55 = vld [vmem:[%s18296_s9 + $0x1c8] sm:$0xff]  }
 0x303   : > { %16243 = vmatprep.mubr.msk.bf16.mxu0 %vm1202_vm3, %v9609_v54  ;;  %v2827_v17 = vrot.slane %v17935_v55, 1  ;;  %v2826_v54 = vsel %vm2713_vm6, %v2823_v52, %v2825_v59  ;;  %v9715_v52 = vrot.slane %v9713_v60, 3  ;;  %v17945_v44 = vld [vmem:[%s18296_s9 + $0x108] sm:$0xff]   ;;  %v9757_v60 = vrot.slane %v9755_v63, 2  ;;  %v17964_v63 = vld [vmem:[%s18296_s9 + $0x150] sm:$0xff]  }
 0x304   : > { %v9671_v2 = vor.u32 %v9670_v22, %v9667_v28  ;;  %v9728_v53 = vshrl.u32 %v17945_v44, 16 }
 0x305   : > { %v2828_v6 = vsel %vm2713_vm6, %v2825_v59, %v2827_v17  ;;  %v9716_v5 = vor.u32 %v9715_v52, %v9712_v37 }
 0x306   : > { %v9672_v9 = vsel %vm9466_vm7, %v9662_v45, %v9671_v2  ;;  %v9681_v31 = vsel %vm9466_vm7, %v9671_v2, %v9680_v39  ;;  %v9731_v45 = vshll.u32 %v17945_v44, 16  ;;  %v9730_v55 = vrot.slane %v9728_v53, 2  ;;  %v17958_v53 = vld [vmem:[%s18296_s9 + $0x220] ss:$0 sps:$4 sm:$0x11]  }
 0x307   : > { %15622 = vmatmul.mubr.msk.bf16.gmra.mrb[96].mxu1 %vm1202_vm3, %v2814_v20  ;;  %v17936_v20 = vld [vmem:[%s18296_s9 + $0xe0] sm:$0xff]  }
 0x308   : > { %15625 = vmatprep.mubr.msk.bf16.mxu1 %vm1202_vm3, %v2816_v47  ;;  %v9683_v41 = vshrl.u32 %v17936_v20, 16  ;;  %v9686_v47 = vshll.u32 %v17936_v20, 16 }
 0x30a   : > { %16244 = vmatmul.mubr.msk.bf16.gmra.mrb[28].mxu0 %vm1202_vm3, %v9618_v23  ;;  %v9685_v24 = vrot.slane %v9683_v41, 2  ;;  %v9688_v18 = vrot.slane %v9686_v47, 3  ;;  %v17939_v23 = vld [vmem:[%s18296_s9 + $0x1d8] sm:$0xff]  }
 0x30b   : > { %16247 = vmatprep.mubr.msk.bf16.mxu0 %vm1202_vm3, %v9627_v49  ;;  %v2831_v21 = vrot.slane %v17939_v23, 1  ;;  %v2830_v49 = vsel %vm2713_vm6, %v2827_v17, %v2829_v27  ;;  %v9733_v17 = vrot.slane %v9731_v45, 3  ;;  %v17949_v41 = vld [vmem:[%s18296_s9 + $0x118] sm:$0xff]   ;;  %v2849_v45 = vrot.slane %v17958_v53, 1 }
 0x30c   : > { %v9689_v4 = vor.u32 %v9688_v18, %v9685_v24  ;;  %v9746_v47 = vshrl.u32 %v17949_v41, 16 }
 0x30d   : > { %v2832_v29 = vsel %vm2713_vm6, %v2829_v27, %v2831_v21  ;;  %v9734_v20 = vor.u32 %v9733_v17, %v9730_v55 }
 0x30e   : > { %v9690_v32 = vsel %vm9466_vm7, %v9680_v39, %v9689_v4  ;;  %v9699_v50 = vsel %vm9466_vm7, %v9689_v4, %v9698_v62  ;;  %v9749_v39 = vshll.u32 %v17949_v41, 16  ;;  %v9748_v23 = vrot.slane %v9746_v47, 2 }
 0x30f   : > { %15626 = vmatmul.mubr.msk.bf16.gmra.mrb[100].mxu1 %vm1202_vm3, %v2818_v30  ;;  %v17940_v30 = vld [vmem:[%s18296_s9 + $0xf0] sm:$0xff]  }
 0x310   : > { %15629 = vmatprep.mubr.msk.bf16.mxu1 %vm1202_vm3, %v2820_v25  ;;  %v9701_v48 = vshrl.u32 %v17940_v30, 16  ;;  %v9704_v25 = vshll.u32 %v17940_v30, 16 }
 0x312   : > { %16248 = vmatmul.mubr.msk.bf16.gmra.mrb[32].mxu0 %vm1202_vm3, %v9636_v36  ;;  %v9703_v19 = vrot.slane %v9701_v48, 2  ;;  %v9706_v43 = vrot.slane %v9704_v25, 3  ;;  %v17943_v36 = vld [vmem:[%s18296_s9 + $0x1e8] sm:$0xff]  }
 0x313   : > { %16251 = vmatprep.mubr.msk.bf16.mxu0 %vm1202_vm3, %v9645_v0  ;;  %v2835_v34 = vrot.slane %v17943_v36, 1  ;;  %v2834_v0 = vsel %vm2713_vm6, %v2831_v21, %v2833_v15  ;;  %v9751_v21 = vrot.slane %v9749_v39, 3  ;;  %v17953_v48 = vld [vmem:[%s18296_s9 + $0x128] sm:$0xff]   ;;  %v17962_v39 = vld [vmem:[%s18296_s9 + $0x20] sm:$0xff]  }
 0x314   : > { %v9707_v1 = vor.u32 %v9706_v43, %v9703_v19  ;;  %v9764_v25 = vshrl.u32 %v17953_v48, 16  ;;  %v4256_v42 = vrot.slane %v17962_v39, 1 }
 0x315   : > { %v2836_v38 = vsel %vm2713_vm6, %v2833_v15, %v2835_v34  ;;  %v9752_v30 = vor.u32 %v9751_v21, %v9748_v23 }
 0x316   : > { %v9708_v46 = vsel %vm9466_vm7, %v9698_v62, %v9707_v1  ;;  %v9717_v22 = vsel %vm9466_vm7, %v9707_v1, %v9716_v5  ;;  %v9767_v62 = vshll.u32 %v17953_v48, 16  ;;  %v9766_v36 = vrot.slane %v9764_v25, 2 }
 0x317   : > { %15630 = vmatmul.mubr.msk.bf16.gmra.mrb[104].mxu1 %vm1202_vm3, %v2822_v61  ;;  %v17944_v61 = vld [vmem:[%s18296_s9 + $0x100] sm:$0xff]  }
 0x318   : > { %15633 = vmatprep.mubr.msk.bf16.mxu1 %vm1202_vm3, %v2824_v58  ;;  %v9719_v13 = vshrl.u32 %v17944_v61, 16  ;;  %v9722_v58 = vshll.u32 %v17944_v61, 16 }
 0x31a   : > { %16252 = vmatmul.mubr.msk.bf16.gmra.mrb[36].mxu0 %vm1202_vm3, %v9654_v3  ;;  %v9721_v40 = vrot.slane %v9719_v13, 2  ;;  %v9724_v59 = vrot.slane %v9722_v58, 3  ;;  %v17947_v3 = vld [vmem:[%s18296_s9 + $0x1f8] sm:$0xff]  }
 0x31b   : > { %16255 = vmatprep.mubr.msk.bf16.mxu0 %vm1202_vm3, %v9663_v11  ;;  %v2839_v28 = vrot.slane %v17947_v3, 1  ;;  %v2838_v11 = vsel %vm2713_vm6, %v2835_v34, %v2837_v12  ;;  %v9769_v34 = vrot.slane %v9767_v62, 3  ;;  %v17957_v13 = vld [vmem:[%s18296_s9 + $0x138] sm:$0xff]   ;;  %v17966_v62 = vld [vmem:[%s18296_s9 + $0x30] sm:$0xff]  }
 0x31c   : > { %v9725_v14 = vor.u32 %v9724_v59, %v9721_v40  ;;  %v9782_v58 = vshrl.u32 %v17957_v13, 16  ;;  %v17959_v59 = vld [vmem:[%s18296_s9 + $0x18] sm:$0xff]   ;;  %v4260_v26 = vrot.slane %v17966_v62, 1 }
 0x31d   : > { %v2840_v33 = vsel %vm2713_vm6, %v2837_v12, %v2839_v28  ;;  %v9770_v61 = vor.u32 %v9769_v34, %v9766_v36  ;;  %v4254_v3 = vrot.slane %v17959_v59, 1 }
 0x31e   : > { %v9726_v16 = vsel %vm9466_vm7, %v9716_v5, %v9725_v14  ;;  %v9735_v18 = vsel %vm9466_vm7, %v9725_v14, %v9734_v20  ;;  %v9785_v5 = vshll.u32 %v17957_v13, 16 }
 0x31f   : > { %15634 = vmatmul.mubr.msk.bf16.gmra.mrb[108].mxu1 %vm1202_vm3, %v2826_v54  ;;  %v17948_v54 = vld [vmem:[%s18296_s9 + $0x110] sm:$0xff]   ;;  %v4257_v21 = vsel %vm2713_vm6, %v4254_v3, %v4256_v42 }
 0x320   : > { %15637 = vmatprep.mubr.msk.bf16.mxu1 %vm1202_vm3, %v2828_v6  ;;  %v9737_v2 = vshrl.u32 %v17948_v54, 16  ;;  %v9740_v6 = vshll.u32 %v17948_v54, 16  ;;  %v9787_v55 = vrot.slane %v9785_v5, 3 }
 0x322   : > { %16256 = vmatmul.mubr.msk.bf16.gmra.mrb[40].mxu0 %vm1202_vm3, %v9672_v9  ;;  %v9739_v51 = vrot.slane %v9737_v2, 2  ;;  %v9742_v27 = vrot.slane %v9740_v6, 3  ;;  %v17951_v9 = vld [vmem:[%s18296_s9 + $0x208] sm:$0xff]  }
 0x323   : > { %16259 = vmatprep.mubr.msk.bf16.mxu0 %vm1202_vm3, %v9681_v31  ;;  %v2843_v24 = vrot.slane %v17951_v9, 1  ;;  %v2842_v31 = vsel %vm2713_vm6, %v2839_v28, %v2841_v35 }
 0x324   : > { %v9743_v4 = vor.u32 %v9742_v27, %v9739_v51  ;;  %v17963_v27 = vld [vmem:[%s18296_s9 + $0x28] sm:$0xff]  }
 0x325   : > { %v4258_v9 = vrot.slane %v17963_v27, 1 }
 0x326   : > { %v9744_v15 = vsel %vm9466_vm7, %v9734_v20, %v9743_v4  ;;  %v9753_v43 = vsel %vm9466_vm7, %v9743_v4, %v9752_v30  ;;  %v17961_v20 = vld [vmem:[%s18296_s9 + $0x148] sm:$0xff]   ;;  %v9812_v4 = vshll.u32 %v17964_v63, 16 }
 0x327   : > { %15638 = vmatmul.mubr.msk.bf16.gmra.mrb[112].mxu1 %vm1202_vm3, %v2830_v49  ;;  %v9758_v49 = vshll.u32 %v17952_v10, 16  ;;  %v9800_v41 = vshrl.u32 %v17961_v20, 16  ;;  %v9803_v47 = vshll.u32 %v17961_v20, 16  ;;  %v4259_v10 = vsel %vm2713_vm6, %v4256_v42, %v4258_v9  ;;  %v17975_v42 = vld [vmem:[%s18296_s9 + $0x58] sm:$0xff]  }
 0x328   : > { %15641 = vmatprep.mubr.msk.bf16.mxu1 %vm1202_vm3, %v2832_v29  ;;  %v2844_v29 = vsel %vm2713_vm6, %v2841_v35, %v2843_v24 }
 0x329   : > { %v9760_v8 = vrot.slane %v9758_v49, 3  ;;  %v9805_v23 = vrot.slane %v9803_v47, 3  ;;  %v9809_v49 = vshrl.u32 %v17964_v63, 16  ;;  %v17977_v63 = vld [vmem:[%s18296_s9 + $0x188] sm:$0xff]  }
 0x32a   : > { %16260 = vmatmul.mubr.msk.bf16.gmra.mrb[44].mxu0 %vm1202_vm3, %v9690_v32  ;;  %v17955_v32 = vld [vmem:[%s18296_s9 + $0x218] sm:$0xff]  }
 0x32b   : > { %16263 = vmatprep.mubr.msk.bf16.mxu0 %vm1202_vm3, %v9699_v50  ;;  %v2847_v19 = vrot.slane %v17955_v32, 1  ;;  %v2846_v50 = vsel %vm2713_vm6, %v2843_v24, %v2845_v57  ;;  %v9761_v37 = vor.u32 %v9760_v8, %v9757_v60  ;;  %v9811_v60 = vrot.slane %v9809_v49, 2 }
 0x32c   : > { %v9814_v8 = vrot.slane %v9812_v4, 3  ;;  %v9872_v49 = vshrl.u32 %v17977_v63, 16  ;;  %v9875_v4 = vshll.u32 %v17977_v63, 16 }
 0x32d   : > { %v2848_v52 = vsel %vm2713_vm6, %v2845_v57, %v2847_v19  ;;  %v9762_v44 = vsel %vm9466_vm7, %v9752_v30, %v9761_v37  ;;  %v9771_v28 = vsel %vm9466_vm7, %v9761_v37, %v9770_v61  ;;  %v2850_v17 = vsel %vm2713_vm6, %v2847_v19, %v2849_v45  ;;  %v17965_v30 = vld [vmem:[%s18296_s9 + $0x158] sm:$0xff]   ;;  %v17968_v37 = vld [vmem:[%s18296_s9 + $0x160] sm:$0xff]  }
 0x32e   : > { %v9818_v48 = vshrl.u32 %v17965_v30, 16  ;;  %v9821_v25 = vshll.u32 %v17965_v30, 16  ;;  %v9815_v34 = vor.u32 %v9814_v8, %v9811_v60  ;;  %v9874_v8 = vrot.slane %v9872_v49, 2 }
 0x32f   : > { %15642 = vmatmul.mubr.msk.bf16.gmra.mrb[116].mxu1 %vm1202_vm3, %v2834_v0  ;;  %v17956_v0 = vld [vmem:[%s18296_s9 + $0x130] sm:$0xff]  }
 0x330   : > { %15645 = vmatprep.mubr.msk.bf16.mxu1 %vm1202_vm3, %v2836_v38  ;;  %v9773_v1 = vshrl.u32 %v17956_v0, 16  ;;  %v9776_v38 = vshll.u32 %v17956_v0, 16  ;;  %v9823_v36 = vrot.slane %v9821_v25, 3  ;;  %v9830_v0 = vshll.u32 %v17968_v37, 16 }
 0x332   : > { %16264 = vmatmul.mubr.msk.bf16.gmra.mrb[48].mxu0 %vm1202_vm3, %v9708_v46  ;;  %v9775_v56 = vrot.slane %v9773_v1, 2  ;;  %v9778_v12 = vrot.slane %v9776_v38, 3  ;;  %v21170_v46 = vld [vmem:[#allocation5_spill] sm:$0xff]  ;;  %v17969_v38 = vld [vmem:[%s18296_s9 + $0x168] sm:$0xff]   ;;  %v9832_v45 = vrot.slane %v9830_v0, 3 }
 0x333   : > { %16267 = vmatprep.mubr.msk.bf16.mxu0 %vm1202_vm3, %v9717_v22  ;;  %v4253_v40 = vrot.slane %v21170_v46, 1  ;;  %v9784_v22 = vrot.slane %v9782_v58, 2  ;;  %v9839_v13 = vshll.u32 %v17969_v38, 16  ;;  %v17970_v58 = vld [vmem:[%s18296_s9 + $0x40] sm:$0xff]  }
 0x334   : > { %v4264_v5 = vrot.slane %v17970_v58, 1 }
 0x335   : > { %v4255_v14 = vsel %vm2713_vm6, %v4253_v40, %v4254_v3  ;;  %v9788_v6 = vor.u32 %v9787_v55, %v9784_v22  ;;  %v9841_v59 = vrot.slane %v9839_v13, 3  ;;  %v17972_v55 = vld [vmem:[%s18296_s9 + $0x170] sm:$0xff]  }
 0x337   : > { %15646 = vmatmul.mubr.msk.bf16.gmra.mrb[120].mxu1 %vm1202_vm3, %v2838_v11  ;;  %v9779_v11 = vor.u32 %v9778_v12, %v9775_v56  ;;  %v17971_v56 = vld [vmem:[%s18296_s9 + $0x48] sm:$0xff]  }
 0x338   : > { %15649 = vmatprep.mubr.msk.bf16.mxu1 %vm1202_vm3, %v2840_v33  ;;  %v17960_v33 = vld [vmem:[%s18296_s9 + $0x140] sm:$0xff]   ;;  %v4266_v12 = vrot.slane %v17971_v56, 1 }
 0x339   : > { %v9791_v54 = vshrl.u32 %v17960_v33, 16  ;;  %v9794_v2 = vshll.u32 %v17960_v33, 16  ;;  %v9780_v35 = vsel %vm9466_vm7, %v9770_v61, %v9779_v11  ;;  %v9789_v24 = vsel %vm9466_vm7, %v9779_v11, %v9788_v6  ;;  %v17973_v33 = vld [vmem:[%s18296_s9 + $0x178] sm:$0xff]  }
 0x33a   : > { %16268 = vmatmul.mubr.msk.bf16.gmra.mrb[52].mxu0 %vm1202_vm3, %v9726_v16  ;;  %v9836_v61 = vshrl.u32 %v17969_v38, 16  ;;  %v4267_v22 = vsel %vm2713_vm6, %v4264_v5, %v4266_v12  ;;  %v9848_v11 = vshll.u32 %v17972_v55, 16 }
 0x33b   : > { %16271 = vmatprep.mubr.msk.bf16.mxu0 %vm1202_vm3, %v9735_v18  ;;  %v9793_v16 = vrot.slane %v9791_v54, 2  ;;  %v9796_v51 = vrot.slane %v9794_v2, 3  ;;  %v9802_v18 = vrot.slane %v9800_v41, 2  ;;  %v9854_v54 = vshrl.u32 %v17973_v33, 16 }
 0x33c   : > { %v9838_v40 = vrot.slane %v9836_v61, 2  ;;  %v9857_v2 = vshll.u32 %v17973_v33, 16  ;;  %v9850_v39 = vrot.slane %v9848_v11, 3 }
 0x33e   : > { %v9859_v27 = vrot.slane %v9857_v2, 3 }
 0x33f   : > { %15650 = vmatmul.mubr.msk.bf16.gmra.mrb[124].mxu1 %vm1202_vm3, %v2842_v31  ;;  %v9797_v31 = vor.u32 %v9796_v51, %v9793_v16  ;;  %v9856_v51 = vrot.slane %v9854_v54, 2 }
 0x340   : > { %15653 = vmatprep.mubr.msk.bf16.mxu1 %vm1202_vm3, %v2844_v29  ;;  %v9806_v29 = vor.u32 %v9805_v23, %v9802_v18  ;;  %v17976_v23 = vld [vmem:[%s18296_s9 + $0x180] sm:$0xff]  }
 0x341   : > { %v9798_v57 = vsel %vm9466_vm7, %v9788_v6, %v9797_v31  ;;  %v17974_v6 = vld [vmem:[%s18296_s9 + $0x50] sm:$0xff]  }
 0x342   : > { %16272 = vmatmul.mubr.msk.bf16.gmra.mrb[56].mxu0 %vm1202_vm3, %v9744_v15  ;;  %v17967_v15 = vld [vmem:[%s18296_s9 + $0x38] sm:$0xff]   ;;  %v9807_v19 = vsel %vm9466_vm7, %v9797_v31, %v9806_v29  ;;  %v4268_v20 = vrot.slane %v17974_v6, 1  ;;  %v9866_v31 = vshll.u32 %v17976_v23, 16 }
 0x343   : > { %16275 = vmatprep.mubr.msk.bf16.mxu0 %vm1202_vm3, %v9753_v43  ;;  %v4262_v32 = vrot.slane %v17967_v15, 1  ;;  %v9820_v43 = vrot.slane %v9818_v48, 2  ;;  %v9877_v15 = vrot.slane %v9875_v4, 3 }
 0x344   : > { %v9868_v62 = vrot.slane %v9866_v31, 3 }
 0x345   : > { %v9824_v1 = vor.u32 %v9823_v36, %v9820_v43  ;;  %v4265_v3 = vsel %vm2713_vm6, %v4262_v32, %v4264_v5  ;;  %v17980_v36 = vld [vmem:[%s18296_s9 + $0x190] sm:$0xff]   ;;  %v17983_v5 = vld [vmem:[%s18296_s9 + $0x78] sm:$0xff]  }
 0x347   : > { %15654 = vmatmul.mubr.msk.bf16.gmra.mrb[128].mxu1 %vm1202_vm3, %v2846_v50  ;;  %v4263_v50 = vsel %vm2713_vm6, %v4260_v26, %v4262_v32  ;;  %v9825_v46 = vsel %vm9466_vm7, %v9815_v34, %v9824_v1 }
 0x348   : > { %15657 = vmatprep.mubr.msk.bf16.mxu1 %vm1202_vm3, %v2848_v52  ;;  %v9827_v52 = vshrl.u32 %v17968_v37, 16  ;;  %v17981_v37 = vld [vmem:[%s18296_s9 + $0x198] sm:$0xff]  }
 0x349   : > { %v9893_v0 = vshll.u32 %v17981_v37, 16 }
 0x34a   : > { %16276 = vmatmul.mubr.msk.bf16.gmra.mrb[60].mxu0 %vm1202_vm3, %v9762_v44  ;;  %v9816_v44 = vsel %vm9466_vm7, %v9806_v29, %v9815_v34  ;;  %v9829_v53 = vrot.slane %v9827_v52, 2  ;;  %v17978_v29 = vld [vmem:[%s18296_s9 + $0x60] sm:$0xff]   ;;  %v9884_v34 = vshll.u32 %v17980_v36, 16  ;;  %v9890_v52 = vshrl.u32 %v17981_v37, 16 }
 0x34b   : > { %16279 = vmatprep.mubr.msk.bf16.mxu0 %vm1202_vm3, %v9771_v28  ;;  %v4272_v30 = vrot.slane %v17978_v29, 1  ;;  %v9895_v56 = vrot.slane %v9893_v0, 3 }
 0x34c   : > { %v9833_v28 = vor.u32 %v9832_v45, %v9829_v53  ;;  %v9886_v58 = vrot.slane %v9884_v34, 3  ;;  %v9892_v45 = vrot.slane %v9890_v52, 2 }
 0x34e   : > { %v9834_v41 = vsel %vm9466_vm7, %v9824_v1, %v9833_v28  ;;  %v17982_v1 = vld [vmem:[%s18296_s9 + $0x70] sm:$0xff]  }
 0x34f   : > { %15658 = vmatmul.mubr.msk.bf16.gmra.mrb[132].mxu1 %vm1202_vm3, %v2850_v17  ;;  %v9845_v17 = vshrl.u32 %v17972_v55, 16  ;;  %v4276_v38 = vrot.slane %v17982_v1, 1  ;;  %v17985_v55 = vld [vmem:[%s18296_s9 + $0x1a8] sm:$0xff]  }
 0x350   : > { %15663 = vmatprep.mubr.msk.bf16.mxu1 %vm1202_vm3, %v4255_v14  ;;  %v9842_v14 = vor.u32 %v9841_v59, %v9838_v40  ;;  %v17984_v59 = vld [vmem:[%s18296_s9 + $0x1a0] sm:$0xff]   ;;  %v9911_v11 = vshll.u32 %v17985_v55, 16 }
 0x351   : > { %v9847_v47 = vrot.slane %v9845_v17, 2  ;;  %v9908_v17 = vshrl.u32 %v17985_v55, 16 }
 0x352   : > { %16280 = vmatmul.mubr.msk.bf16.gmra.mrb[64].mxu0 %vm1202_vm3, %v9780_v35  ;;  %v4270_v35 = vrot.slane %v17975_v42, 1  ;;  %v9843_v16 = vsel %vm9466_vm7, %v9833_v28, %v9842_v14  ;;  %v9902_v28 = vshll.u32 %v17984_v59, 16  ;;  %v9913_v42 = vrot.slane %v9911_v11, 3 }
 0x353   : > { %16283 = vmatprep.mubr.msk.bf16.mxu0 %vm1202_vm3, %v9789_v24  ;;  %v9851_v24 = vor.u32 %v9850_v39, %v9847_v47  ;;  %v9910_v39 = vrot.slane %v9908_v17, 2 }
 0x354   : > { %v4271_v18 = vsel %vm2713_vm6, %v4268_v20, %v4270_v35  ;;  %v4273_v32 = vsel %vm2713_vm6, %v4270_v35, %v4272_v30  ;;  %v9904_v6 = vrot.slane %v9902_v28, 3 }
 0x355   : > { %v9852_v48 = vsel %vm9466_vm7, %v9842_v14, %v9851_v24  ;;  %v17986_v14 = vld [vmem:[%s18296_s9 + $0x80] sm:$0xff]  }
 0x356   : > { %v4280_v33 = vrot.slane %v17986_v14, 1 }
 0x357   : > { %15664 = vmatmul.mubr.msk.bf16.vlgmr.msra.gmra.mrb[0].mxu1 %vm1202_vm3, %v4257_v21  ;;  %v9863_v21 = vshrl.u32 %v17976_v23, 16  ;;  %v17989_v23 = vld [vmem:[%s18296_s9 + $0x1b8] sm:$0xff]  }
 0x358   : > { %16490 = vmatpush3.bf16.msra.mxu1 %v18280_v7  ;;  %15667 = vmatprep.mubr.msk.bf16.mxu1 %vm1202_vm3, %v4259_v10  ;;  %v4261_v7 = vsel %vm2713_vm6, %v4258_v9, %v4260_v26  ;;  %v4269_v9 = vsel %vm2713_vm6, %v4266_v12, %v4268_v20  ;;  %v9860_v10 = vor.u32 %v9859_v27, %v9856_v51  ;;  %v17979_v26 = vld [vmem:[%s18296_s9 + $0x68] sm:$0xff]   ;;  %v17988_v27 = vld [vmem:[%s18296_s9 + $0x1b0] sm:$0xff]   ;;  %v9929_v31 = vshll.u32 %v17989_v23, 16 }
 0x359   : > { %v9865_v25 = vrot.slane %v9863_v21, 2  ;;  %v17987_v20 = vld [vmem:[%s18296_s9 + $0x88] sm:$0xff]   ;;  %v9926_v21 = vshrl.u32 %v17989_v23, 16 }
 0x35a   : > { %16284 = vmatmul.mubr.msk.bf16.gmra.mrb[68].mxu0 %vm1202_vm3, %v9798_v57  ;;  %v4274_v57 = vrot.slane %v17979_v26, 1  ;;  %v9861_v60 = vsel %vm9466_vm7, %v9851_v24, %v9860_v10  ;;  %v9920_v24 = vshll.u32 %v17988_v27, 16  ;;  %v9931_v26 = vrot.slane %v9929_v31, 3 }
 0x35b   : > { %16287 = vmatprep.mubr.msk.bf16.mxu0 %vm1202_vm3, %v9807_v19  ;;  %v9869_v19 = vor.u32 %v9868_v62, %v9865_v25  ;;  %v9928_v62 = vrot.slane %v9926_v21, 2 }
 0x35c   : > { %v4275_v43 = vsel %vm2713_vm6, %v4272_v30, %v4274_v57  ;;  %v4277_v12 = vsel %vm2713_vm6, %v4274_v57, %v4276_v38  ;;  %v9922_v29 = vrot.slane %v9920_v24, 3  ;;  %v17991_v30 = vld [vmem:[%s18296_s9 + $0x98] sm:$0xff]  }
 0x35d   : > { %v9870_v61 = vsel %vm9466_vm7, %v9860_v10, %v9869_v19  ;;  %v17990_v10 = vld [vmem:[%s18296_s9 + $0x90] sm:$0xff]  }
 0x35e   : > { %v4284_v63 = vrot.slane %v17990_v10, 1 }
 0x35f   : > { %15668 = vmatmul.mubr.msk.bf16.gmra.mrb[4].mxu1 %vm1202_vm3, %v4261_v7  ;;  %v9881_v7 = vshrl.u32 %v17980_v36, 16  ;;  %v17993_v36 = vld [vmem:[%s18296_s9 + $0x1c8] sm:$0xff]  }
 0x360   : > { %15671 = vmatprep.mubr.msk.bf16.mxu1 %vm1202_vm3, %v4263_v50  ;;  %v9878_v50 = vor.u32 %v9877_v15, %v9874_v8  ;;  %v17992_v15 = vld [vmem:[%s18296_s9 + $0x1c0] sm:$0xff]   ;;  %v9947_v34 = vshll.u32 %v17993_v36, 16 }
 0x361   : > { %v9883_v13 = vrot.slane %v9881_v7, 2  ;;  %v9944_v7 = vshrl.u32 %v17993_v36, 16 }
 0x362   : > { %16288 = vmatmul.mubr.msk.bf16.gmra.mrb[72].mxu0 %vm1202_vm3, %v9816_v44  ;;  %v4278_v44 = vrot.slane %v17983_v5, 1  ;;  %v9879_v53 = vsel %vm9466_vm7, %v9869_v19, %v9878_v50  ;;  %v9938_v19 = vshll.u32 %v17992_v15, 16  ;;  %v9949_v5 = vrot.slane %v9947_v34, 3 }
 0x363   : > { %16291 = vmatprep.mubr.msk.bf16.mxu0 %vm1202_vm3, %v9825_v46  ;;  %v9887_v46 = vor.u32 %v9886_v58, %v9883_v13  ;;  %v9946_v58 = vrot.slane %v9944_v7, 2 }
 0x364   : > { %v4279_v40 = vsel %vm2713_vm6, %v4276_v38, %v4278_v44  ;;  %v4281_v35 = vsel %vm2713_vm6, %v4278_v44, %v4280_v33  ;;  %v9940_v1 = vrot.slane %v9938_v19, 3  ;;  %v17995_v38 = vld [vmem:[%s18296_s9 + $0xa8] sm:$0xff]  }
 0x365   : > { %v9888_v54 = vsel %vm9466_vm7, %v9878_v50, %v9887_v46  ;;  %v17994_v50 = vld [vmem:[%s18296_s9 + $0xa0] sm:$0xff]  }
 0x366   : > { %v4288_v37 = vrot.slane %v17994_v50, 1 }
 0x367   : > { %15672 = vmatmul.mubr.msk.bf16.gmra.mrb[8].mxu1 %vm1202_vm3, %v4265_v3  ;;  %v9899_v3 = vshrl.u32 %v17984_v59, 16  ;;  %v17997_v59 = vld [vmem:[%s18296_s9 + $0x1d8] sm:$0xff]  }
 0x368   : > { %15675 = vmatprep.mubr.msk.bf16.mxu1 %vm1202_vm3, %v4267_v22  ;;  %v9896_v22 = vor.u32 %v9895_v56, %v9892_v45  ;;  %v17996_v56 = vld [vmem:[%s18296_s9 + $0x1d0] sm:$0xff]   ;;  %v9965_v28 = vshll.u32 %v17997_v59, 16 }
 0x369   : > { %v9901_v2 = vrot.slane %v9899_v3, 2  ;;  %v9962_v3 = vshrl.u32 %v17997_v59, 16 }
 0x36a   : > { %16292 = vmatmul.mubr.msk.bf16.gmra.mrb[76].mxu0 %vm1202_vm3, %v9834_v41  ;;  %v4282_v41 = vrot.slane %v17987_v20, 1  ;;  %v9897_v47 = vsel %vm9466_vm7, %v9887_v46, %v9896_v22  ;;  %v9956_v46 = vshll.u32 %v17996_v56, 16  ;;  %v9967_v20 = vrot.slane %v9965_v28, 3 }
 0x36b   : > { %16295 = vmatprep.mubr.msk.bf16.mxu0 %vm1202_vm3, %v9843_v16  ;;  %v9905_v16 = vor.u32 %v9904_v6, %v9901_v2  ;;  %v9964_v6 = vrot.slane %v9962_v3, 2 }
 0x36c   : > { %v4283_v51 = vsel %vm2713_vm6, %v4280_v33, %v4282_v41  ;;  %v4285_v57 = vsel %vm2713_vm6, %v4282_v41, %v4284_v63  ;;  %v9958_v14 = vrot.slane %v9956_v46, 3  ;;  %v17999_v33 = vld [vmem:[%s18296_s9 + $0xb8] sm:$0xff]  }
 0x36d   : > { %v9906_v49 = vsel %vm9466_vm7, %v9896_v22, %v9905_v16  ;;  %v17998_v22 = vld [vmem:[%s18296_s9 + $0xb0] sm:$0xff]  }
 0x36e   : > { %v4292_v55 = vrot.slane %v17998_v22, 1 }
 0x36f   : > { %15676 = vmatmul.mubr.msk.bf16.gmra.mrb[12].mxu1 %vm1202_vm3, %v4269_v9  ;;  %v9917_v9 = vshrl.u32 %v17988_v27, 16  ;;  %v18001_v27 = vld [vmem:[%s18296_s9 + $0x1e8] sm:$0xff]  }
 0x370   : > { %15679 = vmatprep.mubr.msk.bf16.mxu1 %vm1202_vm3, %v4271_v18  ;;  %v9914_v18 = vor.u32 %v9913_v42, %v9910_v39  ;;  %v18000_v42 = vld [vmem:[%s18296_s9 + $0x1e0] sm:$0xff]   ;;  %v9983_v24 = vshll.u32 %v18001_v27, 16 }
 0x371   : > { %v9919_v4 = vrot.slane %v9917_v9, 2  ;;  %v9980_v9 = vshrl.u32 %v18001_v27, 16 }
 0x372   : > { %16296 = vmatmul.mubr.msk.bf16.gmra.mrb[80].mxu0 %vm1202_vm3, %v9852_v48  ;;  %v4286_v48 = vrot.slane %v17991_v30, 1  ;;  %v9915_v25 = vsel %vm9466_vm7, %v9905_v16, %v9914_v18  ;;  %v9974_v16 = vshll.u32 %v18000_v42, 16  ;;  %v9985_v30 = vrot.slane %v9983_v24, 3 }
 0x373   : > { %16299 = vmatprep.mubr.msk.bf16.mxu0 %vm1202_vm3, %v9861_v60  ;;  %v9923_v60 = vor.u32 %v9922_v29, %v9919_v4  ;;  %v9982_v29 = vrot.slane %v9980_v9, 2 }
 0x374   : > { %v4287_v8 = vsel %vm2713_vm6, %v4284_v63, %v4286_v48  ;;  %v4289_v44 = vsel %vm2713_vm6, %v4286_v48, %v4288_v37  ;;  %v9976_v10 = vrot.slane %v9974_v16, 3  ;;  %v18003_v63 = vld [vmem:[%s18296_s9 + $0xc8] sm:$0xff]  }
 0x375   : > { %v9924_v52 = vsel %vm9466_vm7, %v9914_v18, %v9923_v60  ;;  %v18002_v18 = vld [vmem:[%s18296_s9 + $0xc0] sm:$0xff]  }
 0x376   : > { %v4296_v23 = vrot.slane %v18002_v18, 1 }
 0x377   : > { %15680 = vmatmul.mubr.msk.bf16.gmra.mrb[16].mxu1 %vm1202_vm3, %v4273_v32  ;;  %v9935_v32 = vshrl.u32 %v17992_v15, 16  ;;  %v18005_v15 = vld [vmem:[%s18296_s9 + $0x1f8] sm:$0xff]  }
 0x378   : > { %15683 = vmatprep.mubr.msk.bf16.mxu1 %vm1202_vm3, %v4275_v43  ;;  %v9932_v43 = vor.u32 %v9931_v26, %v9928_v62  ;;  %v18004_v26 = vld [vmem:[%s18296_s9 + $0x1f0] sm:$0xff]   ;;  %v10001_v19 = vshll.u32 %v18005_v15, 16 }
 0x379   : > { %v9937_v0 = vrot.slane %v9935_v32, 2  ;;  %v9998_v32 = vshrl.u32 %v18005_v15, 16 }
 0x37a   : > { %16300 = vmatmul.mubr.msk.bf16.gmra.mrb[84].mxu0 %vm1202_vm3, %v9870_v61  ;;  %v4290_v61 = vrot.slane %v17995_v38, 1  ;;  %v9933_v13 = vsel %vm9466_vm7, %v9923_v60, %v9932_v43  ;;  %v9992_v60 = vshll.u32 %v18004_v26, 16  ;;  %v10003_v38 = vrot.slane %v10001_v19, 3 }
 0x37b   : > { %16303 = vmatprep.mubr.msk.bf16.mxu0 %vm1202_vm3, %v9879_v53  ;;  %v9941_v53 = vor.u32 %v9940_v1, %v9937_v0  ;;  %v10000_v1 = vrot.slane %v9998_v32, 2 }
 0x37c   : > { %v4291_v45 = vsel %vm2713_vm6, %v4288_v37, %v4290_v61  ;;  %v4293_v41 = vsel %vm2713_vm6, %v4290_v61, %v4292_v55  ;;  %v9994_v50 = vrot.slane %v9992_v60, 3  ;;  %v18007_v37 = vld [vmem:[%s18296_s9 + $0xd8] sm:$0xff]  }
 0x37d   : > { %v9942_v17 = vsel %vm9466_vm7, %v9932_v43, %v9941_v53  ;;  %v18006_v43 = vld [vmem:[%s18296_s9 + $0xd0] sm:$0xff]  }
 0x37e   : > { %v4300_v36 = vrot.slane %v18006_v43, 1 }
 0x37f   : > { %15684 = vmatmul.mubr.msk.bf16.gmra.mrb[20].mxu1 %vm1202_vm3, %v4277_v12  ;;  %v9953_v12 = vshrl.u32 %v17996_v56, 16  ;;  %v18009_v56 = vld [vmem:[%s18296_s9 + $0x208] sm:$0xff]  }
 0x380   : > { %15687 = vmatprep.mubr.msk.bf16.mxu1 %vm1202_vm3, %v4279_v40  ;;  %v9950_v40 = vor.u32 %v9949_v5, %v9946_v58  ;;  %v18008_v5 = vld [vmem:[%s18296_s9 + $0x200] sm:$0xff]   ;;  %v10019_v46 = vshll.u32 %v18009_v56, 16 }
 0x381   : > { %v9955_v11 = vrot.slane %v9953_v12, 2  ;;  %v10016_v12 = vshrl.u32 %v18009_v56, 16 }
 0x382   : > { %16304 = vmatmul.mubr.msk.bf16.gmra.mrb[88].mxu0 %vm1202_vm3, %v9888_v54  ;;  %v4294_v54 = vrot.slane %v17999_v33, 1  ;;  %v9951_v2 = vsel %vm9466_vm7, %v9941_v53, %v9950_v40  ;;  %v10010_v53 = vshll.u32 %v18008_v5, 16  ;;  %v10021_v33 = vrot.slane %v10019_v46, 3 }
 0x383   : > { %16307 = vmatprep.mubr.msk.bf16.mxu0 %vm1202_vm3, %v9897_v47  ;;  %v9959_v47 = vor.u32 %v9958_v14, %v9955_v11  ;;  %v10018_v14 = vrot.slane %v10016_v12, 2 }
 0x384   : > { %v4295_v39 = vsel %vm2713_vm6, %v4292_v55, %v4294_v54  ;;  %v4297_v48 = vsel %vm2713_vm6, %v4294_v54, %v4296_v23  ;;  %v10012_v22 = vrot.slane %v10010_v53, 3  ;;  %v18011_v55 = vld [vmem:[%s18296_s9 + $0xe8] sm:$0xff]  }
 0x385   : > { %v9960_v21 = vsel %vm9466_vm7, %v9950_v40, %v9959_v47  ;;  %v18010_v40 = vld [vmem:[%s18296_s9 + $0xe0] sm:$0xff]  }
 0x386   : > { %v4304_v59 = vrot.slane %v18010_v40, 1 }
 0x387   : > { %15688 = vmatmul.mubr.msk.bf16.gmra.mrb[24].mxu1 %vm1202_vm3, %v4281_v35  ;;  %v9971_v35 = vshrl.u32 %v18000_v42, 16  ;;  %v18013_v42 = vld [vmem:[%s18296_s9 + $0x218] sm:$0xff]  }
 0x388   : > { %15691 = vmatprep.mubr.msk.bf16.mxu1 %vm1202_vm3, %v4283_v51  ;;  %v9968_v51 = vor.u32 %v9967_v20, %v9964_v6  ;;  %v18012_v20 = vld [vmem:[%s18296_s9 + $0x210] sm:$0xff]   ;;  %v10037_v16 = vshll.u32 %v18013_v42, 16 }
 0x389   : > { %v9973_v31 = vrot.slane %v9971_v35, 2  ;;  %v10034_v35 = vshrl.u32 %v18013_v42, 16 }
 0x38a   : > { %16308 = vmatmul.mubr.msk.bf16.gmra.mrb[92].mxu0 %vm1202_vm3, %v9906_v49  ;;  %v4298_v49 = vrot.slane %v18003_v63, 1  ;;  %v9969_v4 = vsel %vm9466_vm7, %v9959_v47, %v9968_v51  ;;  %v10028_v47 = vshll.u32 %v18012_v20, 16  ;;  %v10039_v63 = vrot.slane %v10037_v16, 3  ;;  %v20004_v16 = vld [vmem:[%s18296_s9 + $0x128] sm:$0xff]  }
 0x38b   : > { %16311 = vmatprep.mubr.msk.bf16.mxu0 %vm1202_vm3, %v9915_v25  ;;  %v9977_v25 = vor.u32 %v9976_v10, %v9973_v31  ;;  %v10036_v10 = vrot.slane %v10034_v35, 2 }
 0x38c   : > { %v4299_v62 = vsel %vm2713_vm6, %v4296_v23, %v4298_v49  ;;  %v4301_v61 = vsel %vm2713_vm6, %v4298_v49, %v4300_v36  ;;  %v10030_v18 = vrot.slane %v10028_v47, 3  ;;  %v18015_v23 = vld [vmem:[%s18296_s9 + $0xf8] sm:$0xff]  }
 0x38d   : > { %v9978_v7 = vsel %vm9466_vm7, %v9968_v51, %v9977_v25  ;;  %v18014_v51 = vld [vmem:[%s18296_s9 + $0xf0] sm:$0xff]  }
 0x38e   : > { %v4308_v27 = vrot.slane %v18014_v51, 1  ;;  %v4322_v51 = vrot.slane %v20004_v16, 1 }
 0x38f   : > { %15692 = vmatmul.mubr.msk.bf16.gmra.mrb[28].mxu1 %vm1202_vm3, %v4285_v57  ;;  %v9989_v57 = vshrl.u32 %v18004_v26, 16  ;;  %v18017_v26 = vld [vmem:[%s18296_s9 + $0x228] sm:$0xff]  }
 0x390   : > { %15695 = vmatprep.mubr.msk.bf16.mxu1 %vm1202_vm3, %v4287_v8  ;;  %v9986_v8 = vor.u32 %v9985_v30, %v9982_v29  ;;  %v18016_v30 = vld [vmem:[%s18296_s9 + $0x220] sm:$0xff]   ;;  %v10055_v60 = vshll.u32 %v18017_v26, 16 }
 0x391   : > { %v9991_v34 = vrot.slane %v9989_v57, 2  ;;  %v10052_v57 = vshrl.u32 %v18017_v26, 16  ;;  %v18030_v26 = vld [vmem:[%s18296_s9 + $0x30] sm:$0xff]  }
 0x392   : > { %16312 = vmatmul.mubr.msk.bf16.gmra.mrb[96].mxu0 %vm1202_vm3, %v9924_v52  ;;  %v4302_v52 = vrot.slane %v18007_v37, 1  ;;  %v9987_v0 = vsel %vm9466_vm7, %v9977_v25, %v9986_v8  ;;  %v10046_v25 = vshll.u32 %v18016_v30, 16  ;;  %v10057_v37 = vrot.slane %v10055_v60, 3 }
 0x393   : > { %16315 = vmatprep.mubr.msk.bf16.mxu0 %vm1202_vm3, %v9933_v13  ;;  %v9995_v13 = vor.u32 %v9994_v50, %v9991_v34  ;;  %v10054_v50 = vrot.slane %v10052_v57, 2  ;;  %v11017_v57 = vrot.slane %v18030_v26, 3 }
 0x394   : > { %v4303_v58 = vsel %vm2713_vm6, %v4300_v36, %v4302_v52  ;;  %v4305_v54 = vsel %vm2713_vm6, %v4302_v52, %v4304_v59  ;;  %v10048_v43 = vrot.slane %v10046_v25, 3  ;;  %v18019_v36 = vld [vmem:[%s18296_s9 + $0x108] sm:$0xff]  }
 0x395   : > { %v9996_v3 = vsel %vm9466_vm7, %v9986_v8, %v9995_v13  ;;  %v18018_v8 = vld [vmem:[%s18296_s9 + $0x100] sm:$0xff]  }
 0x396   : > { %v4312_v15 = vrot.slane %v18018_v8, 1  ;;  %v18031_v8 = vld [vmem:[%s18296_s9 + $0x38] sm:$0xff]  }
 0x397   : > { %15696 = vmatmul.mubr.msk.bf16.gmra.mrb[32].mxu1 %vm1202_vm3, %v4289_v44  ;;  %v10007_v44 = vshrl.u32 %v18008_v5, 16  ;;  %v18021_v5 = vld [vmem:[%s18296_s9 + $0x238] sm:$0xff]  }
 0x398   : > { %15699 = vmatprep.mubr.msk.bf16.mxu1 %vm1202_vm3, %v4291_v45  ;;  %v10004_v45 = vor.u32 %v10003_v38, %v10000_v1  ;;  %v18020_v38 = vld [vmem:[%s18296_s9 + $0x230] sm:$0xff]   ;;  %v10073_v53 = vshll.u32 %v18021_v5, 16 }
 0x399   : > { %v10009_v28 = vrot.slane %v10007_v44, 2  ;;  %v10070_v44 = vshrl.u32 %v18021_v5, 16  ;;  %v20058_v5 = vld [vmem:[%s18296_s9 + $0x158] sm:$0xff]  }
 0x39a   : > { %16316 = vmatmul.mubr.msk.bf16.gmra.mrb[100].mxu0 %vm1202_vm3, %v9942_v17  ;;  %v4306_v17 = vrot.slane %v18011_v55, 1  ;;  %v10005_v11 = vsel %vm9466_vm7, %v9995_v13, %v10004_v45  ;;  %v10064_v13 = vshll.u32 %v18020_v38, 16 }
 0x39b   : > { %16319 = vmatprep.mubr.msk.bf16.mxu0 %vm1202_vm3, %v9951_v2  ;;  %v10013_v2 = vor.u32 %v10012_v22, %v10009_v28  ;;  %v17833_v28 = vld [vmem:[%s18296_s9 + $0x240] ss:$0 sps:$4 sm:$0x77]   ;;  %v10072_v55 = vrot.slane %v10070_v44, 2  ;;  %v4334_v44 = vrot.slane %v20058_v5, 1 }
 0x39c   : > { %v4307_v6 = vsel %vm2713_vm6, %v4304_v59, %v4306_v17  ;;  %v4309_v49 = vsel %vm2713_vm6, %v4306_v17, %v4308_v27  ;;  %v10066_v40 = vrot.slane %v10064_v13, 3  ;;  %v18023_v59 = vld [vmem:[%s18296_s9 + $0x118] sm:$0xff]   ;;  %v10075_v17 = vrot.slane %v10073_v53, 3 }
 0x39d   : > { %v10014_v9 = vsel %vm9466_vm7, %v10004_v45, %v10013_v2  ;;  %v18022_v45 = vld [vmem:[%s18296_s9 + $0x110] sm:$0xff]  }
 0x39e   : > { %v4316_v56 = vrot.slane %v18022_v45, 1 }
 0x39f   : > { %15700 = vmatmul.mubr.msk.bf16.gmra.mrb[36].mxu1 %vm1202_vm3, %v4293_v41  ;;  %v10025_v41 = vshrl.u32 %v18012_v20, 16  ;;  %v11007_v20 = vld [vmem:[%s18296_s9 + $0x20] sm:$0x8] }
 0x3a0   : > { %15703 = vmatprep.mubr.msk.bf16.mxu1 %vm1202_vm3, %v4295_v39  ;;  %v10022_v39 = vor.u32 %v10021_v33, %v10018_v14 }
 0x3a1   : > { %v10027_v24 = vrot.slane %v10025_v41, 2  ;;  %v18024_v41 = vld [vmem:[%s18296_s9 + $0x120] sm:$0xff]  }
 0x3a2   : > { %16320 = vmatmul.mubr.msk.bf16.gmra.mrb[104].mxu0 %vm1202_vm3, %v9960_v21  ;;  %v4310_v21 = vrot.slane %v18015_v23, 1  ;;  %v10023_v31 = vsel %vm9466_vm7, %v10013_v2, %v10022_v39  ;;  %v10082_v2 = vshll.u32 %v17833_v28, 16  ;;  %v4320_v47 = vrot.slane %v18024_v41, 1  ;;  %v20089_v41 = vld [vmem:[%s18296_s9 + $0x170] sm:$0xff]  }
 0x3a3   : > { %16323 = vmatprep.mubr.msk.bf16.mxu0 %vm1202_vm3, %v9969_v4  ;;  %v10031_v4 = vor.u32 %v10030_v18, %v10027_v24 }
 0x3a4   : > { %v4311_v29 = vsel %vm2713_vm6, %v4308_v27, %v4310_v21  ;;  %v4313_v52 = vsel %vm2713_vm6, %v4310_v21, %v4312_v15  ;;  %v10084_v35 = vrot.slane %v10082_v2, 3  ;;  %v4323_v21 = vsel %vm2713_vm6, %v4320_v47, %v4322_v51 }
 0x3a5   : > { %v10032_v32 = vsel %vm9466_vm7, %v10022_v39, %v10031_v4 }
 0x3a7   : > { %15704 = vmatmul.mubr.msk.bf16.gmra.mrb[40].mxu1 %vm1202_vm3, %v4297_v48  ;;  %v10043_v48 = vshrl.u32 %v18016_v30, 16  ;;  %v20022_v30 = vld [vmem:[%s18296_s9 + $0x138] sm:$0xff]  }
 0x3a8   : > { %15707 = vmatprep.mubr.msk.bf16.mxu1 %vm1202_vm3, %v4299_v62  ;;  %v10040_v62 = vor.u32 %v10039_v63, %v10036_v10  ;;  %v18027_v10 = vld [vmem:[%s18296_s9 + $0x28] sm:$0xff]  }
 0x3a9   : > { %v10045_v19 = vrot.slane %v10043_v48, 2  ;;  %v11015_v63 = vrot.slane %v18027_v10, 3  ;;  %v4326_v48 = vrot.slane %v20022_v30, 1 }
 0x3aa   : > { %16324 = vmatmul.mubr.msk.bf16.gmra.mrb[108].mxu0 %vm1202_vm3, %v9978_v7  ;;  %v4314_v7 = vrot.slane %v18019_v36, 1  ;;  %v10041_v34 = vsel %vm9466_vm7, %v10031_v4, %v10040_v62  ;;  %v20040_v36 = vld [vmem:[%s18296_s9 + $0x148] sm:$0xff]  }
 0x3ab   : > { %16327 = vmatprep.mubr.msk.bf16.mxu0 %vm1202_vm3, %v9987_v0  ;;  %v10049_v0 = vor.u32 %v10048_v43, %v10045_v19  ;;  %v11018_v43 = vsel %vm11013_vm8, %v11015_v63, %v11017_v57 }
 0x3ac   : > { %v4315_v1 = vsel %vm2713_vm6, %v4312_v15, %v4314_v7  ;;  %v11019_v15 = vrot.slane %v18031_v8, 3 }
 0x3ad   : > { %v10050_v12 = vsel %vm9466_vm7, %v10040_v62, %v10049_v0 }
 0x3af   : > { %15708 = vmatmul.mubr.msk.bf16.gmra.mrb[44].mxu1 %vm1202_vm3, %v4301_v61  ;;  %v10061_v61 = vshrl.u32 %v18020_v38, 16 }
 0x3b0   : > { %15711 = vmatprep.mubr.msk.bf16.mxu1 %vm1202_vm3, %v4303_v58  ;;  %v10058_v58 = vor.u32 %v10057_v37, %v10054_v50  ;;  %v18034_v37 = vld [vmem:[%s18296_s9 + $0x40] sm:$0xff]  }
 0x3b1   : > { %v10063_v46 = vrot.slane %v10061_v61, 2  ;;  %v20053_v61 = vld [vmem:[%s18296_s9 + $0x150] sm:$0xff]  }
 0x3b2   : > { %16328 = vmatmul.mubr.msk.bf16.gmra.mrb[112].mxu0 %vm1202_vm3, %v9996_v3  ;;  %v4318_v3 = vrot.slane %v18023_v59, 1  ;;  %v10059_v22 = vsel %vm9466_vm7, %v10049_v0, %v10058_v58  ;;  %v4332_v13 = vrot.slane %v20053_v61, 1 }
 0x3b3   : > { %16331 = vmatprep.mubr.msk.bf16.mxu0 %vm1202_vm3, %v10005_v11  ;;  %v4317_v11 = vsel %vm2713_vm6, %v4314_v7, %v4316_v56  ;;  %v10067_v14 = vor.u32 %v10066_v40, %v10063_v46  ;;  %v4330_v7 = vrot.slane %v20040_v36, 1  ;;  %v18039_v40 = vld [vmem:[%s18296_s9 + $0x58] sm:$0xff]  }
 0x3b4   : > { %v4319_v33 = vsel %vm2713_vm6, %v4316_v56, %v4318_v3  ;;  %v4321_v18 = vsel %vm2713_vm6, %v4318_v3, %v4320_v47  ;;  %v18038_v56 = vld [vmem:[%s18296_s9 + $0x50] sm:$0xff]   ;;  %v4335_v46 = vsel %vm2713_vm6, %v4332_v13, %v4334_v44  ;;  %v11027_v59 = vrot.slane %v18039_v40, 3  ;;  %v20071_v3 = vld [vmem:[%s18296_s9 + $0x160] sm:$0xff]  }
 0x3b5   : > { %v10068_v39 = vsel %vm9466_vm7, %v10058_v58, %v10067_v14  ;;  %v4333_v45 = vsel %vm2713_vm6, %v4330_v7, %v4332_v13  ;;  %v4340_v47 = vrot.slane %v20089_v41, 1  ;;  %v18058_v40 = vld [vmem:[%s18296_s9 + $0xa0] sm:$0xff]  }
 0x3b7   : > { %15712 = vmatmul.mubr.msk.bf16.gmra.mrb[48].mxu1 %vm1202_vm3, %v4305_v54  ;;  %v10079_v54 = vshrl.u32 %v17833_v28, 16  ;;  %v4336_v28 = vrot.slane %v20071_v3, 1 }
 0x3b8   : > { %15715 = vmatprep.mubr.msk.bf16.mxu1 %vm1202_vm3, %v4307_v6  ;;  %v10076_v6 = vor.u32 %v10075_v17, %v10072_v55  ;;  %v20076_v55 = vld [vmem:[%s18296_s9 + $0x168] sm:$0xff]  }
 0x3b9   : > { %v10081_v42 = vrot.slane %v10079_v54, 2  ;;  %v4338_v17 = vrot.slane %v20076_v55, 1 }
 0x3ba   : > { %16332 = vmatmul.mubr.msk.bf16.gmra.mrb[116].mxu0 %vm1202_vm3, %v10014_v9  ;;  %v10077_v27 = vsel %vm9466_vm7, %v10067_v14, %v10076_v6  ;;  %v18026_v9 = vld [vmem:[%s18296_s9 + $0x24] sm:$0xf]  ;;  %v4337_v14 = vsel %vm2713_vm6, %v4334_v44, %v4336_v28 }
 0x3bb   : > { %16335 = vmatprep.mubr.msk.bf16.mxu0 %vm1202_vm3, %v10023_v31  ;;  %v13874_v24 = vcombine.low %v11007_v20, %v18026_v9  ;;  %v10085_v23 = vor.u32 %v10084_v35, %v10081_v42  ;;  %v4339_v2 = vsel %vm2713_vm6, %v4336_v28, %v4338_v17  ;;  %v20094_v42 = vld [vmem:[%s18296_s9 + $0x178] sm:$0xff]   ;;  %v18046_v9 = vld [vmem:[%s18296_s9 + $0x70] sm:$0xff]  }
 0x3bc   : > { %v4342_v35 = vrot.slane %v20094_v42, 1 }
 0x3bd   : > { %v11014_v31 = vrot.slane %v13874_v24, 3  ;;  %v11033_v24 = vrot.slane %v18046_v9, 3  ;;  %v20179_v9 = vld [vmem:[%s18296_s9 + $0x1c0] sm:$0xff]  }
 0x3bf   : > { %15716 = vmatmul.mubr.msk.bf16.gmra.mrb[52].mxu1 %vm1202_vm3, %v4309_v49  ;;  %v20017_v49 = vld [vmem:[%s18296_s9 + $0x130] sm:$0xff]   ;;  %v11016_v25 = vsel %vm11013_vm8, %v11014_v31, %v11015_v63  ;;  %v20107_v31 = vld [vmem:[%s18296_s9 + $0x180] sm:$0xff]  }
 0x3c0   : > { %15719 = vmatprep.mubr.msk.bf16.mxu1 %vm1202_vm3, %v4311_v29  ;;  %v4324_v4 = vrot.slane %v20017_v49, 1  ;;  %v10086_v29 = vsel %vm9466_vm7, %v10076_v6, %v10085_v23  ;;  %v18043_v6 = vld [vmem:[%s18296_s9 + $0x68] sm:$0xff]   ;;  %v18047_v23 = vld [vmem:[%s18296_s9 + $0x78] sm:$0xff]   ;;  %v4344_v10 = vrot.slane %v20107_v31, 1 }
 0x3c1   : > { %v11031_v20 = vrot.slane %v18043_v6, 3 }
 0x3c2   : > { %16336 = vmatmul.mubr.msk.bf16.gmra.mrb[120].mxu0 %vm1202_vm3, %v10032_v32  ;;  %v4325_v62 = vsel %vm2713_vm6, %v4322_v51, %v4324_v4  ;;  %v4327_v60 = vsel %vm2713_vm6, %v4324_v4, %v4326_v48  ;;  %v20035_v32 = vld [vmem:[%s18296_s9 + $0x140] sm:$0xff]   ;;  %v20112_v4 = vld [vmem:[%s18296_s9 + $0x188] sm:$0xff]  }
 0x3c3   : > { %16339 = vmatprep.mubr.msk.bf16.mxu0 %vm1202_vm3, %v10041_v34  ;;  %v4328_v19 = vrot.slane %v20035_v32, 1  ;;  %v11020_v34 = vsel %vm11013_vm8, %v11017_v57, %v11019_v15  ;;  %v11034_v63 = vsel %vm11013_vm8, %v11031_v20, %v11033_v24 }
 0x3c5   : > { %v4329_v50 = vsel %vm2713_vm6, %v4326_v48, %v4328_v19  ;;  %v4331_v0 = vsel %vm2713_vm6, %v4328_v19, %v4330_v7  ;;  %v20130_v7 = vld [vmem:[%s18296_s9 + $0x198] sm:$0xff]  }
 0x3c7   : > { %15720 = vmatmul.mubr.msk.bf16.gmra.mrb[56].mxu1 %vm1202_vm3, %v4313_v52  ;;  %v11021_v52 = vrot.slane %v18034_v37, 3 }
 0x3c8   : > { %15723 = vmatprep.mubr.msk.bf16.mxu1 %vm1202_vm3, %v4315_v1  ;;  %v18035_v1 = vld [vmem:[%s18296_s9 + $0x48] sm:$0xff]  }
 0x3c9   : > { %v11023_v38 = vrot.slane %v18035_v1, 3  ;;  %v11022_v58 = vsel %vm11013_vm8, %v11019_v15, %v11021_v52  ;;  %v20125_v15 = vld [vmem:[%s18296_s9 + $0x190] sm:$0xff]  }
 0x3ca   : > { %16340 = vmatmul.mubr.msk.bf16.gmra.mrb[124].mxu0 %vm1202_vm3, %v10050_v12  ;;  %v11025_v12 = vrot.slane %v18038_v56, 3  ;;  %v4348_v19 = vrot.slane %v20125_v15, 1 }
 0x3cb   : > { %16343 = vmatprep.mubr.msk.bf16.mxu0 %vm1202_vm3, %v10059_v22  ;;  %v11024_v53 = vsel %vm11013_vm8, %v11021_v52, %v11023_v38  ;;  %v18054_v52 = vld [vmem:[%s18296_s9 + $0x90] sm:$0xff]  }
 0x3cc   : > { %v11026_v22 = vsel %vm11013_vm8, %v11023_v38, %v11025_v12  ;;  %v18055_v38 = vld [vmem:[%s18296_s9 + $0x98] sm:$0xff]  }
 0x3cd   : > { %v11043_v13 = vrot.slane %v18055_v38, 3  ;;  %v18070_v38 = vld [vmem:[%s18296_s9 + $0xd0] sm:$0xff]  }
 0x3cf   : > { %15724 = vmatmul.mubr.msk.bf16.gmra.mrb[60].mxu1 %vm1202_vm3, %v4317_v11  ;;  %v11028_v11 = vsel %vm11013_vm8, %v11025_v12, %v11027_v59 }
 0x3d0   : > { %15727 = vmatprep.mubr.msk.bf16.mxu1 %vm1202_vm3, %v4319_v33  ;;  %v18042_v33 = vld [vmem:[%s18296_s9 + $0x60] sm:$0xff]  }
 0x3d1   : > { %v11029_v54 = vrot.slane %v18042_v33, 3 }
 0x3d2   : > { %16344 = vmatmul.mubr.msk.bf16.gmra.mrb[128].mxu0 %vm1202_vm3, %v10068_v39 }
 0x3d3   : > { %16347 = vmatprep.mubr.msk.bf16.mxu0 %vm1202_vm3, %v10077_v27  ;;  %v11030_v39 = vsel %vm11013_vm8, %v11027_v59, %v11029_v54  ;;  %v11032_v51 = vsel %vm11013_vm8, %v11029_v54, %v11031_v20  ;;  %v4341_v27 = vsel %vm2713_vm6, %v4338_v17, %v4340_v47  ;;  %v11045_v59 = vrot.slane %v18058_v40, 3  ;;  %v20166_v54 = vld [vmem:[%s18296_s9 + $0x1b8] sm:$0xff]  }
 0x3d5   : > { %v11046_v33 = vsel %vm11013_vm8, %v11043_v13, %v11045_v59 }
 0x3d7   : > { %15728 = vmatmul.mubr.msk.bf16.gmra.mrb[64].mxu1 %vm1202_vm3, %v4321_v18  ;;  %v4343_v18 = vsel %vm2713_vm6, %v4340_v47, %v4342_v35  ;;  %v18062_v47 = vld [vmem:[%s18296_s9 + $0xb0] sm:$0xff]  }
 0x3d8   : > { %15731 = vmatprep.mubr.msk.bf16.mxu1 %vm1202_vm3, %v4323_v21  ;;  %v11035_v21 = vrot.slane %v18047_v23, 3  ;;  %v20184_v23 = vld [vmem:[%s18296_s9 + $0x1c8] sm:$0xff]  }
 0x3da   : > { %16348 = vmatmul.mubr.msk.bf16.gmra.mrb[132].mxu0 %vm1202_vm3, %v10086_v29  ;;  %v4346_v29 = vrot.slane %v20112_v4, 1  ;;  %v11036_v48 = vsel %vm11013_vm8, %v11033_v24, %v11035_v21  ;;  %v4360_v24 = vrot.slane %v20179_v9, 1 }
 0x3db   : > { %16353 = vmatprep.mubr.msk.bf16.mxu0 %vm1202_vm3, %v11016_v25  ;;  %v4345_v25 = vsel %vm2713_vm6, %v4342_v35, %v4344_v10 }
 0x3dc   : > { %v4347_v57 = vsel %vm2713_vm6, %v4344_v10, %v4346_v29  ;;  %v4349_v37 = vsel %vm2713_vm6, %v4346_v29, %v4348_v19  ;;  %v18066_v29 = vld [vmem:[%s18296_s9 + $0xc0] sm:$0xff]  }
 0x3df   : > { %15732 = vmatmul.mubr.msk.bf16.gmra.mrb[68].mxu1 %vm1202_vm3, %v4325_v62  ;;  %v18050_v62 = vld [vmem:[%s18296_s9 + $0x80] sm:$0xff]  }
 0x3e0   : > { %15735 = vmatprep.mubr.msk.bf16.mxu1 %vm1202_vm3, %v4327_v60  ;;  %v11037_v26 = vrot.slane %v18050_v62, 3  ;;  %v18051_v60 = vld [vmem:[%s18296_s9 + $0x88] sm:$0xff]  }
 0x3e1   : > { %v11039_v8 = vrot.slane %v18051_v60, 3  ;;  %v18067_v62 = vld [vmem:[%s18296_s9 + $0xc8] sm:$0xff]  }
 0x3e2   : > { %16354 = vmatmul.mubr.msk.bf16.vlgmr.msra.gmra.mrb[0].mxu0 %vm1202_vm3, %v11018_v43  ;;  %v11038_v43 = vsel %vm11013_vm8, %v11035_v21, %v11037_v26  ;;  %v4362_v21 = vrot.slane %v20184_v23, 1 }
 0x3e3   : > { %16357 = vmatprep.mubr.msk.bf16.mxu0 %vm1202_vm3, %v11020_v34  ;;  %v4350_v34 = vrot.slane %v20130_v7, 1 }
 0x3e5   : > { %v4351_v1 = vsel %vm2713_vm6, %v4348_v19, %v4350_v34  ;;  %v20202_v19 = vld [vmem:[%s18296_s9 + $0x1d8] sm:$0xff]  }
 0x3e7   : > { %15736 = vmatmul.mubr.msk.bf16.gmra.mrb[72].mxu1 %vm1202_vm3, %v4329_v50  ;;  %v11040_v50 = vsel %vm11013_vm8, %v11037_v26, %v11039_v8  ;;  %v11055_v26 = vrot.slane %v18067_v62, 3 }
 0x3e8   : > { %15739 = vmatprep.mubr.msk.bf16.mxu1 %vm1202_vm3, %v4331_v0  ;;  %v11041_v0 = vrot.slane %v18054_v52, 3 }
 0x3ea   : > { %16358 = vmatmul.mubr.msk.bf16.gmra.mrb[4].mxu0 %vm1202_vm3, %v11022_v58  ;;  %v20143_v58 = vld [vmem:[%s18296_s9 + $0x1a0] sm:$0xff]   ;;  %v11044_v12 = vsel %vm11013_vm8, %v11041_v0, %v11043_v13  ;;  %v11057_v13 = vrot.slane %v18070_v38, 3 }
 0x3eb   : > { %16361 = vmatprep.mubr.msk.bf16.mxu0 %vm1202_vm3, %v11024_v53  ;;  %v4352_v44 = vrot.slane %v20143_v58, 1  ;;  %v11042_v53 = vsel %vm11013_vm8, %v11039_v8, %v11041_v0  ;;  %v20275_v38 = vld [vmem:[%s18296_s9 + $0x200] sm:$0xff]  }
 0x3ec   : > { %v11058_v40 = vsel %vm11013_vm8, %v11055_v26, %v11057_v13 }
 0x3ef   : > { %15740 = vmatmul.mubr.msk.bf16.gmra.mrb[76].mxu1 %vm1202_vm3, %v4333_v45  ;;  %v20148_v45 = vld [vmem:[%s18296_s9 + $0x1a8] sm:$0xff]  }
 0x3f0   : > { %15743 = vmatprep.mubr.msk.bf16.mxu1 %vm1202_vm3, %v4335_v46  ;;  %v4354_v56 = vrot.slane %v20148_v45, 1  ;;  %v4353_v46 = vsel %vm2713_vm6, %v4350_v34, %v4352_v44 }
 0x3f2   : > { %16362 = vmatmul.mubr.msk.bf16.gmra.mrb[8].mxu0 %vm1202_vm3, %v11026_v22  ;;  %v4355_v28 = vsel %vm2713_vm6, %v4352_v44, %v4354_v56  ;;  %v18059_v22 = vld [vmem:[%s18296_s9 + $0xa8] sm:$0xff]  }
 0x3f3   : > { %16365 = vmatprep.mubr.msk.bf16.mxu0 %vm1202_vm3, %v11028_v11  ;;  %v11047_v17 = vrot.slane %v18059_v22, 3  ;;  %v20161_v11 = vld [vmem:[%s18296_s9 + $0x1b0] sm:$0xff]  }
 0x3f5   : > { %v11048_v6 = vsel %vm11013_vm8, %v11045_v59, %v11047_v17  ;;  %v20228_v59 = vld [vmem:[%s18296_s9 + $0x1e8] sm:$0xff]  }
 0x3f7   : > { %15744 = vmatmul.mubr.msk.bf16.gmra.mrb[80].mxu1 %vm1202_vm3, %v4337_v14  ;;  %v4356_v14 = vrot.slane %v20161_v11, 1 }
 0x3f8   : > { %15747 = vmatprep.mubr.msk.bf16.mxu1 %vm1202_vm3, %v4339_v2  ;;  %v4358_v2 = vrot.slane %v20166_v54, 1 }
 0x3f9   : > { %v4357_v20 = vsel %vm2713_vm6, %v4354_v56, %v4356_v14 }
 0x3fa   : > { %16366 = vmatmul.mubr.msk.bf16.gmra.mrb[12].mxu0 %vm1202_vm3, %v11030_v39  ;;  %v11049_v39 = vrot.slane %v18062_v47, 3  ;;  %v4359_v35 = vsel %vm2713_vm6, %v4356_v14, %v4358_v2 }
 0x3fb   : > { %16369 = vmatprep.mubr.msk.bf16.mxu0 %vm1202_vm3, %v11032_v51  ;;  %v18063_v51 = vld [vmem:[%s18296_s9 + $0xb8] sm:$0xff]  }
 0x3ff   : > { %15748 = vmatmul.mubr.msk.bf16.gmra.mrb[84].mxu1 %vm1202_vm3, %v4341_v27  ;;  %v11051_v27 = vrot.slane %v18063_v51, 3 }
 0x400   : > { %15751 = vmatprep.mubr.msk.bf16.mxu1 %vm1202_vm3, %v4343_v18  ;;  %v11050_v18 = vsel %vm11013_vm8, %v11047_v17, %v11049_v39 }
 0x401   : > { %v11052_v10 = vsel %vm11013_vm8, %v11049_v39, %v11051_v27 }
 0x402   : > { %16370 = vmatmul.mubr.msk.bf16.gmra.mrb[16].mxu0 %vm1202_vm3, %v11034_v63  ;;  %v4361_v63 = vsel %vm2713_vm6, %v4358_v2, %v4360_v24 }
 0x403   : > { %16373 = vmatprep.mubr.msk.bf16.mxu0 %vm1202_vm3, %v11036_v48  ;;  %v11053_v48 = vrot.slane %v18066_v29, 3 }
 0x405   : > { %v11054_v8 = vsel %vm11013_vm8, %v11051_v27, %v11053_v48  ;;  %v20249_v27 = vld [vmem:[%s18296_s9 + $0x1f0] sm:$0xff]  }
 0x407   : > { %15752 = vmatmul.mubr.msk.bf16.gmra.mrb[88].mxu1 %vm1202_vm3, %v4345_v25  ;;  %v4363_v25 = vsel %vm2713_vm6, %v4360_v24, %v4362_v21  ;;  %v4372_v24 = vrot.slane %v20249_v27, 1 }
 0x408   : > { %15755 = vmatprep.mubr.msk.bf16.mxu1 %vm1202_vm3, %v4347_v57  ;;  %v20197_v57 = vld [vmem:[%s18296_s9 + $0x1d0] sm:$0xff]  }
 0x409   : > { %v4364_v60 = vrot.slane %v20197_v57, 1 }
 0x40a   : > { %16374 = vmatmul.mubr.msk.bf16.gmra.mrb[20].mxu0 %vm1202_vm3, %v11038_v43  ;;  %v4366_v43 = vrot.slane %v20202_v19, 1 }
 0x40b   : > { %16377 = vmatprep.mubr.msk.bf16.mxu0 %vm1202_vm3, %v11040_v50  ;;  %v11056_v50 = vsel %vm11013_vm8, %v11053_v48, %v11055_v26  ;;  %v4365_v0 = vsel %vm2713_vm6, %v4362_v21, %v4364_v60  ;;  %v20254_v21 = vld [vmem:[%s18296_s9 + $0x1f8] sm:$0xff]  }
 0x40c   : > { %v4367_v44 = vsel %vm2713_vm6, %v4364_v60, %v4366_v43  ;;  %v18078_v60 = vld [vmem:[%s18296_s9 + $0xf0] sm:$0xff]  }
 0x40f   : > { %15756 = vmatmul.mubr.msk.bf16.gmra.mrb[92].mxu1 %vm1202_vm3, %v4349_v37 }
 0x410   : > { %15759 = vmatprep.mubr.msk.bf16.mxu1 %vm1202_vm3, %v4351_v1 }
 0x412   : > { %16378 = vmatmul.mubr.msk.bf16.gmra.mrb[24].mxu0 %vm1202_vm3, %v11042_v53  ;;  %v18071_v53 = vld [vmem:[%s18296_s9 + $0xd8] sm:$0xff]  }
 0x413   : > { %16381 = vmatprep.mubr.msk.bf16.mxu0 %vm1202_vm3, %v11044_v12  ;;  %v11059_v56 = vrot.slane %v18071_v53, 3  ;;  %v20223_v12 = vld [vmem:[%s18296_s9 + $0x1e0] sm:$0xff]   ;;  %v20280_v53 = vld [vmem:[%s18296_s9 + $0x208] sm:$0xff]  }
 0x415   : > { %v11060_v17 = vsel %vm11013_vm8, %v11057_v13, %v11059_v56  ;;  %v4376_v13 = vrot.slane %v20275_v38, 1 }
 0x417   : > { %15760 = vmatmul.mubr.msk.bf16.gmra.mrb[96].mxu1 %vm1202_vm3, %v4353_v46  ;;  %v4368_v46 = vrot.slane %v20223_v12, 1 }
 0x418   : > { %15763 = vmatprep.mubr.msk.bf16.mxu1 %vm1202_vm3, %v4355_v28  ;;  %v4370_v28 = vrot.slane %v20228_v59, 1 }
 0x419   : > { %v4369_v2 = vsel %vm2713_vm6, %v4366_v43, %v4368_v46 }
 0x41a   : > { %16382 = vmatmul.mubr.msk.bf16.gmra.mrb[28].mxu0 %vm1202_vm3, %v11046_v33  ;;  %v4371_v39 = vsel %vm2713_vm6, %v4368_v46, %v4370_v28  ;;  %v4373_v62 = vsel %vm2713_vm6, %v4370_v28, %v4372_v24 }
 0x41b   : > { %16385 = vmatprep.mubr.msk.bf16.mxu0 %vm1202_vm3, %v11048_v6 }
 0x41f   : > { %15764 = vmatmul.mubr.msk.bf16.gmra.mrb[100].mxu1 %vm1202_vm3, %v4357_v20  ;;  %v18074_v20 = vld [vmem:[%s18296_s9 + $0xe0] sm:$0xff]  }
 0x420   : > { %15767 = vmatprep.mubr.msk.bf16.mxu1 %vm1202_vm3, %v4359_v35  ;;  %v11061_v47 = vrot.slane %v18074_v20, 3  ;;  %v18075_v35 = vld [vmem:[%s18296_s9 + $0xe8] sm:$0xff]  }
 0x421   : > { %v11063_v51 = vrot.slane %v18075_v35, 3 }
 0x422   : > { %16386 = vmatmul.mubr.msk.bf16.gmra.mrb[32].mxu0 %vm1202_vm3, %v11050_v18  ;;  %v11062_v18 = vsel %vm11013_vm8, %v11059_v56, %v11061_v47  ;;  %v4378_v56 = vrot.slane %v20280_v53, 1 }
 0x423   : > { %16389 = vmatprep.mubr.msk.bf16.mxu0 %vm1202_vm3, %v11052_v10  ;;  %v4374_v10 = vrot.slane %v20254_v21, 1  ;;  %v11064_v29 = vsel %vm11013_vm8, %v11061_v47, %v11063_v51  ;;  %v18082_v47 = vld [vmem:[%s18296_s9 + $0x100] sm:$0xff]  }
 0x424   : > { %v4379_v35 = vsel %vm2713_vm6, %v4376_v13, %v4378_v56 }
 0x425   : > { %v4375_v43 = vsel %vm2713_vm6, %v4372_v24, %v4374_v10 }
 0x427   : > { %15768 = vmatmul.mubr.msk.bf16.gmra.mrb[104].mxu1 %vm1202_vm3, %v4361_v63 }
 0x428   : > { %15771 = vmatprep.mubr.msk.bf16.mxu1 %vm1202_vm3, %v4363_v25 }
 0x42a   : > { %v20205_v34 = vpop.f32.mrb[0].mxu1  ;;  %16390 = vmatmul.mubr.msk.bf16.gmra.mrb[36].mxu0 %vm1202_vm3, %v11054_v8  ;;  %v11065_v8 = vrot.slane %v18078_v60, 3 }
 0x42b   : > { %v20208_v37 = vpop.f32.mrb[1].mxu1  ;;  %16393 = vmatprep.mubr.msk.bf16.mxu0 %vm1202_vm3, %v11056_v50  ;;  %v18079_v50 = vld [vmem:[%s18296_s9 + $0xf8] sm:$0xff]  }
 0x42c   : > { %v20211_v52 = vpop.f32.mrb[2].mxu1 }
 0x42d   : > { %v20214_v1 = vpop.f32.mrb[3].mxu1 }
 0x42f   : > { %15772 = vmatmul.mubr.msk.bf16.gmra.mrb[108].mxu1 %vm1202_vm3, %v4365_v0  ;;  %v11067_v0 = vrot.slane %v18079_v50, 3 }
 0x430   : > { %15775 = vmatprep.mubr.msk.bf16.mxu1 %vm1202_vm3, %v4367_v44  ;;  %v11066_v44 = vsel %vm11013_vm8, %v11063_v51, %v11065_v8  ;;  %v18083_v51 = vld [vmem:[%s18296_s9 + $0x108] sm:$0xff]  }
 0x431   : > { %v11071_v24 = vrot.slane %v18083_v51, 3 }
 0x432   : > { %v20231_v22 = vpop.f32.mrb[4].mxu1  ;;  %16394 = vmatmul.mubr.msk.bf16.gmra.mrb[40].mxu0 %vm1202_vm3, %v11058_v40  ;;  %v11068_v40 = vsel %vm11013_vm8, %v11065_v8, %v11067_v0 }
 0x433   : > { %v20234_v14 = vpop.f32.mrb[5].mxu1  ;;  %16397 = vmatprep.mubr.msk.bf16.mxu0 %vm1202_vm3, %v11060_v17 }
 0x434   : > { %v20237_v33 = vpop.f32.mrb[6].mxu1 }
 0x435   : > { %v20240_v6 = vpop.f32.mrb[7].mxu1 }
 0x437   : > { %15776 = vmatmul.mubr.msk.bf16.gmra.mrb[112].mxu1 %vm1202_vm3, %v4369_v2  ;;  %v4377_v2 = vsel %vm2713_vm6, %v4374_v10, %v4376_v13 }
 0x438   : > { %15779 = vmatprep.mubr.msk.bf16.mxu1 %vm1202_vm3, %v4371_v39  ;;  %v11069_v39 = vrot.slane %v18082_v47, 3 }
 0x43a   : > { %v20257_v63 = vpop.f32.mrb[8].mxu1  ;;  %16398 = vmatmul.mubr.msk.bf16.gmra.mrb[44].mxu0 %vm1202_vm3, %v11062_v18  ;;  %v20301_v18 = vld [vmem:[%s18296_s9 + $0x210] sm:$0xff]  }
 0x43b   : > { %v20260_v48 = vpop.f32.mrb[9].mxu1  ;;  %16401 = vmatprep.mubr.msk.bf16.mxu0 %vm1202_vm3, %v11064_v29  ;;  %v4380_v10 = vrot.slane %v20301_v18, 1  ;;  %v11070_v29 = vsel %vm11013_vm8, %v11067_v0, %v11069_v39  ;;  %v18086_v0 = vld [vmem:[%s18296_s9 + $0x110] sm:$0xff]  }
 0x43c   : > { %v20263_v25 = vpop.f32.mrb[10].mxu1 }
 0x43d   : > { %v20266_v26 = vpop.f32.mrb[11].mxu1 }
 0x43f   : > { %15780 = vmatmul.mubr.msk.bf16.gmra.mrb[116].mxu1 %vm1202_vm3, %v4373_v62  ;;  %v20306_v62 = vld [vmem:[%s18296_s9 + $0x218] sm:$0xff]  }
 0x440   : > { %15783 = vmatprep.mubr.msk.bf16.mxu1 %vm1202_vm3, %v4375_v43  ;;  %v4382_v60 = vrot.slane %v20306_v62, 1  ;;  %v11072_v43 = vsel %vm11013_vm8, %v11069_v39, %v11071_v24  ;;  %v20327_v39 = vld [vmem:[%s18296_s9 + $0x220] sm:$0xff]  }
 0x442   : > { %v20283_v46 = vpop.f32.mrb[12].mxu1  ;;  %16402 = vmatmul.mubr.msk.bf16.gmra.mrb[48].mxu0 %vm1202_vm3, %v11066_v44  ;;  %v4381_v44 = vsel %vm2713_vm6, %v4378_v56, %v4380_v10  ;;  %v4383_v47 = vsel %vm2713_vm6, %v4380_v10, %v4382_v60  ;;  %v4384_v56 = vrot.slane %v20327_v39, 1  ;;  %v5632_v10 = vshrl.u32 %v20004_v16, 16 }
 0x443   : > { %21171 = vst [vmem:[#allocation7_spill] sm:$0xff] %v20283_v46  ;;  %v20286_v28 = vpop.f32.mrb[13].mxu1  ;;  %16405 = vmatprep.mubr.msk.bf16.mxu0 %vm1202_vm3, %v11068_v40 }
 0x444   : > { %21172 = vst [vmem:[#allocation10_spill] sm:$0xff] %v20286_v28  ;;  %v20289_v17 = vpop.f32.mrb[14].mxu1 }
 0x445   : > { %21173 = vst [vmem:[#allocation8_spill] sm:$0xff] %v20289_v17  ;;  %v20292_v20 = vpop.f32.mrb[15].mxu1 }
 0x446   : > { %21174 = vst [vmem:[#allocation9_spill] sm:$0xff] %v20292_v20  ;;  %v18090_v20 = vld [vmem:[%s18296_s9 + $0x120] sm:$0xff]  }
 0x447   : > { %15784 = vmatmul.mubr.msk.bf16.gmra.mrb[120].mxu1 %vm1202_vm3, %v4377_v2  ;;  %v11073_v2 = vrot.slane %v18086_v0, 3  ;;  %v5635_v0 = vshll.u32 %v20004_v16, 16  ;;  %v11077_v17 = vrot.slane %v18090_v20, 3  ;;  %v5650_v20 = vshrl.u32 %v20022_v30, 16 }
 0x448   : > { %15787 = vmatprep.mubr.msk.bf16.mxu1 %vm1202_vm3, %v4379_v35  ;;  %v18087_v35 = vld [vmem:[%s18296_s9 + $0x118] sm:$0xff]  }
 0x449   : > { %v11075_v51 = vrot.slane %v18087_v35, 3 }
 0x44a   : > { %v20309_v8 = vpop.f32.mrb[16].mxu1  ;;  %16406 = vmatmul.mubr.msk.bf16.gmra.mrb[52].mxu0 %vm1202_vm3, %v11070_v29  ;;  %v11074_v29 = vsel %vm11013_vm8, %v11071_v24, %v11073_v2  ;;  %v4385_v24 = vsel %vm2713_vm6, %v4382_v60, %v4384_v56  ;;  %v5641_v60 = vshrl.u32 %v20017_v49, 16 }
 0x44b   : > { %21175 = vst [vmem:[#allocation11_spill] sm:$0xff] %v20309_v8  ;;  %v20312_v50 = vpop.f32.mrb[17].mxu1  ;;  %16409 = vmatprep.mubr.msk.bf16.mxu0 %vm1202_vm3, %v11072_v43 }
 0x44c   : > { %21176 = vst [vmem:[#allocation14_spill] sm:$0xff] %v20312_v50  ;;  %v20315_v13 = vpop.f32.mrb[18].mxu1  ;;  %v17835_v50 = vld [vmem:[%s18296_s9 + $0x230] ss:$0 sps:$4 sm:$0x11]  }
 0x44d   : > { %21177 = vst [vmem:[#allocation12_spill] sm:$0xff] %v20315_v13  ;;  %v20318_v40 = vpop.f32.mrb[19].mxu1 }
 0x44e   : > { %21178 = vst [vmem:[#allocation13_spill] sm:$0xff] %v20318_v40  ;;  %v20332_v40 = vld [vmem:[%s18296_s9 + $0x228] sm:$0xff]  }
 0x44f   : > { %15788 = vmatmul.mubr.msk.bf16.gmra.mrb[124].mxu1 %vm1202_vm3, %v4381_v44  ;;  %21179 = vst [vmem:[#allocation15_spill] sm:$0xff] %v20332_v40  ;;  %v4386_v43 = vrot.slane %v20332_v40, 1  ;;  %v11076_v44 = vsel %vm11013_vm8, %v11073_v2, %v11075_v51  ;;  %v5637_v40 = vrot.slane %v5635_v0, 2  ;;  %v18091_v2 = vld [vmem:[%s18296_s9 + $0x128] sm:$0xff]  }
 0x450   : > { %15791 = vmatprep.mubr.msk.bf16.mxu1 %vm1202_vm3, %v4383_v47  ;;  %v11079_v28 = vrot.slane %v18091_v2, 3  ;;  %v21186_v2 = vld [vmem:[#allocation6_spill] sm:$0xff] }
 0x451   : > { %v4387_v16 = vsel %vm2713_vm6, %v4384_v56, %v4386_v43  ;;  %v5653_v56 = vshll.u32 %v20022_v30, 16  ;;  %v18092_v30 = vld [vmem:[%s18296_s9 + $0x130] sm:$0xff]  }
 0x452   : > { %v20337_v35 = vpop.f32.mrb[20].mxu1  ;;  %16410 = vmatmul.mubr.msk.bf16.gmra.mrb[56].mxu0 %vm1202_vm3, %v11074_v29  ;;  %v4388_v29 = vrot.slane %v17835_v50, 1  ;;  %v11080_v0 = vsel %vm11013_vm8, %v11077_v17, %v11079_v28 }
 0x453   : > { %21180 = vst [vmem:[#allocation18_spill] sm:$0xff] %v20337_v35  ;;  %v20340_v47 = vpop.f32.mrb[21].mxu1  ;;  %16413 = vmatprep.mubr.msk.bf16.mxu0 %vm1202_vm3, %v11076_v44  ;;  %v5634_v35 = vrot.slane %v5632_v10, 1  ;;  %v11078_v44 = vsel %vm11013_vm8, %v11075_v51, %v11077_v17  ;;  %v5652_v17 = vrot.slane %v5650_v20, 1  ;;  %v5671_v20 = vshll.u32 %v20040_v36, 16 }
 0x454   : > { %21181 = vst [vmem:[#allocation16_spill] sm:$0xff] %v20340_v47  ;;  %v20343_v13 = vpop.f32.mrb[22].mxu1  ;;  %v5655_v47 = vrot.slane %v5653_v56, 2 }
 0x455   : > { %21182 = vst [vmem:[#allocation17_spill] sm:$0xff] %v20343_v13  ;;  %v20347_v8 = vpop.f32.mrb[23].mxu1  ;;  %v5638_v13 = vor.u32 %v5637_v40, %v5634_v35  ;;  %v11081_v35 = vrot.slane %v18092_v30, 3 }
 0x456   : > { %21183 = vst [vmem:[#allocation19_spill] sm:$0xff] %v20347_v8  ;;  %v5644_v8 = vshll.u32 %v20017_v49, 16  ;;  %v4389_v49 = vsel %vm2713_vm6, %v4386_v43, %v4388_v29  ;;  %v5662_v29 = vshll.u32 %v20035_v32, 16 }
 0x457   : > { %15792 = vmatmul.mubr.msk.bf16.gmra.mrb[128].mxu1 %vm1202_vm3, %v4385_v24 }
 0x458   : > { %15795 = vmatprep.mubr.msk.bf16.mxu1 %vm1202_vm3, %v4387_v16  ;;  %v5643_v16 = vrot.slane %v5641_v60, 1  ;;  %v5646_v51 = vrot.slane %v5644_v8, 2  ;;  %v5659_v8 = vshrl.u32 %v20035_v32, 16  ;;  %v11082_v60 = vsel %vm11013_vm8, %v11079_v28, %v11081_v35 }
 0x459   : > { %v5664_v28 = vrot.slane %v5662_v29, 2 }
 0x45a   : > { %v20360_v10 = vpop.f32.mrb[24].mxu1  ;;  %16414 = vmatmul.mubr.msk.bf16.gmra.mrb[60].mxu0 %vm1202_vm3, %v11078_v44  ;;  %v5647_v43 = vor.u32 %v5646_v51, %v5643_v16  ;;  %v5656_v44 = vor.u32 %v5655_v47, %v5652_v17  ;;  %v5661_v16 = vrot.slane %v5659_v8, 1  ;;  %v18095_v17 = vld [vmem:[%s18296_s9 + $0x148] sm:$0xff]   ;;  %v5680_v8 = vshll.u32 %v20053_v61, 16 }
 0x45b   : > { %21184 = vst [vmem:[#allocation22_spill] sm:$0xff] %v20360_v10  ;;  %v20363_v24 = vpop.f32.mrb[25].mxu1  ;;  %16417 = vmatprep.mubr.msk.bf16.mxu0 %vm1202_vm3, %v11080_v0  ;;  %v5639_v10 = vsel %vm5316_vm4, %v21186_v2, %v5638_v13  ;;  %v5668_v0 = vshrl.u32 %v20040_v36, 16  ;;  %v18094_v36 = vld [vmem:[%s18296_s9 + $0x140] sm:$0xff]  }
 0x45c   : > { %21185 = vst [vmem:[#allocation20_spill] sm:$0xff] %v20363_v24  ;;  %v20366_v50 = vpop.f32.mrb[26].mxu1  ;;  %v18093_v24 = vld [vmem:[%s18296_s9 + $0x138] sm:$0xff]   ;;  %v5648_v32 = vsel %vm5316_vm4, %v5638_v13, %v5647_v43  ;;  %v11085_v51 = vrot.slane %v18094_v36, 3  ;;  %v5657_v30 = vsel %vm5316_vm4, %v5647_v43, %v5656_v44  ;;  %v5677_v13 = vshrl.u32 %v20053_v61, 16 }
 0x45d   : > { %v20369_v40 = vpop.f32.mrb[27].mxu1  ;;  %v11083_v46 = vrot.slane %v18093_v24, 3  ;;  %v5670_v2 = vrot.slane %v5668_v0, 1  ;;  %v5686_v36 = vshrl.u32 %v20058_v5, 16  ;;  %v5689_v43 = vshll.u32 %v20058_v5, 16  ;;  %v18096_v5 = vld [vmem:[%s18296_s9 + $0x150] sm:$0xff]  }
 0x45f   : > { %15796 = vmatmul.mubr.msk.bf16.gmra.mrb[132].mxu1 %vm1202_vm3, %v4389_v49  ;;  %v11084_v24 = vsel %vm11013_vm8, %v11081_v35, %v11083_v46  ;;  %v5673_v35 = vrot.slane %v5671_v20, 2  ;;  %v11086_v29 = vsel %vm11013_vm8, %v11083_v46, %v11085_v51  ;;  %v5682_v46 = vrot.slane %v5680_v8, 2 }
 0x460   : > { %15869 = vmatprep.mubr.msk.bf16.mxu1 %vm1202_vm3, %v5639_v10 }
 0x462   : > { %v20383_v56 = vpop.f32.mrb[28].mxu1  ;;  %16418 = vmatmul.mubr.msk.bf16.gmra.mrb[64].mxu0 %vm1202_vm3, %v11082_v60  ;;  %v5665_v60 = vor.u32 %v5664_v28, %v5661_v16  ;;  %v5679_v28 = vrot.slane %v5677_v13, 1  ;;  %v5698_v13 = vshll.u32 %v20071_v3, 16 }
 0x463   : > { %v20386_v49 = vpop.f32.mrb[29].mxu1  ;;  %16421 = vmatprep.mubr.msk.bf16.mxu0 %vm1202_vm3, %v11084_v24  ;;  %v5674_v24 = vor.u32 %v5673_v35, %v5670_v2  ;;  %v11089_v2 = vrot.slane %v18096_v5, 3  ;;  %v5704_v5 = vshrl.u32 %v20076_v55, 16 }
 0x464   : > { %21187 = vst [vmem:[#allocation21_spill] sm:$0xff] %v20386_v49  ;;  %v20389_v10 = vpop.f32.mrb[30].mxu1  ;;  %v11087_v49 = vrot.slane %v18095_v17, 3  ;;  %v5666_v61 = vsel %vm5316_vm4, %v5656_v44, %v5665_v60  ;;  %v5688_v17 = vrot.slane %v5686_v36, 1  ;;  %v5695_v44 = vshrl.u32 %v20071_v3, 16 }
 0x465   : > { %v20392_v47 = vpop.f32.mrb[31].mxu1  ;;  %v5675_v35 = vsel %vm5316_vm4, %v5665_v60, %v5674_v24  ;;  %v5707_v60 = vshll.u32 %v20076_v55, 16  ;;  %v18098_v55 = vld [vmem:[%s18296_s9 + $0x160] sm:$0xff]  }
 0x466   : > { %v11088_v20 = vsel %vm11013_vm8, %v11085_v51, %v11087_v49  ;;  %v5691_v51 = vrot.slane %v5689_v43, 2  ;;  %v11090_v8 = vsel %vm11013_vm8, %v11087_v49, %v11089_v2  ;;  %v5700_v49 = vrot.slane %v5698_v13, 2 }
 0x467   : > { %15870 = vmatmul.mubr.msk.bf16.vlgmr.msra.gmra.mrb[68].mxu1 %vm1202_vm3, %v5648_v32 }
 0x468   : > { %15873 = vmatprep.mubr.msk.bf16.mxu1 %vm1202_vm3, %v5657_v30 }
 0x46a   : > { %v20405_v0 = vpop.f32.mrb[32].mxu1  ;;  %16422 = vmatmul.mubr.msk.bf16.gmra.mrb[68].mxu0 %vm1202_vm3, %v11086_v29  ;;  %v5683_v29 = vor.u32 %v5682_v46, %v5679_v28  ;;  %v5697_v28 = vrot.slane %v5695_v44, 1  ;;  %v5716_v44 = vshll.u32 %v20089_v41, 16 }
 0x46b   : > { %21188 = vst [vmem:[#allocation23_spill] sm:$0xff] %v20405_v0  ;;  %v20408_v32 = vpop.f32.mrb[33].mxu1  ;;  %16425 = vmatprep.mubr.msk.bf16.mxu0 %vm1202_vm3, %v11088_v20  ;;  %v18097_v0 = vld [vmem:[%s18296_s9 + $0x158] sm:$0xff]   ;;  %v5692_v20 = vor.u32 %v5691_v51, %v5688_v17  ;;  %v5706_v51 = vrot.slane %v5704_v5, 1 }
 0x46c   : > { %21189 = vst [vmem:[#allocation26_spill] sm:$0xff] %v20408_v32  ;;  %v20411_v16 = vpop.f32.mrb[34].mxu1  ;;  %v11091_v32 = vrot.slane %v18097_v0, 3  ;;  %v5684_v3 = vsel %vm5316_vm4, %v5674_v24, %v5683_v29  ;;  %v5713_v24 = vshrl.u32 %v20089_v41, 16 }
 0x46d   : > { %v20414_v30 = vpop.f32.mrb[35].mxu1  ;;  %v5693_v17 = vsel %vm5316_vm4, %v5683_v29, %v5692_v20  ;;  %v5725_v29 = vshll.u32 %v20094_v42, 16 }
 0x46e   : > { %v11092_v43 = vsel %vm11013_vm8, %v11089_v2, %v11091_v32  ;;  %v5709_v2 = vrot.slane %v5707_v60, 2 }
 0x46f   : > { %15874 = vmatmul.mubr.msk.bf16.gmra.mrb[72].mxu1 %vm1202_vm3, %v5666_v61 }
 0x470   : > { %15877 = vmatprep.mubr.msk.bf16.mxu1 %vm1202_vm3, %v5675_v35  ;;  %v11093_v35 = vrot.slane %v18098_v55, 3  ;;  %v5722_v55 = vshrl.u32 %v20094_v42, 16  ;;  %v18100_v42 = vld [vmem:[%s18296_s9 + $0x170] sm:$0xff]  }
 0x472   : > { %v20427_v36 = vpop.f32.mrb[36].mxu1  ;;  %16426 = vmatmul.mubr.msk.bf16.gmra.mrb[72].mxu0 %vm1202_vm3, %v11090_v8  ;;  %v5701_v8 = vor.u32 %v5700_v49, %v5697_v28  ;;  %v11094_v13 = vsel %vm11013_vm8, %v11091_v32, %v11093_v35  ;;  %v5715_v28 = vrot.slane %v5713_v24, 1  ;;  %v5718_v32 = vrot.slane %v5716_v44, 2 }
 0x473   : > { %21190 = vst [vmem:[#allocation24_spill] sm:$0xff] %v20427_v36  ;;  %v20430_v0 = vpop.f32.mrb[37].mxu1  ;;  %16429 = vmatprep.mubr.msk.bf16.mxu0 %vm1202_vm3, %v11092_v43  ;;  %v18099_v36 = vld [vmem:[%s18296_s9 + $0x168] sm:$0xff]   ;;  %v5710_v43 = vor.u32 %v5709_v2, %v5706_v51  ;;  %v5724_v2 = vrot.slane %v5722_v55, 1  ;;  %v5734_v24 = vshll.u32 %v20107_v31, 16 }
 0x474   : > { %21191 = vst [vmem:[#allocation25_spill] sm:$0xff] %v20430_v0  ;;  %v20433_v61 = vpop.f32.mrb[38].mxu1  ;;  %v11095_v0 = vrot.slane %v18099_v36, 3  ;;  %v5702_v41 = vsel %vm5316_vm4, %v5692_v20, %v5701_v8  ;;  %v5731_v20 = vshrl.u32 %v20107_v31, 16 }
 0x475   : > { %v20436_v46 = vpop.f32.mrb[39].mxu1  ;;  %v5711_v51 = vsel %vm5316_vm4, %v5701_v8, %v5710_v43  ;;  %v5743_v8 = vshll.u32 %v20112_v4, 16 }
 0x476   : > { %v11096_v60 = vsel %vm11013_vm8, %v11093_v35, %v11095_v0  ;;  %v5727_v35 = vrot.slane %v5725_v29, 2 }
 0x477   : > { %15878 = vmatmul.mubr.msk.bf16.gmra.mrb[76].mxu1 %vm1202_vm3, %v5684_v3 }
 0x478   : > { %15881 = vmatprep.mubr.msk.bf16.mxu1 %vm1202_vm3, %v5693_v17  ;;  %v11097_v17 = vrot.slane %v18100_v42, 3  ;;  %v5740_v42 = vshrl.u32 %v20112_v4, 16  ;;  %v18102_v4 = vld [vmem:[%s18296_s9 + $0x180] sm:$0xff]  }
 0x47a   : > { %v20449_v5 = vpop.f32.mrb[40].mxu1  ;;  %16430 = vmatmul.mubr.msk.bf16.gmra.mrb[76].mxu0 %vm1202_vm3, %v11094_v13  ;;  %v5719_v13 = vor.u32 %v5718_v32, %v5715_v28  ;;  %v11098_v44 = vsel %vm11013_vm8, %v11095_v0, %v11097_v17  ;;  %v5733_v28 = vrot.slane %v5731_v20, 1  ;;  %v5736_v0 = vrot.slane %v5734_v24, 2 }
 0x47b   : > { %21192 = vst [vmem:[#allocation27_spill] sm:$0xff] %v20449_v5  ;;  %v20452_v36 = vpop.f32.mrb[41].mxu1  ;;  %16433 = vmatprep.mubr.msk.bf16.mxu0 %vm1202_vm3, %v11096_v60  ;;  %v18101_v5 = vld [vmem:[%s18296_s9 + $0x178] sm:$0xff]   ;;  %v5728_v60 = vor.u32 %v5727_v35, %v5724_v2  ;;  %v5742_v35 = vrot.slane %v5740_v42, 1  ;;  %v5752_v20 = vshll.u32 %v20125_v15, 16 }
 0x47c   : > { %21193 = vst [vmem:[#allocation30_spill] sm:$0xff] %v20452_v36  ;;  %v20455_v3 = vpop.f32.mrb[42].mxu1  ;;  %v11099_v36 = vrot.slane %v18101_v5, 3  ;;  %v5720_v31 = vsel %vm5316_vm4, %v5710_v43, %v5719_v13  ;;  %v5749_v43 = vshrl.u32 %v20125_v15, 16 }
 0x47d   : > { %v20458_v49 = vpop.f32.mrb[43].mxu1  ;;  %v5729_v2 = vsel %vm5316_vm4, %v5719_v13, %v5728_v60  ;;  %v5761_v13 = vshll.u32 %v20130_v7, 16 }
 0x47e   : > { %v11100_v29 = vsel %vm11013_vm8, %v11097_v17, %v11099_v36  ;;  %v5745_v17 = vrot.slane %v5743_v8, 2 }
 0x47f   : > { %15882 = vmatmul.mubr.msk.bf16.gmra.mrb[80].mxu1 %vm1202_vm3, %v5702_v41 }
 0x480   : > { %15885 = vmatprep.mubr.msk.bf16.mxu1 %vm1202_vm3, %v5711_v51  ;;  %v11101_v51 = vrot.slane %v18102_v4, 3  ;;  %v5758_v4 = vshrl.u32 %v20130_v7, 16  ;;  %v18104_v7 = vld [vmem:[%s18296_s9 + $0x190] sm:$0xff]  }
 0x482   : > { %v20471_v55 = vpop.f32.mrb[44].mxu1  ;;  %16434 = vmatmul.mubr.msk.bf16.gmra.mrb[80].mxu0 %vm1202_vm3, %v11098_v44  ;;  %v5737_v44 = vor.u32 %v5736_v0, %v5733_v28  ;;  %v11102_v24 = vsel %vm11013_vm8, %v11099_v36, %v11101_v51  ;;  %v5751_v28 = vrot.slane %v5749_v43, 1  ;;  %v5754_v36 = vrot.slane %v5752_v20, 2 }
 0x483   : > { %21194 = vst [vmem:[#allocation28_spill] sm:$0xff] %v20471_v55  ;;  %v20474_v5 = vpop.f32.mrb[45].mxu1  ;;  %16437 = vmatprep.mubr.msk.bf16.mxu0 %vm1202_vm3, %v11100_v29  ;;  %v18103_v55 = vld [vmem:[%s18296_s9 + $0x188] sm:$0xff]   ;;  %v5746_v29 = vor.u32 %v5745_v17, %v5742_v35  ;;  %v5760_v17 = vrot.slane %v5758_v4, 1  ;;  %v5770_v43 = vshll.u32 %v20143_v58, 16 }
 0x484   : > { %21195 = vst [vmem:[#allocation29_spill] sm:$0xff] %v20474_v5  ;;  %v20477_v41 = vpop.f32.mrb[46].mxu1  ;;  %v11103_v5 = vrot.slane %v18103_v55, 3  ;;  %v5738_v15 = vsel %vm5316_vm4, %v5728_v60, %v5737_v44  ;;  %v5767_v60 = vshrl.u32 %v20143_v58, 16 }
 0x485   : > { %v20480_v32 = vpop.f32.mrb[47].mxu1  ;;  %v5747_v35 = vsel %vm5316_vm4, %v5737_v44, %v5746_v29  ;;  %v5779_v44 = vshll.u32 %v20148_v45, 16 }
 0x486   : > { %v11104_v8 = vsel %vm11013_vm8, %v11101_v51, %v11103_v5  ;;  %v5763_v51 = vrot.slane %v5761_v13, 2 }
 0x487   : > { %15886 = vmatmul.mubr.msk.bf16.gmra.mrb[84].mxu1 %vm1202_vm3, %v5720_v31 }
 0x488   : > { %15889 = vmatprep.mubr.msk.bf16.mxu1 %vm1202_vm3, %v5729_v2  ;;  %v11105_v2 = vrot.slane %v18104_v7, 3  ;;  %v5776_v7 = vshrl.u32 %v20148_v45, 16  ;;  %v18106_v45 = vld [vmem:[%s18296_s9 + $0x1a0] sm:$0xff]  }
 0x48a   : > { %v20493_v42 = vpop.f32.mrb[48].mxu1  ;;  %16438 = vmatmul.mubr.msk.bf16.gmra.mrb[84].mxu0 %vm1202_vm3, %v11102_v24  ;;  %v5755_v24 = vor.u32 %v5754_v36, %v5751_v28  ;;  %v11106_v20 = vsel %vm11013_vm8, %v11103_v5, %v11105_v2  ;;  %v5769_v28 = vrot.slane %v5767_v60, 1  ;;  %v5772_v5 = vrot.slane %v5770_v43, 2 }
 0x48b   : > { %21196 = vst [vmem:[#allocation31_spill] sm:$0xff] %v20493_v42  ;;  %v20496_v55 = vpop.f32.mrb[49].mxu1  ;;  %16441 = vmatprep.mubr.msk.bf16.mxu0 %vm1202_vm3, %v11104_v8  ;;  %v18105_v42 = vld [vmem:[%s18296_s9 + $0x198] sm:$0xff]   ;;  %v5764_v8 = vor.u32 %v5763_v51, %v5760_v17  ;;  %v5778_v51 = vrot.slane %v5776_v7, 1  ;;  %v5788_v60 = vshll.u32 %v20161_v11, 16 }
 0x48c   : > { %21197 = vst [vmem:[#allocation34_spill] sm:$0xff] %v20496_v55  ;;  %v20499_v31 = vpop.f32.mrb[50].mxu1  ;;  %v11107_v55 = vrot.slane %v18105_v42, 3  ;;  %v5756_v58 = vsel %vm5316_vm4, %v5746_v29, %v5755_v24  ;;  %v5785_v29 = vshrl.u32 %v20161_v11, 16 }
 0x48d   : > { %v20502_v0 = vpop.f32.mrb[51].mxu1  ;;  %v5765_v17 = vsel %vm5316_vm4, %v5755_v24, %v5764_v8  ;;  %v5797_v24 = vshll.u32 %v20166_v54, 16 }
 0x48e   : > { %v11108_v13 = vsel %vm11013_vm8, %v11105_v2, %v11107_v55  ;;  %v5781_v2 = vrot.slane %v5779_v44, 2 }
 0x48f   : > { %15890 = vmatmul.mubr.msk.bf16.gmra.mrb[88].mxu1 %vm1202_vm3, %v5738_v15 }
 0x490   : > { %15893 = vmatprep.mubr.msk.bf16.mxu1 %vm1202_vm3, %v5747_v35  ;;  %v11109_v35 = vrot.slane %v18106_v45, 3  ;;  %v5794_v45 = vshrl.u32 %v20166_v54, 16  ;;  %v18108_v54 = vld [vmem:[%s18296_s9 + $0x1b0] sm:$0xff]  }
 0x492   : > { %v20515_v4 = vpop.f32.mrb[52].mxu1  ;;  %16442 = vmatmul.mubr.msk.bf16.gmra.mrb[88].mxu0 %vm1202_vm3, %v11106_v20  ;;  %v5773_v20 = vor.u32 %v5772_v5, %v5769_v28  ;;  %v11110_v43 = vsel %vm11013_vm8, %v11107_v55, %v11109_v35  ;;  %v5787_v28 = vrot.slane %v5785_v29, 1  ;;  %v5790_v55 = vrot.slane %v5788_v60, 2 }
 0x493   : > { %21198 = vst [vmem:[#allocation32_spill] sm:$0xff] %v20515_v4  ;;  %v20518_v42 = vpop.f32.mrb[53].mxu1  ;;  %16445 = vmatprep.mubr.msk.bf16.mxu0 %vm1202_vm3, %v11108_v13  ;;  %v18107_v4 = vld [vmem:[%s18296_s9 + $0x1a8] sm:$0xff]   ;;  %v5782_v13 = vor.u32 %v5781_v2, %v5778_v51  ;;  %v5796_v2 = vrot.slane %v5794_v45, 1  ;;  %v5806_v29 = vshll.u32 %v20179_v9, 16 }
 0x494   : > { %21199 = vst [vmem:[#allocation33_spill] sm:$0xff] %v20518_v42  ;;  %v20521_v15 = vpop.f32.mrb[54].mxu1  ;;  %v11111_v42 = vrot.slane %v18107_v4, 3  ;;  %v5774_v11 = vsel %vm5316_vm4, %v5764_v8, %v5773_v20  ;;  %v5803_v8 = vshrl.u32 %v20179_v9, 16 }
 0x495   : > { %v20524_v36 = vpop.f32.mrb[55].mxu1  ;;  %v5783_v51 = vsel %vm5316_vm4, %v5773_v20, %v5782_v13  ;;  %v5815_v20 = vshll.u32 %v20184_v23, 16 }
 0x496   : > { %v11112_v44 = vsel %vm11013_vm8, %v11109_v35, %v11111_v42  ;;  %v5799_v35 = vrot.slane %v5797_v24, 2 }
 0x497   : > { %15894 = vmatmul.mubr.msk.bf16.gmra.mrb[92].mxu1 %vm1202_vm3, %v5756_v58 }
 0x498   : > { %15897 = vmatprep.mubr.msk.bf16.mxu1 %vm1202_vm3, %v5765_v17  ;;  %v11113_v17 = vrot.slane %v18108_v54, 3  ;;  %v5812_v54 = vshrl.u32 %v20184_v23, 16  ;;  %v18110_v23 = vld [vmem:[%s18296_s9 + $0x1c0] sm:$0xff]  }
 0x49a   : > { %v20537_v7 = vpop.f32.mrb[56].mxu1  ;;  %16446 = vmatmul.mubr.msk.bf16.gmra.mrb[92].mxu0 %vm1202_vm3, %v11110_v43  ;;  %v5791_v43 = vor.u32 %v5790_v55, %v5787_v28  ;;  %v11114_v60 = vsel %vm11013_vm8, %v11111_v42, %v11113_v17  ;;  %v5805_v28 = vrot.slane %v5803_v8, 1  ;;  %v5808_v42 = vrot.slane %v5806_v29, 2 }
 0x49b   : > { %21200 = vst [vmem:[#allocation35_spill] sm:$0xff] %v20537_v7  ;;  %v20540_v4 = vpop.f32.mrb[57].mxu1  ;;  %16449 = vmatprep.mubr.msk.bf16.mxu0 %vm1202_vm3, %v11112_v44  ;;  %v18109_v7 = vld [vmem:[%s18296_s9 + $0x1b8] sm:$0xff]   ;;  %v5800_v44 = vor.u32 %v5799_v35, %v5796_v2  ;;  %v5814_v35 = vrot.slane %v5812_v54, 1  ;;  %v5824_v8 = vshll.u32 %v20197_v57, 16 }
 0x49c   : > { %21201 = vst [vmem:[#allocation38_spill] sm:$0xff] %v20540_v4  ;;  %v20543_v58 = vpop.f32.mrb[58].mxu1  ;;  %v11115_v4 = vrot.slane %v18109_v7, 3  ;;  %v5792_v9 = vsel %vm5316_vm4, %v5782_v13, %v5791_v43  ;;  %v5821_v13 = vshrl.u32 %v20197_v57, 16 }
 0x49d   : > { %v20546_v5 = vpop.f32.mrb[59].mxu1  ;;  %v5801_v2 = vsel %vm5316_vm4, %v5791_v43, %v5800_v44  ;;  %v5833_v43 = vshll.u32 %v20202_v19, 16 }
 0x49e   : > { %v11116_v24 = vsel %vm11013_vm8, %v11113_v17, %v11115_v4  ;;  %v5817_v17 = vrot.slane %v5815_v20, 2 }
 0x49f   : > { %15898 = vmatmul.mubr.msk.bf16.gmra.mrb[96].mxu1 %vm1202_vm3, %v5774_v11 }
 0x4a0   : > { %15901 = vmatprep.mubr.msk.bf16.mxu1 %vm1202_vm3, %v5783_v51  ;;  %v11117_v51 = vrot.slane %v18110_v23, 3  ;;  %v5830_v23 = vshrl.u32 %v20202_v19, 16  ;;  %v18112_v19 = vld [vmem:[%s18296_s9 + $0x1d0] sm:$0xff]  }
 0x4a2   : > { %v20559_v45 = vpop.f32.mrb[60].mxu1  ;;  %16450 = vmatmul.mubr.msk.bf16.gmra.mrb[96].mxu0 %vm1202_vm3, %v11114_v60  ;;  %v5809_v60 = vor.u32 %v5808_v42, %v5805_v28  ;;  %v11118_v29 = vsel %vm11013_vm8, %v11115_v4, %v11117_v51  ;;  %v5823_v28 = vrot.slane %v5821_v13, 1  ;;  %v5826_v4 = vrot.slane %v5824_v8, 2 }
 0x4a3   : > { %21202 = vst [vmem:[#allocation36_spill] sm:$0xff] %v20559_v45  ;;  %v20562_v7 = vpop.f32.mrb[61].mxu1  ;;  %16453 = vmatprep.mubr.msk.bf16.mxu0 %vm1202_vm3, %v11116_v24  ;;  %v18111_v45 = vld [vmem:[%s18296_s9 + $0x1c8] sm:$0xff]   ;;  %v5818_v24 = vor.u32 %v5817_v17, %v5814_v35  ;;  %v5832_v17 = vrot.slane %v5830_v23, 1  ;;  %v5851_v23 = vshll.u32 %v20228_v59, 16 }
 0x4a4   : > { %21203 = vst [vmem:[#allocation37_spill] sm:$0xff] %v20562_v7  ;;  %v20565_v11 = vpop.f32.mrb[62].mxu1  ;;  %v11119_v7 = vrot.slane %v18111_v45, 3  ;;  %v5810_v57 = vsel %vm5316_vm4, %v5800_v44, %v5809_v60  ;;  %v5827_v44 = vor.u32 %v5826_v4, %v5823_v28 }
 0x4a5   : > { %v20568_v55 = vpop.f32.mrb[63].mxu1  ;;  %v5819_v35 = vsel %vm5316_vm4, %v5809_v60, %v5818_v24  ;;  %v5848_v60 = vshrl.u32 %v20228_v59, 16 }
 0x4a6   : > { %v11120_v20 = vsel %vm11013_vm8, %v11117_v51, %v11119_v7  ;;  %v5835_v51 = vrot.slane %v5833_v43, 2 }
 0x4a7   : > { %15902 = vmatmul.mubr.msk.bf16.gmra.mrb[100].mxu1 %vm1202_vm3, %v5792_v9  ;;  %v5850_v4 = vrot.slane %v5848_v60, 1  ;;  %v5869_v60 = vshll.u32 %v20254_v21, 16 }
 0x4a8   : > { %15905 = vmatprep.mubr.msk.bf16.mxu1 %vm1202_vm3, %v5801_v2  ;;  %v11121_v2 = vrot.slane %v18112_v19, 3  ;;  %v5836_v8 = vor.u32 %v5835_v51, %v5832_v17  ;;  %v5853_v19 = vrot.slane %v5851_v23, 2  ;;  %v5860_v51 = vshll.u32 %v20249_v27, 16 }
 0x4aa   : > { %v20581_v54 = vpop.f32.mrb[64].mxu1  ;;  %16454 = vmatmul.mubr.msk.bf16.gmra.mrb[100].mxu0 %vm1202_vm3, %v11118_v29  ;;  %v5839_v29 = vshrl.u32 %v20223_v12, 16  ;;  %v11122_v13 = vsel %vm11013_vm8, %v11119_v7, %v11121_v2  ;;  %v5837_v7 = vsel %vm5316_vm4, %v5827_v44, %v5836_v8 }
 0x4ab   : > { %21204 = vst [vmem:[#allocation39_spill] sm:$0xff] %v20581_v54  ;;  %v20584_v45 = vpop.f32.mrb[65].mxu1  ;;  %16457 = vmatprep.mubr.msk.bf16.mxu0 %vm1202_vm3, %v11120_v20  ;;  %v18113_v54 = vld [vmem:[%s18296_s9 + $0x1d8] sm:$0xff]  }
 0x4ac   : > { %21205 = vst [vmem:[#allocation40_spill] sm:$0xff] %v20584_v45  ;;  %v20587_v9 = vpop.f32.mrb[66].mxu1  ;;  %v11123_v45 = vrot.slane %v18113_v54, 3  ;;  %v5841_v54 = vrot.slane %v5839_v29, 1 }
 0x4ad   : > { %21206 = vst [vmem:[#allocation41_spill] sm:$0xff] %v20587_v9  ;;  %v20590_v42 = vpop.f32.mrb[67].mxu1  ;;  %v5842_v9 = vshll.u32 %v20223_v12, 16  ;;  %v5828_v12 = vsel %vm5316_vm4, %v5818_v24, %v5827_v44  ;;  %v5857_v24 = vshrl.u32 %v20249_v27, 16  ;;  %v5854_v27 = vor.u32 %v5853_v19, %v5850_v4  ;;  %v20639_v19 = vld [vmem:[%s18296_s9 + $0x1f8] sm:$0xff]  }
 0x4ae   : > { %v11124_v43 = vsel %vm11013_vm8, %v11121_v2, %v11123_v45 }
 0x4af   : > { %15906 = vmatmul.mubr.msk.bf16.gmra.mrb[104].mxu1 %vm1202_vm3, %v5810_v57  ;;  %v5844_v20 = vrot.slane %v5842_v9, 2  ;;  %v18114_v57 = vld [vmem:[%s18296_s9 + $0x1e0] sm:$0xff]  }
 0x4b0   : > { %15909 = vmatprep.mubr.msk.bf16.mxu1 %vm1202_vm3, %v5819_v35  ;;  %v11125_v28 = vrot.slane %v18114_v57, 3  ;;  %v18115_v35 = vld [vmem:[%s18296_s9 + $0x1e8] sm:$0xff]   ;;  %v20613_v9 = vld [vmem:[%s21039_s2] ss:$0 sm:$0xff] }
 0x4b1   : > { %v11127_v17 = vrot.slane %v18115_v35, 3  ;;  %v5845_v59 = vor.u32 %v5844_v20, %v5841_v54  ;;  %v18116_v20 = vld [vmem:[%s18296_s9 + $0x1f0] sm:$0xff]  }
 0x4b2   : > { %16458 = vmatmul.mubr.msk.bf16.gmra.mrb[104].mxu0 %vm1202_vm3, %v11122_v13  ;;  %v5866_v13 = vshrl.u32 %v20254_v21, 16  ;;  %v11126_v54 = vsel %vm11013_vm8, %v11123_v45, %v11125_v28  ;;  %v5859_v45 = vrot.slane %v5857_v24, 1  ;;  %v5875_v24 = vshrl.u32 %v20275_v38, 16 }
 0x4b3   : > { %16461 = vmatprep.mubr.msk.bf16.mxu0 %vm1202_vm3, %v11124_v43 }
 0x4b5   : > { %v16355_v2 = vpop.f32.mrb[0].mxu0 }
 0x4b6   : > { %v16491_v29 = vadd.f32 %v16355_v2, %v20205_v34  ;;  %v11392_v44 = vpop.f32.mrb[1].mxu0  ;;  %v5846_v2 = vsel %vm5316_vm4, %v5836_v8, %v5845_v59 }
 0x4b7   : > { %15910 = vmatmul.mubr.msk.bf16.gmra.mrb[108].mxu1 %vm1202_vm3, %v5828_v12  ;;  %v16492_v23 = vadd.f32 %v11392_v44, %v20208_v37  ;;  %v16356_v43 = vpop.f32.mrb[2].mxu0  ;;  %v11129_v12 = vrot.slane %v18116_v20, 3  ;;  %v5862_v44 = vrot.slane %v5860_v51, 2  ;;  %v5878_v51 = vshll.u32 %v20275_v38, 16 }
 0x4b8   : > { %15913 = vmatprep.mubr.msk.bf16.mxu1 %vm1202_vm3, %v5837_v7  ;;  %v12080_v34 = vadd.f32 %v16491_v29, %v20613_v9  ;;  %v16493_v57 = vadd.f32 %v16356_v43, %v20211_v52  ;;  %v11395_v35 = vpop.f32.mrb[3].mxu0  ;;  %v11128_v7 = vsel %vm11013_vm8, %v11125_v28, %v11127_v17  ;;  %v11131_v52 = vrot.slane %v20639_v19, 3 }
 0x4b9   : > { %v12078_v21 = vadd.f32 %v16492_v23, %v20613_v9  ;;  %v16494_v37 = vadd.f32 %v11395_v35, %v20214_v1  ;;  %v5868_v28 = vrot.slane %v5866_v13, 1  ;;  %v5871_v29 = vrot.slane %v5869_v60, 2 }
 0x4ba   : > { %v12081_v4 = vadd.f32 %v16493_v57, %v20613_v9  ;;  %16462 = vmatmul.mubr.msk.bf16.gmra.mrb[108].mxu0 %vm1202_vm3, %v11126_v54  ;;  %v5855_v23 = vsel %vm5316_vm4, %v5845_v59, %v5854_v27  ;;  %v12216_v43 = vmax.f32 %v12080_v34, 0.0  ;;  %v11130_v13 = vsel %vm11013_vm8, %v11127_v17, %v11129_v12 }
 0x4bb   : > { %v12079_v8 = vadd.f32 %v16494_v37, %v20613_v9  ;;  %16465 = vmatprep.mubr.msk.bf16.mxu0 %vm1202_vm3, %v11128_v7  ;;  %v12214_v20 = vmax.f32 %v12078_v21, 0.0  ;;  %v5863_v60 = vor.u32 %v5862_v44, %v5859_v45  ;;  %v11132_v59 = vsel %vm11013_vm8, %v11129_v12, %v11131_v52 }
 0x4bc   : > { %v12217_v1 = vmax.f32 %v12081_v4, 0.0  ;;  %v5872_v38 = vor.u32 %v5871_v29, %v5868_v28  ;;  %v5887_v17 = vshll.u32 %v20280_v53, 16  ;;  %v5877_v44 = vrot.slane %v5875_v24, 1 }
 0x4bd   : > { %v12215_v54 = vmax.f32 %v12079_v8, 0.0  ;;  %v16359_v57 = vpop.f32.mrb[4].mxu0  ;;  %v5880_v28 = vrot.slane %v5878_v51, 2  ;;  %v5864_v8 = vsel %vm5316_vm4, %v5854_v27, %v5863_v60  ;;  %v5893_v27 = vshrl.u32 %v20301_v18, 16 }
 0x4be   : > { %v14227_v35 = vpack.c.bf16 %v12217_v1, %v12216_v43  ;;  %v16495_v7 = vadd.f32 %v16359_v57, %v20231_v22  ;;  %v11408_v37 = vpop.f32.mrb[5].mxu0  ;;  %v5889_v51 = vrot.slane %v5887_v17, 2  ;;  %v18119_v57 = vld [vmem:[%s18296_s9 + $0x208] sm:$0xff]  }
 0x4bf   : > { %15914 = vmatmul.mubr.msk.bf16.gmra.mrb[112].mxu1 %vm1202_vm3, %v5846_v2  ;;  %v14222_v34 = vpack.c.bf16 %v12215_v54, %v12214_v20  ;;  %v16496_v21 = vadd.f32 %v11408_v37, %v20234_v14  ;;  %v16360_v4 = vpop.f32.mrb[6].mxu0  ;;  %v5884_v2 = vshrl.u32 %v20280_v53, 16 }
 0x4c0   : > { %15917 = vmatprep.mubr.msk.bf16.mxu1 %vm1202_vm3, %v5855_v23  ;;  %14559 = vst [vmem:[%s20658_s6 + $0x8] sm:$0xff] %v14227_v35   ;;  %v12084_v22 = vadd.f32 %v16495_v7, %v20613_v9  ;;  %v16497_v45 = vadd.f32 %v16360_v4, %v20237_v33  ;;  %v11411_v12 = vpop.f32.mrb[7].mxu0  ;;  %v18118_v23 = vld [vmem:[%s18296_s9 + $0x200] sm:$0xff]   ;;  %v5873_v33 = vsel %vm5316_vm4, %v5863_v60, %v5872_v38  ;;  %v5902_v4 = vshrl.u32 %v20306_v62, 16 }
 0x4c1   : > { %14223 = vst [vmem:[%s20658_s6] sm:$0xff] %v14222_v34   ;;  %v12082_v14 = vadd.f32 %v16496_v21, %v20613_v9  ;;  %v16498_v29 = vadd.f32 %v11411_v12, %v20240_v6  ;;  %v11133_v43 = vrot.slane %v18118_v23, 3  ;;  %v5886_v24 = vrot.slane %v5884_v2, 1 }
 0x4c2   : > { %v12085_v53 = vadd.f32 %v16497_v45, %v20613_v9  ;;  %16466 = vmatmul.mubr.msk.bf16.gmra.mrb[112].mxu0 %vm1202_vm3, %v11130_v13  ;;  %v12220_v20 = vmax.f32 %v12084_v22, 0.0  ;;  %v11135_v6 = vrot.slane %v18119_v57, 3  ;;  %v5881_v35 = vor.u32 %v5880_v28, %v5877_v44 }
 0x4c3   : > { %v12083_v1 = vadd.f32 %v16498_v29, %v20613_v9  ;;  %16469 = vmatprep.mubr.msk.bf16.mxu0 %vm1202_vm3, %v11132_v59  ;;  %v12218_v7 = vmax.f32 %v12082_v14, 0.0  ;;  %v5896_v34 = vshll.u32 %v20301_v18, 16  ;;  %v5905_v2 = vshll.u32 %v20306_v62, 16  ;;  %v18120_v29 = vld [vmem:[%s18296_s9 + $0x210] sm:$0xff]  }
 0x4c4   : > { %v12221_v54 = vmax.f32 %v12085_v53, 0.0  ;;  %v11134_v18 = vsel %vm11013_vm8, %v11131_v52, %v11133_v43  ;;  %v5890_v12 = vor.u32 %v5889_v51, %v5886_v24  ;;  %v11136_v14 = vsel %vm11013_vm8, %v11133_v43, %v11135_v6 }
 0x4c5   : > { %v12219_v37 = vmax.f32 %v12083_v1, 0.0  ;;  %v16363_v13 = vpop.f32.mrb[8].mxu0  ;;  %v11137_v53 = vrot.slane %v18120_v29, 3  ;;  %v5882_v19 = vsel %vm5316_vm4, %v5872_v38, %v5881_v35  ;;  %v5895_v52 = vrot.slane %v5893_v27, 1 }
 0x4c6   : > { %v14237_v59 = vpack.c.bf16 %v12221_v54, %v12220_v20  ;;  %v16499_v60 = vadd.f32 %v16363_v13, %v20257_v63  ;;  %v11424_v21 = vpop.f32.mrb[9].mxu0  ;;  %v5898_v23 = vrot.slane %v5896_v34, 2  ;;  %v5907_v1 = vrot.slane %v5905_v2, 2  ;;  %v18121_v20 = vld [vmem:[%s18296_s9 + $0x218] sm:$0xff]   ;;  %v21207_v34 = vld [vmem:[#allocation7_spill] sm:$0xff] }
 0x4c7   : > { %15918 = vmatmul.mubr.msk.bf16.gmra.mrb[116].mxu1 %vm1202_vm3, %v5864_v8  ;;  %v14232_v17 = vpack.c.bf16 %v12219_v37, %v12218_v7  ;;  %v16500_v22 = vadd.f32 %v11424_v21, %v20260_v48  ;;  %v16364_v45 = vpop.f32.mrb[10].mxu0  ;;  %v11139_v38 = vrot.slane %v18121_v20, 3  ;;  %v5911_v37 = vshrl.u32 %v20327_v39, 16 }
 0x4c8   : > { %15921 = vmatprep.mubr.msk.bf16.mxu1 %vm1202_vm3, %v5873_v33  ;;  %14561 = vst [vmem:[%s20658_s6 + $0x18] sm:$0xff] %v14237_v59   ;;  %v12088_v63 = vadd.f32 %v16499_v60, %v20613_v9  ;;  %v16501_v44 = vadd.f32 %v16364_v45, %v20263_v25  ;;  %v11427_v28 = vpop.f32.mrb[11].mxu0  ;;  %v5904_v25 = vrot.slane %v5902_v4, 1  ;;  %v5891_v33 = vsel %vm5316_vm4, %v5881_v35, %v5890_v12  ;;  %v21208_v4 = vld [vmem:[#allocation10_spill] sm:$0xff] }
 0x4c9   : > { %14560 = vst [vmem:[%s20658_s6 + $0x10] sm:$0xff] %v14232_v17   ;;  %v12086_v48 = vadd.f32 %v16500_v22, %v20613_v9  ;;  %v16502_v62 = vadd.f32 %v11427_v28, %v20266_v26  ;;  %v11138_v26 = vsel %vm11013_vm8, %v11135_v6, %v11137_v53  ;;  %v5914_v13 = vshll.u32 %v20327_v39, 16  ;;  %v21209_v22 = vld [vmem:[#allocation15_spill] sm:$0xff] }
 0x4ca   : > { %v12089_v8 = vadd.f32 %v16501_v44, %v20613_v9  ;;  %16470 = vmatmul.mubr.msk.bf16.gmra.mrb[116].mxu0 %vm1202_vm3, %v11134_v18  ;;  %v12224_v24 = vmax.f32 %v12088_v63, 0.0  ;;  %v5899_v6 = vor.u32 %v5898_v23, %v5895_v52  ;;  %v5908_v60 = vor.u32 %v5907_v1, %v5904_v25  ;;  %v21210_v63 = vld [vmem:[#allocation8_spill] sm:$0xff]  ;;  %v18122_v25 = vld [vmem:[%s18296_s9 + $0x220] sm:$0xff]  }
 0x4cb   : > { %v12087_v43 = vadd.f32 %v16502_v62, %v20613_v9  ;;  %16473 = vmatprep.mubr.msk.bf16.mxu0 %vm1202_vm3, %v11136_v14  ;;  %v12222_v54 = vmax.f32 %v12086_v48, 0.0  ;;  %v5920_v45 = vshrl.u32 %v21209_v22, 16  ;;  %v5923_v18 = vshll.u32 %v21209_v22, 16  ;;  %v21211_v48 = vld [vmem:[#allocation9_spill] sm:$0xff] }
 0x4cc   : > { %v12225_v51 = vmax.f32 %v12089_v8, 0.0  ;;  %v11140_v14 = vsel %vm11013_vm8, %v11137_v53, %v11139_v38  ;;  %v5916_v52 = vrot.slane %v5914_v13, 2  ;;  %v5900_v23 = vsel %vm5316_vm4, %v5890_v12, %v5899_v6 }
 0x4cd   : > { %v12223_v57 = vmax.f32 %v12087_v43, 0.0  ;;  %v16367_v7 = vpop.f32.mrb[12].mxu0  ;;  %v11141_v1 = vrot.slane %v18122_v25, 3  ;;  %v5909_v53 = vsel %vm5316_vm4, %v5899_v6, %v5908_v60  ;;  %v18125_v25 = vld [vmem:[%s18296_s9 + $0x230] sm:$0xff]  }
 0x4ce   : > { %v14247_v27 = vpack.c.bf16 %v12225_v51, %v12224_v24  ;;  %v16503_v35 = vadd.f32 %v16367_v7, %v21207_v34  ;;  %v11440_v59 = vpop.f32.mrb[13].mxu0  ;;  %v5925_v24 = vrot.slane %v5923_v18, 2 }
 0x4cf   : > { %15922 = vmatmul.mubr.msk.bf16.gmra.mrb[120].mxu1 %vm1202_vm3, %v5882_v19  ;;  %v14242_v21 = vpack.c.bf16 %v12223_v57, %v12222_v54  ;;  %v16504_v2 = vadd.f32 %v11440_v59, %v21208_v4  ;;  %v16368_v17 = vpop.f32.mrb[14].mxu0  ;;  %v5913_v19 = vrot.slane %v5911_v37, 1  ;;  %v18123_v54 = vld [vmem:[%s18296_s9 + $0x228] sm:$0xff]   ;;  %v18124_v59 = vld [vmem:[%s18296_s9 + $0x230] ss:$0 sps:$4 sm:$0x33]  }
 0x4d0   : > { %15925 = vmatprep.mubr.msk.bf16.mxu1 %vm1202_vm3, %v5891_v33  ;;  %14563 = vst [vmem:[%s20658_s6 + $0x28] sm:$0xff] %v14247_v27   ;;  %v12092_v39 = vadd.f32 %v16503_v35, %v20613_v9  ;;  %v16505_v44 = vadd.f32 %v16368_v17, %v21210_v63  ;;  %v11443_v28 = vpop.f32.mrb[15].mxu0  ;;  %v5922_v33 = vrot.slane %v5920_v45, 1  ;;  %v11143_v57 = vrot.slane %v18123_v54, 3  ;;  %v21212_v27 = vld [vmem:[#allocation11_spill] sm:$0xff]  ;;  %v21214_v63 = vld [vmem:[#allocation12_spill] sm:$0xff] }
 0x4d1   : > { %14562 = vst [vmem:[%s20658_s6 + $0x20] sm:$0xff] %v14242_v21   ;;  %v12090_v29 = vadd.f32 %v16504_v2, %v20613_v9  ;;  %v16506_v62 = vadd.f32 %v11443_v28, %v21211_v48  ;;  %v5917_v12 = vor.u32 %v5916_v52, %v5913_v19  ;;  %v5929_v6 = vshrl.u32 %v18124_v59, 16  ;;  %v21213_v2 = vld [vmem:[#allocation14_spill] sm:$0xff]  ;;  %v21215_v48 = vld [vmem:[#allocation13_spill] sm:$0xff] }
 0x4d2   : > { %v12093_v8 = vadd.f32 %v16505_v44, %v20613_v9  ;;  %16474 = vmatmul.mubr.msk.bf16.gmra.mrb[120].mxu0 %vm1202_vm3, %v11138_v26  ;;  %v12228_v51 = vmax.f32 %v12092_v39, 0.0  ;;  %v5932_v21 = vshll.u32 %v18124_v59, 16  ;;  %v11142_v45 = vsel %vm11013_vm8, %v11139_v38, %v11141_v1 }
 0x4d3   : > { %v12091_v43 = vadd.f32 %v16506_v62, %v20613_v9  ;;  %16477 = vmatprep.mubr.msk.bf16.mxu0 %vm1202_vm3, %v11140_v14  ;;  %v12226_v7 = vmax.f32 %v12090_v29, 0.0  ;;  %v5926_v18 = vor.u32 %v5925_v24, %v5922_v33  ;;  %v11144_v14 = vsel %vm11013_vm8, %v11141_v1, %v11143_v57  ;;  %v18126_v24 = vld [vmem:[%s18296_s9 + $0x238] sm:$0xff]  }
 0x4d4   : > { %v12229_v20 = vmax.f32 %v12093_v8, 0.0  ;;  %v5918_v38 = vsel %vm5316_vm4, %v5908_v60, %v5917_v12  ;;  %v5931_v52 = vrot.slane %v5929_v6, 1  ;;  %v5934_v8 = vrot.slane %v5932_v21, 2 }
 0x4d5   : > { %v12227_v37 = vmax.f32 %v12091_v43, 0.0  ;;  %v16371_v26 = vpop.f32.mrb[16].mxu0  ;;  %v11145_v1 = vrot.slane %v18125_v25, 3  ;;  %v5927_v43 = vsel %vm5316_vm4, %v5917_v12, %v5926_v18  ;;  %v21217_v12 = vld [vmem:[#allocation16_spill] sm:$0xff] }
 0x4d6   : > { %v14257_v13 = vpack.c.bf16 %v12229_v20, %v12228_v51  ;;  %v16507_v34 = vadd.f32 %v16371_v26, %v21212_v27  ;;  %v11456_v35 = vpop.f32.mrb[17].mxu0  ;;  %v11147_v51 = vrot.slane %v18126_v24, 3  ;;  %v5935_v27 = vor.u32 %v5934_v8, %v5931_v52 }
 0x4d7   : > { %15926 = vmatmul.mubr.msk.bf16.gmra.mrb[124].mxu1 %vm1202_vm3, %v5900_v23  ;;  %v14252_v4 = vpack.c.bf16 %v12227_v37, %v12226_v7  ;;  %v16508_v17 = vadd.f32 %v11456_v35, %v21213_v2  ;;  %v16372_v22 = vpop.f32.mrb[18].mxu0  ;;  %v21216_v37 = vld [vmem:[#allocation18_spill] sm:$0xff]  ;;  %v11146_v6 = vsel %vm11013_vm8, %v11143_v57, %v11145_v1 }
 0x4d8   : > { %15929 = vmatprep.mubr.msk.bf16.mxu1 %vm1202_vm3, %v5909_v53  ;;  %14565 = vst [vmem:[%s20658_s6 + $0x38] sm:$0xff] %v14257_v13   ;;  %v12096_v39 = vadd.f32 %v16507_v34, %v20613_v9  ;;  %v16509_v44 = vadd.f32 %v16372_v22, %v21214_v63  ;;  %v11459_v28 = vpop.f32.mrb[19].mxu0  ;;  %v11148_v22 = vsel %vm11013_vm8, %v11145_v1, %v11147_v51 }
 0x4d9   : > { %14564 = vst [vmem:[%s20658_s6 + $0x30] sm:$0xff] %v14252_v4   ;;  %v12094_v29 = vadd.f32 %v16508_v17, %v20613_v9  ;;  %v16510_v62 = vadd.f32 %v11459_v28, %v21215_v48  ;;  %v21218_v4 = vld [vmem:[#allocation17_spill] sm:$0xff]  ;;  %v5936_v28 = vsel %vm5316_vm4, %v5926_v18, %v5935_v27 }
 0x4da   : > { %v12097_v19 = vadd.f32 %v16509_v44, %v20613_v9  ;;  %16478 = vmatmul.mubr.msk.bf16.gmra.mrb[124].mxu0 %vm1202_vm3, %v11142_v45  ;;  %v12232_v53 = vmax.f32 %v12096_v39, 0.0  ;;  %v21219_v39 = vld [vmem:[#allocation19_spill] sm:$0xff] }
 0x4db   : > { %v12095_v23 = vadd.f32 %v16510_v62, %v20613_v9  ;;  %16481 = vmatprep.mubr.msk.bf16.mxu0 %vm1202_vm3, %v11144_v14  ;;  %v12230_v20 = vmax.f32 %v12094_v29, 0.0  ;;  %v18127_v14 = vld [vmem:[%s18296_s9 + $0x240] ss:$0 sps:$4 sm:$0x77]   ;;  %s17581_s9 = smul.u32 8704, %s18238_s16  ;;  %s20996_s16 = scalar_lea.sflag [#allocation3], %s161_s4 }
 0x4dc   : > { %v12233_v33 = vmax.f32 %v12097_v19, 0.0  ;;  %v11149_v29 = vrot.slane %v18127_v14, 3 }
 0x4dd   : > { %v12231_v54 = vmax.f32 %v12095_v23, 0.0  ;;  %v16375_v7 = vpop.f32.mrb[20].mxu0  ;;  %v21220_v23 = vld [vmem:[#allocation22_spill] sm:$0xff]  ;;  %s20988_s19 = scalar_lea.hbm %s21040_s3, %s17581_s9 }
 0x4de   : > { %v14267_v60 = vpack.c.bf16 %v12233_v33, %v12232_v53  ;;  %v16511_v26 = vadd.f32 %v16375_v7, %v21216_v37  ;;  %v11472_v13 = vpop.f32.mrb[21].mxu0  ;;  %v11150_v24 = vsel %vm11013_vm8, %v11147_v51, %v11149_v29 }
 0x4df   : > { %15930 = vmatmul.mubr.msk.bf16.gmra.mrb[128].mxu1 %vm1202_vm3, %v5918_v38  ;;  %v14262_v34 = vpack.c.bf16 %v12231_v54, %v12230_v20  ;;  %v16512_v35 = vadd.f32 %v11472_v13, %v21217_v12  ;;  %v16376_v59 = vpop.f32.mrb[22].mxu0 }
 0x4e0   : > { %15933 = vmatprep.mubr.msk.bf16.mxu1 %vm1202_vm3, %v5927_v43  ;;  %14567 = vst [vmem:[%s20658_s6 + $0x48] sm:$0xff] %v14267_v60   ;;  %v12100_v21 = vadd.f32 %v16511_v26, %v20613_v9  ;;  %v16513_v2 = vadd.f32 %v16376_v59, %v21218_v4  ;;  %v11475_v17 = vpop.f32.mrb[23].mxu0  ;;  %v21221_v43 = vld [vmem:[#allocation20_spill] sm:$0xff]  ;;  %v21222_v4 = vld [vmem:[#allocation21_spill] sm:$0xff] }
 0x4e1   : > { %14566 = vst [vmem:[%s20658_s6 + $0x40] sm:$0xff] %v14262_v34   ;;  %v12098_v45 = vadd.f32 %v16512_v35, %v20613_v9  ;;  %v16514_v63 = vadd.f32 %v11475_v17, %v21219_v39 }
 0x4e2   : > { %v12101_v44 = vadd.f32 %v16513_v2, %v20613_v9  ;;  %16482 = vmatmul.mubr.msk.bf16.gmra.mrb[128].mxu0 %vm1202_vm3, %v11146_v6  ;;  %v12236_v48 = vmax.f32 %v12100_v21, 0.0 }
 0x4e3   : > { %v12099_v57 = vadd.f32 %v16514_v63, %v20613_v9  ;;  %16485 = vmatprep.mubr.msk.bf16.mxu0 %vm1202_vm3, %v11148_v22  ;;  %v12234_v19 = vmax.f32 %v12098_v45, 0.0 }
 0x4e4   : > { %v12237_v62 = vmax.f32 %v12101_v44, 0.0 }
 0x4e5   : > { %v12235_v38 = vmax.f32 %v12099_v57, 0.0  ;;  %v16379_v52 = vpop.f32.mrb[24].mxu0 }
 0x4e6   : > { %v14277_v8 = vpack.c.bf16 %v12237_v62, %v12236_v48  ;;  %v16515_v25 = vadd.f32 %v16379_v52, %v21220_v23  ;;  %v11488_v1 = vpop.f32.mrb[25].mxu0 }
 0x4e7   : > { %15934 = vmatmul.mubr.msk.bf16.gmra.mrb[132].mxu1 %vm1202_vm3, %v5936_v28  ;;  %v14272_v18 = vpack.c.bf16 %v12235_v38, %v12234_v19  ;;  %v16516_v53 = vadd.f32 %v11488_v1, %v21221_v43  ;;  %v16380_v33 = vpop.f32.mrb[26].mxu0  ;;  %v21223_v19 = vld [vmem:[#allocation23_spill] sm:$0xff] }
 0x4e8   : > { %14569 = vst [vmem:[%s20658_s6 + $0x58] sm:$0xff] %v14277_v8   ;;  %v12104_v20 = vadd.f32 %v16515_v25, %v20613_v9  ;;  %v16517_v54 = vadd.f32 %v16380_v33, %v20366_v50  ;;  %v11491_v7 = vpop.f32.mrb[27].mxu0  ;;  %v21224_v8 = vld [vmem:[#allocation26_spill] sm:$0xff] }
 0x4e9   : > { %14568 = vst [vmem:[%s20658_s6 + $0x50] sm:$0xff] %v14272_v18   ;;  %v12102_v60 = vadd.f32 %v16516_v53, %v20613_v9  ;;  %v16518_v37 = vadd.f32 %v11491_v7, %v20369_v40 }
 0x4ea   : > { %v12105_v26 = vadd.f32 %v16517_v54, %v20613_v9  ;;  %16486 = vmatmul.mubr.msk.bf16.gmra.mrb[132].mxu0 %vm1202_vm3, %v11150_v24  ;;  %v12240_v51 = vmax.f32 %v12104_v20, 0.0 }
 0x4eb   : > { %v12103_v13 = vadd.f32 %v16518_v37, %v20613_v9  ;;  %v12238_v34 = vmax.f32 %v12102_v60, 0.0 }
 0x4ec   : > { %v12241_v27 = vmax.f32 %v12105_v26, 0.0 }
 0x4ed   : > { %v12239_v12 = vmax.f32 %v12103_v13, 0.0  ;;  %v16383_v35 = vpop.f32.mrb[28].mxu0  ;;  %v21225_v13 = vld [vmem:[#allocation24_spill] sm:$0xff] }
 0x4ee   : > { %v14287_v50 = vpack.c.bf16 %v12241_v27, %v12240_v51  ;;  %v16519_v59 = vadd.f32 %v16383_v35, %v20383_v56  ;;  %v11504_v6 = vpop.f32.mrb[29].mxu0 }
 0x4ef   : > { %v14282_v21 = vpack.c.bf16 %v12239_v12, %v12238_v34  ;;  %v16520_v2 = vadd.f32 %v11504_v6, %v21222_v4  ;;  %v16384_v40 = vpop.f32.mrb[30].mxu0  ;;  %v21226_v34 = vld [vmem:[#allocation25_spill] sm:$0xff] }
 0x4f0   : > { %14571 = vst [vmem:[%s20658_s6 + $0x68] sm:$0xff] %v14287_v50   ;;  %v12108_v17 = vadd.f32 %v16519_v59, %v20613_v9  ;;  %v16521_v22 = vadd.f32 %v16384_v40, %v20389_v10  ;;  %v11507_v45 = vpop.f32.mrb[31].mxu0 }
 0x4f1   : > { %14570 = vst [vmem:[%s20658_s6 + $0x60] sm:$0xff] %v14282_v21   ;;  %v12106_v39 = vadd.f32 %v16520_v2, %v20613_v9  ;;  %v16522_v63 = vadd.f32 %v11507_v45, %v20392_v47 }
 0x4f2   : > { %v12109_v44 = vadd.f32 %v16521_v22, %v20613_v9  ;;  %v12244_v28 = vmax.f32 %v12108_v17, 0.0 }
 0x4f3   : > { %v12107_v56 = vadd.f32 %v16522_v63, %v20613_v9  ;;  %v12242_v14 = vmax.f32 %v12106_v39, 0.0 }
 0x4f4   : > { %v12245_v57 = vmax.f32 %v12109_v44, 0.0  ;;  %v21227_v44 = vld [vmem:[#allocation27_spill] sm:$0xff] }
 0x4f5   : > { %v12243_v29 = vmax.f32 %v12107_v56, 0.0  ;;  %v16387_v48 = vpop.f32.mrb[32].mxu0 }
 0x4f6   : > { %v14297_v62 = vpack.c.bf16 %v12245_v57, %v12244_v28  ;;  %v16523_v10 = vadd.f32 %v16387_v48, %v21223_v19  ;;  %v11520_v38 = vpop.f32.mrb[33].mxu0  ;;  %v21228_v57 = vld [vmem:[#allocation30_spill] sm:$0xff] }
 0x4f7   : > { %v14292_v52 = vpack.c.bf16 %v12243_v29, %v12242_v14  ;;  %v16524_v23 = vadd.f32 %v11520_v38, %v21224_v8  ;;  %v16388_v25 = vpop.f32.mrb[34].mxu0 }
 0x4f8   : > { %14573 = vst [vmem:[%s20658_s6 + $0x78] sm:$0xff] %v14297_v62   ;;  %v12112_v47 = vadd.f32 %v16523_v10, %v20613_v9  ;;  %v16525_v1 = vadd.f32 %v16388_v25, %v20411_v16  ;;  %v11523_v18 = vpop.f32.mrb[35].mxu0 }
 0x4f9   : > { %14572 = vst [vmem:[%s20658_s6 + $0x70] sm:$0xff] %v14292_v52   ;;  %v12110_v43 = vadd.f32 %v16524_v23, %v20613_v9  ;;  %v16526_v53 = vadd.f32 %v11523_v18, %v20414_v30 }
 0x4fa   : > { %v12113_v33 = vadd.f32 %v16525_v1, %v20613_v9  ;;  %v12248_v20 = vmax.f32 %v12112_v47, 0.0 }
 0x4fb   : > { %v12111_v24 = vadd.f32 %v16526_v53, %v20613_v9  ;;  %v12246_v7 = vmax.f32 %v12110_v43, 0.0  ;;  %v21229_v43 = vld [vmem:[#allocation28_spill] sm:$0xff] }
 0x4fc   : > { %v12249_v54 = vmax.f32 %v12113_v33, 0.0 }
 0x4fd   : > { %v12247_v60 = vmax.f32 %v12111_v24, 0.0  ;;  %v16391_v37 = vpop.f32.mrb[36].mxu0  ;;  %v21230_v24 = vld [vmem:[#allocation29_spill] sm:$0xff] }
 0x4fe   : > { %v14307_v26 = vpack.c.bf16 %v12249_v54, %v12248_v20  ;;  %v16527_v16 = vadd.f32 %v16391_v37, %v21225_v13  ;;  %v11536_v51 = vpop.f32.mrb[37].mxu0 }
 0x4ff   : > { %v14302_v27 = vpack.c.bf16 %v12247_v60, %v12246_v7  ;;  %v16528_v12 = vadd.f32 %v11536_v51, %v21226_v34  ;;  %v16392_v35 = vpop.f32.mrb[38].mxu0 }
 0x500   : > { %14575 = vst [vmem:[%s20658_s6 + $0x88] sm:$0xff] %v14307_v26   ;;  %v12116_v30 = vadd.f32 %v16527_v16, %v20613_v9  ;;  %v16529_v50 = vadd.f32 %v16392_v35, %v20433_v61  ;;  %v11539_v59 = vpop.f32.mrb[39].mxu0 }
 0x501   : > { %14574 = vst [vmem:[%s20658_s6 + $0x80] sm:$0xff] %v14302_v27   ;;  %v12114_v6 = vadd.f32 %v16528_v12, %v20613_v9  ;;  %v16530_v21 = vadd.f32 %v11539_v59, %v20436_v46 }
 0x502   : > { %v12117_v4 = vadd.f32 %v16529_v50, %v20613_v9  ;;  %v12252_v40 = vmax.f32 %v12116_v30, 0.0  ;;  %v21231_v50 = vld [vmem:[#allocation31_spill] sm:$0xff] }
 0x503   : > { %v12115_v2 = vadd.f32 %v16530_v21, %v20613_v9  ;;  %v12250_v22 = vmax.f32 %v12114_v6, 0.0  ;;  %v21232_v21 = vld [vmem:[#allocation34_spill] sm:$0xff] }
 0x504   : > { %v12253_v17 = vmax.f32 %v12117_v4, 0.0 }
 0x505   : > { %v12251_v45 = vmax.f32 %v12115_v2, 0.0  ;;  %v16395_v39 = vpop.f32.mrb[40].mxu0 }
 0x506   : > { %v14317_v63 = vpack.c.bf16 %v12253_v17, %v12252_v40  ;;  %v16531_v61 = vadd.f32 %v16395_v39, %v21227_v44  ;;  %v11552_v56 = vpop.f32.mrb[41].mxu0 }
 0x507   : > { %v14312_v28 = vpack.c.bf16 %v12251_v45, %v12250_v22  ;;  %v16532_v14 = vadd.f32 %v11552_v56, %v21228_v57  ;;  %v16396_v29 = vpop.f32.mrb[42].mxu0 }
 0x508   : > { %14577 = vst [vmem:[%s20658_s6 + $0x98] sm:$0xff] %v14317_v63   ;;  %v12120_v46 = vadd.f32 %v16531_v61, %v20613_v9  ;;  %v16533_v48 = vadd.f32 %v16396_v29, %v20455_v3  ;;  %v11555_v62 = vpop.f32.mrb[43].mxu0  ;;  %v21233_v29 = vld [vmem:[#allocation32_spill] sm:$0xff] }
 0x509   : > { %14576 = vst [vmem:[%s20658_s6 + $0x90] sm:$0xff] %v14312_v28   ;;  %v12118_v19 = vadd.f32 %v16532_v14, %v20613_v9  ;;  %v16534_v10 = vadd.f32 %v11555_v62, %v20458_v49  ;;  %v21234_v62 = vld [vmem:[#allocation33_spill] sm:$0xff] }
 0x50a   : > { %v12121_v38 = vadd.f32 %v16533_v48, %v20613_v9  ;;  %v12256_v8 = vmax.f32 %v12120_v46, 0.0 }
 0x50b   : > { %v12119_v52 = vadd.f32 %v16534_v10, %v20613_v9  ;;  %v12254_v25 = vmax.f32 %v12118_v19, 0.0 }
 0x50c   : > { %v12257_v23 = vmax.f32 %v12121_v38, 0.0 }
 0x50d   : > { %v12255_v47 = vmax.f32 %v12119_v52, 0.0  ;;  %v16399_v1 = vpop.f32.mrb[44].mxu0 }
 0x50e   : > { %v14327_v18 = vpack.c.bf16 %v12257_v23, %v12256_v8  ;;  %v16535_v3 = vadd.f32 %v16399_v1, %v21229_v43  ;;  %v11568_v53 = vpop.f32.mrb[45].mxu0 }
 0x50f   : > { %v14322_v33 = vpack.c.bf16 %v12255_v47, %v12254_v25  ;;  %v16536_v20 = vadd.f32 %v11568_v53, %v21230_v24  ;;  %v16400_v54 = vpop.f32.mrb[46].mxu0  ;;  %v21235_v24 = vld [vmem:[#allocation35_spill] sm:$0xff] }
 0x510   : > { %14579 = vst [vmem:[%s20658_s6 + $0xa8] sm:$0xff] %v14327_v18   ;;  %v12124_v49 = vadd.f32 %v16535_v3, %v20613_v9  ;;  %v16537_v7 = vadd.f32 %v16400_v54, %v20477_v41  ;;  %v11571_v60 = vpop.f32.mrb[47].mxu0 }
 0x511   : > { %14578 = vst [vmem:[%s20658_s6 + $0xa0] sm:$0xff] %v14322_v33   ;;  %v12122_v37 = vadd.f32 %v16536_v20, %v20613_v9  ;;  %v16538_v26 = vadd.f32 %v11571_v60, %v20480_v32 }
 0x512   : > { %v12125_v13 = vadd.f32 %v16537_v7, %v20613_v9  ;;  %v12260_v51 = vmax.f32 %v12124_v49, 0.0  ;;  %v21236_v49 = vld [vmem:[#allocation38_spill] sm:$0xff] }
 0x513   : > { %v12123_v16 = vadd.f32 %v16538_v26, %v20613_v9  ;;  %v12258_v34 = vmax.f32 %v12122_v37, 0.0 }
 0x514   : > { %v12261_v27 = vmax.f32 %v12125_v13, 0.0 }
 0x515   : > { %v12259_v12 = vmax.f32 %v12123_v16, 0.0  ;;  %v16403_v35 = vpop.f32.mrb[48].mxu0 }
 0x516   : > { %v14337_v30 = vpack.c.bf16 %v12261_v27, %v12260_v51  ;;  %v16539_v41 = vadd.f32 %v16403_v35, %v21231_v50  ;;  %v11584_v59 = vpop.f32.mrb[49].mxu0 }
 0x517   : > { %v14332_v6 = vpack.c.bf16 %v12259_v12, %v12258_v34  ;;  %v16540_v4 = vadd.f32 %v11584_v59, %v21232_v21  ;;  %v16404_v2 = vpop.f32.mrb[50].mxu0  ;;  %v21237_v59 = vld [vmem:[#allocation36_spill] sm:$0xff] }
 0x518   : > { %14581 = vst [vmem:[%s20658_s6 + $0xb8] sm:$0xff] %v14337_v30   ;;  %v12128_v32 = vadd.f32 %v16539_v41, %v20613_v9  ;;  %v16541_v40 = vadd.f32 %v16404_v2, %v20499_v31  ;;  %v11587_v17 = vpop.f32.mrb[51].mxu0 }
 0x519   : > { %14580 = vst [vmem:[%s20658_s6 + $0xb0] sm:$0xff] %v14332_v6   ;;  %v12126_v22 = vadd.f32 %v16540_v4, %v20613_v9  ;;  %v16542_v45 = vadd.f32 %v11587_v17, %v20502_v0  ;;  %v21238_v4 = vld [vmem:[#allocation37_spill] sm:$0xff] }
 0x51a   : > { %v12129_v39 = vadd.f32 %v16541_v40, %v20613_v9  ;;  %v12264_v44 = vmax.f32 %v12128_v32, 0.0 }
 0x51b   : > { %v12127_v63 = vadd.f32 %v16542_v45, %v20613_v9  ;;  %v12262_v56 = vmax.f32 %v12126_v22, 0.0 }
 0x51c   : > { %v12265_v61 = vmax.f32 %v12129_v39, 0.0 }
 0x51d   : > { %v12263_v28 = vmax.f32 %v12127_v63, 0.0  ;;  %v16407_v57 = vpop.f32.mrb[52].mxu0 }
 0x51e   : > { %v14347_v14 = vpack.c.bf16 %v12265_v61, %v12264_v44  ;;  %v16543_v31 = vadd.f32 %v16407_v57, %v21233_v29  ;;  %v11600_v46 = vpop.f32.mrb[53].mxu0  ;;  %v21239_v29 = vld [vmem:[#allocation39_spill] sm:$0xff] }
 0x51f   : > { %v14342_v48 = vpack.c.bf16 %v12263_v28, %v12262_v56  ;;  %v16544_v19 = vadd.f32 %v11600_v46, %v21234_v62  ;;  %v16408_v10 = vpop.f32.mrb[54].mxu0 }
 0x520   : > { %14583 = vst [vmem:[%s20658_s6 + $0xc8] sm:$0xff] %v14347_v14   ;;  %v12132_v0 = vadd.f32 %v16543_v31, %v20613_v9  ;;  %v16545_v38 = vadd.f32 %v16408_v10, %v20521_v15  ;;  %v11603_v52 = vpop.f32.mrb[55].mxu0  ;;  %v21241_v10 = vld [vmem:[#allocation41_spill] sm:$0xff] }
 0x521   : > { %14582 = vst [vmem:[%s20658_s6 + $0xc0] sm:$0xff] %v14342_v48   ;;  %v12130_v8 = vadd.f32 %v16544_v19, %v20613_v9  ;;  %v16546_v23 = vadd.f32 %v11603_v52, %v20524_v36  ;;  %v21240_v48 = vld [vmem:[#allocation40_spill] sm:$0xff] }
 0x522   : > { %v12133_v25 = vadd.f32 %v16545_v38, %v20613_v9  ;;  %v12268_v1 = vmax.f32 %v12132_v0, 0.0 }
 0x523   : > { %v12131_v47 = vadd.f32 %v16546_v23, %v20613_v9  ;;  %v12266_v43 = vmax.f32 %v12130_v8, 0.0 }
 0x524   : > { %v12269_v18 = vmax.f32 %v12133_v25, 0.0 }
 0x525   : > { %v12267_v3 = vmax.f32 %v12131_v47, 0.0  ;;  %v16411_v53 = vpop.f32.mrb[56].mxu0 }
 0x526   : > { %v14357_v33 = vpack.c.bf16 %v12269_v18, %v12268_v1  ;;  %v16547_v15 = vadd.f32 %v16411_v53, %v21235_v24  ;;  %v11616_v20 = vpop.f32.mrb[57].mxu0 }
 0x527   : > { %v14352_v54 = vpack.c.bf16 %v12267_v3, %v12266_v43  ;;  %v16548_v7 = vadd.f32 %v11616_v20, %v21236_v49  ;;  %v16412_v60 = vpop.f32.mrb[58].mxu0 }
 0x528   : > { %14585 = vst [vmem:[%s20658_s6 + $0xd8] sm:$0xff] %v14357_v33   ;;  %v12136_v36 = vadd.f32 %v16547_v15, %v20613_v9  ;;  %v16549_v37 = vadd.f32 %v16412_v60, %v20543_v58  ;;  %v11619_v26 = vpop.f32.mrb[59].mxu0 }
 0x529   : > { %14584 = vst [vmem:[%s20658_s6 + $0xd0] sm:$0xff] %v14352_v54   ;;  %v12134_v13 = vadd.f32 %v16548_v7, %v20613_v9  ;;  %v16550_v16 = vadd.f32 %v11619_v26, %v20546_v5 }
 0x52a   : > { %v12137_v51 = vadd.f32 %v16549_v37, %v20613_v9  ;;  %v12272_v34 = vmax.f32 %v12136_v36, 0.0 }
 0x52b   : > { %v12135_v27 = vadd.f32 %v16550_v16, %v20613_v9  ;;  %v12270_v35 = vmax.f32 %v12134_v13, 0.0 }
 0x52c   : > { %v12273_v12 = vmax.f32 %v12137_v51, 0.0 }
 0x52d   : > { %v12271_v30 = vmax.f32 %v12135_v27, 0.0  ;;  %v16415_v50 = vpop.f32.mrb[60].mxu0 }
 0x52e   : > { %v14367_v41 = vpack.c.bf16 %v12273_v12, %v12272_v34  ;;  %v16551_v58 = vadd.f32 %v16415_v50, %v21237_v59  ;;  %v11632_v6 = vpop.f32.mrb[61].mxu0 }
 0x52f   : > { %v14362_v21 = vpack.c.bf16 %v12271_v30, %v12270_v35  ;;  %v16552_v2 = vadd.f32 %v11632_v6, %v21238_v4  ;;  %v16416_v32 = vpop.f32.mrb[62].mxu0 }
 0x530   : > { %14587 = vst [vmem:[%s20658_s6 + $0xe8] sm:$0xff] %v14367_v41   ;;  %v12140_v5 = vadd.f32 %v16551_v58, %v20613_v9  ;;  %v16553_v40 = vadd.f32 %v16416_v32, %v20565_v11  ;;  %v11635_v17 = vpop.f32.mrb[63].mxu0 }
 0x531   : > { %14586 = vst [vmem:[%s20658_s6 + $0xe0] sm:$0xff] %v14362_v21   ;;  %v12138_v22 = vadd.f32 %v16552_v2, %v20613_v9  ;;  %v16554_v45 = vadd.f32 %v11635_v17, %v20568_v55 }
 0x532   : > { %v12141_v39 = vadd.f32 %v16553_v40, %v20613_v9  ;;  %v12276_v44 = vmax.f32 %v12140_v5, 0.0 }
 0x533   : > { %v12139_v63 = vadd.f32 %v16554_v45, %v20613_v9  ;;  %v12274_v56 = vmax.f32 %v12138_v22, 0.0 }
 0x534   : > { %v12277_v61 = vmax.f32 %v12141_v39, 0.0 }
 0x535   : > { %v12275_v28 = vmax.f32 %v12139_v63, 0.0  ;;  %v16419_v57 = vpop.f32.mrb[64].mxu0 }
 0x536   : > { %v14377_v14 = vpack.c.bf16 %v12277_v61, %v12276_v44  ;;  %v16555_v11 = vadd.f32 %v16419_v57, %v21239_v29  ;;  %v11648_v31 = vpop.f32.mrb[65].mxu0 }
 0x537   : > { %v14372_v46 = vpack.c.bf16 %v12275_v28, %v12274_v56  ;;  %v16556_v62 = vadd.f32 %v11648_v31, %v21240_v48  ;;  %v16420_v19 = vpop.f32.mrb[66].mxu0 }
 0x538   : > { %14589 = vst [vmem:[%s20658_s6 + $0xf8] sm:$0xff] %v14377_v14   ;;  %v12144_v55 = vadd.f32 %v16555_v11, %v20613_v9  ;;  %v16557_v0 = vadd.f32 %v16420_v19, %v21241_v10  ;;  %v11651_v38 = vpop.f32.mrb[67].mxu0 }
 0x539   : > { %14588 = vst [vmem:[%s20658_s6 + $0xf0] sm:$0xff] %v14372_v46   ;;  %v12142_v8 = vadd.f32 %v16556_v62, %v20613_v9  ;;  %v16558_v23 = vadd.f32 %v11651_v38, %v20590_v42 }
 0x53a   : > { %v15871_v52 = vpop.f32.mrb[68].mxu1  ;;  %v12145_v47 = vadd.f32 %v16557_v0, %v20613_v9  ;;  %v12280_v3 = vmax.f32 %v12144_v55, 0.0 }
 0x53b   : > { %v6450_v25 = vpop.f32.mrb[69].mxu1  ;;  %v12143_v18 = vadd.f32 %v16558_v23, %v20613_v9  ;;  %v12278_v33 = vmax.f32 %v12142_v8, 0.0 }
 0x53c   : > { %v15872_v1 = vpop.f32.mrb[70].mxu1  ;;  %v12281_v53 = vmax.f32 %v12145_v47, 0.0 }
 0x53d   : > { %v6453_v43 = vpop.f32.mrb[71].mxu1  ;;  %v12279_v24 = vmax.f32 %v12143_v18, 0.0  ;;  %v16423_v15 = vpop.f32.mrb[68].mxu0 }
 0x53e   : > { %v14387_v20 = vpack.c.bf16 %v12281_v53, %v12280_v3  ;;  %v16559_v54 = vadd.f32 %v16423_v15, %v15871_v52  ;;  %v11664_v49 = vpop.f32.mrb[69].mxu0 }
 0x53f   : > { %v14382_v7 = vpack.c.bf16 %v12279_v24, %v12278_v33  ;;  %v16560_v60 = vadd.f32 %v11664_v49, %v6450_v25  ;;  %v16424_v42 = vpop.f32.mrb[70].mxu0 }
 0x540   : > { %14591 = vst [vmem:[%s20658_s6 + $0x108] sm:$0xff] %v14387_v20   ;;  %v12148_v36 = vadd.f32 %v16559_v54, %v20613_v9  ;;  %v16561_v37 = vadd.f32 %v16424_v42, %v15872_v1  ;;  %v11667_v26 = vpop.f32.mrb[71].mxu0 }
 0x541   : > { %14590 = vst [vmem:[%s20658_s6 + $0x100] sm:$0xff] %v14382_v7   ;;  %v12146_v16 = vadd.f32 %v16560_v60, %v20613_v9  ;;  %v16562_v51 = vadd.f32 %v11667_v26, %v6453_v43  ;;  %v20895_v43 = vld [vmem:[%s21039_s2] ss:$0 sm:$0xff] }
 0x542   : > { %v15875_v13 = vpop.f32.mrb[72].mxu1  ;;  %v12149_v34 = vadd.f32 %v16561_v37, %v20613_v9  ;;  %v12284_v50 = vmax.f32 %v12148_v36, 0.0 }
 0x543   : > { %v6466_v27 = vpop.f32.mrb[73].mxu1  ;;  %v12147_v35 = vadd.f32 %v16562_v51, %v20613_v9  ;;  %v12282_v59 = vmax.f32 %v12146_v16, 0.0 }
 0x544   : > { %v15876_v12 = vpop.f32.mrb[74].mxu1  ;;  %v12285_v41 = vmax.f32 %v12149_v34, 0.0 }
 0x545   : > { %v6469_v30 = vpop.f32.mrb[75].mxu1  ;;  %v12283_v58 = vmax.f32 %v12147_v35, 0.0  ;;  %v16427_v6 = vpop.f32.mrb[72].mxu0 }
 0x546   : > { %v14397_v21 = vpack.c.bf16 %v12285_v41, %v12284_v50  ;;  %v16563_v4 = vadd.f32 %v16427_v6, %v15875_v13  ;;  %v11680_v2 = vpop.f32.mrb[73].mxu0 }
 0x547   : > { %v14392_v32 = vpack.c.bf16 %v12283_v58, %v12282_v59  ;;  %v16564_v5 = vadd.f32 %v11680_v2, %v6466_v27  ;;  %v16428_v40 = vpop.f32.mrb[74].mxu0 }
 0x548   : > { %14593 = vst [vmem:[%s20658_s6 + $0x118] sm:$0xff] %v14397_v21   ;;  %v12152_v17 = vadd.f32 %v16563_v4, %v20613_v9  ;;  %v16565_v22 = vadd.f32 %v16428_v40, %v15876_v12  ;;  %v11683_v45 = vpop.f32.mrb[75].mxu0 }
 0x549   : > { %14592 = vst [vmem:[%s20658_s6 + $0x110] sm:$0xff] %v14392_v32   ;;  %v12150_v63 = vadd.f32 %v16564_v5, %v20613_v9  ;;  %v16566_v44 = vadd.f32 %v11683_v45, %v6469_v30 }
 0x54a   : > { %v15879_v39 = vpop.f32.mrb[76].mxu1  ;;  %v12153_v56 = vadd.f32 %v16565_v22, %v20613_v9  ;;  %v12288_v29 = vmax.f32 %v12152_v17, 0.0 }
 0x54b   : > { %v6482_v61 = vpop.f32.mrb[77].mxu1  ;;  %v12151_v57 = vadd.f32 %v16566_v44, %v20613_v9  ;;  %v12286_v31 = vmax.f32 %v12150_v63, 0.0 }
 0x54c   : > { %v15880_v28 = vpop.f32.mrb[78].mxu1  ;;  %v12289_v11 = vmax.f32 %v12153_v56, 0.0 }
 0x54d   : > { %v6485_v14 = vpop.f32.mrb[79].mxu1  ;;  %v12287_v46 = vmax.f32 %v12151_v57, 0.0  ;;  %v16431_v48 = vpop.f32.mrb[76].mxu0 }
 0x54e   : > { %v14407_v62 = vpack.c.bf16 %v12289_v11, %v12288_v29  ;;  %v16567_v19 = vadd.f32 %v16431_v48, %v15879_v39  ;;  %v11696_v55 = vpop.f32.mrb[77].mxu0 }
 0x54f   : > { %v14402_v10 = vpack.c.bf16 %v12287_v46, %v12286_v31  ;;  %v16568_v0 = vadd.f32 %v11696_v55, %v6482_v61  ;;  %v16432_v38 = vpop.f32.mrb[78].mxu0 }
 0x550   : > { %14595 = vst [vmem:[%s20658_s6 + $0x128] sm:$0xff] %v14407_v62   ;;  %v12156_v52 = vadd.f32 %v16567_v19, %v20613_v9  ;;  %v16569_v8 = vadd.f32 %v16432_v38, %v15880_v28  ;;  %v11699_v23 = vpop.f32.mrb[79].mxu0 }
 0x551   : > { %14594 = vst [vmem:[%s20658_s6 + $0x120] sm:$0xff] %v14402_v10   ;;  %v12154_v47 = vadd.f32 %v16568_v0, %v20613_v9  ;;  %v16570_v1 = vadd.f32 %v11699_v23, %v6485_v14 }
 0x552   : > { %v15883_v25 = vpop.f32.mrb[80].mxu1  ;;  %v12157_v3 = vadd.f32 %v20895_v43, %v16569_v8  ;;  %v12292_v15 = vmax.f32 %v12156_v52, 0.0 }
 0x553   : > { %v6498_v18 = vpop.f32.mrb[81].mxu1  ;;  %v12155_v33 = vadd.f32 %v20895_v43, %v16570_v1  ;;  %v12290_v54 = vmax.f32 %v12154_v47, 0.0 }
 0x554   : > { %v15884_v53 = vpop.f32.mrb[82].mxu1  ;;  %v12293_v20 = vmax.f32 %v12157_v3, 0.0 }
 0x555   : > { %v6501_v24 = vpop.f32.mrb[83].mxu1  ;;  %v12291_v49 = vmax.f32 %v12155_v33, 0.0  ;;  %v16435_v9 = vpop.f32.mrb[80].mxu0 }
 0x556   : > { %v14417_v7 = vpack.c.bf16 %v12293_v20, %v12292_v15  ;;  %v16571_v60 = vadd.f32 %v16435_v9, %v15883_v25  ;;  %v11712_v42 = vpop.f32.mrb[81].mxu0 }
 0x557   : > { %v14412_v36 = vpack.c.bf16 %v12291_v49, %v12290_v54  ;;  %v16572_v37 = vadd.f32 %v11712_v42, %v6498_v18  ;;  %v16436_v26 = vpop.f32.mrb[82].mxu0 }
 0x558   : > { %14597 = vst [vmem:[%s20658_s6 + $0x138] sm:$0xff] %v14417_v7   ;;  %v12160_v13 = vadd.f32 %v20895_v43, %v16571_v60  ;;  %v16573_v16 = vadd.f32 %v16436_v26, %v15884_v53  ;;  %v11715_v51 = vpop.f32.mrb[83].mxu0 }
 0x559   : > { %14596 = vst [vmem:[%s20658_s6 + $0x130] sm:$0xff] %v14412_v36   ;;  %v12158_v34 = vadd.f32 %v20895_v43, %v16572_v37  ;;  %v16574_v12 = vadd.f32 %v11715_v51, %v6501_v24 }
 0x55a   : > { %v15887_v27 = vpop.f32.mrb[84].mxu1  ;;  %v12161_v30 = vadd.f32 %v20895_v43, %v16573_v16  ;;  %v12296_v58 = vmax.f32 %v12160_v13, 0.0 }
 0x55b   : > { %v6514_v35 = vpop.f32.mrb[85].mxu1  ;;  %v12159_v41 = vadd.f32 %v20895_v43, %v16574_v12  ;;  %v12294_v21 = vmax.f32 %v12158_v34, 0.0 }
 0x55c   : > { %v15888_v50 = vpop.f32.mrb[86].mxu1  ;;  %v12297_v6 = vmax.f32 %v12161_v30, 0.0 }
 0x55d   : > { %v6517_v59 = vpop.f32.mrb[87].mxu1  ;;  %v12295_v4 = vmax.f32 %v12159_v41, 0.0  ;;  %v16439_v2 = vpop.f32.mrb[84].mxu0 }
 0x55e   : > { %v14427_v32 = vpack.c.bf16 %v12297_v6, %v12296_v58  ;;  %v16575_v5 = vadd.f32 %v16439_v2, %v15887_v27  ;;  %v11728_v40 = vpop.f32.mrb[85].mxu0 }
 0x55f   : > { %v14422_v17 = vpack.c.bf16 %v12295_v4, %v12294_v21  ;;  %v16576_v22 = vadd.f32 %v11728_v40, %v6514_v35  ;;  %v16440_v45 = vpop.f32.mrb[86].mxu0 }
 0x560   : > { %14599 = vst [vmem:[%s20658_s6 + $0x148] sm:$0xff] %v14427_v32   ;;  %v12164_v39 = vadd.f32 %v20895_v43, %v16575_v5  ;;  %v16577_v63 = vadd.f32 %v16440_v45, %v15888_v50  ;;  %v11731_v44 = vpop.f32.mrb[87].mxu0 }
 0x561   : > { %14598 = vst [vmem:[%s20658_s6 + $0x140] sm:$0xff] %v14422_v17   ;;  %v12162_v56 = vadd.f32 %v20895_v43, %v16576_v22  ;;  %v16578_v28 = vadd.f32 %v11731_v44, %v6517_v59 }
 0x562   : > { %v15891_v61 = vpop.f32.mrb[88].mxu1  ;;  %v12165_v14 = vadd.f32 %v20895_v43, %v16577_v63  ;;  %v12300_v46 = vmax.f32 %v12164_v39, 0.0 }
 0x563   : > { %v6530_v57 = vpop.f32.mrb[89].mxu1  ;;  %v12163_v11 = vadd.f32 %v20895_v43, %v16578_v28  ;;  %v12298_v62 = vmax.f32 %v12162_v56, 0.0 }
 0x564   : > { %v15892_v29 = vpop.f32.mrb[90].mxu1  ;;  %v12301_v48 = vmax.f32 %v12165_v14, 0.0 }
 0x565   : > { %v6533_v31 = vpop.f32.mrb[91].mxu1  ;;  %v12299_v19 = vmax.f32 %v12163_v11, 0.0  ;;  %v16443_v55 = vpop.f32.mrb[88].mxu0 }
 0x566   : > { %v14437_v10 = vpack.c.bf16 %v12301_v48, %v12300_v46  ;;  %v16579_v0 = vadd.f32 %v16443_v55, %v15891_v61  ;;  %v11744_v38 = vpop.f32.mrb[89].mxu0 }
 0x567   : > { %v14432_v52 = vpack.c.bf16 %v12299_v19, %v12298_v62  ;;  %v16580_v8 = vadd.f32 %v11744_v38, %v6530_v57  ;;  %v16444_v23 = vpop.f32.mrb[90].mxu0 }
 0x568   : > { %14601 = vst [vmem:[%s20658_s6 + $0x158] sm:$0xff] %v14437_v10   ;;  %v12168_v25 = vadd.f32 %v20895_v43, %v16579_v0  ;;  %v16581_v47 = vadd.f32 %v16444_v23, %v15892_v29  ;;  %v11747_v1 = vpop.f32.mrb[91].mxu0 }
 0x569   : > { %14600 = vst [vmem:[%s20658_s6 + $0x150] sm:$0xff] %v14432_v52   ;;  %v12166_v3 = vadd.f32 %v20895_v43, %v16580_v8  ;;  %v16582_v53 = vadd.f32 %v11747_v1, %v6533_v31 }
 0x56a   : > { %v15895_v18 = vpop.f32.mrb[92].mxu1  ;;  %v12169_v24 = vadd.f32 %v20895_v43, %v16581_v47  ;;  %v12304_v49 = vmax.f32 %v12168_v25, 0.0 }
 0x56b   : > { %v6546_v33 = vpop.f32.mrb[93].mxu1  ;;  %v12167_v20 = vadd.f32 %v20895_v43, %v16582_v53  ;;  %v12302_v7 = vmax.f32 %v12166_v3, 0.0 }
 0x56c   : > { %v15896_v15 = vpop.f32.mrb[94].mxu1  ;;  %v12305_v9 = vmax.f32 %v12169_v24, 0.0 }
 0x56d   : > { %v6549_v54 = vpop.f32.mrb[95].mxu1  ;;  %v12303_v60 = vmax.f32 %v12167_v20, 0.0  ;;  %v16447_v42 = vpop.f32.mrb[92].mxu0 }
 0x56e   : > { %v14447_v36 = vpack.c.bf16 %v12305_v9, %v12304_v49  ;;  %v16583_v37 = vadd.f32 %v16447_v42, %v15895_v18  ;;  %v11760_v26 = vpop.f32.mrb[93].mxu0 }
 0x56f   : > { %v14442_v13 = vpack.c.bf16 %v12303_v60, %v12302_v7  ;;  %v16584_v16 = vadd.f32 %v11760_v26, %v6546_v33  ;;  %v16448_v51 = vpop.f32.mrb[94].mxu0 }
 0x570   : > { %14603 = vst [vmem:[%s20658_s6 + $0x168] sm:$0xff] %v14447_v36   ;;  %v12172_v27 = vadd.f32 %v20895_v43, %v16583_v37  ;;  %v16585_v34 = vadd.f32 %v16448_v51, %v15896_v15  ;;  %v11763_v12 = vpop.f32.mrb[95].mxu0 }
 0x571   : > { %14602 = vst [vmem:[%s20658_s6 + $0x160] sm:$0xff] %v14442_v13   ;;  %v12170_v30 = vadd.f32 %v20895_v43, %v16584_v16  ;;  %v16586_v50 = vadd.f32 %v11763_v12, %v6549_v54 }
 0x572   : > { %v15899_v35 = vpop.f32.mrb[96].mxu1  ;;  %v12173_v59 = vadd.f32 %v20895_v43, %v16585_v34  ;;  %v12308_v4 = vmax.f32 %v12172_v27, 0.0 }
 0x573   : > { %v6562_v41 = vpop.f32.mrb[97].mxu1  ;;  %v12171_v6 = vadd.f32 %v20895_v43, %v16586_v50  ;;  %v12306_v32 = vmax.f32 %v12170_v30, 0.0 }
 0x574   : > { %v15900_v58 = vpop.f32.mrb[98].mxu1  ;;  %v12309_v2 = vmax.f32 %v12173_v59, 0.0 }
 0x575   : > { %v6565_v21 = vpop.f32.mrb[99].mxu1  ;;  %v12307_v5 = vmax.f32 %v12171_v6, 0.0  ;;  %v16451_v40 = vpop.f32.mrb[96].mxu0 }
 0x576   : > { %v14457_v17 = vpack.c.bf16 %v12309_v2, %v12308_v4  ;;  %v16587_v22 = vadd.f32 %v16451_v40, %v15899_v35  ;;  %v11776_v45 = vpop.f32.mrb[97].mxu0 }
 0x577   : > { %v14452_v39 = vpack.c.bf16 %v12307_v5, %v12306_v32  ;;  %v16588_v63 = vadd.f32 %v11776_v45, %v6562_v41  ;;  %v16452_v44 = vpop.f32.mrb[98].mxu0 }
 0x578   : > { %14605 = vst [vmem:[%s20658_s6 + $0x178] sm:$0xff] %v14457_v17   ;;  %v12176_v61 = vadd.f32 %v20895_v43, %v16587_v22  ;;  %v16589_v56 = vadd.f32 %v16452_v44, %v15900_v58  ;;  %v11779_v28 = vpop.f32.mrb[99].mxu0 }
 0x579   : > { %14604 = vst [vmem:[%s20658_s6 + $0x170] sm:$0xff] %v14452_v39   ;;  %v12174_v14 = vadd.f32 %v20895_v43, %v16588_v63  ;;  %v16590_v29 = vadd.f32 %v11779_v28, %v6565_v21 }
 0x57a   : > { %v15903_v57 = vpop.f32.mrb[100].mxu1  ;;  %v12177_v31 = vadd.f32 %v20895_v43, %v16589_v56  ;;  %v12312_v19 = vmax.f32 %v12176_v61, 0.0 }
 0x57b   : > { %v6578_v11 = vpop.f32.mrb[101].mxu1  ;;  %v12175_v48 = vadd.f32 %v20895_v43, %v16590_v29  ;;  %v12310_v10 = vmax.f32 %v12174_v14, 0.0 }
 0x57c   : > { %v15904_v46 = vpop.f32.mrb[102].mxu1  ;;  %v12313_v55 = vmax.f32 %v12177_v31, 0.0 }
 0x57d   : > { %v6581_v62 = vpop.f32.mrb[103].mxu1  ;;  %v12311_v0 = vmax.f32 %v12175_v48, 0.0  ;;  %v16455_v38 = vpop.f32.mrb[100].mxu0 }
 0x57e   : > { %v14467_v52 = vpack.c.bf16 %v12313_v55, %v12312_v19  ;;  %v16591_v8 = vadd.f32 %v16455_v38, %v15903_v57  ;;  %v11792_v23 = vpop.f32.mrb[101].mxu0 }
 0x57f   : > { %v14462_v25 = vpack.c.bf16 %v12311_v0, %v12310_v10  ;;  %v16592_v47 = vadd.f32 %v11792_v23, %v6578_v11  ;;  %v16456_v1 = vpop.f32.mrb[102].mxu0 }
 0x580   : > { %14607 = vst [vmem:[%s20658_s6 + $0x188] sm:$0xff] %v14467_v52   ;;  %v12180_v18 = vadd.f32 %v20895_v43, %v16591_v8  ;;  %v16593_v3 = vadd.f32 %v16456_v1, %v15904_v46  ;;  %v11795_v53 = vpop.f32.mrb[103].mxu0 }
 0x581   : > { %14606 = vst [vmem:[%s20658_s6 + $0x180] sm:$0xff] %v14462_v25   ;;  %v12178_v24 = vadd.f32 %v20895_v43, %v16592_v47  ;;  %v16594_v15 = vadd.f32 %v11795_v53, %v6581_v62 }
 0x582   : > { %v15907_v33 = vpop.f32.mrb[104].mxu1  ;;  %v12181_v54 = vadd.f32 %v20895_v43, %v16593_v3  ;;  %v12316_v60 = vmax.f32 %v12180_v18, 0.0 }
 0x583   : > { %v6594_v20 = vpop.f32.mrb[105].mxu1  ;;  %v12179_v9 = vadd.f32 %v20895_v43, %v16594_v15  ;;  %v12314_v36 = vmax.f32 %v12178_v24, 0.0 }
 0x584   : > { %v15908_v49 = vpop.f32.mrb[106].mxu1  ;;  %v12317_v42 = vmax.f32 %v12181_v54, 0.0 }
 0x585   : > { %v6597_v7 = vpop.f32.mrb[107].mxu1  ;;  %v12315_v37 = vmax.f32 %v12179_v9, 0.0  ;;  %v16459_v26 = vpop.f32.mrb[104].mxu0 }
 0x586   : > { %v14477_v13 = vpack.c.bf16 %v12317_v42, %v12316_v60  ;;  %v16595_v16 = vadd.f32 %v16459_v26, %v15907_v33  ;;  %v11808_v51 = vpop.f32.mrb[105].mxu0 }
 0x587   : > { %v14472_v27 = vpack.c.bf16 %v12315_v37, %v12314_v36  ;;  %v16596_v34 = vadd.f32 %v11808_v51, %v6594_v20  ;;  %v16460_v12 = vpop.f32.mrb[106].mxu0 }
 0x588   : > { %14609 = vst [vmem:[%s20658_s6 + $0x198] sm:$0xff] %v14477_v13   ;;  %v12184_v35 = vadd.f32 %v20895_v43, %v16595_v16  ;;  %v16597_v30 = vadd.f32 %v16460_v12, %v15908_v49  ;;  %v11811_v50 = vpop.f32.mrb[107].mxu0 }
 0x589   : > { %14608 = vst [vmem:[%s20658_s6 + $0x190] sm:$0xff] %v14472_v27   ;;  %v12182_v59 = vadd.f32 %v20895_v43, %v16596_v34  ;;  %v16598_v58 = vadd.f32 %v11811_v50, %v6597_v7 }
 0x58a   : > { %v15911_v41 = vpop.f32.mrb[108].mxu1  ;;  %v12185_v21 = vadd.f32 %v20895_v43, %v16597_v30  ;;  %v12320_v5 = vmax.f32 %v12184_v35, 0.0 }
 0x58b   : > { %v6610_v6 = vpop.f32.mrb[109].mxu1  ;;  %v12183_v2 = vadd.f32 %v20895_v43, %v16598_v58  ;;  %v12318_v17 = vmax.f32 %v12182_v59, 0.0 }
 0x58c   : > { %v15912_v4 = vpop.f32.mrb[110].mxu1  ;;  %v12321_v40 = vmax.f32 %v12185_v21, 0.0 }
 0x58d   : > { %v6613_v32 = vpop.f32.mrb[111].mxu1  ;;  %v12319_v22 = vmax.f32 %v12183_v2, 0.0  ;;  %v16463_v45 = vpop.f32.mrb[108].mxu0 }
 0x58e   : > { %v14487_v39 = vpack.c.bf16 %v12321_v40, %v12320_v5  ;;  %v16599_v63 = vadd.f32 %v16463_v45, %v15911_v41  ;;  %v11824_v44 = vpop.f32.mrb[109].mxu0 }
 0x58f   : > { %v14482_v61 = vpack.c.bf16 %v12319_v22, %v12318_v17  ;;  %v16600_v56 = vadd.f32 %v11824_v44, %v6610_v6  ;;  %v16464_v28 = vpop.f32.mrb[110].mxu0 }
 0x590   : > { %14611 = vst [vmem:[%s20658_s6 + $0x1a8] sm:$0xff] %v14487_v39   ;;  %v12188_v57 = vadd.f32 %v20895_v43, %v16599_v63  ;;  %v16601_v14 = vadd.f32 %v16464_v28, %v15912_v4  ;;  %v11827_v29 = vpop.f32.mrb[111].mxu0 }
 0x591   : > { %14610 = vst [vmem:[%s20658_s6 + $0x1a0] sm:$0xff] %v14482_v61   ;;  %v12186_v31 = vadd.f32 %v20895_v43, %v16600_v56  ;;  %v16602_v46 = vadd.f32 %v11827_v29, %v6613_v32 }
 0x592   : > { %v15915_v11 = vpop.f32.mrb[112].mxu1  ;;  %v12189_v62 = vadd.f32 %v20895_v43, %v16601_v14  ;;  %v12324_v0 = vmax.f32 %v12188_v57, 0.0 }
 0x593   : > { %v6626_v48 = vpop.f32.mrb[113].mxu1  ;;  %v12187_v55 = vadd.f32 %v20895_v43, %v16602_v46  ;;  %v12322_v52 = vmax.f32 %v12186_v31, 0.0 }
 0x594   : > { %v15916_v19 = vpop.f32.mrb[114].mxu1  ;;  %v12325_v38 = vmax.f32 %v12189_v62, 0.0 }
 0x595   : > { %v6629_v10 = vpop.f32.mrb[115].mxu1  ;;  %v12323_v8 = vmax.f32 %v12187_v55, 0.0  ;;  %v16467_v23 = vpop.f32.mrb[112].mxu0 }
 0x596   : > { %v14497_v25 = vpack.c.bf16 %v12325_v38, %v12324_v0  ;;  %v16603_v47 = vadd.f32 %v16467_v23, %v15915_v11  ;;  %v11840_v1 = vpop.f32.mrb[113].mxu0 }
 0x597   : > { %v14492_v18 = vpack.c.bf16 %v12323_v8, %v12322_v52  ;;  %v16604_v3 = vadd.f32 %v11840_v1, %v6626_v48  ;;  %v16468_v53 = vpop.f32.mrb[114].mxu0 }
 0x598   : > { %14613 = vst [vmem:[%s20658_s6 + $0x1b8] sm:$0xff] %v14497_v25   ;;  %v12192_v33 = vadd.f32 %v20895_v43, %v16603_v47  ;;  %v16605_v24 = vadd.f32 %v16468_v53, %v15916_v19  ;;  %v11843_v15 = vpop.f32.mrb[115].mxu0 }
 0x599   : > { %14612 = vst [vmem:[%s20658_s6 + $0x1b0] sm:$0xff] %v14492_v18   ;;  %v12190_v54 = vadd.f32 %v20895_v43, %v16604_v3  ;;  %v16606_v49 = vadd.f32 %v11843_v15, %v6629_v10 }
 0x59a   : > { %v15919_v20 = vpop.f32.mrb[116].mxu1  ;;  %v12193_v7 = vadd.f32 %v20895_v43, %v16605_v24  ;;  %v12328_v37 = vmax.f32 %v12192_v33, 0.0 }
 0x59b   : > { %v6642_v9 = vpop.f32.mrb[117].mxu1  ;;  %v12191_v42 = vadd.f32 %v20895_v43, %v16606_v49  ;;  %v12326_v13 = vmax.f32 %v12190_v54, 0.0 }
 0x59c   : > { %v15920_v60 = vpop.f32.mrb[118].mxu1  ;;  %v12329_v26 = vmax.f32 %v12193_v7, 0.0 }
 0x59d   : > { %v6645_v36 = vpop.f32.mrb[119].mxu1  ;;  %v12327_v16 = vmax.f32 %v12191_v42, 0.0  ;;  %v16471_v51 = vpop.f32.mrb[116].mxu0 }
 0x59e   : > { %v14507_v27 = vpack.c.bf16 %v12329_v26, %v12328_v37  ;;  %v16607_v34 = vadd.f32 %v16471_v51, %v15919_v20  ;;  %v11856_v12 = vpop.f32.mrb[117].mxu0 }
 0x59f   : > { %v14502_v35 = vpack.c.bf16 %v12327_v16, %v12326_v13  ;;  %v16608_v30 = vadd.f32 %v11856_v12, %v6642_v9  ;;  %v16472_v50 = vpop.f32.mrb[118].mxu0 }
 0x5a0   : > { %14615 = vst [vmem:[%s20658_s6 + $0x1c8] sm:$0xff] %v14507_v27   ;;  %v12196_v41 = vadd.f32 %v20895_v43, %v16607_v34  ;;  %v16609_v59 = vadd.f32 %v16472_v50, %v15920_v60  ;;  %v11859_v58 = vpop.f32.mrb[119].mxu0 }
 0x5a1   : > { %14614 = vst [vmem:[%s20658_s6 + $0x1c0] sm:$0xff] %v14502_v35   ;;  %v12194_v21 = vadd.f32 %v20895_v43, %v16608_v30  ;;  %v16610_v4 = vadd.f32 %v11859_v58, %v6645_v36 }
 0x5a2   : > { %v15923_v6 = vpop.f32.mrb[120].mxu1  ;;  %v12197_v32 = vadd.f32 %v20895_v43, %v16609_v59  ;;  %v12332_v22 = vmax.f32 %v12196_v41, 0.0 }
 0x5a3   : > { %v6658_v2 = vpop.f32.mrb[121].mxu1  ;;  %v12195_v40 = vadd.f32 %v20895_v43, %v16610_v4  ;;  %v12330_v39 = vmax.f32 %v12194_v21, 0.0 }
 0x5a4   : > { %v15924_v5 = vpop.f32.mrb[122].mxu1  ;;  %v12333_v45 = vmax.f32 %v12197_v32, 0.0 }
 0x5a5   : > { %v6661_v17 = vpop.f32.mrb[123].mxu1  ;;  %v12331_v63 = vmax.f32 %v12195_v40, 0.0  ;;  %v16475_v44 = vpop.f32.mrb[120].mxu0 }
 0x5a6   : > { %v14517_v61 = vpack.c.bf16 %v12333_v45, %v12332_v22  ;;  %v16611_v56 = vadd.f32 %v16475_v44, %v15923_v6  ;;  %v11872_v28 = vpop.f32.mrb[121].mxu0 }
 0x5a7   : > { %v14512_v57 = vpack.c.bf16 %v12331_v63, %v12330_v39  ;;  %v16612_v14 = vadd.f32 %v11872_v28, %v6658_v2  ;;  %v16476_v29 = vpop.f32.mrb[122].mxu0 }
 0x5a8   : > { %14617 = vst [vmem:[%s20658_s6 + $0x1d8] sm:$0xff] %v14517_v61   ;;  %v12200_v11 = vadd.f32 %v20895_v43, %v16611_v56  ;;  %v16613_v31 = vadd.f32 %v16476_v29, %v15924_v5  ;;  %v11875_v46 = vpop.f32.mrb[123].mxu0 }
 0x5a9   : > { %14616 = vst [vmem:[%s20658_s6 + $0x1d0] sm:$0xff] %v14512_v57   ;;  %v12198_v62 = vadd.f32 %v20895_v43, %v16612_v14  ;;  %v16614_v19 = vadd.f32 %v11875_v46, %v6661_v17 }
 0x5aa   : > { %v15927_v48 = vpop.f32.mrb[124].mxu1  ;;  %v12201_v10 = vadd.f32 %v20895_v43, %v16613_v31  ;;  %v12336_v8 = vmax.f32 %v12200_v11, 0.0 }
 0x5ab   : > { %v6674_v55 = vpop.f32.mrb[125].mxu1  ;;  %v12199_v38 = vadd.f32 %v20895_v43, %v16614_v19  ;;  %v12334_v25 = vmax.f32 %v12198_v62, 0.0 }
 0x5ac   : > { %v15928_v0 = vpop.f32.mrb[126].mxu1  ;;  %v12337_v23 = vmax.f32 %v12201_v10, 0.0 }
 0x5ad   : > { %v6677_v52 = vpop.f32.mrb[127].mxu1  ;;  %v12335_v47 = vmax.f32 %v12199_v38, 0.0  ;;  %v16479_v1 = vpop.f32.mrb[124].mxu0 }
 0x5ae   : > { %v14527_v18 = vpack.c.bf16 %v12337_v23, %v12336_v8  ;;  %v16615_v3 = vadd.f32 %v16479_v1, %v15927_v48  ;;  %v11888_v53 = vpop.f32.mrb[125].mxu0 }
 0x5af   : > { %v14522_v33 = vpack.c.bf16 %v12335_v47, %v12334_v25  ;;  %v16616_v24 = vadd.f32 %v11888_v53, %v6674_v55  ;;  %v16480_v15 = vpop.f32.mrb[126].mxu0 }
 0x5b0   : > { %14619 = vst [vmem:[%s20658_s6 + $0x1e8] sm:$0xff] %v14527_v18   ;;  %v12204_v20 = vadd.f32 %v20895_v43, %v16615_v3  ;;  %v16617_v54 = vadd.f32 %v16480_v15, %v15928_v0  ;;  %v11891_v49 = vpop.f32.mrb[127].mxu0 }
 0x5b1   : > { %14618 = vst [vmem:[%s20658_s6 + $0x1e0] sm:$0xff] %v14522_v33   ;;  %v12202_v7 = vadd.f32 %v20895_v43, %v16616_v24  ;;  %v16618_v60 = vadd.f32 %v11891_v49, %v6677_v52 }
 0x5b2   : > { %v15931_v9 = vpop.f32.mrb[128].mxu1  ;;  %v12205_v36 = vadd.f32 %v20895_v43, %v16617_v54  ;;  %v12340_v16 = vmax.f32 %v12204_v20, 0.0 }
 0x5b3   : > { %v6690_v42 = vpop.f32.mrb[129].mxu1  ;;  %v12203_v26 = vadd.f32 %v20895_v43, %v16618_v60  ;;  %v12338_v27 = vmax.f32 %v12202_v7, 0.0 }
 0x5b4   : > { %v15932_v37 = vpop.f32.mrb[130].mxu1  ;;  %v12341_v51 = vmax.f32 %v12205_v36, 0.0 }
 0x5b5   : > { %v6693_v13 = vpop.f32.mrb[131].mxu1  ;;  %v12339_v34 = vmax.f32 %v12203_v26, 0.0  ;;  %v16483_v12 = vpop.f32.mrb[128].mxu0 }
 0x5b6   : > { %v14537_v35 = vpack.c.bf16 %v12341_v51, %v12340_v16  ;;  %v16619_v30 = vadd.f32 %v16483_v12, %v15931_v9  ;;  %v11904_v50 = vpop.f32.mrb[129].mxu0 }
 0x5b7   : > { %v14532_v41 = vpack.c.bf16 %v12339_v34, %v12338_v27  ;;  %v16620_v59 = vadd.f32 %v11904_v50, %v6690_v42  ;;  %v16484_v58 = vpop.f32.mrb[130].mxu0 }
 0x5b8   : > { %14621 = vst [vmem:[%s20658_s6 + $0x1f8] sm:$0xff] %v14537_v35   ;;  %v12208_v6 = vadd.f32 %v20895_v43, %v16619_v30  ;;  %v16621_v21 = vadd.f32 %v16484_v58, %v15932_v37  ;;  %v11907_v4 = vpop.f32.mrb[131].mxu0 }
 0x5b9   : > { %14620 = vst [vmem:[%s20658_s6 + $0x1f0] sm:$0xff] %v14532_v41   ;;  %v12206_v32 = vadd.f32 %v20895_v43, %v16620_v59  ;;  %v16622_v5 = vadd.f32 %v11907_v4, %v6693_v13 }
 0x5ba   : > { %v15935_v2 = vpop.f32.mrb[132].mxu1  ;;  %v12209_v17 = vadd.f32 %v20895_v43, %v16621_v21  ;;  %v12344_v63 = vmax.f32 %v12208_v6, 0.0 }
 0x5bb   : > { %v6706_v40 = vpop.f32.mrb[133].mxu1  ;;  %v12207_v45 = vadd.f32 %v20895_v43, %v16622_v5  ;;  %v12342_v61 = vmax.f32 %v12206_v32, 0.0 }
 0x5bc   : > { %v15936_v22 = vpop.f32.mrb[134].mxu1  ;;  %v12345_v44 = vmax.f32 %v12209_v17, 0.0 }
 0x5bd   : > { %v6709_v39 = vpop.f32.mrb[135].mxu1  ;;  %v12343_v56 = vmax.f32 %v12207_v45, 0.0  ;;  %v16487_v28 = vpop.f32.mrb[132].mxu0 }
 0x5be   : > { %v14547_v57 = vpack.c.bf16 %v12345_v44, %v12344_v63  ;;  %v16623_v14 = vadd.f32 %v16487_v28, %v15935_v2  ;;  %v11920_v29 = vpop.f32.mrb[133].mxu0 }
 0x5bf   : > { %v14542_v11 = vpack.c.bf16 %v12343_v56, %v12342_v61  ;;  %v16624_v31 = vadd.f32 %v11920_v29, %v6706_v40  ;;  %v16488_v46 = vpop.f32.mrb[134].mxu0 }
 0x5c0   : > { %14623 = vst [vmem:[%s20658_s6 + $0x208] sm:$0xff] %v14547_v57   ;;  %v12212_v48 = vadd.f32 %v20895_v43, %v16623_v14  ;;  %v16625_v62 = vadd.f32 %v16488_v46, %v15936_v22  ;;  %v11923_v19 = vpop.f32.mrb[135].mxu0 }
 0x5c1   : > { %14622 = vst [vmem:[%s20658_s6 + $0x200] sm:$0xff] %v14542_v11   ;;  %v12210_v55 = vadd.f32 %v20895_v43, %v16624_v31  ;;  %v16626_v10 = vadd.f32 %v11923_v19, %v6709_v39 }
 0x5c2   : > { %v12213_v0 = vadd.f32 %v20895_v43, %v16625_v62  ;;  %v12348_v52 = vmax.f32 %v12212_v48, 0.0 }
 0x5c3   : > { %v12211_v38 = vadd.f32 %v20895_v43, %v16626_v10  ;;  %v12346_v23 = vmax.f32 %v12210_v55, 0.0 }
 0x5c4   : > { %v12349_v8 = vmax.f32 %v12213_v0, 0.0 }
 0x5c5   : > { %v12347_v25 = vmax.f32 %v12211_v38, 0.0 }
 0x5c6   : > { %v14557_v47 = vpack.c.bf16 %v12349_v8, %v12348_v52 }
 0x5c7   : > { %v14552_v1 = vpack.c.bf16 %v12347_v25, %v12346_v23 }
 0x5c8   : > { %14625 = vst [vmem:[%s20658_s6 + $0x218] sm:$0xff] %v14557_v47  }
 0x5c9   : > { %14624 = vst [vmem:[%s20658_s6 + $0x210] sm:$0xff] %v14552_v1  }
 0x5ca   : > { %18142 = shalt.err (!%p18139_p3)
}
 0x5cb   : > { %s18143_s27 = scalar_lea.hbm %s20988_s19, 8704  ;;  %s18147_s30 = scalar_lea.hbm %s21040_s3, 34816 }
 0x5cc   : > { %p18144_p4 = scmp.ne.s32.totalorder %s20988_s19, %s18143_s27  ;;  %p18148_p9 = scmp.lt.u32.totalorder %s20988_s19, %s21040_s3 }
 0x5cd   : > { %p18149_p10 = scmp.lt.u32.totalorder %s18147_s30, %s18143_s27  ;;  %p18151_p12 = scmp.lt.u32.totalorder %s18143_s27, %s20988_s19 }
 0x5ce   : > { %p18145_p7 = pnand %p18144_p4, %p18255_p5 }
 0x5cf   : > { %p18150_p11 = por %p18149_p10, %p18148_p9 }
 0x5d0   : > { %p18146_p8 = pneg %p18145_p7 }
 0x5d1   : > { %p18152_p13 = por %p18151_p12, %p18150_p11 }
 0x5d3   : > { %p18153_p0 = pnand %p18152_p13, %p18146_p8 }
 0x5d5   : > { %18156 = shalt.err (!%p18153_p0)
}
 0x5d6   : > { %s18195_s6 = smov 64   ;;  %s18196_s7 = smov 4  }
 0x5d7   : > { %17582 = dma.vmem_to_hbm [thread:$0]  (%p18255_p5), %s20990_s10, 8704, %s20988_s19, %s20996_s16, %s18195_s6, %s18195_s6, %s18196_s7  }
 0x5d8 PF: > { %p17588_p1 = scmp.ge.s32.totalorder %s18191_s15, 2  ;;  %s13059_s8 = sand.u32 1, %s18179_s12  }
 0x5d9   : > { %s13060_s9 = scalar_lea.sflag [#allocation3], %s13059_s8 }
 0x5da   : > { %p17585_p2 = pnand %p17588_p1, %p18259_p6 }
 0x5dc   : > { %18174 = dma.done.wait (!%p17585_p2), %s13060_s9, 8704  }
 0x5dd   : > { %18176 = vsyncadd (!%p17585_p2), %s13060_s9, 4294958592  ;;  %p13_p3 = scmp.ge.s32.totalorder %s18242_s18, 6   ;;  %s21242_s12 = smov %s18183_s13 }
 0x5de   : > { %s21243_s13 = smov %s18187_s14  ;;  %s21244_s14 = smov %s18253_s21 }
 0x5df   : > { %s21245_s15 = smov %s18242_s18  ;;  %15 = sbr.rel (!%p13_p3) target bundleno = 3 (0x3), region = 75 }
 0x5e6   :  { %13065 = vsyncpa [#allocation3], 1 }
 0x5e7   :  { %13067 = vsyncpa [#allocation3 + $0x1], 1 }

</bundles_post_ra>
